<compile_context>
chip_gen: v7x
topology: tpu7x:2x2x1
jax: 0.10.0
libtpu: 0.0.40
codegen_flags: <defaults>
</compile_context>

<pallas_src>
import functools

import jax
import jax.numpy as jnp
from jax.experimental import pallas as pl
from jax.experimental.pallas import tpu as pltpu


def _round_up(x, m):
    return ((x + m - 1) // m) * m


# ----------------------------------------------------------------------------
# Fused kernel: conv (all filter sizes) + ReLU + max-pool + final Linear
# ----------------------------------------------------------------------------
def fused_cnn_kernel(x_ref, wcat_ref, bcat_ref, ow_ref, ob_ref, o_ref,
                     y_ref, pooled_ref, *, filter_sizes, cp):
    # x_ref     : (TB, S, E)              bf16  -- batch block of embedded tokens
    # wcat_ref  : (E, sum(ks)*CP)         bf16  -- conv taps, each lane-padded to CP
    # bcat_ref  : (1, nF*CP)              f32   -- conv biases (lane-padded)
    # ow_ref    : (nF*CP, OP)             f32   -- final Linear weight (padded)
    # ob_ref    : (1, OP)                 f32   -- final Linear bias (padded)
    # o_ref     : (TB, OP)                f32   -- lane-dense padded logits
    # y_ref     : (TB, S, max_ks*CP)      f32   -- VMEM scratch, reused per filter
    # pooled_ref: (TB, nF*CP)             f32   -- VMEM scratch for pooled features
    TB, S, E = x_ref.shape
    CP = cp

    # (TB, S, E) -> (TB*S, E): leading-dim merge, free because S % 8 == 0.
    x2 = x_ref[...].reshape(TB * S, E)

    col = 0
    for f, ks in enumerate(filter_sizes):          # short static loops
        L = S - ks + 1
        # 1) One MXU matmul per tap, streamed straight into the VMEM scratch
        #    (every column slice is a static, 128-lane-aligned block).
        for k in range(ks):
            tap = jnp.dot(x2, wcat_ref[:, col + k * CP: col + (k + 1) * CP],
                          preferred_element_type=jnp.float32)      # (TB*S, CP)
            y_ref[:, :, k * CP:(k + 1) * CP] = tap.reshape(TB, S, CP)
        # 2) Recombine taps with time-shifted adds, accumulating in place in
        #    the scratch (bounds vreg live ranges; VPU work only).
        for k in range(1, ks):
            y_ref[:, 0:L, 0:CP] = (
                y_ref[:, 0:L, 0:CP]
                + y_ref[:, k:k + L, k * CP:(k + 1) * CP])
        # 3) Max-pool over time, then bias + ReLU (hoisting past the max is
        #    exact: bias is constant over t and ReLU is monotone).
        m = jnp.max(y_ref[:, 0:L, 0:CP], axis=1)                   # (TB, CP)
        pooled_ref[:, f * CP:(f + 1) * CP] = jnp.maximum(
            m + bcat_ref[:, f * CP:(f + 1) * CP], 0.0)
        col += ks * CP

    # 4) Single fused Linear epilogue on the lane-dense pooled buffer.
    o_ref[...] = (jnp.dot(pooled_ref[...], ow_ref[...],
                          preferred_element_type=jnp.float32)
                  + ob_ref[...])


def fused_cnn(embedded, wcat, bcat, out_w, out_b, filter_sizes, block_b,
              vmem_limit_bytes):
    """embedded: (Bp, S, E) bf16, Bp % block_b == 0 -> padded logits (Bp, OP) f32."""
    Bp, S, E = embedded.shape
    nF = len(filter_sizes)
    ntaps = sum(filter_sizes)
    max_ks = max(filter_sizes)
    totc = wcat.shape[1]
    CP = totc // ntaps
    OP = out_w.shape[1]

    kernel = functools.partial(fused_cnn_kernel,
                               filter_sizes=tuple(filter_sizes), cp=CP)
    return pl.pallas_call(
        kernel,
        out_shape=jax.ShapeDtypeStruct((Bp, OP), jnp.float32),
        grid_spec=pltpu.PrefetchScalarGridSpec(
            num_scalar_prefetch=0,
            grid=(Bp // block_b,),
            in_specs=[
                pl.BlockSpec((block_b, S, E), lambda i: (i, 0, 0)),
                pl.BlockSpec((E, totc), lambda i: (0, 0)),
                pl.BlockSpec((1, nF * CP), lambda i: (0, 0)),
                pl.BlockSpec((nF * CP, OP), lambda i: (0, 0)),
                pl.BlockSpec((1, OP), lambda i: (0, 0)),
            ],
            out_specs=pl.BlockSpec((block_b, OP), lambda i: (i, 0)),
            scratch_shapes=[
                pltpu.VMEM((block_b, S, max_ks * CP), jnp.float32),  # conv taps
                pltpu.VMEM((block_b, nF * CP), jnp.float32),         # pooled cat
            ]),
        compiler_params=pltpu.CompilerParams(
            dimension_semantics=("parallel",),
            vmem_limit_bytes=vmem_limit_bytes),
    )(embedded, wcat, bcat, out_w, out_b)


# ----------------------------------------------------------------------------
# Full forward pass
# ----------------------------------------------------------------------------
def cnn_forward(X, params, filter_sizes, *, batch_tile=128):
    emb_table = params["embedding"]
    E = emb_table.shape[1]
    C = E                      # out_channels == embedding_dim in this model
    B, S = X.shape
    nF = len(filter_sizes)
    max_ks = max(filter_sizes)
    ntaps = sum(filter_sizes)
    O = params["out_w"].shape[1]
    assert S >= max_ks, "seq_len must be >= max(filter_sizes)"
    assert S % 8 == 0, "seq_len must be sublane-aligned for the in-kernel reshape"

    CP = _round_up(C, 128)               # lane-pad each tap's output channels
    OP = _round_up(max(O, 128), 128)     # lane-dense (padded) logits
    totc = ntaps * CP

    # Embedding lookup (gather) -- plain-JAX glue; activations cast to bf16.
    # TODO(synk): optionally fuse the gather into the kernel (scalar-prefetched
    # token ids + per-row DMA from the HBM table) if the activation HBM stream
    # dominates at production batch sizes.
    embedded = jnp.take(emb_table, X, axis=0).astype(jnp.bfloat16)   # (B, S, E)

    # ---- batch tile selection with an explicit VMEM budget -------------------
    TB = max(8, min(_round_up(batch_tile, 8), _round_up(B, 8)))

    def vmem_est(tb):
        x_blk = 2 * tb * S * E * 2                         # double-buffered input
        o_blk = 2 * tb * OP * 4                            # double-buffered output
        w_blk = 2 * (E * totc * 2 + nF * CP * 4 + nF * CP * OP * 4 + OP * 4)
        y_scr = tb * S * max_ks * CP * 4                   # conv-tap scratch
        p_scr = tb * nF * CP * 4                           # pooled scratch
        return x_blk + o_blk + w_blk + y_scr + p_scr

    # Keep compute buffers comfortably under the v7x 64 MiB/TC VMEM.
    while TB > 8 and vmem_est(TB) > (40 << 20):
        TB = max(8, _round_up(TB // 2, 8))
    # Keep >= 2 grid steps so the "parallel" batch axis feeds both v7x TCs.
    while TB > 8 and (B + TB - 1) // TB < 2:
        TB = max(8, _round_up(TB // 2, 8))

    Bp = TB * ((B + TB - 1) // TB)
    if Bp != B:
        embedded = jnp.pad(embedded, ((0, Bp - B), (0, 0), (0, 0)))

    vmem_limit = int(min(max(vmem_est(TB) + (8 << 20), 32 << 20), 56 << 20))

    # ---- weight packing: taps stacked on the out-channel axis, lane-padded ---
    wcols, bcols, owblocks = [], [], []
    for f, ks in enumerate(filter_sizes):
        w = params["conv_w"][f]                                   # (ks, E, C)
        for k in range(ks):
            wcols.append(jnp.pad(w[k], ((0, 0), (0, CP - C))))    # (E, CP)
        bcols.append(jnp.pad(params["conv_b"][f], (0, CP - C)))   # (CP,)
        owblocks.append(jnp.pad(params["out_w"][f * C:(f + 1) * C, :],
                                ((0, CP - C), (0, OP - O))))      # (CP, OP)
    wcat = jnp.concatenate(wcols, axis=1).astype(jnp.bfloat16)    # (E, ntaps*CP)
    bcat = jnp.concatenate(bcols)[None, :]                        # (1, nF*CP)
    ow = jnp.concatenate(owblocks, axis=0)                        # (nF*CP, OP)
    ob = jnp.pad(params["out_b"], ((0, 0), (0, OP - O)))          # (1, OP)

    # TODO(synk): dropout is identity in eval mode; training-mode RNG dropout not implemented.
    logits = fused_cnn(embedded, wcat, bcat, ow, ob, filter_sizes, TB,
                       vmem_limit)                                # (Bp, OP)
    return logits[:B, :O]


# ----------------------------------------------------------------------------
# Pure-JAX reference (PyTorch op order) for correctness checking
# ----------------------------------------------------------------------------
def cnn_reference(X, params, filter_sizes):
    hp = jax.lax.Precision.HIGHEST
    emb = jnp.take(params["embedding"], X, axis=0)
    emb = emb.astype(jnp.bfloat16).astype(jnp.float32)     # match kernel's bf16 inputs
    pooled = []
    for f, ks in enumerate(filter_sizes):
        w = params["conv_w"][f].astype(jnp.bfloat16).astype(jnp.float32)   # (ks, E, C)
        L = emb.shape[1] - ks + 1
        conv = params["conv_b"][f][None, None, :]
        for k in range(ks):
            conv = conv + jnp.einsum("ble,ec->blc", emb[:, k:k + L, :], w[k],
                                     precision=hp)
        conv = jax.nn.relu(conv)                   # bias + ReLU before pool (PyTorch order)
        pooled.append(jnp.max(conv, axis=1))
    cat = jnp.concatenate(pooled, axis=1)
    return jnp.dot(cat, params["out_w"], precision=hp) + params["out_b"]


# ----------------------------------------------------------------------------
# Parameter init (stand-in for the pre-trained embedding / torch init)
# ----------------------------------------------------------------------------
def init_params(key, vocab_size, embedding_dim, filter_sizes, output_dim):
    keys = jax.random.split(key, 2 + 2 * len(filter_sizes) + 2)
    params = {}
    params["embedding"] = jax.random.normal(
        keys[0], (vocab_size, embedding_dim), jnp.float32) * 0.1

    conv_w, conv_b = [], []
    for i, ks in enumerate(filter_sizes):
        # PyTorch conv weight is (C_out=E, 1, ks, E); stored here as (ks, E_in, C_out).
        w_pt = jax.random.normal(
            keys[1 + 2 * i], (embedding_dim, 1, ks, embedding_dim),
            jnp.float32) * 0.05
        conv_w.append(jnp.transpose(w_pt[:, 0, :, :], (1, 2, 0)))   # (ks, E, C)
        conv_b.append(jax.random.normal(
            keys[2 + 2 * i], (embedding_dim,), jnp.float32) * 0.01)
    params["conv_w"] = conv_w
    params["conv_b"] = conv_b

    F = len(filter_sizes) * embedding_dim
    # PyTorch Linear weight is (output_dim, F); stored transposed as (F, output_dim).
    params["out_w"] = jax.random.normal(
        keys[-2], (F, output_dim), jnp.float32) * 0.05
    params["out_b"] = jax.random.normal(
        keys[-1], (1, output_dim), jnp.float32) * 0.01
    return params


if __name__ == "__main__":
    # Small shapes consistent with the module.  batch=64 with the default
    # batch_tile exercises the adaptive tiling (clamped to TB=32 so the
    # parallel batch grid has 2 steps; M = TB*S = 512, a multiple of 256).
    batch = 64
    seq_len = 16
    embedding_dim = 32
    vocab_size = 50
    filter_sizes = (2, 3, 4)
    output_dim = 2

    key = jax.random.PRNGKey(0)
    k_params, k_tokens = jax.random.split(key)

    params = init_params(k_params, vocab_size, embedding_dim,
                         filter_sizes, output_dim)
    X = jax.random.randint(k_tokens, (batch, seq_len), 0, vocab_size,
                           dtype=jnp.int32)

    logits = cnn_forward(X, params, filter_sizes)
    jax.block_until_ready(logits)

    assert logits.shape == (batch, output_dim)
    assert logits.dtype == jnp.float32

    ref = cnn_reference(X, params, filter_sizes)
    max_err = float(jnp.max(jnp.abs(logits - ref)))
    assert jnp.allclose(logits, ref, atol=1e-3, rtol=1e-3), max_err

    print("KERNEL_OK")
</pallas_src>

<mosaic_0001>
module attributes {stable_mosaic.version = 11 : i64} {
  func.func @fused_cnn_kernel(%arg0: i32, %arg1: memref<32x16x32xbf16, #tpu.memory_space<vmem>>, %arg2: memref<32x1152xbf16, #tpu.memory_space<vmem>>, %arg3: memref<1x384xf32, #tpu.memory_space<vmem>>, %arg4: memref<384x128xf32, #tpu.memory_space<vmem>>, %arg5: memref<1x128xf32, #tpu.memory_space<vmem>>, %arg6: memref<32x128xf32, #tpu.memory_space<vmem>>, %arg7: memref<32x16x512xf32, #tpu.memory_space<vmem>>, %arg8: memref<32x384xf32, #tpu.memory_space<vmem>>) attributes {dimension_semantics = [#tpu.dimension_semantics<parallel>], iteration_bounds = array<i64: 2>, scalar_prefetch = 0 : i64, scratch_operands = 2 : i64, tpu.core_type = #tpu.core_type<tc>, window_params = [{transform_indices = @transform_0, window_bounds = array<i64: 32, 16, 32>}, {pipeline_mode = #tpu.pipeline_mode<synchronous>, transform_indices = @transform_1, window_bounds = array<i64: 32, 1152>}, {pipeline_mode = #tpu.pipeline_mode<synchronous>, transform_indices = @transform_2, window_bounds = array<i64: 1, 384>}, {pipeline_mode = #tpu.pipeline_mode<synchronous>, transform_indices = @transform_3, window_bounds = array<i64: 384, 128>}, {pipeline_mode = #tpu.pipeline_mode<synchronous>, transform_indices = @transform_4, window_bounds = array<i64: 1, 128>}, {transform_indices = @transform_5, window_bounds = array<i64: 32, 128>}]} {
    %c0 = arith.constant 0 : index
    %c0_0 = arith.constant 0 : index
    %c0_1 = arith.constant 0 : index
    %0 = vector.load %arg1[%c0, %c0_0, %c0_1] : memref<32x16x32xbf16, #tpu.memory_space<vmem>>, vector<32x16x32xbf16>
    %1 = vector.shape_cast %0 : vector<32x16x32xbf16> to vector<512x32xbf16>
    %c0_2 = arith.constant 0 : index
    %c0_3 = arith.constant 0 : index
    %2 = vector.load %arg2[%c0_2, %c0_3] : memref<32x1152xbf16, #tpu.memory_space<vmem>>, vector<32x128xbf16>
    %cst = arith.constant dense<0.000000e+00> : vector<512x128xf32>
    %3 = tpu.matmul %1, %2, %cst {dimension_numbers = #tpu.dot_dimension_numbers<[1], [0], [0], [1], [0, 0, 1, 1], [], []>} : vector<512x32xbf16>, vector<32x128xbf16>, vector<512x128xf32> -> vector<512x128xf32>
    %4 = vector.shape_cast %3 : vector<512x128xf32> to vector<32x16x128xf32>
    %c0_4 = arith.constant 0 : index
    %c0_5 = arith.constant 0 : index
    %c0_6 = arith.constant 0 : index
    %5 = vector.load %arg7[%c0_4, %c0_5, %c0_6] : memref<32x16x512xf32, #tpu.memory_space<vmem>>, vector<32x16x128xf32>
    tpu.vector_store %arg7[%c0_4, %c0_5, %c0_6], %4 {strides = array<i32>} : memref<32x16x512xf32, #tpu.memory_space<vmem>>, vector<32x16x128xf32>,
    %c0_7 = arith.constant 0 : index
    %c128 = arith.constant 128 : index
    %6 = vector.load %arg2[%c0_7, %c128] : memref<32x1152xbf16, #tpu.memory_space<vmem>>, vector<32x128xbf16>
    %cst_8 = arith.constant dense<0.000000e+00> : vector<512x128xf32>
    %7 = tpu.matmul %1, %6, %cst_8 {dimension_numbers = #tpu.dot_dimension_numbers<[1], [0], [0], [1], [0, 0, 1, 1], [], []>} : vector<512x32xbf16>, vector<32x128xbf16>, vector<512x128xf32> -> vector<512x128xf32>
    %8 = vector.shape_cast %7 : vector<512x128xf32> to vector<32x16x128xf32>
    %c0_9 = arith.constant 0 : index
    %c0_10 = arith.constant 0 : index
    %c128_11 = arith.constant 128 : index
    %9 = vector.load %arg7[%c0_9, %c0_10, %c128_11] : memref<32x16x512xf32, #tpu.memory_space<vmem>>, vector<32x16x128xf32>
    tpu.vector_store %arg7[%c0_9, %c0_10, %c128_11], %8 {strides = array<i32>} : memref<32x16x512xf32, #tpu.memory_space<vmem>>, vector<32x16x128xf32>,
    %c0_12 = arith.constant 0 : index
    %c0_13 = arith.constant 0 : index
    %c0_14 = arith.constant 0 : index
    %10 = vector.load %arg7[%c0_12, %c0_13, %c0_14] : memref<32x16x512xf32, #tpu.memory_space<vmem>>, vector<32x15x128xf32>
    %c0_15 = arith.constant 0 : index
    %c1 = arith.constant 1 : index
    %c128_16 = arith.constant 128 : index
    %11 = vector.load %arg7[%c0_15, %c1, %c128_16] : memref<32x16x512xf32, #tpu.memory_space<vmem>>, vector<32x15x128xf32>
    %12 = arith.addf %10, %11 : vector<32x15x128xf32>
    %c0_17 = arith.constant 0 : index
    %c0_18 = arith.constant 0 : index
    %c0_19 = arith.constant 0 : index
    %13 = vector.load %arg7[%c0_17, %c0_18, %c0_19] : memref<32x16x512xf32, #tpu.memory_space<vmem>>, vector<32x15x128xf32>
    tpu.vector_store %arg7[%c0_17, %c0_18, %c0_19], %12 {strides = array<i32>} : memref<32x16x512xf32, #tpu.memory_space<vmem>>, vector<32x15x128xf32>,
    %c0_20 = arith.constant 0 : index
    %c0_21 = arith.constant 0 : index
    %c0_22 = arith.constant 0 : index
    %14 = vector.load %arg7[%c0_20, %c0_21, %c0_22] : memref<32x16x512xf32, #tpu.memory_space<vmem>>, vector<32x15x128xf32>
    %cst_23 = arith.constant dense<0xFF800000> : vector<32x128xf32>
    %15 = vector.multi_reduction <maximumf>, %14, %cst_23 [1] : vector<32x15x128xf32> to vector<32x128xf32>
    %c0_24 = arith.constant 0 : index
    %c0_25 = arith.constant 0 : index
    %16 = vector.load %arg3[%c0_24, %c0_25] : memref<1x384xf32, #tpu.memory_space<vmem>>, vector<1x128xf32>
    %17 = vector.broadcast %16 : vector<1x128xf32> to vector<32x128xf32>
    %18 = arith.addf %15, %17 : vector<32x128xf32>
    %cst_26 = arith.constant 0.000000e+00 : f32
    %19 = vector.broadcast %cst_26 : f32 to vector<32x128xf32>
    %20 = arith.maximumf %18, %19 : vector<32x128xf32>
    %c0_27 = arith.constant 0 : index
    %c0_28 = arith.constant 0 : index
    %21 = vector.load %arg8[%c0_27, %c0_28] : memref<32x384xf32, #tpu.memory_space<vmem>>, vector<32x128xf32>
    tpu.vector_store %arg8[%c0_27, %c0_28], %20 {strides = array<i32>} : memref<32x384xf32, #tpu.memory_space<vmem>>, vector<32x128xf32>,
    %c0_29 = arith.constant 0 : index
    %c256 = arith.constant 256 : index
    %22 = vector.load %arg2[%c0_29, %c256] : memref<32x1152xbf16, #tpu.memory_space<vmem>>, vector<32x128xbf16>
    %cst_30 = arith.constant dense<0.000000e+00> : vector<512x128xf32>
    %23 = tpu.matmul %1, %22, %cst_30 {dimension_numbers = #tpu.dot_dimension_numbers<[1], [0], [0], [1], [0, 0, 1, 1], [], []>} : vector<512x32xbf16>, vector<32x128xbf16>, vector<512x128xf32> -> vector<512x128xf32>
    %24 = vector.shape_cast %23 : vector<512x128xf32> to vector<32x16x128xf32>
    %c0_31 = arith.constant 0 : index
    %c0_32 = arith.constant 0 : index
    %c0_33 = arith.constant 0 : index
    %25 = vector.load %arg7[%c0_31, %c0_32, %c0_33] : memref<32x16x512xf32, #tpu.memory_space<vmem>>, vector<32x16x128xf32>
    tpu.vector_store %arg7[%c0_31, %c0_32, %c0_33], %24 {strides = array<i32>} : memref<32x16x512xf32, #tpu.memory_space<vmem>>, vector<32x16x128xf32>,
    %c0_34 = arith.constant 0 : index
    %c384 = arith.constant 384 : index
    %26 = vector.load %arg2[%c0_34, %c384] : memref<32x1152xbf16, #tpu.memory_space<vmem>>, vector<32x128xbf16>
    %cst_35 = arith.constant dense<0.000000e+00> : vector<512x128xf32>
    %27 = tpu.matmul %1, %26, %cst_35 {dimension_numbers = #tpu.dot_dimension_numbers<[1], [0], [0], [1], [0, 0, 1, 1], [], []>} : vector<512x32xbf16>, vector<32x128xbf16>, vector<512x128xf32> -> vector<512x128xf32>
    %28 = vector.shape_cast %27 : vector<512x128xf32> to vector<32x16x128xf32>
    %c0_36 = arith.constant 0 : index
    %c0_37 = arith.constant 0 : index
    %c128_38 = arith.constant 128 : index
    %29 = vector.load %arg7[%c0_36, %c0_37, %c128_38] : memref<32x16x512xf32, #tpu.memory_space<vmem>>, vector<32x16x128xf32>
    tpu.vector_store %arg7[%c0_36, %c0_37, %c128_38], %28 {strides = array<i32>} : memref<32x16x512xf32, #tpu.memory_space<vmem>>, vector<32x16x128xf32>,
    %c0_39 = arith.constant 0 : index
    %c512 = arith.constant 512 : index
    %30 = vector.load %arg2[%c0_39, %c512] : memref<32x1152xbf16, #tpu.memory_space<vmem>>, vector<32x128xbf16>
    %cst_40 = arith.constant dense<0.000000e+00> : vector<512x128xf32>
    %31 = tpu.matmul %1, %30, %cst_40 {dimension_numbers = #tpu.dot_dimension_numbers<[1], [0], [0], [1], [0, 0, 1, 1], [], []>} : vector<512x32xbf16>, vector<32x128xbf16>, vector<512x128xf32> -> vector<512x128xf32>
    %32 = vector.shape_cast %31 : vector<512x128xf32> to vector<32x16x128xf32>
    %c0_41 = arith.constant 0 : index
    %c0_42 = arith.constant 0 : index
    %c256_43 = arith.constant 256 : index
    %33 = vector.load %arg7[%c0_41, %c0_42, %c256_43] : memref<32x16x512xf32, #tpu.memory_space<vmem>>, vector<32x16x128xf32>
    tpu.vector_store %arg7[%c0_41, %c0_42, %c256_43], %32 {strides = array<i32>} : memref<32x16x512xf32, #tpu.memory_space<vmem>>, vector<32x16x128xf32>,
    %c0_44 = arith.constant 0 : index
    %c0_45 = arith.constant 0 : index
    %c0_46 = arith.constant 0 : index
    %34 = vector.load %arg7[%c0_44, %c0_45, %c0_46] : memref<32x16x512xf32, #tpu.memory_space<vmem>>, vector<32x14x128xf32>
    %c0_47 = arith.constant 0 : index
    %c1_48 = arith.constant 1 : index
    %c128_49 = arith.constant 128 : index
    %35 = vector.load %arg7[%c0_47, %c1_48, %c128_49] : memref<32x16x512xf32, #tpu.memory_space<vmem>>, vector<32x14x128xf32>
    %36 = arith.addf %34, %35 : vector<32x14x128xf32>
    %c0_50 = arith.constant 0 : index
    %c0_51 = arith.constant 0 : index
    %c0_52 = arith.constant 0 : index
    %37 = vector.load %arg7[%c0_50, %c0_51, %c0_52] : memref<32x16x512xf32, #tpu.memory_space<vmem>>, vector<32x14x128xf32>
    tpu.vector_store %arg7[%c0_50, %c0_51, %c0_52], %36 {strides = array<i32>} : memref<32x16x512xf32, #tpu.memory_space<vmem>>, vector<32x14x128xf32>,
    %c0_53 = arith.constant 0 : index
    %c0_54 = arith.constant 0 : index
    %c0_55 = arith.constant 0 : index
    %38 = vector.load %arg7[%c0_53, %c0_54, %c0_55] : memref<32x16x512xf32, #tpu.memory_space<vmem>>, vector<32x14x128xf32>
    %c0_56 = arith.constant 0 : index
    %c2 = arith.constant 2 : index
    %c256_57 = arith.constant 256 : index
    %39 = vector.load %arg7[%c0_56, %c2, %c256_57] : memref<32x16x512xf32, #tpu.memory_space<vmem>>, vector<32x14x128xf32>
    %40 = arith.addf %38, %39 : vector<32x14x128xf32>
    %c0_58 = arith.constant 0 : index
    %c0_59 = arith.constant 0 : index
    %c0_60 = arith.constant 0 : index
    %41 = vector.load %arg7[%c0_58, %c0_59, %c0_60] : memref<32x16x512xf32, #tpu.memory_space<vmem>>, vector<32x14x128xf32>
    tpu.vector_store %arg7[%c0_58, %c0_59, %c0_60], %40 {strides = array<i32>} : memref<32x16x512xf32, #tpu.memory_space<vmem>>, vector<32x14x128xf32>,
    %c0_61 = arith.constant 0 : index
    %c0_62 = arith.constant 0 : index
    %c0_63 = arith.constant 0 : index
    %42 = vector.load %arg7[%c0_61, %c0_62, %c0_63] : memref<32x16x512xf32, #tpu.memory_space<vmem>>, vector<32x14x128xf32>
    %cst_64 = arith.constant dense<0xFF800000> : vector<32x128xf32>
    %43 = vector.multi_reduction <maximumf>, %42, %cst_64 [1] : vector<32x14x128xf32> to vector<32x128xf32>
    %c0_65 = arith.constant 0 : index
    %c128_66 = arith.constant 128 : index
    %44 = vector.load %arg3[%c0_65, %c128_66] : memref<1x384xf32, #tpu.memory_space<vmem>>, vector<1x128xf32>
    %45 = vector.broadcast %44 : vector<1x128xf32> to vector<32x128xf32>
    %46 = arith.addf %43, %45 : vector<32x128xf32>
    %cst_67 = arith.constant 0.000000e+00 : f32
    %47 = vector.broadcast %cst_67 : f32 to vector<32x128xf32>
    %48 = arith.maximumf %46, %47 : vector<32x128xf32>
    %c0_68 = arith.constant 0 : index
    %c128_69 = arith.constant 128 : index
    %49 = vector.load %arg8[%c0_68, %c128_69] : memref<32x384xf32, #tpu.memory_space<vmem>>, vector<32x128xf32>
    tpu.vector_store %arg8[%c0_68, %c128_69], %48 {strides = array<i32>} : memref<32x384xf32, #tpu.memory_space<vmem>>, vector<32x128xf32>,
    %c0_70 = arith.constant 0 : index
    %c640 = arith.constant 640 : index
    %50 = vector.load %arg2[%c0_70, %c640] : memref<32x1152xbf16, #tpu.memory_space<vmem>>, vector<32x128xbf16>
    %cst_71 = arith.constant dense<0.000000e+00> : vector<512x128xf32>
    %51 = tpu.matmul %1, %50, %cst_71 {dimension_numbers = #tpu.dot_dimension_numbers<[1], [0], [0], [1], [0, 0, 1, 1], [], []>} : vector<512x32xbf16>, vector<32x128xbf16>, vector<512x128xf32> -> vector<512x128xf32>
    %52 = vector.shape_cast %51 : vector<512x128xf32> to vector<32x16x128xf32>
    %c0_72 = arith.constant 0 : index
    %c0_73 = arith.constant 0 : index
    %c0_74 = arith.constant 0 : index
    %53 = vector.load %arg7[%c0_72, %c0_73, %c0_74] : memref<32x16x512xf32, #tpu.memory_space<vmem>>, vector<32x16x128xf32>
    tpu.vector_store %arg7[%c0_72, %c0_73, %c0_74], %52 {strides = array<i32>} : memref<32x16x512xf32, #tpu.memory_space<vmem>>, vector<32x16x128xf32>,
    %c0_75 = arith.constant 0 : index
    %c768 = arith.constant 768 : index
    %54 = vector.load %arg2[%c0_75, %c768] : memref<32x1152xbf16, #tpu.memory_space<vmem>>, vector<32x128xbf16>
    %cst_76 = arith.constant dense<0.000000e+00> : vector<512x128xf32>
    %55 = tpu.matmul %1, %54, %cst_76 {dimension_numbers = #tpu.dot_dimension_numbers<[1], [0], [0], [1], [0, 0, 1, 1], [], []>} : vector<512x32xbf16>, vector<32x128xbf16>, vector<512x128xf32> -> vector<512x128xf32>
    %56 = vector.shape_cast %55 : vector<512x128xf32> to vector<32x16x128xf32>
    %c0_77 = arith.constant 0 : index
    %c0_78 = arith.constant 0 : index
    %c128_79 = arith.constant 128 : index
    %57 = vector.load %arg7[%c0_77, %c0_78, %c128_79] : memref<32x16x512xf32, #tpu.memory_space<vmem>>, vector<32x16x128xf32>
    tpu.vector_store %arg7[%c0_77, %c0_78, %c128_79], %56 {strides = array<i32>} : memref<32x16x512xf32, #tpu.memory_space<vmem>>, vector<32x16x128xf32>,
    %c0_80 = arith.constant 0 : index
    %c896 = arith.constant 896 : index
    %58 = vector.load %arg2[%c0_80, %c896] : memref<32x1152xbf16, #tpu.memory_space<vmem>>, vector<32x128xbf16>
    %cst_81 = arith.constant dense<0.000000e+00> : vector<512x128xf32>
    %59 = tpu.matmul %1, %58, %cst_81 {dimension_numbers = #tpu.dot_dimension_numbers<[1], [0], [0], [1], [0, 0, 1, 1], [], []>} : vector<512x32xbf16>, vector<32x128xbf16>, vector<512x128xf32> -> vector<512x128xf32>
    %60 = vector.shape_cast %59 : vector<512x128xf32> to vector<32x16x128xf32>
    %c0_82 = arith.constant 0 : index
    %c0_83 = arith.constant 0 : index
    %c256_84 = arith.constant 256 : index
    %61 = vector.load %arg7[%c0_82, %c0_83, %c256_84] : memref<32x16x512xf32, #tpu.memory_space<vmem>>, vector<32x16x128xf32>
    tpu.vector_store %arg7[%c0_82, %c0_83, %c256_84], %60 {strides = array<i32>} : memref<32x16x512xf32, #tpu.memory_space<vmem>>, vector<32x16x128xf32>,
    %c0_85 = arith.constant 0 : index
    %c1024 = arith.constant 1024 : index
    %62 = vector.load %arg2[%c0_85, %c1024] : memref<32x1152xbf16, #tpu.memory_space<vmem>>, vector<32x128xbf16>
    %cst_86 = arith.constant dense<0.000000e+00> : vector<512x128xf32>
    %63 = tpu.matmul %1, %62, %cst_86 {dimension_numbers = #tpu.dot_dimension_numbers<[1], [0], [0], [1], [0, 0, 1, 1], [], []>} : vector<512x32xbf16>, vector<32x128xbf16>, vector<512x128xf32> -> vector<512x128xf32>
    %64 = vector.shape_cast %63 : vector<512x128xf32> to vector<32x16x128xf32>
    %c0_87 = arith.constant 0 : index
    %c0_88 = arith.constant 0 : index
    %c384_89 = arith.constant 384 : index
    %65 = vector.load %arg7[%c0_87, %c0_88, %c384_89] : memref<32x16x512xf32, #tpu.memory_space<vmem>>, vector<32x16x128xf32>
    tpu.vector_store %arg7[%c0_87, %c0_88, %c384_89], %64 {strides = array<i32>} : memref<32x16x512xf32, #tpu.memory_space<vmem>>, vector<32x16x128xf32>,
    %c0_90 = arith.constant 0 : index
    %c0_91 = arith.constant 0 : index
    %c0_92 = arith.constant 0 : index
    %66 = vector.load %arg7[%c0_90, %c0_91, %c0_92] : memref<32x16x512xf32, #tpu.memory_space<vmem>>, vector<32x13x128xf32>
    %c0_93 = arith.constant 0 : index
    %c1_94 = arith.constant 1 : index
    %c128_95 = arith.constant 128 : index
    %67 = vector.load %arg7[%c0_93, %c1_94, %c128_95] : memref<32x16x512xf32, #tpu.memory_space<vmem>>, vector<32x13x128xf32>
    %68 = arith.addf %66, %67 : vector<32x13x128xf32>
    %c0_96 = arith.constant 0 : index
    %c0_97 = arith.constant 0 : index
    %c0_98 = arith.constant 0 : index
    %69 = vector.load %arg7[%c0_96, %c0_97, %c0_98] : memref<32x16x512xf32, #tpu.memory_space<vmem>>, vector<32x13x128xf32>
    tpu.vector_store %arg7[%c0_96, %c0_97, %c0_98], %68 {strides = array<i32>} : memref<32x16x512xf32, #tpu.memory_space<vmem>>, vector<32x13x128xf32>,
    %c0_99 = arith.constant 0 : index
    %c0_100 = arith.constant 0 : index
    %c0_101 = arith.constant 0 : index
    %70 = vector.load %arg7[%c0_99, %c0_100, %c0_101] : memref<32x16x512xf32, #tpu.memory_space<vmem>>, vector<32x13x128xf32>
    %c0_102 = arith.constant 0 : index
    %c2_103 = arith.constant 2 : index
    %c256_104 = arith.constant 256 : index
    %71 = vector.load %arg7[%c0_102, %c2_103, %c256_104] : memref<32x16x512xf32, #tpu.memory_space<vmem>>, vector<32x13x128xf32>
    %72 = arith.addf %70, %71 : vector<32x13x128xf32>
    %c0_105 = arith.constant 0 : index
    %c0_106 = arith.constant 0 : index
    %c0_107 = arith.constant 0 : index
    %73 = vector.load %arg7[%c0_105, %c0_106, %c0_107] : memref<32x16x512xf32, #tpu.memory_space<vmem>>, vector<32x13x128xf32>
    tpu.vector_store %arg7[%c0_105, %c0_106, %c0_107], %72 {strides = array<i32>} : memref<32x16x512xf32, #tpu.memory_space<vmem>>, vector<32x13x128xf32>,
    %c0_108 = arith.constant 0 : index
    %c0_109 = arith.constant 0 : index
    %c0_110 = arith.constant 0 : index
    %74 = vector.load %arg7[%c0_108, %c0_109, %c0_110] : memref<32x16x512xf32, #tpu.memory_space<vmem>>, vector<32x13x128xf32>
    %c0_111 = arith.constant 0 : index
    %c3 = arith.constant 3 : index
    %c384_112 = arith.constant 384 : index
    %75 = vector.load %arg7[%c0_111, %c3, %c384_112] : memref<32x16x512xf32, #tpu.memory_space<vmem>>, vector<32x13x128xf32>
    %76 = arith.addf %74, %75 : vector<32x13x128xf32>
    %c0_113 = arith.constant 0 : index
    %c0_114 = arith.constant 0 : index
    %c0_115 = arith.constant 0 : index
    %77 = vector.load %arg7[%c0_113, %c0_114, %c0_115] : memref<32x16x512xf32, #tpu.memory_space<vmem>>, vector<32x13x128xf32>
    tpu.vector_store %arg7[%c0_113, %c0_114, %c0_115], %76 {strides = array<i32>} : memref<32x16x512xf32, #tpu.memory_space<vmem>>, vector<32x13x128xf32>,
    %c0_116 = arith.constant 0 : index
    %c0_117 = arith.constant 0 : index
    %c0_118 = arith.constant 0 : index
    %78 = vector.load %arg7[%c0_116, %c0_117, %c0_118] : memref<32x16x512xf32, #tpu.memory_space<vmem>>, vector<32x13x128xf32>
    %cst_119 = arith.constant dense<0xFF800000> : vector<32x128xf32>
    %79 = vector.multi_reduction <maximumf>, %78, %cst_119 [1] : vector<32x13x128xf32> to vector<32x128xf32>
    %c0_120 = arith.constant 0 : index
    %c256_121 = arith.constant 256 : index
    %80 = vector.load %arg3[%c0_120, %c256_121] : memref<1x384xf32, #tpu.memory_space<vmem>>, vector<1x128xf32>
    %81 = vector.broadcast %80 : vector<1x128xf32> to vector<32x128xf32>
    %82 = arith.addf %79, %81 : vector<32x128xf32>
    %cst_122 = arith.constant 0.000000e+00 : f32
    %83 = vector.broadcast %cst_122 : f32 to vector<32x128xf32>
    %84 = arith.maximumf %82, %83 : vector<32x128xf32>
    %c0_123 = arith.constant 0 : index
    %c256_124 = arith.constant 256 : index
    %85 = vector.load %arg8[%c0_123, %c256_124] : memref<32x384xf32, #tpu.memory_space<vmem>>, vector<32x128xf32>
    tpu.vector_store %arg8[%c0_123, %c256_124], %84 {strides = array<i32>} : memref<32x384xf32, #tpu.memory_space<vmem>>, vector<32x128xf32>,
    %c0_125 = arith.constant 0 : index
    %c0_126 = arith.constant 0 : index
    %86 = vector.load %arg8[%c0_125, %c0_126] : memref<32x384xf32, #tpu.memory_space<vmem>>, vector<32x384xf32>
    %c0_127 = arith.constant 0 : index
    %c0_128 = arith.constant 0 : index
    %87 = vector.load %arg4[%c0_127, %c0_128] : memref<384x128xf32, #tpu.memory_space<vmem>>, vector<384x128xf32>
    %cst_129 = arith.constant dense<0.000000e+00> : vector<32x128xf32>
    %88 = tpu.matmul %86, %87, %cst_129 {dimension_numbers = #tpu.dot_dimension_numbers<[1], [0], [0], [1], [0, 0, 1, 1], [], []>} : vector<32x384xf32>, vector<384x128xf32>, vector<32x128xf32> -> vector<32x128xf32>
    %c0_130 = arith.constant 0 : index
    %c0_131 = arith.constant 0 : index
    %89 = vector.load %arg5[%c0_130, %c0_131] : memref<1x128xf32, #tpu.memory_space<vmem>>, vector<1x128xf32>
    %90 = vector.broadcast %89 : vector<1x128xf32> to vector<32x128xf32>
    %91 = arith.addf %88, %90 : vector<32x128xf32>
    %c0_132 = arith.constant 0 : index
    %c0_133 = arith.constant 0 : index
    %92 = vector.load %arg6[%c0_132, %c0_133] : memref<32x128xf32, #tpu.memory_space<vmem>>, vector<32x128xf32>
    tpu.vector_store %arg6[%c0_132, %c0_133], %91 {strides = array<i32>} : memref<32x128xf32, #tpu.memory_space<vmem>>, vector<32x128xf32>,
    return
  }
  func.func @transform_0(%arg0: i32) -> (i32, i32, i32) {
    %c0_i32 = arith.constant 0 : i32
    %c0_i32_0 = arith.constant 0 : i32
    %c0_i32_1 = arith.constant 0 : i32
    return %arg0, %c0_i32, %c0_i32_0 : i32, i32, i32
  }
  func.func @transform_1(%arg0: i32) -> (i32, i32) {
    %c0_i32 = arith.constant 0 : i32
    %c0_i32_0 = arith.constant 0 : i32
    %c0_i32_1 = arith.constant 0 : i32
    return %c0_i32, %c0_i32_0 : i32, i32
  }
  func.func @transform_2(%arg0: i32) -> (i32, i32) {
    %c0_i32 = arith.constant 0 : i32
    %c0_i32_0 = arith.constant 0 : i32
    %c0_i32_1 = arith.constant 0 : i32
    return %c0_i32, %c0_i32_0 : i32, i32
  }
  func.func @transform_3(%arg0: i32) -> (i32, i32) {
    %c0_i32 = arith.constant 0 : i32
    %c0_i32_0 = arith.constant 0 : i32
    %c0_i32_1 = arith.constant 0 : i32
    return %c0_i32, %c0_i32_0 : i32, i32
  }
  func.func @transform_4(%arg0: i32) -> (i32, i32) {
    %c0_i32 = arith.constant 0 : i32
    %c0_i32_0 = arith.constant 0 : i32
    %c0_i32_1 = arith.constant 0 : i32
    return %c0_i32, %c0_i32_0 : i32, i32
  }
  func.func @transform_5(%arg0: i32) -> (i32, i32) {
    %c0_i32 = arith.constant 0 : i32
    %c0_i32_0 = arith.constant 0 : i32
    return %arg0, %c0_i32 : i32, i32
  }
}

</mosaic_0001>

<bundles_post_ra>
// kernel: tpu_custom_call.1
= control target key start
LH: loop header
LB: loop body
LE: loop exit
PB: predicated region body
PF: predicated region fallthrough
CT: control target
= control target key end

     0   :  { %10 = vsyncpa [#allocation5], 0  ;;  %s13551_s0 = inlined_call_operand.vmem [shape: bf16[64,16,32], index: 0, kind: input, shape index: {}]   ;;  %s13552_s1 = inlined_call_operand.vmem [shape: bf16[32,1152], index: 1, kind: input, shape index: {}]   ;;  %s13553_s2 = inlined_call_operand.vmem [shape: f32[1,384], index: 2, kind: input, shape index: {}]   ;;  %s13554_s3 = inlined_call_operand.vmem [shape: f32[384,128], index: 3, kind: input, shape index: {}]   ;;  %s13555_s4 = inlined_call_operand.vmem [shape: f32[1,128], index: 4, kind: input, shape index: {}]   ;;  %s13556_s5 = inlined_call_operand.hbm [shape: f32[64,128], index: 5, kind: output, shape index: {}]  }
   0x1   :  { %12 = vsyncpa [#allocation5 + $0x1], 0  ;;  %s10252_s18 = smov 0   ;;  %s10254_s19 = smov 0  }
   0x2   :  { %s10256_s20 = smov 0   ;;  %s10258_s21 = smov 0  }
   0x3 LB: > { %s10273_s22 = sadd.s32 4294967295, %s10217_s21   ;;  %s8540_s23 = sadd.s32 4294967294, %s10217_s21   ;;  %s10217_s21 = sphi %s10258_s21, %s13653_s21   ;;  %s10213_s20 = sphi %s10256_s20, %s13652_s20   ;;  %s10209_s19 = sphi %s10254_s19, %s13651_s19   ;;  %s10205_s18 = sphi %s10252_s18, %s13650_s18  }
   0x4   : > { %s10277_s24 = sadd.s32 1, %s10217_s21   ;;  %s135_s25 = sadd.s32 1, %s10213_s20 }
   0x5   : > { %s132_s26 = ssub.s32 %s10217_s21, %s10277_s24  ;;  %p145_p0 = scmp.ne.s32.totalorder %s10213_s20, %s10209_s19 }
   0x6   : > { %p133_p1 = scmp.eq.s32.totalorder %s132_s26, 0  ;;  %p146_p2 = scmp.eq.s32.totalorder %s10273_s22, 1 }
   0x7   : > { %p151_p3 = scmp.ne.s32.totalorder %s10209_s19, %s10205_s18  ;;  %p152_p4 = scmp.eq.s32.totalorder %s8540_s23, 1 }
   0x8   : > { %s10288_s27 = scalar_select %p133_p1, %s10213_s20, %s135_s25  }
   0x9   : > { %p10290_p5 = por %p146_p2, %p145_p0  ;;  %p10294_p6 = por %p152_p4, %p151_p3 }
   0xa   : > { %p8543_p7 = scmp.ge.s32.totalorder %s10217_s21, 1  ;;  %p192_p8 = scmp.lt.s32.totalorder %s10217_s21, 3 }
   0xc   : > { %p193_p9 = pnand %p8543_p7, %p192_p8 }
   0xe   : > { %196 = sbr.rel (%p193_p9) target bundleno = 1203 (0x4b3), region = 40 }
  0x15   : > { %v10026_v0 = vld [vmem:[%s13552_s1] ss:$36 sps:$4 sm:$0xff]   ;;  %v10027_v1 = vld [vmem:[%s13552_s1 + $0x48] ss:$36 sps:$4 sm:$0xff]   ;;  %s8545_s9 = sshll.u32 %s10273_s22, 5  ;;  %vm470_vm0 = vcmask 261120  }
  0x16   : > { %9267 = vmatprep.subr.bf16.mxu0 %v10026_v0  ;;  %9981 = vmatprep.subr.bf16.mxu1 %v10026_v0  ;;  %p222_p10 = scmp.lt.s32.totalorder %s8545_s9, 63  ;;  %v10032_v2 = vld [vmem:[%s13552_s1 + $0x8] ss:$36 sps:$4 sm:$0xff]   ;;  %v10053_v8 = vld [vmem:[%s13552_s1 + $0x50] ss:$36 sps:$4 sm:$0xff]   ;;  %vm1481_vm1 = vcmask 1046528  }
  0x17   : > { %9268 = vmatpush3.bf16.msra.mxu0 %v10026_v0  ;;  %9983 = vmatpush3.bf16.msra.mxu1 %v10026_v0  ;;  %v10049_v3 = vld [vmem:[%s13552_s1 + $0x4] ss:$36 sps:$4 sm:$0xff]   ;;  %v10050_v6 = vld [vmem:[%s13552_s1 + $0x4c] ss:$36 sps:$4 sm:$0xff]   ;;  %v10066_v31 = vld [vmem:[%s13552_s1 + $0x54] ss:$36 sps:$4 sm:$0xff]  }
  0x18   : > { %9269 = vmatprep.subr.bf16.mxu0 %v10027_v1  ;;  %9982 = vmatprep.subr.bf16.mxu1 %v10027_v1  ;;  %s13655_s9 = smov (!%p222_p10, %s8545_s9), 63  ;;  %v10062_v12 = vld [vmem:[%s13552_s1 + $0xc] ss:$36 sps:$4 sm:$0xff]   ;;  %v10068_v40 = vld [vmem:[%s13552_s1 + $0x14] ss:$36 sps:$4 sm:$0xff]   ;;  %vm2194_vm2 = vcmask 1041409  }
  0x19   : > { %s8895_s14 = sshll.u32 %s13655_s9, 3  ;;  %v10065_v27 = vld [vmem:[%s13552_s1 + $0x10] ss:$36 sps:$4 sm:$0xff]   ;;  %v10067_v42 = vld [vmem:[%s13552_s1 + $0x58] ss:$36 sps:$4 sm:$0xff]   ;;  %vm2197_vm3 = vcmask 1042434  }
  0x1a   : > { %s10316_s17 = scalar_lea.vmem %s13551_s0, %s8895_s14  ;;  %v10538_v43 = vld [vmem:[%s13552_s1 + $0x18] ss:$36 sps:$4 sm:$0xff]   ;;  %v10071_v54 = vld [vmem:[%s13552_s1 + $0x60] ss:$36 sps:$4 sm:$0xff]   ;;  %vm2200_vm4 = vcmask 1043459   ;;  %vm2203_vm5 = vcmask 1044484  }
  0x1b   : > { %9270 = vmatpush3.bf16.msra.mxu0 %v10027_v1  ;;  %9984 = vmatpush3.bf16.msra.mxu1 %v10027_v1  ;;  %v10319_v4 = vld [vmem:[%s10316_s17] sm:$0xff]   ;;  %v10322_v5 = vld [vmem:[%s10316_s17 + $0xb0] sm:$0xff]   ;;  %v10330_v7 = vld [vmem:[%s10316_s17 + $0x8] sm:$0xff]   ;;  %vm2206_vm6 = vcmask 1045509   ;;  %vm2209_vm7 = vcmask 1046534   ;;  %vm2212_vm8 = vcmask 1047559  }
  0x1c   : > { %9403 = vmatprep.subr.bf16.mxu0 %v10032_v2  ;;  %9335 = vmatprep.subr.bf16.mxu1 %v10049_v3  ;;  %v10338_v9 = vld [vmem:[%s10316_s17 + $0xb8] sm:$0xff]   ;;  %v10343_v10 = vld [vmem:[%s10316_s17 + $0x10] sm:$0xff]   ;;  %v10348_v11 = vld [vmem:[%s10316_s17 + $0xc0] sm:$0xff]   ;;  %vm4043_vm9 = vcmask 1045504   ;;  %vm7447_vm10 = vcmask 1044480   ;;  %s218_s26 = sand.u32 1, %s10209_s19  }
  0x1d   : > { %9271 = vmatprep.mubr.msk.bf16.mxu0 %vm470_vm0, %v10319_v4  ;;  %9315 = vmatprep.mubr.msk.bf16.mxu1 %vm470_vm0, %v10322_v5  ;;  %v10358_v13 = vld [vmem:[%s10316_s17 + $0x18] sm:$0xff]   ;;  %v10361_v14 = vld [vmem:[%s10316_s17 + $0xc8] sm:$0xff]   ;;  %v10364_v15 = vld [vmem:[%s10316_s17 + $0x20] sm:$0xff]   ;;  %s8544_s30 = sshll.u32 %s218_s26, 5  ;;  %s8896_s10 = sshll.u32 %s10273_s22, 9 }
  0x1e   : > { %9272 = vmatmul.mubr.msk.bf16.vlgmr.msra.gmra.mrb[0].mxu0 %vm470_vm0, %v10330_v7  ;;  %9316 = vmatmul.mubr.msk.bf16.vlgmr.msra.gmra.mrb[0].mxu1 %vm470_vm0, %v10338_v9  ;;  %v10367_v16 = vld [vmem:[%s10316_s17 + $0xd0] sm:$0xff]   ;;  %v10378_v17 = vld [vmem:[%s10316_s17 + $0x28] sm:$0xff]   ;;  %v10381_v18 = vld [vmem:[%s10316_s17 + $0xd8] sm:$0xff]   ;;  %s220_s8 = scalar_lea.vmem [#allocation4], %s8544_s30  ;;  %s13508_s12 = scalar_lea.hbm %s13556_s5, %s8896_s10 }
  0x1f   : > { %9404 = vmatpush3.bf16.msra.mxu0 %v10032_v2  ;;  %9275 = vmatprep.mubr.msk.bf16.mxu0 %vm470_vm0, %v10343_v10  ;;  %v10384_v19 = vld [vmem:[%s10316_s17 + $0x30] sm:$0xff]   ;;  %v10387_v20 = vld [vmem:[%s10316_s17 + $0xe0] sm:$0xff]   ;;  %v10398_v21 = vld [vmem:[%s10316_s17 + $0x38] sm:$0xff]   ;;  %s8478_s9 = sshll.u32 %s220_s8, 4  ;;  %s13510_s13 = scalar_lea.sflag [#allocation5], %s218_s26  ;;  %s13503_s9 = int_to_ptr.vmem [resolvable:$true] %s8478_s9 }
  0x20   : > { %9336 = vmatpush3.bf16.msra.mxu1 %v10049_v3  ;;  %9319 = vmatprep.mubr.msk.bf16.mxu1 %vm470_vm0, %v10348_v11  ;;  %v10401_v22 = vld [vmem:[%s10316_s17 + $0xe8] sm:$0xff]   ;;  %v10404_v23 = vld [vmem:[%s10316_s17 + $0x40] sm:$0xff]   ;;  %v10407_v24 = vld [vmem:[%s10316_s17 + $0xf0] sm:$0xff]   ;;  %s10155_s22 = scalar_lea.vmem %s13503_s9, 512  ;;  %s10219_s14 = smov [#allocation4]  }
  0x21   : > { %9337 = vmatprep.subr.bf16.mxu1 %v10050_v6  ;;  %9405 = vmatprep.subr.bf16.mxu0 %v10053_v8  ;;  %v10418_v25 = vld [vmem:[%s10316_s17 + $0x48] sm:$0xff]   ;;  %v10421_v26 = vld [vmem:[%s10316_s17 + $0xf8] sm:$0xff]   ;;  %v10427_v28 = vld [vmem:[%s10316_s17 + $0x50] sm:$0xff]   ;;  %p10156_p11 = scmp.ne.s32.totalorder %s13503_s9, %s10155_s22  ;;  %s10159_s15 = sshll.u32 %s10219_s14, 4  ;;  %s10160_s15 = int_to_ptr.vmem [resolvable:$false] %s10159_s15 }
  0x22   : > { %v10438_v29 = vld [vmem:[%s10316_s17 + $0x58] sm:$0xff]   ;;  %v10441_v30 = vld [vmem:[%s10316_s17 + $0x60] sm:$0xff]   ;;  %v10455_v32 = vld [vmem:[%s10316_s17 + $0x68] sm:$0xff]   ;;  %s10161_s16 = scalar_lea.vmem %s10160_s15, 1024  ;;  %p10162_p0 = scmp.lt.s32.totalorder %s13503_s9, %s10160_s15 }
  0x23   : > { %9406 = vmatpush3.bf16.msra.mxu0 %v10053_v8  ;;  %v10458_v33 = vld [vmem:[%s10316_s17 + $0x70] sm:$0xff]   ;;  %v10469_v34 = vld [vmem:[%s10316_s17 + $0x78] sm:$0xff]   ;;  %v10472_v35 = vld [vmem:[%s10316_s17 + $0x80] sm:$0xff]   ;;  %p10157_p12 = pnand %p10156_p11, %p10290_p5  ;;  %p10163_p1 = scmp.lt.s32.totalorder %s10161_s16, %s10155_s22 }
  0x24   : > { %9338 = vmatpush3.bf16.msra.mxu1 %v10050_v6  ;;  %9539 = vmatprep.subr.bf16.mxu0 %v10065_v27  ;;  %v10483_v36 = vld [vmem:[%s10316_s17 + $0x88] sm:$0xff]   ;;  %v10486_v37 = vld [vmem:[%s10316_s17 + $0x90] sm:$0xff]   ;;  %v10497_v38 = vld [vmem:[%s10316_s17 + $0x98] sm:$0xff]  }
  0x25   : > { %9471 = vmatprep.subr.bf16.mxu1 %v10062_v12  ;;  %v10500_v39 = vld [vmem:[%s10316_s17 + $0xa0] sm:$0xff]   ;;  %v10514_v41 = vld [vmem:[%s10316_s17 + $0xa8] sm:$0xff]   ;;  %p10158_p13 = pneg %p10157_p12  ;;  %p10164_p2 = por %p10163_p1, %p10162_p0 }
  0x26   : > { %9276 = vmatmul.mubr.msk.bf16.gmra.mrb[4].mxu0 %vm470_vm0, %v10358_v13  ;;  %9320 = vmatmul.mubr.msk.bf16.gmra.mrb[4].mxu1 %vm470_vm0, %v10361_v14  ;;  %v10070_v44 = vld [vmem:[%s13552_s1 + $0x5c] ss:$36 sps:$4 sm:$0xff]  }
  0x27   : > { %9279 = vmatprep.mubr.msk.bf16.mxu0 %vm470_vm0, %v10364_v15  ;;  %9323 = vmatprep.mubr.msk.bf16.mxu1 %vm470_vm0, %v10367_v16  ;;  %v10671_v52 = vld [vmem:[%s13552_s1 + $0x1c] ss:$36 sps:$4 sm:$0xff]   ;;  %p10165_p3 = pnand %p10164_p2, %p10158_p13 }
  0x28   : > { %v10073_v62 = vld [vmem:[%s13552_s1 + $0x20] ss:$36 sps:$4 sm:$0xff]  }
  0x2e   : > { %9280 = vmatmul.mubr.msk.bf16.gmra.mrb[8].mxu0 %vm470_vm0, %v10378_v17  ;;  %9324 = vmatmul.mubr.msk.bf16.gmra.mrb[8].mxu1 %vm470_vm0, %v10381_v18 }
  0x2f   : > { %9283 = vmatprep.mubr.msk.bf16.mxu0 %vm470_vm0, %v10384_v19  ;;  %9327 = vmatprep.mubr.msk.bf16.mxu1 %vm470_vm0, %v10387_v20 }
  0x36   : > { %9284 = vmatmul.mubr.msk.bf16.gmra.mrb[12].mxu0 %vm470_vm0, %v10398_v21  ;;  %9328 = vmatmul.mubr.msk.bf16.gmra.mrb[12].mxu1 %vm470_vm0, %v10401_v22 }
  0x37   : > { %9287 = vmatprep.mubr.msk.bf16.mxu0 %vm470_vm0, %v10404_v23  ;;  %9331 = vmatprep.mubr.msk.bf16.mxu1 %vm470_vm0, %v10407_v24 }
  0x3e   : > { %9288 = vmatmul.mubr.msk.bf16.gmra.mrb[16].mxu0 %vm470_vm0, %v10418_v25  ;;  %9332 = vmatmul.mubr.msk.bf16.gmra.mrb[16].mxu1 %vm470_vm0, %v10421_v26 }
  0x3f   : > { %9291 = vmatprep.mubr.msk.bf16.mxu0 %vm470_vm0, %v10427_v28  ;;  %9339 = vmatprep.mubr.msk.bf16.mxu1 %vm470_vm0, %v10319_v4 }
  0x46   : > { %9292 = vmatmul.mubr.msk.bf16.gmra.mrb[20].mxu0 %vm470_vm0, %v10438_v29  ;;  %9340 = vmatmul.mubr.msk.bf16.vlgmr.msra.gmra.mrb[20].mxu1 %vm470_vm0, %v10330_v7 }
  0x47   : > { %9295 = vmatprep.mubr.msk.bf16.mxu0 %vm470_vm0, %v10441_v30  ;;  %9343 = vmatprep.mubr.msk.bf16.mxu1 %vm470_vm0, %v10343_v10 }
  0x48   : > { %9472 = vmatpush3.bf16.msra.mxu1 %v10062_v12 }
  0x49   : > { %9473 = vmatprep.subr.bf16.mxu1 %v10066_v31 }
  0x4c   : > { %9474 = vmatpush3.bf16.msra.mxu1 %v10066_v31 }
  0x4d   : > { %9607 = vmatprep.subr.bf16.mxu1 %v10068_v40 }
  0x4e   : > { %9296 = vmatmul.mubr.msk.bf16.gmra.mrb[24].mxu0 %vm470_vm0, %v10455_v32  ;;  %9344 = vmatmul.mubr.msk.bf16.gmra.mrb[24].mxu1 %vm470_vm0, %v10358_v13 }
  0x4f   : > { %9299 = vmatprep.mubr.msk.bf16.mxu0 %vm470_vm0, %v10458_v33  ;;  %9347 = vmatprep.mubr.msk.bf16.mxu1 %vm470_vm0, %v10364_v15 }
  0x56   : > { %9300 = vmatmul.mubr.msk.bf16.gmra.mrb[28].mxu0 %vm470_vm0, %v10469_v34  ;;  %9348 = vmatmul.mubr.msk.bf16.gmra.mrb[28].mxu1 %vm470_vm0, %v10378_v17 }
  0x57   : > { %9303 = vmatprep.mubr.msk.bf16.mxu0 %vm470_vm0, %v10472_v35  ;;  %9351 = vmatprep.mubr.msk.bf16.mxu1 %vm470_vm0, %v10384_v19 }
  0x5e   : > { %9304 = vmatmul.mubr.msk.bf16.gmra.mrb[32].mxu0 %vm470_vm0, %v10483_v36  ;;  %9352 = vmatmul.mubr.msk.bf16.gmra.mrb[32].mxu1 %vm470_vm0, %v10398_v21 }
  0x5f   : > { %9307 = vmatprep.mubr.msk.bf16.mxu0 %vm470_vm0, %v10486_v37  ;;  %9355 = vmatprep.mubr.msk.bf16.mxu1 %vm470_vm0, %v10404_v23 }
  0x66   : > { %9308 = vmatmul.mubr.msk.bf16.gmra.mrb[36].mxu0 %vm470_vm0, %v10497_v38  ;;  %9356 = vmatmul.mubr.msk.bf16.gmra.mrb[36].mxu1 %vm470_vm0, %v10418_v25 }
  0x67   : > { %9311 = vmatprep.mubr.msk.bf16.mxu0 %vm470_vm0, %v10500_v39  ;;  %9359 = vmatprep.mubr.msk.bf16.mxu1 %vm470_vm0, %v10427_v28 }
  0x6e   : > { %9312 = vmatmul.mubr.msk.bf16.gmra.mrb[40].mxu0 %vm470_vm0, %v10514_v41  ;;  %9360 = vmatmul.mubr.msk.bf16.gmra.mrb[40].mxu1 %vm470_vm0, %v10438_v29 }
  0x6f   : > { %9407 = vmatprep.mubr.msk.bf16.mxu0 %vm470_vm0, %v10319_v4  ;;  %9363 = vmatprep.mubr.msk.bf16.mxu1 %vm470_vm0, %v10441_v30 }
  0x76   : > { %9408 = vmatmul.mubr.msk.bf16.vlgmr.msra.gmra.mrb[44].mxu0 %vm470_vm0, %v10330_v7  ;;  %9364 = vmatmul.mubr.msk.bf16.gmra.mrb[44].mxu1 %vm470_vm0, %v10455_v32 }
  0x77   : > { %9540 = vmatpush3.bf16.msra.mxu0 %v10065_v27  ;;  %9367 = vmatprep.mubr.msk.bf16.mxu1 %vm470_vm0, %v10458_v33 }
  0x78   : > { %9411 = vmatprep.mubr.msk.bf16.mxu0 %vm470_vm0, %v10343_v10  ;;  %9541 = vmatprep.subr.bf16.mxu0 %v10067_v42 }
  0x7b   : > { %9542 = vmatpush3.bf16.msra.mxu0 %v10067_v42 }
  0x7c   : > { %9675 = vmatprep.subr.bf16.mxu0 %v10538_v43 }
  0x7e   : > { %9412 = vmatmul.mubr.msk.bf16.gmra.mrb[48].mxu0 %vm470_vm0, %v10358_v13  ;;  %9368 = vmatmul.mubr.msk.bf16.gmra.mrb[48].mxu1 %vm470_vm0, %v10469_v34 }
  0x7f   : > { %9415 = vmatprep.mubr.msk.bf16.mxu0 %vm470_vm0, %v10364_v15  ;;  %9371 = vmatprep.mubr.msk.bf16.mxu1 %vm470_vm0, %v10472_v35 }
  0x86   : > { %9416 = vmatmul.mubr.msk.bf16.gmra.mrb[52].mxu0 %vm470_vm0, %v10378_v17  ;;  %9372 = vmatmul.mubr.msk.bf16.gmra.mrb[52].mxu1 %vm470_vm0, %v10483_v36 }
  0x87   : > { %9419 = vmatprep.mubr.msk.bf16.mxu0 %vm470_vm0, %v10384_v19  ;;  %9375 = vmatprep.mubr.msk.bf16.mxu1 %vm470_vm0, %v10486_v37 }
  0x8e   : > { %9420 = vmatmul.mubr.msk.bf16.gmra.mrb[56].mxu0 %vm470_vm0, %v10398_v21  ;;  %9376 = vmatmul.mubr.msk.bf16.gmra.mrb[56].mxu1 %vm470_vm0, %v10497_v38 }
  0x8f   : > { %9423 = vmatprep.mubr.msk.bf16.mxu0 %vm470_vm0, %v10404_v23  ;;  %9379 = vmatprep.mubr.msk.bf16.mxu1 %vm470_vm0, %v10500_v39 }
  0x96   : > { %9424 = vmatmul.mubr.msk.bf16.gmra.mrb[60].mxu0 %vm470_vm0, %v10418_v25  ;;  %9380 = vmatmul.mubr.msk.bf16.gmra.mrb[60].mxu1 %vm470_vm0, %v10514_v41 }
  0x97   : > { %9427 = vmatprep.mubr.msk.bf16.mxu0 %vm470_vm0, %v10427_v28  ;;  %9383 = vmatprep.mubr.msk.bf16.mxu1 %vm470_vm0, %v10322_v5 }
  0x9e   : > { %9428 = vmatmul.mubr.msk.bf16.gmra.mrb[64].mxu0 %vm470_vm0, %v10438_v29  ;;  %9384 = vmatmul.mubr.msk.bf16.gmra.mrb[64].mxu1 %vm470_vm0, %v10338_v9 }
  0x9f   : > { %9431 = vmatprep.mubr.msk.bf16.mxu0 %vm470_vm0, %v10441_v30  ;;  %9387 = vmatprep.mubr.msk.bf16.mxu1 %vm470_vm0, %v10348_v11 }
  0xa6   : > { %9432 = vmatmul.mubr.msk.bf16.gmra.mrb[68].mxu0 %vm470_vm0, %v10455_v32  ;;  %9388 = vmatmul.mubr.msk.bf16.gmra.mrb[68].mxu1 %vm470_vm0, %v10361_v14 }
  0xa7   : > { %9435 = vmatprep.mubr.msk.bf16.mxu0 %vm470_vm0, %v10458_v33  ;;  %9391 = vmatprep.mubr.msk.bf16.mxu1 %vm470_vm0, %v10367_v16 }
  0xae   : > { %9436 = vmatmul.mubr.msk.bf16.gmra.mrb[72].mxu0 %vm470_vm0, %v10469_v34  ;;  %9392 = vmatmul.mubr.msk.bf16.gmra.mrb[72].mxu1 %vm470_vm0, %v10381_v18 }
  0xaf   : > { %9439 = vmatprep.mubr.msk.bf16.mxu0 %vm470_vm0, %v10472_v35  ;;  %9395 = vmatprep.mubr.msk.bf16.mxu1 %vm470_vm0, %v10387_v20 }
  0xb6   : > { %9440 = vmatmul.mubr.msk.bf16.gmra.mrb[76].mxu0 %vm470_vm0, %v10483_v36  ;;  %9396 = vmatmul.mubr.msk.bf16.gmra.mrb[76].mxu1 %vm470_vm0, %v10401_v22 }
  0xb7   : > { %9443 = vmatprep.mubr.msk.bf16.mxu0 %vm470_vm0, %v10486_v37  ;;  %9399 = vmatprep.mubr.msk.bf16.mxu1 %vm470_vm0, %v10407_v24 }
  0xbe   : > { %9444 = vmatmul.mubr.msk.bf16.gmra.mrb[80].mxu0 %vm470_vm0, %v10497_v38  ;;  %9400 = vmatmul.mubr.msk.bf16.gmra.mrb[80].mxu1 %vm470_vm0, %v10421_v26 }
  0xbf   : > { %9447 = vmatprep.mubr.msk.bf16.mxu0 %vm470_vm0, %v10500_v39  ;;  %9475 = vmatprep.mubr.msk.bf16.mxu1 %vm470_vm0, %v10319_v4 }
  0xc6   : > { %9448 = vmatmul.mubr.msk.bf16.gmra.mrb[84].mxu0 %vm470_vm0, %v10514_v41  ;;  %9476 = vmatmul.mubr.msk.bf16.vlgmr.msra.gmra.mrb[84].mxu1 %vm470_vm0, %v10330_v7 }
  0xc7   : > { %9451 = vmatprep.mubr.msk.bf16.mxu0 %vm470_vm0, %v10322_v5  ;;  %9479 = vmatprep.mubr.msk.bf16.mxu1 %vm470_vm0, %v10343_v10 }
  0xc8   : > { %9608 = vmatpush3.bf16.msra.mxu1 %v10068_v40 }
  0xc9   : > { %9609 = vmatprep.subr.bf16.mxu1 %v10070_v44 }
  0xcc   : > { %9610 = vmatpush3.bf16.msra.mxu1 %v10070_v44 }
  0xcd   : > { %9743 = vmatprep.subr.bf16.mxu1 %v10671_v52 }
  0xce   : > { %9452 = vmatmul.mubr.msk.bf16.gmra.mrb[88].mxu0 %vm470_vm0, %v10338_v9  ;;  %9480 = vmatmul.mubr.msk.bf16.gmra.mrb[88].mxu1 %vm470_vm0, %v10358_v13 }
  0xcf   : > { %9455 = vmatprep.mubr.msk.bf16.mxu0 %vm470_vm0, %v10348_v11  ;;  %9483 = vmatprep.mubr.msk.bf16.mxu1 %vm470_vm0, %v10364_v15 }
  0xd6   : > { %9456 = vmatmul.mubr.msk.bf16.gmra.mrb[92].mxu0 %vm470_vm0, %v10361_v14  ;;  %9484 = vmatmul.mubr.msk.bf16.gmra.mrb[92].mxu1 %vm470_vm0, %v10378_v17 }
  0xd7   : > { %9459 = vmatprep.mubr.msk.bf16.mxu0 %vm470_vm0, %v10367_v16  ;;  %9487 = vmatprep.mubr.msk.bf16.mxu1 %vm470_vm0, %v10384_v19 }
  0xde   : > { %9460 = vmatmul.mubr.msk.bf16.gmra.mrb[96].mxu0 %vm470_vm0, %v10381_v18  ;;  %9488 = vmatmul.mubr.msk.bf16.gmra.mrb[96].mxu1 %vm470_vm0, %v10398_v21 }
  0xdf   : > { %9463 = vmatprep.mubr.msk.bf16.mxu0 %vm470_vm0, %v10387_v20  ;;  %9491 = vmatprep.mubr.msk.bf16.mxu1 %vm470_vm0, %v10404_v23 }
  0xe6   : > { %9464 = vmatmul.mubr.msk.bf16.gmra.mrb[100].mxu0 %vm470_vm0, %v10401_v22  ;;  %9492 = vmatmul.mubr.msk.bf16.gmra.mrb[100].mxu1 %vm470_vm0, %v10418_v25 }
  0xe7   : > { %9467 = vmatprep.mubr.msk.bf16.mxu0 %vm470_vm0, %v10407_v24  ;;  %9495 = vmatprep.mubr.msk.bf16.mxu1 %vm470_vm0, %v10427_v28 }
  0xee   : > { %9468 = vmatmul.mubr.msk.bf16.gmra.mrb[104].mxu0 %vm470_vm0, %v10421_v26  ;;  %9496 = vmatmul.mubr.msk.bf16.gmra.mrb[104].mxu1 %vm470_vm0, %v10438_v29 }
  0xef   : > { %9543 = vmatprep.mubr.msk.bf16.mxu0 %vm470_vm0, %v10319_v4  ;;  %9499 = vmatprep.mubr.msk.bf16.mxu1 %vm470_vm0, %v10441_v30 }
  0xf1   : > { %v10664_v45 = vpop.f32.mrb[0].mxu0  ;;  %v9317_v47 = vpop.f32.mrb[0].mxu1 }
  0xf2   : > { %v10666_v46 = vpop.f32.mrb[1].mxu0  ;;  %902 = vst [vmem:[#allocation2 + $0x5c0] sm:$0xff] %v9317_v47  ;;  %v777_v49 = vpop.f32.mrb[1].mxu1 }
  0xf3   : > { %v9274_v48 = vpop.f32.mrb[2].mxu0  ;;  %900 = vst [vmem:[#allocation2 + $0x580] sm:$0xff] %v777_v49  ;;  %v9318_v51 = vpop.f32.mrb[2].mxu1 }
  0xf4   : > { %859 = vst [vmem:[#allocation2 + $0x60] sm:$0xff] %v9274_v48  ;;  %v604_v50 = vpop.f32.mrb[3].mxu0  ;;  %903 = vst [vmem:[#allocation2 + $0x5e0] sm:$0xff] %v9318_v51  ;;  %v780_v53 = vpop.f32.mrb[3].mxu1 }
  0xf5   : > { %857 = vst [vmem:[#allocation2 + $0x20] sm:$0xff] %v604_v50  ;;  %901 = vst [vmem:[#allocation2 + $0x5a0] sm:$0xff] %v780_v53 }
  0xf6   : > { %9544 = vmatmul.mubr.msk.bf16.vlgmr.msra.gmra.mrb[108].mxu0 %vm470_vm0, %v10330_v7  ;;  %9500 = vmatmul.mubr.msk.bf16.gmra.mrb[108].mxu1 %vm470_vm0, %v10455_v32 }
  0xf7   : > { %9676 = vmatpush3.bf16.msra.mxu0 %v10538_v43  ;;  %9503 = vmatprep.mubr.msk.bf16.mxu1 %vm470_vm0, %v10458_v33 }
  0xf8   : > { %9547 = vmatprep.mubr.msk.bf16.mxu0 %vm470_vm0, %v10343_v10  ;;  %9677 = vmatprep.subr.bf16.mxu0 %v10071_v54 }
  0xf9   : > { %v10686_v55 = vpop.f32.mrb[4].mxu0  ;;  %v9321_v57 = vpop.f32.mrb[4].mxu1 }
  0xfa   : > { %v10688_v56 = vpop.f32.mrb[5].mxu0  ;;  %906 = vst [vmem:[#allocation2 + $0x640] sm:$0xff] %v9321_v57  ;;  %v793_v59 = vpop.f32.mrb[5].mxu1 }
  0xfb   : > { %v9278_v58 = vpop.f32.mrb[6].mxu0  ;;  %9678 = vmatpush3.bf16.msra.mxu0 %v10071_v54  ;;  %904 = vst [vmem:[#allocation2 + $0x600] sm:$0xff] %v793_v59  ;;  %v9322_v61 = vpop.f32.mrb[6].mxu1 }
  0xfc   : > { %863 = vst [vmem:[#allocation2 + $0xe0] sm:$0xff] %v9278_v58  ;;  %v620_v60 = vpop.f32.mrb[7].mxu0  ;;  %907 = vst [vmem:[#allocation2 + $0x660] sm:$0xff] %v9322_v61  ;;  %v796_v63 = vpop.f32.mrb[7].mxu1  ;;  %9811 = vmatprep.subr.bf16.mxu0 %v10073_v62  ;;  %v1290_v61 = vld [vmem:[#allocation2 + $0x20] sm:$0x7f] }
  0xfd   : > { %861 = vst [vmem:[#allocation2 + $0xa0] sm:$0xff] %v620_v60  ;;  %905 = vst [vmem:[#allocation2 + $0x620] sm:$0xff] %v796_v63 }
  0xfe   : > { %9548 = vmatmul.mubr.msk.bf16.gmra.mrb[112].mxu0 %vm470_vm0, %v10358_v13  ;;  %9504 = vmatmul.mubr.msk.bf16.gmra.mrb[112].mxu1 %vm470_vm0, %v10469_v34 }
  0xff   : > { %9551 = vmatprep.mubr.msk.bf16.mxu0 %vm470_vm0, %v10364_v15  ;;  %9507 = vmatprep.mubr.msk.bf16.mxu1 %vm470_vm0, %v10472_v35 }
 0x101   : > { %v10701_v0 = vpop.f32.mrb[8].mxu0  ;;  %v9325_v2 = vpop.f32.mrb[8].mxu1 }
 0x102   : > { %v10703_v1 = vpop.f32.mrb[9].mxu0  ;;  %910 = vst [vmem:[#allocation2 + $0x6c0] sm:$0xff] %v9325_v2  ;;  %v809_v4 = vpop.f32.mrb[9].mxu1 }
 0x103   : > { %v9282_v3 = vpop.f32.mrb[10].mxu0  ;;  %908 = vst [vmem:[#allocation2 + $0x680] sm:$0xff] %v809_v4  ;;  %v9326_v7 = vpop.f32.mrb[10].mxu1 }
 0x104   : > { %867 = vst [vmem:[#allocation2 + $0x160] sm:$0xff] %v9282_v3  ;;  %v636_v6 = vpop.f32.mrb[11].mxu0  ;;  %911 = vst [vmem:[#allocation2 + $0x6e0] sm:$0xff] %v9326_v7  ;;  %v812_v8 = vpop.f32.mrb[11].mxu1 }
 0x105   : > { %865 = vst [vmem:[#allocation2 + $0x120] sm:$0xff] %v636_v6  ;;  %909 = vst [vmem:[#allocation2 + $0x6a0] sm:$0xff] %v812_v8 }
 0x106   : > { %9552 = vmatmul.mubr.msk.bf16.gmra.mrb[116].mxu0 %vm470_vm0, %v10378_v17  ;;  %9508 = vmatmul.mubr.msk.bf16.gmra.mrb[116].mxu1 %vm470_vm0, %v10483_v36 }
 0x107   : > { %9555 = vmatprep.mubr.msk.bf16.mxu0 %vm470_vm0, %v10384_v19  ;;  %9511 = vmatprep.mubr.msk.bf16.mxu1 %vm470_vm0, %v10486_v37 }
 0x109   : > { %v10713_v10 = vpop.f32.mrb[12].mxu0  ;;  %v9329_v13 = vpop.f32.mrb[12].mxu1 }
 0x10a   : > { %v10715_v12 = vpop.f32.mrb[13].mxu0  ;;  %914 = vst [vmem:[#allocation2 + $0x740] sm:$0xff] %v9329_v13  ;;  %v825_v27 = vpop.f32.mrb[13].mxu1 }
 0x10b   : > { %v9286_v15 = vpop.f32.mrb[14].mxu0  ;;  %912 = vst [vmem:[#allocation2 + $0x700] sm:$0xff] %v825_v27  ;;  %v9330_v31 = vpop.f32.mrb[14].mxu1 }
 0x10c   : > { %871 = vst [vmem:[#allocation2 + $0x1e0] sm:$0xff] %v9286_v15  ;;  %v652_v17 = vpop.f32.mrb[15].mxu0  ;;  %915 = vst [vmem:[#allocation2 + $0x760] sm:$0xff] %v9330_v31  ;;  %v828_v40 = vpop.f32.mrb[15].mxu1 }
 0x10d   : > { %869 = vst [vmem:[#allocation2 + $0x1a0] sm:$0xff] %v652_v17  ;;  %913 = vst [vmem:[#allocation2 + $0x720] sm:$0xff] %v828_v40  ;;  %v1296_v40 = vld [vmem:[#allocation2 + $0xe0] sm:$0x7f] }
 0x10e   : > { %9556 = vmatmul.mubr.msk.bf16.gmra.mrb[120].mxu0 %vm470_vm0, %v10398_v21  ;;  %9512 = vmatmul.mubr.msk.bf16.gmra.mrb[120].mxu1 %vm470_vm0, %v10497_v38 }
 0x10f   : > { %9559 = vmatprep.mubr.msk.bf16.mxu0 %vm470_vm0, %v10404_v23  ;;  %9515 = vmatprep.mubr.msk.bf16.mxu1 %vm470_vm0, %v10500_v39 }
 0x111   : > { %v10725_v19 = vpop.f32.mrb[16].mxu0  ;;  %v9333_v43 = vpop.f32.mrb[16].mxu1 }
 0x112   : > { %v10727_v42 = vpop.f32.mrb[17].mxu0  ;;  %918 = vst [vmem:[#allocation2 + $0x7c0] sm:$0xff] %v9333_v43  ;;  %v841_v47 = vpop.f32.mrb[17].mxu1 }
 0x113   : > { %v9290_v44 = vpop.f32.mrb[18].mxu0  ;;  %916 = vst [vmem:[#allocation2 + $0x780] sm:$0xff] %v841_v47  ;;  %v9334_v48 = vpop.f32.mrb[18].mxu1 }
 0x114   : > { %875 = vst [vmem:[#allocation2 + $0x260] sm:$0xff] %v9290_v44  ;;  %v668_v21 = vpop.f32.mrb[19].mxu0  ;;  %919 = vst [vmem:[#allocation2 + $0x7e0] sm:$0xff] %v9334_v48  ;;  %v844_v49 = vpop.f32.mrb[19].mxu1 }
 0x115   : > { %873 = vst [vmem:[#allocation2 + $0x220] sm:$0xff] %v668_v21  ;;  %917 = vst [vmem:[#allocation2 + $0x7a0] sm:$0xff] %v844_v49  ;;  %v1294_v21 = vld [vmem:[#allocation2 + $0xa0] sm:$0x7f] }
 0x116   : > { %9560 = vmatmul.mubr.msk.bf16.gmra.mrb[124].mxu0 %vm470_vm0, %v10418_v25  ;;  %9516 = vmatmul.mubr.msk.bf16.gmra.mrb[124].mxu1 %vm470_vm0, %v10514_v41 }
 0x117   : > { %9563 = vmatprep.mubr.msk.bf16.mxu0 %vm470_vm0, %v10427_v28  ;;  %9519 = vmatprep.mubr.msk.bf16.mxu1 %vm470_vm0, %v10322_v5  ;;  %v1292_v28 = vld [vmem:[#allocation2 + $0x60] sm:$0x7f] }
 0x119   : > { %v10737_v23 = vpop.f32.mrb[20].mxu0  ;;  %v9341_v50 = vpop.f32.mrb[20].mxu1 }
 0x11a   : > { %v681_v51 = vpop.f32.mrb[21].mxu0  ;;  %1227 = vst [vmem:[#allocation2 + $0x48] sm:$0xff] %v9341_v50  ;;  %v970_v53 = vpop.f32.mrb[21].mxu1 }
 0x11b   : > { %876 = vst [vmem:[#allocation2 + $0x280] sm:$0xff] %v681_v51  ;;  %v9294_v54 = vpop.f32.mrb[22].mxu0  ;;  %1225 = vst [vmem:[#allocation2 + $0x8] sm:$0xff] %v970_v53  ;;  %v9342_v25 = vpop.f32.mrb[22].mxu1 }
 0x11c   : > { %879 = vst [vmem:[#allocation2 + $0x2e0] sm:$0xff] %v9294_v54  ;;  %v684_v57 = vpop.f32.mrb[23].mxu0  ;;  %v973_v58 = vpop.f32.mrb[23].mxu1  ;;  %v1486_v59 = vrot.slane %v9342_v25, 1 }
 0x11d   : > { %877 = vst [vmem:[#allocation2 + $0x2a0] sm:$0xff] %v684_v57  ;;  %v1483_v5 = vrot.slane %v973_v58, 1 }
 0x11e   : > { %9564 = vmatmul.mubr.msk.bf16.gmra.mrb[128].mxu0 %vm470_vm0, %v10438_v29  ;;  %9520 = vmatmul.mubr.msk.bf16.gmra.mrb[128].mxu1 %vm470_vm0, %v10338_v9  ;;  %v1645_v60 = vadd.f32 %v1486_v59, %v1292_v28 }
 0x11f   : > { %9567 = vmatprep.mubr.msk.bf16.mxu0 %vm470_vm0, %v10441_v30  ;;  %9523 = vmatprep.mubr.msk.bf16.mxu1 %vm470_vm0, %v10348_v11  ;;  %v1643_v62 = vadd.f32 %v1483_v5, %v1290_v61 }
 0x120   : > { %1709 = vst [vmem:[#allocation2 + $0x60] sm:$0x7f] %v1645_v60 }
 0x121   : > { %v9297_v63 = vpop.f32.mrb[24].mxu0  ;;  %v9345_v2 = vpop.f32.mrb[24].mxu1  ;;  %v1355_v29 = vld [vmem:[#allocation2 + $0x48] sm:$0xfe]  ;;  %1707 = vst [vmem:[#allocation2 + $0x20] sm:$0x7f] %v1643_v62 }
 0x122   : > { %882 = vst [vmem:[#allocation2 + $0x340] sm:$0xff] %v9297_v63  ;;  %v697_v3 = vpop.f32.mrb[25].mxu0  ;;  %1231 = vst [vmem:[#allocation2 + $0xc8] sm:$0xff] %v9345_v2  ;;  %v986_v9 = vpop.f32.mrb[25].mxu1  ;;  %v1485_v6 = vrot.slane %v1355_v29, 1 }
 0x123   : > { %880 = vst [vmem:[#allocation2 + $0x300] sm:$0xff] %v697_v3  ;;  %v9298_v4 = vpop.f32.mrb[26].mxu0  ;;  %v1353_v30 = vld [vmem:[#allocation2 + $0x8] sm:$0xfe]  ;;  %1229 = vst [vmem:[#allocation2 + $0x88] sm:$0xff] %v986_v9  ;;  %v9346_v7 = vpop.f32.mrb[26].mxu1 }
 0x124   : > { %883 = vst [vmem:[#allocation2 + $0x360] sm:$0xff] %v9298_v4  ;;  %v700_v8 = vpop.f32.mrb[27].mxu0  ;;  %v1482_v11 = vrot.slane %v1353_v30, 1  ;;  %v989_v13 = vpop.f32.mrb[27].mxu1  ;;  %v1487_v15 = vsel %vm1481_vm1, %v1485_v6, %v1486_v59  ;;  %v1492_v27 = vrot.slane %v9346_v7, 1 }
 0x125   : > { %881 = vst [vmem:[#allocation2 + $0x320] sm:$0xff] %v700_v8  ;;  %v1644_v17 = vadd.f32 %v10664_v45, %v1487_v15  ;;  %v1489_v43 = vrot.slane %v989_v13, 1  ;;  %v1300_v4 = vld [vmem:[#allocation2 + $0x160] sm:$0x7f] }
 0x126   : > { %9568 = vmatmul.mubr.msk.bf16.gmra.mrb[132].mxu0 %vm470_vm0, %v10455_v32  ;;  %v1484_v31 = vsel %vm1481_vm1, %v1482_v11, %v1483_v5  ;;  %9524 = vmatmul.mubr.msk.bf16.gmra.mrb[132].mxu1 %vm470_vm0, %v10361_v14  ;;  %v1649_v47 = vadd.f32 %v1492_v27, %v1296_v40  ;;  %v1298_v11 = vld [vmem:[#allocation2 + $0x120] sm:$0x7f] }
 0x127   : > { %9571 = vmatprep.mubr.msk.bf16.mxu0 %vm470_vm0, %v10458_v33  ;;  %v1642_v44 = vadd.f32 %v1484_v31, %v10666_v46  ;;  %9527 = vmatprep.mubr.msk.bf16.mxu1 %vm470_vm0, %v10367_v16  ;;  %v1773_v32 = vld [vmem:[#allocation2 + $0x60] sm:$0x7f]  ;;  %v1647_v48 = vadd.f32 %v1489_v43, %v1294_v21 }
 0x128   : > { %v1842_v49 = vsel %vm1481_vm1, %v1773_v32, -inf  ;;  %v1771_v50 = vld [vmem:[#allocation2 + $0x20] sm:$0x7f]  ;;  %1713 = vst [vmem:[#allocation2 + $0xe0] sm:$0x7f] %v1649_v47 }
 0x129   : > { %v9301_v45 = vpop.f32.mrb[28].mxu0  ;;  %v9349_v51 = vpop.f32.mrb[28].mxu1  ;;  %v1843_v53 = vmax.f32 %v1644_v17, %v1842_v49  ;;  %v1834_v33 = vsel %vm1481_vm1, %v1771_v50, -inf  ;;  %v1359_v54 = vld [vmem:[#allocation2 + $0xc8] sm:$0xfe] }
 0x12a   : > { %886 = vst [vmem:[#allocation2 + $0x3c0] sm:$0xff] %v9301_v45  ;;  %v713_v14 = vpop.f32.mrb[29].mxu0  ;;  %1711 = vst [vmem:[#allocation2 + $0xa0] sm:$0x7f] %v1647_v48  ;;  %v1002_v46 = vpop.f32.mrb[29].mxu1  ;;  %v1835_v16 = vmax.f32 %v1642_v44, %v1834_v33  ;;  %v1491_v57 = vrot.slane %v1359_v54, 1 }
 0x12b   : > { %1235 = vst [vmem:[#allocation2 + $0x148] sm:$0xff] %v9349_v51  ;;  %884 = vst [vmem:[#allocation2 + $0x380] sm:$0xff] %v713_v14  ;;  %v9302_v25 = vpop.f32.mrb[30].mxu0  ;;  %v1357_v58 = vld [vmem:[#allocation2 + $0x88] sm:$0xfe]  ;;  %v9350_v59 = vpop.f32.mrb[30].mxu1 }
 0x12c   : > { %1233 = vst [vmem:[#allocation2 + $0x108] sm:$0xff] %v1002_v46  ;;  %887 = vst [vmem:[#allocation2 + $0x3e0] sm:$0xff] %v9302_v25  ;;  %v716_v28 = vpop.f32.mrb[31].mxu0  ;;  %v1844_v5 = vrot.slane %v1843_v53, 4  ;;  %v1488_v60 = vrot.slane %v1357_v58, 1  ;;  %v1005_v61 = vpop.f32.mrb[31].mxu1  ;;  %v1493_v63 = vsel %vm1481_vm1, %v1491_v57, %v1492_v27 }
 0x12d   : > { %885 = vst [vmem:[#allocation2 + $0x3a0] sm:$0xff] %v716_v28  ;;  %v1836_v62 = vrot.slane %v1835_v16, 4  ;;  %v1498_v2 = vrot.slane %v9350_v59, 1  ;;  %v1648_v29 = vadd.f32 %v10686_v55, %v1493_v63  ;;  %v1495_v6 = vrot.slane %v1005_v61, 1  ;;  %v10782_v54 = vld [vmem:[%s13553_s2] ss:$0 sm:$0xff] }
 0x12e   : > { %9572 = vmatmul.mubr.msk.bf16.gmra.mrb[136].mxu0 %vm470_vm0, %v10469_v34  ;;  %v1845_v3 = vmax.f32 %v1843_v53, %v1844_v5  ;;  %v1490_v9 = vsel %vm1481_vm1, %v1488_v60, %v1489_v43  ;;  %9528 = vmatmul.mubr.msk.bf16.gmra.mrb[136].mxu1 %vm470_vm0, %v10381_v18  ;;  %v1304_v63 = vld [vmem:[#allocation2 + $0x1e0] sm:$0x7f] }
 0x12f   : > { %9575 = vmatprep.mubr.msk.bf16.mxu0 %vm470_vm0, %v10472_v35  ;;  %v1837_v30 = vmax.f32 %v1835_v16, %v1836_v62  ;;  %v1646_v7 = vadd.f32 %v1490_v9, %v10688_v56  ;;  %v1653_v8 = vadd.f32 %v1498_v2, %v1300_v4  ;;  %9531 = vmatprep.mubr.msk.bf16.mxu1 %vm470_vm0, %v10387_v20  ;;  %v1777_v55 = vld [vmem:[#allocation2 + $0xe0] sm:$0x7f] }
 0x130   : > { %v1846_v34 = vrot.slane %v1845_v3, 2  ;;  %v1651_v13 = vadd.f32 %v1495_v6, %v1298_v11  ;;  %v1858_v17 = vsel %vm1481_vm1, %v1777_v55, -inf }
 0x131   : > { %v9305_v15 = vpop.f32.mrb[32].mxu0  ;;  %v1838_v27 = vrot.slane %v1837_v30, 2  ;;  %v1775_v31 = vld [vmem:[#allocation2 + $0xa0] sm:$0x7f]  ;;  %1717 = vst [vmem:[#allocation2 + $0x160] sm:$0x7f] %v1653_v8  ;;  %v1859_v43 = vmax.f32 %v1648_v29, %v1858_v17 }
 0x132   : > { %890 = vst [vmem:[#allocation2 + $0x440] sm:$0xff] %v9305_v15  ;;  %v9353_v18 = vpop.f32.mrb[32].mxu1  ;;  %v729_v35 = vpop.f32.mrb[33].mxu0  ;;  %v1847_v40 = vmax.f32 %v1845_v3, %v1846_v34  ;;  %v1850_v56 = vsel %vm1481_vm1, %v1775_v31, -inf  ;;  %v1363_v44 = vld [vmem:[#allocation2 + $0x148] sm:$0xfe] }
 0x133   : > { %1715 = vst [vmem:[#allocation2 + $0x120] sm:$0x7f] %v1651_v13  ;;  %1239 = vst [vmem:[#allocation2 + $0x1c8] sm:$0xff] %v9353_v18  ;;  %v1018_v20 = vpop.f32.mrb[33].mxu1  ;;  %v9306_v47 = vpop.f32.mrb[34].mxu0  ;;  %v1839_v21 = vmax.f32 %v1837_v30, %v1838_v27  ;;  %v1851_v32 = vmax.f32 %v1646_v7, %v1850_v56  ;;  %v1497_v48 = vrot.slane %v1363_v44, 1 }
 0x134   : > { %888 = vst [vmem:[#allocation2 + $0x400] sm:$0xff] %v729_v35  ;;  %v1361_v45 = vld [vmem:[#allocation2 + $0x108] sm:$0xfe]  ;;  %1237 = vst [vmem:[#allocation2 + $0x188] sm:$0xff] %v1018_v20  ;;  %v10775_v49 = vpop.f32.mrb[34].mxu1  ;;  %v732_v50 = vpop.f32.mrb[35].mxu0 }
 0x135   : > { %891 = vst [vmem:[#allocation2 + $0x460] sm:$0xff] %v9306_v47  ;;  %v1848_v51 = vrot.slane %v1847_v40, 1  ;;  %v1860_v14 = vrot.slane %v1859_v43, 4  ;;  %v1494_v53 = vrot.slane %v1361_v45, 1  ;;  %889 = vst [vmem:[#allocation2 + $0x420] sm:$0xff] %v732_v50  ;;  %v10777_v33 = vpop.f32.mrb[35].mxu1  ;;  %v1499_v16 = vsel %vm1481_vm1, %v1497_v48, %v1498_v2 }
 0x136   : > { %v1840_v46 = vrot.slane %v1839_v21, 1  ;;  %v1852_v25 = vrot.slane %v1851_v32, 4  ;;  %v1504_v57 = vrot.slane %v10775_v49, 1  ;;  %9576 = vmatmul.mubr.msk.bf16.gmra.mrb[140].mxu0 %vm470_vm0, %v10483_v36  ;;  %v1652_v28 = vadd.f32 %v10701_v0, %v1499_v16  ;;  %9532 = vmatmul.mubr.msk.bf16.gmra.mrb[140].mxu1 %vm470_vm0, %v10401_v22  ;;  %v1302_v22 = vld [vmem:[#allocation2 + $0x1a0] sm:$0x7f] }
 0x137   : > { %v1849_v58 = vmax.f32 %v1847_v40, %v1848_v51  ;;  %v1861_v59 = vmax.f32 %v1859_v43, %v1860_v14  ;;  %v1496_v5 = vsel %vm1481_vm1, %v1494_v53, %v1495_v6  ;;  %9579 = vmatprep.mubr.msk.bf16.mxu0 %vm470_vm0, %v10486_v37  ;;  %v1501_v2 = vrot.slane %v10777_v33, 1  ;;  %9535 = vmatprep.mubr.msk.bf16.mxu1 %vm470_vm0, %v10407_v24 }
 0x138   : > { %v1841_v60 = vmax.f32 %v1839_v21, %v1840_v46  ;;  %v1853_v61 = vmax.f32 %v1851_v32, %v1852_v25  ;;  %v1650_v62 = vadd.f32 %v1496_v5, %v10703_v1  ;;  %v1781_v3 = vld [vmem:[#allocation2 + $0x160] sm:$0x7f]  ;;  %v1657_v29 = vadd.f32 %v1504_v57, %v1304_v63 }
 0x139   : > { %v2098_v36 = vadd.f32 %v10782_v54, %v1849_v58  ;;  %v1862_v0 = vrot.slane %v1861_v59, 2  ;;  %v9309_v9 = vpop.f32.mrb[36].mxu0  ;;  %v1874_v6 = vsel %vm1481_vm1, %v1781_v3, -inf  ;;  %v1655_v30 = vadd.f32 %v1501_v2, %v1302_v22  ;;  %v9357_v7 = vpop.f32.mrb[36].mxu1  ;;  %v10821_v58 = vld [vmem:[%s10316_s17] sm:$0xff]  }
 0x13a   : > { %v2097_v37 = vadd.f32 %v10782_v54, %v1841_v60  ;;  %v1854_v4 = vrot.slane %v1853_v61, 2  ;;  %v1779_v1 = vld [vmem:[#allocation2 + $0x120] sm:$0x7f]  ;;  %894 = vst [vmem:[#allocation2 + $0x4c0] sm:$0xff] %v9309_v9  ;;  %v745_v8 = vpop.f32.mrb[37].mxu0  ;;  %v1875_v34 = vmax.f32 %v1652_v28, %v1874_v6  ;;  %1243 = vst [vmem:[#allocation2 + $0x248] sm:$0xff] %v9357_v7 }
 0x13b   : > { %v2130_v11 = vmax.f32 %v2098_v36, 0.0  ;;  %v1863_v24 = vmax.f32 %v1861_v59, %v1862_v0  ;;  %v1866_v55 = vsel %vm1481_vm1, %v1779_v1, -inf  ;;  %v1367_v13 = vld [vmem:[#allocation2 + $0x1c8] sm:$0xfe]  ;;  %1721 = vst [vmem:[#allocation2 + $0x1e0] sm:$0x7f] %v1657_v29 }
 0x13c   : > { %892 = vst [vmem:[#allocation2 + $0x480] sm:$0xff] %v745_v8  ;;  %v1034_v15 = vpop.f32.mrb[37].mxu1  ;;  %v9310_v27 = vpop.f32.mrb[38].mxu0  ;;  %v2129_v17 = vmax.f32 %v2097_v37, 0.0  ;;  %v1855_v31 = vmax.f32 %v1853_v61, %v1854_v4  ;;  %v1867_v18 = vmax.f32 %v1650_v62, %v1866_v55  ;;  %v1503_v35 = vrot.slane %v1367_v13, 1 }
 0x13d   : > { %v1365_v40 = vld [vmem:[#allocation2 + $0x188] sm:$0xfe]  ;;  %1719 = vst [vmem:[#allocation2 + $0x1a0] sm:$0x7f] %v1655_v30  ;;  %1241 = vst [vmem:[#allocation2 + $0x208] sm:$0xff] %v1034_v15  ;;  %v10802_v43 = vpop.f32.mrb[38].mxu1 }
 0x13e   : > { %895 = vst [vmem:[#allocation2 + $0x4e0] sm:$0xff] %v9310_v27  ;;  %v748_v56 = vpop.f32.mrb[39].mxu0  ;;  %v2193_v44 = vrot.slane %v2130_v11, 7  ;;  %v1864_v20 = vrot.slane %v1863_v24, 1  ;;  %v1876_v47 = vrot.slane %v1875_v34, 4  ;;  %v1500_v21 = vrot.slane %v1365_v40, 1  ;;  %9580 = vmatmul.mubr.msk.bf16.gmra.mrb[144].mxu0 %vm470_vm0, %v10497_v38  ;;  %9536 = vmatmul.mubr.msk.bf16.gmra.mrb[144].mxu1 %vm470_vm0, %v10421_v26 }
 0x13f   : > { %893 = vst [vmem:[#allocation2 + $0x4a0] sm:$0xff] %v748_v56  ;;  %v10804_v32 = vpop.f32.mrb[39].mxu1  ;;  %v1856_v48 = vrot.slane %v1855_v31, 1  ;;  %v1868_v45 = vrot.slane %v1867_v18, 4  ;;  %v1505_v49 = vsel %vm1481_vm1, %v1503_v35, %v1504_v57  ;;  %v1510_v50 = vrot.slane %v10802_v43, 1  ;;  %9583 = vmatprep.mubr.msk.bf16.mxu0 %vm470_vm0, %v10500_v39  ;;  %9611 = vmatprep.mubr.msk.bf16.mxu1 %vm470_vm0, %v10821_v58 }
 0x140   : > { %v10811_v51 = vsel %vm2194_vm2, %v2193_v44, %v2129_v17  ;;  %v1865_v14 = vmax.f32 %v1863_v24, %v1864_v20  ;;  %v1877_v53 = vmax.f32 %v1875_v34, %v1876_v47  ;;  %v1656_v33 = vadd.f32 %v10713_v10, %v1505_v49  ;;  %v1308_v57 = vld [vmem:[#allocation2 + $0x260] sm:$0x7f]  ;;  %v10843_v44 = vld [vmem:[%s10316_s17 + $0x8] sm:$0xff]   ;;  %v10078_v20 = vld [vmem:[%s10316_s17 + $0xb0] sm:$0xff]  }
 0x141   : > { %v1857_v46 = vmax.f32 %v1855_v31, %v1856_v48  ;;  %v1869_v25 = vmax.f32 %v1867_v18, %v1868_v45  ;;  %v1502_v16 = vsel %vm1481_vm1, %v1500_v21, %v1501_v2  ;;  %v1507_v38 = vrot.slane %v10804_v32, 1  ;;  %v1306_v5 = vld [vmem:[#allocation2 + $0x220] sm:$0x7f]  ;;  %v9313_v39 = vpop.f32.mrb[40].mxu0  ;;  %v9361_v2 = vpop.f32.mrb[40].mxu1  ;;  %v10853_v45 = vld [vmem:[%s10316_s17 + $0x10] sm:$0xff]  }
 0x142   : > { %v2100_v10 = vadd.f32 %v10782_v54, %v1865_v14  ;;  %v1878_v59 = vrot.slane %v1877_v53, 2  ;;  %v1654_v26 = vadd.f32 %v1502_v16, %v10715_v12  ;;  %v1661_v28 = vadd.f32 %v1510_v50, %v1308_v57  ;;  %v1785_v62 = vld [vmem:[#allocation2 + $0x1e0] sm:$0x7f]  ;;  %898 = vst [vmem:[#allocation2 + $0x540] sm:$0xff] %v9313_v39  ;;  %v761_v36 = vpop.f32.mrb[41].mxu0  ;;  %1247 = vst [vmem:[#allocation2 + $0x2c8] sm:$0xff] %v9361_v2 }
 0x143   : > { %v2099_v60 = vadd.f32 %v10782_v54, %v1857_v46  ;;  %v1870_v61 = vrot.slane %v1869_v25, 2  ;;  %v1659_v63 = vadd.f32 %v1507_v38, %v1306_v5  ;;  %v1890_v29 = vsel %vm1481_vm1, %v1785_v62, -inf  ;;  %896 = vst [vmem:[#allocation2 + $0x500] sm:$0xff] %v761_v36  ;;  %v1050_v12 = vpop.f32.mrb[41].mxu1  ;;  %v9314_v9 = vpop.f32.mrb[42].mxu0 }
 0x144   : > { %v2132_v0 = vmax.f32 %v2100_v10, 0.0  ;;  %v1879_v3 = vmax.f32 %v1877_v53, %v1878_v59  ;;  %v1783_v22 = vld [vmem:[#allocation2 + $0x1a0] sm:$0x7f]  ;;  %1725 = vst [vmem:[#allocation2 + $0x260] sm:$0x7f] %v1661_v28  ;;  %v1891_v6 = vmax.f32 %v1656_v33, %v1890_v29  ;;  %1245 = vst [vmem:[#allocation2 + $0x288] sm:$0xff] %v1050_v12 }
 0x145   : > { %v2131_v37 = vmax.f32 %v2099_v60, 0.0  ;;  %v1871_v4 = vmax.f32 %v1869_v25, %v1870_v61  ;;  %v1882_v1 = vsel %vm1481_vm1, %v1783_v22, -inf  ;;  %v1371_v30 = vld [vmem:[#allocation2 + $0x248] sm:$0xfe]  ;;  %1723 = vst [vmem:[#allocation2 + $0x220] sm:$0x7f] %v1659_v63 }
 0x146   : > { %899 = vst [vmem:[#allocation2 + $0x560] sm:$0xff] %v9314_v9  ;;  %v10832_v7 = vpop.f32.mrb[42].mxu1  ;;  %v764_v8 = vpop.f32.mrb[43].mxu0  ;;  %v2199_v11 = vrot.slane %v2132_v0, 5  ;;  %v1880_v24 = vrot.slane %v1879_v3, 1  ;;  %v1883_v34 = vmax.f32 %v1654_v26, %v1882_v1  ;;  %v1509_v55 = vrot.slane %v1371_v30, 1  ;;  %9584 = vmatmul.mubr.msk.bf16.gmra.mrb[148].mxu0 %vm470_vm0, %v10514_v41  ;;  %9612 = vmatmul.mubr.msk.bf16.vlgmr.msra.gmra.mrb[148].mxu1 %vm470_vm0, %v10843_v44 }
 0x147   : > { %897 = vst [vmem:[#allocation2 + $0x520] sm:$0xff] %v764_v8  ;;  %v10834_v13 = vpop.f32.mrb[43].mxu1  ;;  %v2196_v15 = vrot.slane %v2131_v37, 6  ;;  %v1872_v27 = vrot.slane %v1871_v4, 1  ;;  %v1892_v17 = vrot.slane %v1891_v6, 4  ;;  %9587 = vmatprep.mubr.msk.bf16.mxu0 %vm470_vm0, %v10078_v20  ;;  %v1516_v48 = vrot.slane %v10832_v7, 1  ;;  %9615 = vmatprep.mubr.msk.bf16.mxu1 %vm470_vm0, %v10853_v45 }
 0x148   : > { %v1369_v31 = vld [vmem:[#allocation2 + $0x208] sm:$0xfe]  ;;  %v1881_v18 = vmax.f32 %v1879_v3, %v1880_v24  ;;  %v1884_v35 = vrot.slane %v1883_v34, 4  ;;  %v1511_v40 = vsel %vm1481_vm1, %v1509_v55, %v1510_v50  ;;  %9744 = vmatpush3.bf16.msra.mxu1 %v10671_v52  ;;  %v1310_v59 = vld [vmem:[#allocation2 + $0x2a0] sm:$0x7f]  ;;  %v1513_v28 = vrot.slane %v10834_v13, 1 }
 0x149   : > { %v1506_v43 = vrot.slane %v1369_v31, 1  ;;  %v10074_v56 = vld [vmem:[%s13552_s1 + $0x64] ss:$36 sps:$4 sm:$0xff]   ;;  %v2198_v41 = vsel %vm2197_vm3, %v2196_v15, %v10811_v51  ;;  %v1873_v47 = vmax.f32 %v1871_v4, %v1872_v27  ;;  %v1893_v21 = vmax.f32 %v1891_v6, %v1892_v17  ;;  %v9409_v33 = vpop.f32.mrb[44].mxu0  ;;  %v9365_v26 = vpop.f32.mrb[44].mxu1  ;;  %v10080_v30 = vld [vmem:[%s10316_s17 + $0xb8] sm:$0xff]  }
 0x14a   : > { %v10858_v49 = vadd.f32 %v10782_v54, %v1881_v18  ;;  %v1885_v50 = vmax.f32 %v1883_v34, %v1884_v35  ;;  %v1660_v14 = vadd.f32 %v10725_v19, %v1511_v40  ;;  %v1312_v51 = vld [vmem:[#allocation2 + $0x2e0] sm:$0x7f]  ;;  %2571 = vst [vmem:[#allocation2 + $0x40] sm:$0xff] %v9409_v33  ;;  %v2314_v19 = vpop.f32.mrb[45].mxu0  ;;  %9745 = vmatprep.subr.bf16.mxu1 %v10074_v56  ;;  %1251 = vst [vmem:[#allocation2 + $0x348] sm:$0xff] %v9365_v26  ;;  %v1066_v5 = vpop.f32.mrb[45].mxu1 }
 0x14b   : > { %v1508_v53 = vsel %vm1481_vm1, %v1506_v43, %v1507_v38  ;;  %v2101_v46 = vadd.f32 %v10782_v54, %v1873_v47  ;;  %v1894_v25 = vrot.slane %v1893_v21, 2  ;;  %v1789_v16 = vld [vmem:[#allocation2 + $0x260] sm:$0x7f]  ;;  %v1665_v10 = vadd.f32 %v1516_v48, %v1312_v51  ;;  %2569 = vst [vmem:[#allocation2] sm:$0xff] %v2314_v19  ;;  %1249 = vst [vmem:[#allocation2 + $0x308] sm:$0xff] %v1066_v5  ;;  %v10872_v63 = vpop.f32.mrb[46].mxu1 }
 0x14c   : > { %v1658_v57 = vadd.f32 %v1508_v53, %v10727_v42  ;;  %v1886_v32 = vrot.slane %v1885_v50, 2  ;;  %v1906_v38 = vsel %vm1481_vm1, %v1789_v16, -inf  ;;  %v9410_v42 = vpop.f32.mrb[46].mxu0  ;;  %v1787_v61 = vld [vmem:[#allocation2 + $0x220] sm:$0x7f]  ;;  %v2201_v62 = vsel %vm2200_vm4, %v2199_v11, %v2198_v41  ;;  %v10878_v12 = vpop.f32.mrb[47].mxu1  ;;  %9746 = vmatpush3.bf16.msra.mxu1 %v10074_v56 }
 0x14d   : > { %v2133_v39 = vmax.f32 %v2101_v46, 0.0  ;;  %v1895_v52 = vmax.f32 %v1893_v21, %v1894_v25  ;;  %v1907_v60 = vmax.f32 %v1660_v14, %v1906_v38  ;;  %1729 = vst [vmem:[#allocation2 + $0x2e0] sm:$0x7f] %v1665_v10  ;;  %2572 = vst [vmem:[#allocation2 + $0x60] sm:$0xff] %v9410_v42  ;;  %v2317_v2 = vpop.f32.mrb[47].mxu0  ;;  %v2134_v36 = vmax.f32 %v10858_v49, 0.0 }
 0x14e   : > { %v1887_v0 = vmax.f32 %v1885_v50, %v1886_v32  ;;  %v1898_v3 = vsel %vm1481_vm1, %v1787_v61, -inf  ;;  %v1375_v29 = vld [vmem:[#allocation2 + $0x2c8] sm:$0xfe]  ;;  %v1663_v22 = vadd.f32 %v1513_v28, %v1310_v59  ;;  %2570 = vst [vmem:[#allocation2 + $0x20] sm:$0xff] %v2317_v2  ;;  %9588 = vmatmul.mubr.msk.bf16.gmra.mrb[152].mxu0 %vm470_vm0, %v10080_v30  ;;  %v1522_v34 = vrot.slane %v10872_v63, 1  ;;  %v10884_v55 = vld [vmem:[%s10316_s17 + $0x18] sm:$0xff]  }
 0x14f   : > { %v2202_v9 = vrot.slane %v2133_v39, 4  ;;  %v1896_v37 = vrot.slane %v1895_v52, 1  ;;  %v1908_v4 = vrot.slane %v1907_v60, 4  ;;  %v1899_v6 = vmax.f32 %v1658_v57, %v1898_v3  ;;  %v1373_v1 = vld [vmem:[#allocation2 + $0x288] sm:$0xfe]  ;;  %9616 = vmatmul.mubr.msk.bf16.gmra.mrb[152].mxu1 %vm470_vm0, %v10884_v55  ;;  %v10082_v15 = vld [vmem:[%s10316_s17 + $0xc0] sm:$0xff]  }
 0x150   : > { %v1888_v8 = vrot.slane %v1887_v0, 1  ;;  %v1515_v11 = vrot.slane %v1375_v29, 1  ;;  %v1512_v24 = vrot.slane %v1373_v1, 1  ;;  %1727 = vst [vmem:[#allocation2 + $0x2a0] sm:$0x7f] %v1663_v22  ;;  %9591 = vmatprep.mubr.msk.bf16.mxu0 %vm470_vm0, %v10082_v15  ;;  %v1519_v18 = vrot.slane %v10878_v12, 1 }
 0x151   : > { %v1909_v27 = vmax.f32 %v1907_v60, %v1908_v4  ;;  %v1900_v17 = vrot.slane %v1899_v6, 4  ;;  %v1316_v31 = vld [vmem:[#allocation2 + $0x360] sm:$0x7f]  ;;  %v2205_v40 = vrot.slane %v2134_v36, 3  ;;  %v10899_v41 = vpop.f32.mrb[48].mxu0  ;;  %v1897_v47 = vmax.f32 %v1895_v52, %v1896_v37  ;;  %v9369_v53 = vpop.f32.mrb[48].mxu1 }
 0x152   : > { %v10892_v35 = vld [vmem:[%s10316_s17 + $0x20] sm:$0xff]   ;;  %v1889_v43 = vmax.f32 %v1887_v0, %v1888_v8  ;;  %v1517_v56 = vsel %vm1481_vm1, %v1515_v11, %v1516_v48  ;;  %v1669_v20 = vadd.f32 %v1522_v34, %v1316_v31  ;;  %v10902_v51 = vpop.f32.mrb[49].mxu0  ;;  %v1514_v7 = vsel %vm1481_vm1, %v1512_v24, %v1513_v28  ;;  %v1379_v48 = vld [vmem:[#allocation2 + $0x348] sm:$0xfe]  ;;  %1255 = vst [vmem:[#allocation2 + $0x3c8] sm:$0xff] %v9369_v53  ;;  %v10086_v37 = vld [vmem:[%s10316_s17 + $0xd0] sm:$0xff]  }
 0x153   : > { %9619 = vmatprep.mubr.msk.bf16.mxu1 %vm470_vm0, %v10892_v35  ;;  %v1910_v21 = vrot.slane %v1909_v27, 2  ;;  %v1901_v49 = vmax.f32 %v1899_v6, %v1900_v17  ;;  %v1664_v50 = vadd.f32 %v10737_v23, %v1517_v56  ;;  %v1314_v14 = vld [vmem:[#allocation2 + $0x320] sm:$0x7f]  ;;  %v2204_v16 = vsel %vm2203_vm5, %v2202_v9, %v2201_v62  ;;  %v1082_v23 = vpop.f32.mrb[49].mxu1  ;;  %v9414_v57 = vpop.f32.mrb[50].mxu0  ;;  %v10084_v36 = vld [vmem:[%s10316_s17 + $0xc8] sm:$0xff]  }
 0x154   : > { %v2103_v33 = vadd.f32 %v10782_v54, %v1889_v43  ;;  %v1793_v46 = vld [vmem:[#allocation2 + $0x2e0] sm:$0x7f]  ;;  %1733 = vst [vmem:[#allocation2 + $0x360] sm:$0x7f] %v1669_v20  ;;  %v1667_v25 = vadd.f32 %v1519_v18, %v1314_v14  ;;  %1253 = vst [vmem:[#allocation2 + $0x388] sm:$0xff] %v1082_v23  ;;  %v10912_v13 = vpop.f32.mrb[50].mxu1  ;;  %v10915_v39 = vsel %vm2206_vm6, %v2205_v40, %v2204_v16 }
 0x155   : > { %v1911_v10 = vmax.f32 %v1909_v27, %v1910_v21  ;;  %v1902_v59 = vrot.slane %v1901_v49, 2  ;;  %v1922_v26 = vsel %vm1481_vm1, %v1793_v46, -inf  ;;  %v1309_v19 = vld [vmem:[#allocation2 + $0x280] sm:$0xff]  ;;  %2576 = vst [vmem:[#allocation2 + $0xe0] sm:$0xff] %v9414_v57  ;;  %v2333_v32 = vpop.f32.mrb[51].mxu0  ;;  %v1521_v5 = vrot.slane %v1379_v48, 1 }
 0x156   : > { %v2135_v38 = vmax.f32 %v2103_v33, 0.0  ;;  %v1923_v28 = vmax.f32 %v1664_v50, %v1922_v26  ;;  %v1377_v42 = vld [vmem:[#allocation2 + $0x308] sm:$0xfe]  ;;  %1731 = vst [vmem:[#allocation2 + $0x320] sm:$0x7f] %v1667_v25  ;;  %v10917_v52 = vpop.f32.mrb[51].mxu1  ;;  %v1662_v62 = vadd.f32 %v1514_v7, %v1309_v19  ;;  %9592 = vmatmul.mubr.msk.bf16.gmra.mrb[156].mxu0 %vm470_vm0, %v10084_v36  ;;  %v10922_v0 = vadd.f32 %v10782_v54, %v1897_v47 }
 0x157   : > { %2574 = vst [vmem:[#allocation2 + $0xa0] sm:$0xff] %v2333_v32  ;;  %v1912_v60 = vrot.slane %v1911_v10, 1  ;;  %v1903_v61 = vmax.f32 %v1901_v49, %v1902_v59  ;;  %v1791_v63 = vld [vmem:[#allocation2 + $0x2a0] sm:$0x7f]  ;;  %v1518_v2 = vrot.slane %v1377_v42, 1  ;;  %v1523_v22 = vsel %vm1481_vm1, %v1521_v5, %v1522_v34  ;;  %v10927_v9 = vld [vmem:[%s10316_s17 + $0x28] sm:$0xff]   ;;  %9595 = vmatprep.mubr.msk.bf16.mxu0 %vm470_vm0, %v10086_v37 }
 0x158   : > { %v1924_v3 = vrot.slane %v1923_v28, 4  ;;  %v1914_v29 = vsel %vm1481_vm1, %v1791_v63, -inf  ;;  %9620 = vmatmul.mubr.msk.bf16.gmra.mrb[156].mxu1 %vm470_vm0, %v10927_v9  ;;  %v2208_v4 = vrot.slane %v2135_v38, 2  ;;  %v1315_v8 = vld [vmem:[#allocation2 + $0x340] sm:$0xff]  ;;  %v10934_v11 = vld [vmem:[%s10316_s17 + $0x30] sm:$0xff]   ;;  %v1528_v27 = vrot.slane %v10912_v13, 1 }
 0x159   : > { %v1913_v6 = vmax.f32 %v1911_v10, %v1912_v60  ;;  %v1904_v1 = vrot.slane %v1903_v61, 1  ;;  %v1915_v30 = vmax.f32 %v1662_v62, %v1914_v29  ;;  %9623 = vmatprep.mubr.msk.bf16.mxu1 %vm470_vm0, %v10934_v11  ;;  %v1668_v34 = vadd.f32 %v1523_v22, %v1315_v8  ;;  %v1320_v15 = vld [vmem:[#allocation2 + $0x3e0] sm:$0x7f]  ;;  %v10940_v31 = vpop.f32.mrb[52].mxu0  ;;  %v9373_v49 = vpop.f32.mrb[52].mxu1  ;;  %v10088_v62 = vld [vmem:[%s10316_s17 + $0xd8] sm:$0xff]  }
 0x15a   : > { %v1925_v24 = vmax.f32 %v1923_v28, %v1924_v3  ;;  %v1525_v17 = vrot.slane %v10917_v52, 1  ;;  %v1520_v47 = vsel %vm1481_vm1, %v1518_v2, %v1519_v18  ;;  %v1318_v21 = vld [vmem:[#allocation2 + $0x3a0] sm:$0x7f]  ;;  %v10946_v50 = vpop.f32.mrb[53].mxu0  ;;  %v1673_v33 = vadd.f32 %v1528_v27, %v1320_v15  ;;  %1259 = vst [vmem:[#allocation2 + $0x448] sm:$0xff] %v9373_v49  ;;  %v1098_v7 = vpop.f32.mrb[53].mxu1 }
 0x15b   : > { %v2106_v40 = vadd.f32 %v10782_v54, %v1913_v6  ;;  %v1905_v43 = vmax.f32 %v1903_v61, %v1904_v1  ;;  %v1916_v56 = vrot.slane %v1915_v30, 4  ;;  %v1797_v20 = vld [vmem:[#allocation2 + $0x360] sm:$0x7f]  ;;  %v9418_v48 = vpop.f32.mrb[54].mxu0  ;;  %v1383_v57 = vld [vmem:[#allocation2 + $0x3c8] sm:$0xfe]  ;;  %v2210_v38 = vsel %vm2209_vm7, %v2208_v4, %v10915_v39 }
 0x15c   : > { %v1926_v14 = vrot.slane %v1925_v24, 2  ;;  %v1938_v53 = vsel %vm1481_vm1, %v1797_v20, -inf  ;;  %v1671_v46 = vadd.f32 %v1525_v17, %v1318_v21  ;;  %v1313_v18 = vld [vmem:[#allocation2 + $0x300] sm:$0xff]  ;;  %1257 = vst [vmem:[#allocation2 + $0x408] sm:$0xff] %v1098_v7  ;;  %v10952_v10 = vpop.f32.mrb[54].mxu1  ;;  %2580 = vst [vmem:[#allocation2 + $0x160] sm:$0xff] %v9418_v48 }
 0x15d   : > { %v2138_v25 = vmax.f32 %v2106_v40, 0.0  ;;  %v2105_v16 = vadd.f32 %v10782_v54, %v1905_v43  ;;  %v1917_v12 = vmax.f32 %v1915_v30, %v1916_v56  ;;  %v1939_v23 = vmax.f32 %v1668_v34, %v1938_v53  ;;  %v2349_v59 = vpop.f32.mrb[55].mxu0  ;;  %v1795_v32 = vld [vmem:[#allocation2 + $0x320] sm:$0x7f]  ;;  %1737 = vst [vmem:[#allocation2 + $0x3e0] sm:$0x7f] %v1673_v33 }
 0x15e   : > { %v2136_v26 = vmax.f32 %v10922_v0, 0.0  ;;  %v1927_v19 = vmax.f32 %v1925_v24, %v1926_v14  ;;  %v1666_v13 = vadd.f32 %v1520_v47, %v1313_v18  ;;  %1735 = vst [vmem:[#allocation2 + $0x3a0] sm:$0x7f] %v1671_v46  ;;  %v10957_v28 = vpop.f32.mrb[55].mxu1  ;;  %2578 = vst [vmem:[#allocation2 + $0x120] sm:$0xff] %v2349_v59  ;;  %9596 = vmatmul.mubr.msk.bf16.gmra.mrb[160].mxu0 %vm470_vm0, %v10088_v62  ;;  %v1930_v2 = vsel %vm1481_vm1, %v1795_v32, -inf }
 0x15f   : > { %v2214_v5 = vrot.slane %v2138_v25, 7  ;;  %v2137_v42 = vmax.f32 %v2105_v16, 0.0  ;;  %v1918_v60 = vrot.slane %v1917_v12, 2  ;;  %v1940_v61 = vrot.slane %v1939_v23, 4  ;;  %v1381_v0 = vld [vmem:[#allocation2 + $0x388] sm:$0xfe] }
 0x160   : > { %v1928_v63 = vrot.slane %v1927_v19, 1  ;;  %v1527_v36 = vrot.slane %v1383_v57, 1  ;;  %v1534_v3 = vrot.slane %v10952_v10, 1  ;;  %v10964_v39 = vld [vmem:[%s10316_s17 + $0x38] sm:$0xff]   ;;  %v10090_v29 = vld [vmem:[%s10316_s17 + $0xe0] sm:$0xff]   ;;  %v1524_v6 = vrot.slane %v1381_v0, 1 }
 0x161   : > { %9624 = vmatmul.mubr.msk.bf16.gmra.mrb[160].mxu1 %vm470_vm0, %v10964_v39  ;;  %9599 = vmatprep.mubr.msk.bf16.mxu0 %vm470_vm0, %v10090_v29  ;;  %v10971_v22 = vsel %vm2194_vm2, %v2214_v5, %v2137_v42  ;;  %v1919_v37 = vmax.f32 %v1917_v12, %v1918_v60  ;;  %v1941_v4 = vmax.f32 %v1939_v23, %v1940_v61  ;;  %v1324_v1 = vld [vmem:[#allocation2 + $0x460] sm:$0x7f]  ;;  %v2211_v15 = vrot.slane %v2136_v26, 1  ;;  %v10981_v40 = vpop.f32.mrb[56].mxu0  ;;  %v9377_v49 = vpop.f32.mrb[56].mxu1  ;;  %v10092_v60 = vld [vmem:[%s10316_s17 + $0xe8] sm:$0xff]  }
 0x162   : > { %v10974_v30 = vld [vmem:[%s10316_s17 + $0x40] sm:$0xff]   ;;  %v1931_v8 = vmax.f32 %v1666_v13, %v1930_v2  ;;  %v1529_v24 = vsel %vm1481_vm1, %v1527_v36, %v1528_v27  ;;  %v1677_v34 = vadd.f32 %v1534_v3, %v1324_v1  ;;  %v1526_v21 = vsel %vm1481_vm1, %v1524_v6, %v1525_v17  ;;  %v10986_v14 = vpop.f32.mrb[57].mxu0  ;;  %v1387_v27 = vld [vmem:[#allocation2 + $0x448] sm:$0xfe]  ;;  %1263 = vst [vmem:[#allocation2 + $0x4c8] sm:$0xff] %v9377_v49  ;;  %v1114_v46 = vpop.f32.mrb[57].mxu1 }
 0x163   : > { %9627 = vmatprep.mubr.msk.bf16.mxu1 %vm470_vm0, %v10974_v30  ;;  %v1920_v43 = vrot.slane %v1919_v37, 1  ;;  %v1942_v56 = vrot.slane %v1941_v4, 2  ;;  %v1319_v20 = vld [vmem:[#allocation2 + $0x3c0] sm:$0xff]  ;;  %v1531_v33 = vrot.slane %v10957_v28, 1  ;;  %v9422_v7 = vpop.f32.mrb[58].mxu0  ;;  %v1929_v48 = vmax.f32 %v1927_v19, %v1928_v63  ;;  %1261 = vst [vmem:[#allocation2 + $0x488] sm:$0xff] %v1114_v46 }
 0x164   : > { %v1317_v47 = vld [vmem:[#allocation2 + $0x380] sm:$0xff]  ;;  %v1932_v53 = vrot.slane %v1931_v8, 4  ;;  %1741 = vst [vmem:[#allocation2 + $0x460] sm:$0x7f] %v1677_v34  ;;  %v1672_v16 = vadd.f32 %v1529_v24, %v1319_v20  ;;  %v10990_v52 = vsel %vm2212_vm8, %v2211_v15, %v2210_v38  ;;  %v10992_v17 = vpop.f32.mrb[58].mxu1  ;;  %2584 = vst [vmem:[#allocation2 + $0x1e0] sm:$0xff] %v9422_v7 }
 0x165   : > { %v1943_v25 = vmax.f32 %v1941_v4, %v1942_v56  ;;  %v1801_v12 = vld [vmem:[#allocation2 + $0x3e0] sm:$0x7f]  ;;  %13575 = vst [vmem:[#allocation7_spill] sm:$0xff] %v10990_v52  ;;  %v2365_v18 = vpop.f32.mrb[59].mxu0  ;;  %v1670_v26 = vadd.f32 %v1526_v21, %v1317_v47  ;;  %v10995_v19 = vpop.f32.mrb[59].mxu1  ;;  %v1921_v32 = vmax.f32 %v1919_v37, %v1920_v43  ;;  %v1533_v42 = vrot.slane %v1387_v27, 1 }
 0x166   : > { %v1322_v23 = vld [vmem:[#allocation2 + $0x420] sm:$0x7f]  ;;  %v1933_v57 = vmax.f32 %v1931_v8, %v1932_v53  ;;  %v1954_v59 = vsel %vm1481_vm1, %v1801_v12, -inf  ;;  %2582 = vst [vmem:[#allocation2 + $0x1a0] sm:$0xff] %v2365_v18  ;;  %9600 = vmatmul.mubr.msk.bf16.gmra.mrb[164].mxu0 %vm470_vm0, %v10092_v60  ;;  %v1385_v63 = vld [vmem:[#allocation2 + $0x408] sm:$0xfe]  ;;  %v2108_v29 = vadd.f32 %v10782_v54, %v1929_v48 }
 0x167   : > { %v1675_v13 = vadd.f32 %v1531_v33, %v1322_v23  ;;  %v1944_v28 = vrot.slane %v1943_v25, 1  ;;  %v1955_v38 = vmax.f32 %v1672_v16, %v1954_v59  ;;  %v1799_v5 = vld [vmem:[#allocation2 + $0x3a0] sm:$0x7f]  ;;  %v1540_v2 = vrot.slane %v10992_v17, 1  ;;  %v11002_v36 = vld [vmem:[%s10316_s17 + $0x48] sm:$0xff]   ;;  %v10094_v0 = vld [vmem:[%s10316_s17 + $0xf0] sm:$0xff]  }
 0x168   : > { %v1934_v61 = vrot.slane %v1933_v57, 2  ;;  %v1946_v62 = vsel %vm1481_vm1, %v1799_v5, -inf  ;;  %9603 = vmatprep.mubr.msk.bf16.mxu0 %vm470_vm0, %v10094_v0  ;;  %v1328_v6 = vld [vmem:[#allocation2 + $0x4e0] sm:$0x7f]  ;;  %v11010_v1 = vld [vmem:[%s10316_s17 + $0x50] sm:$0xff]   ;;  %v1535_v24 = vsel %vm1481_vm1, %v1533_v42, %v1534_v3  ;;  %v1530_v34 = vrot.slane %v1385_v63, 1 }
 0x169   : > { %1739 = vst [vmem:[#allocation2 + $0x420] sm:$0x7f] %v1675_v13  ;;  %9628 = vmatmul.mubr.msk.bf16.gmra.mrb[164].mxu1 %vm470_vm0, %v11002_v36  ;;  %v1956_v37 = vrot.slane %v1955_v38, 4  ;;  %v1947_v4 = vmax.f32 %v1670_v26, %v1946_v62  ;;  %v1681_v15 = vadd.f32 %v1540_v2, %v1328_v6  ;;  %v11017_v43 = vpop.f32.mrb[60].mxu0  ;;  %v2107_v56 = vadd.f32 %v10782_v54, %v1921_v32  ;;  %v1323_v49 = vld [vmem:[#allocation2 + $0x440] sm:$0xff]  ;;  %v9381_v27 = vpop.f32.mrb[60].mxu1 }
 0x16a   : > { %9631 = vmatprep.mubr.msk.bf16.mxu1 %vm470_vm0, %v11010_v1  ;;  %v1935_v8 = vmax.f32 %v1933_v57, %v1934_v61  ;;  %v1945_v20 = vmax.f32 %v1943_v25, %v1944_v28  ;;  %v11020_v46 = vpop.f32.mrb[61].mxu0  ;;  %v1676_v48 = vadd.f32 %v1535_v24, %v1323_v49  ;;  %v1532_v3 = vsel %vm1481_vm1, %v1530_v34, %v1531_v33  ;;  %v1391_v16 = vld [vmem:[#allocation2 + $0x4c8] sm:$0xfe]  ;;  %v1130_v12 = vpop.f32.mrb[61].mxu1  ;;  %v1321_v32 = vld [vmem:[#allocation2 + $0x400] sm:$0xff]  ;;  %v10096_v62 = vld [vmem:[%s10316_s17 + $0xf8] sm:$0xff]  }
 0x16b   : > { %v1957_v47 = vmax.f32 %v1955_v38, %v1956_v37  ;;  %v1948_v21 = vrot.slane %v1947_v4, 4  ;;  %v1805_v53 = vld [vmem:[#allocation2 + $0x460] sm:$0x7f]  ;;  %1745 = vst [vmem:[#allocation2 + $0x4e0] sm:$0x7f] %v1681_v15  ;;  %1267 = vst [vmem:[#allocation2 + $0x548] sm:$0xff] %v9381_v27  ;;  %v1674_v42 = vadd.f32 %v1532_v3, %v1321_v32 }
 0x16c   : > { %v1936_v7 = vrot.slane %v1935_v8, 1  ;;  %v1970_v10 = vsel %vm1481_vm1, %v1805_v53, -inf  ;;  %v9426_v23 = vpop.f32.mrb[62].mxu0  ;;  %v2140_v17 = vmax.f32 %v2108_v29, 0.0  ;;  %1265 = vst [vmem:[#allocation2 + $0x508] sm:$0xff] %v1130_v12  ;;  %v11024_v57 = vpop.f32.mrb[62].mxu1  ;;  %v11033_v63 = vadd.f32 %v10782_v54, %v1945_v20 }
 0x16d   : > { %v1958_v25 = vrot.slane %v1957_v47, 2  ;;  %v1949_v18 = vmax.f32 %v1947_v4, %v1948_v21  ;;  %2588 = vst [vmem:[#allocation2 + $0x260] sm:$0xff] %v9426_v23  ;;  %v2381_v59 = vpop.f32.mrb[63].mxu0  ;;  %v1971_v13 = vmax.f32 %v1676_v48, %v1970_v10  ;;  %v1539_v28 = vrot.slane %v1391_v16, 1  ;;  %v11027_v38 = vpop.f32.mrb[63].mxu1  ;;  %v11038_v4 = vld [vmem:[%s10316_s17 + $0x58] sm:$0xff]  }
 0x16e   : > { %v1937_v26 = vmax.f32 %v1935_v8, %v1936_v7  ;;  %v1537_v33 = vrot.slane %v10995_v19, 1  ;;  %2586 = vst [vmem:[#allocation2 + $0x220] sm:$0xff] %v2381_v59  ;;  %v2139_v5 = vmax.f32 %v2107_v56, 0.0  ;;  %v1546_v61 = vrot.slane %v11024_v57, 1  ;;  %9604 = vmatmul.mubr.msk.bf16.gmra.mrb[168].mxu0 %vm470_vm0, %v10096_v62  ;;  %v1326_v34 = vld [vmem:[#allocation2 + $0x4a0] sm:$0x7f] }
 0x16f   : > { %v1972_v0 = vrot.slane %v1971_v13, 4  ;;  %v1541_v37 = vsel %vm1481_vm1, %v1539_v28, %v1540_v2  ;;  %9679 = vmatprep.mubr.msk.bf16.mxu0 %vm470_vm0, %v10821_v58  ;;  %v11044_v6 = vmax.f32 %v1957_v47, %v1958_v25  ;;  %v1950_v8 = vrot.slane %v1949_v18, 2  ;;  %v1389_v15 = vld [vmem:[#allocation2 + $0x488] sm:$0xfe]  ;;  %v11049_v20 = vld [vmem:[%s10316_s17 + $0x60] sm:$0xff]   ;;  %v11101_v57 = vld [vmem:[%s10316_s17 + $0x70] sm:$0xff]  }
 0x170   : > { %v1803_v60 = vld [vmem:[#allocation2 + $0x420] sm:$0x7f]  ;;  %v11046_v56 = vrot.slane %v2140_v17, 5  ;;  %v11054_v2 = vadd.f32 %v10782_v54, %v1937_v26  ;;  %v1679_v58 = vadd.f32 %v1537_v33, %v1326_v34  ;;  %v11060_v27 = vrot.slane %v2139_v5, 6 }
 0x171   : > { %v1962_v29 = vsel %vm1481_vm1, %v1803_v60, -inf  ;;  %9632 = vmatmul.mubr.msk.bf16.gmra.mrb[168].mxu1 %vm470_vm0, %v11038_v4  ;;  %v1973_v21 = vmax.f32 %v1971_v13, %v1972_v0  ;;  %v1327_v49 = vld [vmem:[#allocation2 + $0x4c0] sm:$0xff]  ;;  %v11058_v53 = vpop.f32.mrb[64].mxu0  ;;  %v9385_v16 = vpop.f32.mrb[64].mxu1  ;;  %v1536_v59 = vrot.slane %v1389_v15, 1  ;;  %v1960_v32 = vrot.slane %v11044_v6, 1 }
 0x172   : > { %v1963_v24 = vmax.f32 %v1674_v42, %v1962_v29  ;;  %9635 = vmatprep.mubr.msk.bf16.mxu1 %vm470_vm0, %v11049_v20  ;;  %v1332_v47 = vld [vmem:[#allocation2 + $0x560] sm:$0x7f]  ;;  %v1680_v48 = vadd.f32 %v1541_v37, %v1327_v49  ;;  %v11064_v12 = vpop.f32.mrb[65].mxu0  ;;  %1743 = vst [vmem:[#allocation2 + $0x4a0] sm:$0x7f] %v1679_v58  ;;  %1271 = vst [vmem:[#allocation2 + $0x5c8] sm:$0xff] %v9385_v16  ;;  %v11069_v28 = vmax.f32 %v1949_v18, %v1950_v8 }
 0x173   : > { %v1809_v10 = vld [vmem:[#allocation2 + $0x4e0] sm:$0x7f]  ;;  %v1685_v3 = vadd.f32 %v1546_v61, %v1332_v47  ;;  %13576 = vst [vmem:[#allocation8_spill] sm:$0xff] %v11064_v12  ;;  %v1974_v17 = vrot.slane %v1973_v21, 2  ;;  %v1146_v26 = vpop.f32.mrb[65].mxu1  ;;  %v9430_v13 = vpop.f32.mrb[66].mxu0 }
 0x174   : > { %v1964_v7 = vrot.slane %v1963_v24, 4  ;;  %v1986_v25 = vsel %vm1481_vm1, %v1809_v10, -inf  ;;  %v1395_v60 = vld [vmem:[#allocation2 + $0x548] sm:$0xfe]  ;;  %v1330_v62 = vld [vmem:[#allocation2 + $0x520] sm:$0x7f] }
 0x175   : > { %v1987_v42 = vmax.f32 %v1680_v48, %v1986_v25  ;;  %1749 = vst [vmem:[#allocation2 + $0x560] sm:$0x7f] %v1685_v3  ;;  %v11074_v0 = vld [vmem:[%s13552_s1 + $0x68] ss:$36 sps:$4 sm:$0xff]   ;;  %1269 = vst [vmem:[#allocation2 + $0x588] sm:$0xff] %v1146_v26  ;;  %v11076_v29 = vpop.f32.mrb[66].mxu1  ;;  %v1975_v18 = vmax.f32 %v1973_v21, %v1974_v17 }
 0x176   : > { %v1965_v5 = vmax.f32 %v1963_v24, %v1964_v7  ;;  %2592 = vst [vmem:[#allocation2 + $0x2e0] sm:$0xff] %v9430_v13  ;;  %v2397_v37 = vpop.f32.mrb[67].mxu0  ;;  %v2141_v34 = vmax.f32 %v11054_v2, 0.0  ;;  %v1545_v8 = vrot.slane %v1395_v60, 1  ;;  %v1543_v24 = vrot.slane %v11027_v38, 1  ;;  %v11080_v15 = vpop.f32.mrb[67].mxu1  ;;  %9680 = vmatmul.mubr.msk.bf16.vlgmr.msra.gmra.mrb[172].mxu0 %vm470_vm0, %v10843_v44 }
 0x177   : > { %2590 = vst [vmem:[#allocation2 + $0x2a0] sm:$0xff] %v2397_v37  ;;  %v1988_v58 = vrot.slane %v1987_v42, 4  ;;  %v1393_v47 = vld [vmem:[#allocation2 + $0x508] sm:$0xfe]  ;;  %v1552_v7 = vrot.slane %v11076_v29, 1  ;;  %v1976_v48 = vrot.slane %v1975_v18, 1  ;;  %v1538_v2 = vsel %vm1481_vm1, %v1536_v59, %v1537_v33  ;;  %9683 = vmatprep.mubr.msk.bf16.mxu0 %vm470_vm0, %v10853_v45 }
 0x178   : > { %v1966_v49 = vrot.slane %v1965_v5, 2  ;;  %v1547_v38 = vsel %vm1481_vm1, %v1545_v8, %v1546_v61  ;;  %v1683_v21 = vadd.f32 %v1543_v24, %v1330_v62  ;;  %v11092_v10 = vld [vmem:[%s10316_s17 + $0x68] sm:$0xff]   ;;  %v10100_v3 = vld [vmem:[%s13552_s1 + $0x20] ss:$36 sps:$4 sm:$0xff]   ;;  %v1542_v19 = vrot.slane %v1393_v47, 1 }
 0x179   : > { %9636 = vmatmul.mubr.msk.bf16.gmra.mrb[172].mxu1 %vm470_vm0, %v11092_v10  ;;  %9812 = vmatpush3.bf16.msra.mxu0 %v10100_v3  ;;  %v1989_v16 = vmax.f32 %v1987_v42, %v1988_v58  ;;  %v1336_v17 = vld [vmem:[#allocation2 + $0x5e0] sm:$0x7f]  ;;  %v1549_v33 = vrot.slane %v11080_v15, 1  ;;  %v11108_v61 = vmax.f32 %v11044_v6, %v1960_v32  ;;  %v1952_v25 = vrot.slane %v11069_v28, 1  ;;  %v11113_v42 = vpop.f32.mrb[68].mxu0  ;;  %v9389_v6 = vpop.f32.mrb[68].mxu1 }
 0x17a   : > { %v1967_v44 = vmax.f32 %v1965_v5, %v1966_v49  ;;  %9639 = vmatprep.mubr.msk.bf16.mxu1 %vm470_vm0, %v11101_v57  ;;  %v1977_v59 = vmax.f32 %v1975_v18, %v1976_v48  ;;  %v1325_v26 = vld [vmem:[#allocation2 + $0x480] sm:$0xff]  ;;  %1747 = vst [vmem:[#allocation2 + $0x520] sm:$0x7f] %v1683_v21  ;;  %v1689_v13 = vadd.f32 %v1552_v7, %v1336_v17  ;;  %13577 = vst [vmem:[#allocation9_spill] sm:$0xff] %v11113_v42  ;;  %v11118_v32 = vpop.f32.mrb[69].mxu0  ;;  %v1162_v21 = vpop.f32.mrb[69].mxu1 }
 0x17b   : > { %v1334_v5 = vld [vmem:[#allocation2 + $0x5a0] sm:$0x7f]  ;;  %v1990_v62 = vrot.slane %v1989_v16, 2  ;;  %v1678_v37 = vadd.f32 %v1538_v2, %v1325_v26  ;;  %9813 = vmatprep.subr.bf16.mxu0 %v11074_v0  ;;  %13578 = vst [vmem:[#allocation10_spill] sm:$0xff] %v11118_v32  ;;  %v2217_v2 = vsel %vm2197_vm3, %v11060_v27, %v10971_v22  ;;  %1275 = vst [vmem:[#allocation2 + $0x648] sm:$0xff] %v9389_v6  ;;  %v9434_v3 = vpop.f32.mrb[70].mxu0 }
 0x17c   : > { %v1968_v60 = vrot.slane %v1967_v44, 1  ;;  %v1807_v8 = vld [vmem:[#allocation2 + $0x4a0] sm:$0x7f]  ;;  %v1687_v45 = vadd.f32 %v1549_v33, %v1334_v5  ;;  %v2114_v18 = vadd.f32 %v10782_v54, %v1977_v59  ;;  %1753 = vst [vmem:[#allocation2 + $0x5e0] sm:$0x7f] %v1689_v13  ;;  %v1544_v23 = vsel %vm1481_vm1, %v1542_v19, %v1543_v24  ;;  %1273 = vst [vmem:[#allocation2 + $0x608] sm:$0xff] %v1162_v21 }
 0x17d   : > { %v1331_v49 = vld [vmem:[#allocation2 + $0x540] sm:$0xff]  ;;  %v1978_v58 = vsel %vm1481_vm1, %v1807_v8, -inf  ;;  %9814 = vmatpush3.bf16.msra.mxu0 %v11074_v0  ;;  %v11128_v54 = vrot.slane %v2141_v34, 4  ;;  %2596 = vst [vmem:[#allocation2 + $0x360] sm:$0xff] %v9434_v3  ;;  %v2413_v59 = vpop.f32.mrb[71].mxu0  ;;  %v1991_v24 = vmax.f32 %v1989_v16, %v1990_v62 }
 0x17e   : > { %v1684_v47 = vadd.f32 %v1547_v38, %v1331_v49  ;;  %v1813_v48 = vld [vmem:[#allocation2 + $0x560] sm:$0x7f]  ;;  %v1969_v17 = vmax.f32 %v1967_v44, %v1968_v60  ;;  %v1979_v26 = vmax.f32 %v1678_v37, %v1978_v58  ;;  %1751 = vst [vmem:[#allocation2 + $0x5a0] sm:$0x7f] %v1687_v45  ;;  %v11130_v38 = vpop.f32.mrb[70].mxu1  ;;  %v2146_v22 = vmax.f32 %v2114_v18, 0.0  ;;  %9684 = vmatmul.mubr.msk.bf16.gmra.mrb[176].mxu0 %vm470_vm0, %v10884_v55 }
 0x17f   : > { %v2002_v5 = vsel %vm1481_vm1, %v1813_v48, -inf  ;;  %v11134_v44 = vsel %vm2200_vm4, %v11046_v56, %v2217_v2  ;;  %v11136_v13 = vpop.f32.mrb[71].mxu1  ;;  %2594 = vst [vmem:[#allocation2 + $0x320] sm:$0xff] %v2413_v59  ;;  %v11141_v0 = vld [vmem:[%s13553_s2] ss:$0 sm:$0xff]  ;;  %v13557_v56 = vrot.slane %v11130_v38, 1  ;;  %9687 = vmatprep.mubr.msk.bf16.mxu0 %vm470_vm0, %v10892_v35 }
 0x180   : > { %v2003_v27 = vmax.f32 %v1684_v47, %v2002_v5  ;;  %v2113_v34 = vadd.f32 %v11141_v0, %v1969_v17  ;;  %v1980_v19 = vrot.slane %v1979_v26, 4  ;;  %v1329_v60 = vld [vmem:[#allocation2 + $0x500] sm:$0xff]  ;;  %v1399_v37 = vld [vmem:[#allocation2 + $0x5c8] sm:$0xfe]  ;;  %v2228_v49 = vrot.slane %v2146_v22, 7  ;;  %v11148_v47 = vld [vmem:[%s10316_s17 + $0x78] sm:$0xff]  }
 0x181   : > { %v1340_v8 = vld [vmem:[#allocation2 + $0x660] sm:$0x7f]  ;;  %v1682_v6 = vadd.f32 %v1544_v23, %v1329_v60  ;;  %v1551_v18 = vrot.slane %v1399_v37, 1  ;;  %v1397_v58 = vld [vmem:[#allocation2 + $0x588] sm:$0xfe]  ;;  %9640 = vmatmul.mubr.msk.bf16.gmra.mrb[176].mxu1 %vm470_vm0, %v11148_v47  ;;  %v1992_v22 = vrot.slane %v1991_v24, 1 }
 0x182   : > { %v2004_v45 = vrot.slane %v2003_v27, 4  ;;  %v2145_v16 = vmax.f32 %v2113_v34, 0.0  ;;  %v1981_v62 = vmax.f32 %v1979_v26, %v1980_v19  ;;  %v1811_v48 = vld [vmem:[#allocation2 + $0x520] sm:$0x7f]  ;;  %v1548_v2 = vrot.slane %v1397_v58, 1  ;;  %v11166_v26 = vpop.f32.mrb[72].mxu0 }
 0x183   : > { %v11156_v55 = vld [vmem:[%s10316_s17 + $0x80] sm:$0xff]   ;;  %v1994_v3 = vsel %vm1481_vm1, %v1811_v48, -inf  ;;  %v1553_v5 = vsel %vm1481_vm1, %v1551_v18, %v1552_v7  ;;  %v1693_v35 = vadd.f32 %v13557_v56, %v1340_v8  ;;  %13579 = vst [vmem:[#allocation11_spill] sm:$0xff] %v11166_v26  ;;  %v9393_v37 = vpop.f32.mrb[72].mxu1 }
 0x184   : > { %9643 = vmatprep.mubr.msk.bf16.mxu1 %vm470_vm0, %v11156_v55  ;;  %v2005_v23 = vmax.f32 %v2003_v27, %v2004_v45  ;;  %v1335_v17 = vld [vmem:[#allocation2 + $0x5c0] sm:$0xff]  ;;  %v11169_v59 = vsel %vm2194_vm2, %v2228_v49, %v2145_v16  ;;  %v1982_v34 = vrot.slane %v1981_v62, 2  ;;  %v1995_v19 = vmax.f32 %v1682_v6, %v1994_v3  ;;  %v11171_v45 = vpop.f32.mrb[73].mxu0  ;;  %1279 = vst [vmem:[#allocation2 + $0x6c8] sm:$0xff] %v9393_v37  ;;  %v1178_v49 = vpop.f32.mrb[73].mxu1 }
 0x185   : > { %v1817_v60 = vld [vmem:[#allocation2 + $0x5e0] sm:$0x7f]  ;;  %13580 = vst [vmem:[#allocation12_spill] sm:$0xff] %v11171_v45  ;;  %v1688_v29 = vadd.f32 %v1553_v5, %v1335_v17  ;;  %v1550_v8 = vsel %vm1481_vm1, %v1548_v2, %v1549_v33  ;;  %1757 = vst [vmem:[#allocation2 + $0x660] sm:$0x7f] %v1693_v35  ;;  %v1953_v6 = vmax.f32 %v11069_v28, %v1952_v25  ;;  %v9438_v16 = vpop.f32.mrb[74].mxu0 }
 0x186   : > { %v1333_v27 = vld [vmem:[#allocation2 + $0x580] sm:$0xff]  ;;  %v2006_v58 = vrot.slane %v2005_v23, 2  ;;  %v2018_v7 = vsel %vm1481_vm1, %v1817_v60, -inf  ;;  %v1983_v48 = vmax.f32 %v1981_v62, %v1982_v34  ;;  %v1996_v3 = vrot.slane %v1995_v19, 4  ;;  %1277 = vst [vmem:[#allocation2 + $0x688] sm:$0xff] %v1178_v49  ;;  %v11180_v17 = vpop.f32.mrb[74].mxu1  ;;  %9688 = vmatmul.mubr.msk.bf16.gmra.mrb[180].mxu0 %vm470_vm0, %v10927_v9 }
 0x187   : > { %v1815_v18 = vld [vmem:[#allocation2 + $0x5a0] sm:$0x7f]  ;;  %v1686_v56 = vadd.f32 %v1550_v8, %v1333_v27  ;;  %2600 = vst [vmem:[#allocation2 + $0x3e0] sm:$0xff] %v9438_v16  ;;  %v2429_v15 = vpop.f32.mrb[75].mxu0  ;;  %v2019_v33 = vmax.f32 %v1688_v29, %v2018_v7  ;;  %v13581_v35 = vrot.slane %v11136_v13, 1  ;;  %v11185_v37 = vpop.f32.mrb[75].mxu1  ;;  %v1993_v28 = vmax.f32 %v1991_v24, %v1992_v22  ;;  %9691 = vmatprep.mubr.msk.bf16.mxu0 %vm470_vm0, %v10934_v11 }
 0x188   : > { %v1338_v21 = vld [vmem:[#allocation2 + $0x620] sm:$0x7f]  ;;  %v2007_v5 = vmax.f32 %v2005_v23, %v2006_v58  ;;  %v2010_v2 = vsel %vm1481_vm1, %v1815_v18, -inf  ;;  %2598 = vst [vmem:[#allocation2 + $0x3a0] sm:$0xff] %v2429_v15  ;;  %v1984_v25 = vrot.slane %v1983_v48, 1  ;;  %v1997_v62 = vmax.f32 %v1995_v19, %v1996_v3  ;;  %v11201_v49 = vld [vmem:[%s10316_s17 + $0x90] sm:$0xff]  }
 0x189   : > { %v1691_v60 = vadd.f32 %v13581_v35, %v1338_v21  ;;  %v2011_v34 = vmax.f32 %v1686_v56, %v2010_v2  ;;  %v1403_v27 = vld [vmem:[#allocation2 + $0x648] sm:$0xfe]  ;;  %v2020_v58 = vrot.slane %v2019_v33, 4  ;;  %v1564_v8 = vrot.slane %v11180_v17, 1  ;;  %v1344_v19 = vld [vmem:[#allocation2 + $0x6e0] sm:$0x7f] }
 0x18a   : > { %v2008_v23 = vrot.slane %v2007_v5, 1  ;;  %v1557_v29 = vrot.slane %v1403_v27, 1  ;;  %v1401_v7 = vld [vmem:[#allocation2 + $0x608] sm:$0xfe]  ;;  %v1985_v24 = vmax.f32 %v1983_v48, %v1984_v25  ;;  %v1998_v56 = vrot.slane %v1997_v62, 2  ;;  %v1339_v3 = vld [vmem:[#allocation2 + $0x640] sm:$0xff] }
 0x18b   : > { %1755 = vst [vmem:[#allocation2 + $0x620] sm:$0x7f] %v1691_v60  ;;  %v11191_v21 = vld [vmem:[%s10316_s17 + $0x88] sm:$0xff]   ;;  %v2012_v22 = vrot.slane %v2011_v34, 4  ;;  %v1554_v9 = vrot.slane %v1401_v7, 1  ;;  %v11198_v18 = vadd.f32 %v11141_v0, %v1953_v6  ;;  %v13582_v15 = vrot.slane %v11130_v38, 1 }
 0x18c   : > { %9644 = vmatmul.mubr.msk.bf16.gmra.mrb[180].mxu1 %vm470_vm0, %v11191_v21  ;;  %v2009_v16 = vmax.f32 %v2007_v5, %v2008_v23  ;;  %v1697_v11 = vadd.f32 %v1564_v8, %v1344_v19  ;;  %v11210_v48 = vpop.f32.mrb[76].mxu0  ;;  %v2116_v35 = vadd.f32 %v11141_v0, %v1993_v28  ;;  %v1999_v6 = vmax.f32 %v1997_v62, %v1998_v56  ;;  %v1821_v27 = vld [vmem:[#allocation2 + $0x660] sm:$0x7f]  ;;  %v9397_v7 = vpop.f32.mrb[76].mxu1 }
 0x18d   : > { %9647 = vmatprep.mubr.msk.bf16.mxu1 %vm470_vm0, %v11201_v49  ;;  %v1559_v2 = vsel %vm1481_vm1, %v1557_v29, %v13582_v15  ;;  %13583 = vst [vmem:[#allocation13_spill] sm:$0xff] %v11210_v48  ;;  %v2013_v60 = vmax.f32 %v2011_v34, %v2012_v22  ;;  %v11213_v52 = vpop.f32.mrb[77].mxu0  ;;  %v2115_v5 = vadd.f32 %v11141_v0, %v1985_v24  ;;  %v2034_v38 = vsel %vm1481_vm1, %v1821_v27, -inf  ;;  %v1407_v15 = vld [vmem:[#allocation2 + $0x6c8] sm:$0xfe]  ;;  %v1194_v34 = vpop.f32.mrb[77].mxu1 }
 0x18e   : > { %v1692_v25 = vadd.f32 %v1559_v2, %v1339_v3  ;;  %13584 = vst [vmem:[#allocation14_spill] sm:$0xff] %v11213_v52  ;;  %v2021_v23 = vmax.f32 %v2019_v33, %v2020_v58  ;;  %v13585_v29 = vrot.slane %v11136_v13, 1  ;;  %1761 = vst [vmem:[#allocation2 + $0x6e0] sm:$0x7f] %v1697_v11  ;;  %v13586_v28 = vmax.f32 %v11033_v63, 0.0  ;;  %v9442_v56 = vpop.f32.mrb[78].mxu0  ;;  %9692 = vmatmul.mubr.msk.bf16.gmra.mrb[184].mxu0 %vm470_vm0, %v10964_v39 }
 0x18f   : > { %1283 = vst [vmem:[#allocation2 + $0x748] sm:$0xff] %v9397_v7  ;;  %v2118_v22 = vadd.f32 %v11141_v0, %v2009_v16  ;;  %v11227_v33 = vadd.f32 %v11141_v0, %v11108_v61  ;;  %1281 = vst [vmem:[#allocation2 + $0x708] sm:$0xff] %v1194_v34  ;;  %v11229_v13 = vpop.f32.mrb[78].mxu1  ;;  %v2445_v58 = vpop.f32.mrb[79].mxu0  ;;  %v2000_v24 = vrot.slane %v1999_v6, 1  ;;  %v1337_v63 = vld [vmem:[#allocation2 + $0x600] sm:$0xff]  ;;  %v11235_v16 = vsel %vm2203_vm5, %v11128_v54, %v11134_v44 }
 0x190   : > { %v1556_v19 = vsel %vm1481_vm1, %v1554_v9, %v13585_v29  ;;  %v11222_v62 = vrot.slane %v13586_v28, 3  ;;  %v2035_v3 = vmax.f32 %v1692_v25, %v2034_v38  ;;  %2604 = vst [vmem:[#allocation2 + $0x460] sm:$0xff] %v9442_v56  ;;  %v2014_v9 = vrot.slane %v2013_v60, 2  ;;  %v11237_v11 = vpop.f32.mrb[79].mxu1  ;;  %2602 = vst [vmem:[#allocation2 + $0x420] sm:$0xff] %v2445_v58  ;;  %v11243_v2 = vld [vmem:[%s10316_s17 + $0x98] sm:$0xff]   ;;  %9695 = vmatprep.mubr.msk.bf16.mxu0 %vm470_vm0, %v10974_v30 }
 0x191   : > { %v2148_v61 = vmax.f32 %v2116_v35, 0.0  ;;  %v1690_v27 = vadd.f32 %v1556_v19, %v1337_v63  ;;  %v1563_v38 = vrot.slane %v1407_v15, 1  ;;  %v2147_v29 = vmax.f32 %v2115_v5, 0.0  ;;  %v1343_v19 = vld [vmem:[#allocation2 + $0x6c0] sm:$0xff]  ;;  %v1405_v63 = vld [vmem:[#allocation2 + $0x688] sm:$0xfe] }
 0x192   : > { %v2036_v25 = vrot.slane %v2035_v3, 4  ;;  %v1819_v7 = vld [vmem:[#allocation2 + $0x620] sm:$0x7f]  ;;  %v2022_v28 = vrot.slane %v2021_v23, 2  ;;  %v2015_v34 = vmax.f32 %v2013_v60, %v2014_v9  ;;  %v2150_v54 = vmax.f32 %v2118_v22, 0.0  ;;  %v9401_v15 = vpop.f32.mrb[80].mxu1 }
 0x193   : > { %v2026_v56 = vsel %vm1481_vm1, %v1819_v7, -inf  ;;  %v11251_v39 = vld [vmem:[%s10316_s17 + $0xa0] sm:$0xff]   ;;  %v2001_v60 = vmax.f32 %v1999_v6, %v2000_v24  ;;  %v1565_v58 = vsel %vm1481_vm1, %v1563_v38, %v1564_v8  ;;  %v1561_v30 = vrot.slane %v11185_v37, 1  ;;  %1287 = vst [vmem:[#allocation2 + $0x7c8] sm:$0xff] %v9401_v15  ;;  %v1210_v37 = vpop.f32.mrb[81].mxu1 }
 0x194   : > { %9648 = vmatmul.mubr.msk.bf16.gmra.mrb[184].mxu1 %vm470_vm0, %v11243_v2  ;;  %v2037_v44 = vmax.f32 %v2035_v3, %v2036_v25  ;;  %v2027_v35 = vmax.f32 %v1690_v27, %v2026_v56  ;;  %v2016_v5 = vrot.slane %v2015_v34, 1  ;;  %v1342_v9 = vld [vmem:[#allocation2 + $0x6a0] sm:$0x7f]  ;;  %v11259_v22 = vrot.slane %v2148_v61, 5  ;;  %v11261_v3 = vpop.f32.mrb[80].mxu0  ;;  %1285 = vst [vmem:[#allocation2 + $0x788] sm:$0xff] %v1210_v37 }
 0x195   : > { %9651 = vmatprep.mubr.msk.bf16.mxu1 %vm470_vm0, %v11251_v39  ;;  %13587 = vst [vmem:[#allocation15_spill] sm:$0xff] %v11261_v3  ;;  %v1696_v7 = vadd.f32 %v1565_v58, %v1343_v19  ;;  %v1825_v56 = vld [vmem:[#allocation2 + $0x6e0] sm:$0x7f]  ;;  %v11263_v52 = vrot.slane %v2147_v29, 6  ;;  %v11265_v6 = vpop.f32.mrb[81].mxu0  ;;  %v11267_v17 = vmax.f32 %v2021_v23, %v2022_v28  ;;  %v1695_v24 = vadd.f32 %v1561_v30, %v1342_v9  ;;  %v11272_v58 = vpop.f32.mrb[82].mxu1 }
 0x196   : > { %v2038_v25 = vrot.slane %v2037_v44, 2  ;;  %v2028_v27 = vrot.slane %v2027_v35, 4  ;;  %13588 = vst [vmem:[#allocation16_spill] sm:$0xff] %v11265_v6  ;;  %v2050_v8 = vsel %vm1481_vm1, %v1825_v56, -inf  ;;  %v9446_v61 = vpop.f32.mrb[82].mxu0  ;;  %v11270_v38 = vrot.slane %v2150_v54, 3  ;;  %9696 = vmatmul.mubr.msk.bf16.gmra.mrb[188].mxu0 %vm470_vm0, %v11002_v36 }
 0x197   : > { %v2051_v45 = vmax.f32 %v1696_v7, %v2050_v8  ;;  %v1411_v19 = vld [vmem:[#allocation2 + $0x748] sm:$0xfe]  ;;  %2608 = vst [vmem:[#allocation2 + $0x4e0] sm:$0xff] %v9446_v61  ;;  %v2461_v29 = vpop.f32.mrb[83].mxu0  ;;  %v11275_v23 = vadd.f32 %v11141_v0, %v2001_v60  ;;  %v2017_v28 = vmax.f32 %v2015_v34, %v2016_v5  ;;  %v1560_v9 = vrot.slane %v1405_v63, 1  ;;  %v11278_v54 = vpop.f32.mrb[83].mxu1  ;;  %9699 = vmatprep.mubr.msk.bf16.mxu0 %vm470_vm0, %v11010_v1 }
 0x198   : > { %v2039_v3 = vmax.f32 %v2037_v44, %v2038_v25  ;;  %v2029_v48 = vmax.f32 %v2027_v35, %v2028_v27  ;;  %1759 = vst [vmem:[#allocation2 + $0x6a0] sm:$0x7f] %v1695_v24  ;;  %v1570_v15 = vrot.slane %v11229_v13, 1  ;;  %2606 = vst [vmem:[#allocation2 + $0x4a0] sm:$0xff] %v2461_v29  ;;  %v1348_v27 = vld [vmem:[#allocation2 + $0x760] sm:$0x7f]  ;;  %v2223_v7 = vsel %vm2206_vm6, %v11222_v62, %v11235_v16 }
 0x199   : > { %v2052_v25 = vrot.slane %v2051_v45, 4  ;;  %v1569_v60 = vrot.slane %v1411_v19, 1  ;;  %v13558_v13 = vrot.slane %v11237_v11, 1  ;;  %v11288_v63 = vld [vmem:[%s10316_s17 + $0xa8] sm:$0xff]   ;;  %v1346_v8 = vld [vmem:[#allocation2 + $0x720] sm:$0x7f]  ;;  %v1562_v19 = vsel %vm1481_vm1, %v1560_v9, %v1561_v30 }
 0x19a   : > { %v2040_v44 = vrot.slane %v2039_v3, 1  ;;  %v2030_v35 = vrot.slane %v2029_v48, 2  ;;  %v1701_v5 = vadd.f32 %v1570_v15, %v1348_v27  ;;  %v1409_v24 = vld [vmem:[#allocation2 + $0x708] sm:$0xfe]  ;;  %v1576_v36 = vrot.slane %v11272_v58, 1  ;;  %v11297_v61 = vld [vmem:[%s10316_s17 + $0xb0] sm:$0xff]  }
 0x19b   : > { %v2053_v16 = vmax.f32 %v2051_v45, %v2052_v25  ;;  %v2149_v37 = vmax.f32 %v11275_v23, 0.0  ;;  %v1699_v1 = vadd.f32 %v13558_v13, %v1346_v8  ;;  %v1573_v45 = vrot.slane %v11278_v54, 1  ;;  %v1341_v25 = vld [vmem:[#allocation2 + $0x680] sm:$0xff]  ;;  %v9477_v34 = vpop.f32.mrb[84].mxu1 }
 0x19c   : > { %9652 = vmatmul.mubr.msk.bf16.gmra.mrb[188].mxu1 %vm470_vm0, %v11288_v63  ;;  %v2041_v56 = vmax.f32 %v2039_v3, %v2040_v44  ;;  %v2031_v62 = vmax.f32 %v2029_v48, %v2030_v35  ;;  %1765 = vst [vmem:[#allocation2 + $0x760] sm:$0x7f] %v1701_v5  ;;  %v1352_v3 = vld [vmem:[#allocation2 + $0x7e0] sm:$0x7f]  ;;  %v11305_v48 = vpop.f32.mrb[84].mxu0  ;;  %v11308_v29 = vadd.f32 %v11141_v0, %v2017_v28  ;;  %v1566_v9 = vrot.slane %v1409_v24, 1 }
 0x19d   : > { %9655 = vmatprep.mubr.msk.bf16.mxu1 %vm470_vm0, %v11297_v61  ;;  %13589 = vst [vmem:[#allocation17_spill] sm:$0xff] %v11305_v48  ;;  %v2054_v35 = vrot.slane %v2053_v16, 2  ;;  %v1350_v27 = vld [vmem:[#allocation2 + $0x7a0] sm:$0x7f]  ;;  %v11311_v30 = vpop.f32.mrb[85].mxu0  ;;  %v1705_v8 = vadd.f32 %v1576_v36, %v1352_v3  ;;  %v13591_v28 = vmax.f32 %v11198_v18, 0.0  ;;  %v1694_v42 = vadd.f32 %v1562_v19, %v1341_v25 }
 0x19e   : > { %v2122_v23 = vadd.f32 %v11141_v0, %v2041_v56  ;;  %v2032_v44 = vrot.slane %v2031_v62, 1  ;;  %13590 = vst [vmem:[#allocation18_spill] sm:$0xff] %v11311_v30  ;;  %1763 = vst [vmem:[#allocation2 + $0x720] sm:$0x7f] %v1699_v1  ;;  %v1415_v5 = vld [vmem:[#allocation2 + $0x7c8] sm:$0xfe]  ;;  %v1703_v13 = vadd.f32 %v1573_v45, %v1350_v27  ;;  %v1571_v30 = vsel %vm1481_vm1, %v1569_v60, %v1570_v15 }
 0x19f   : > { %v2224_v48 = vrot.slane %v13591_v28, 2  ;;  %2940 = vst [vmem:[#allocation2 + $0x48] sm:$0xff] %v9477_v34  ;;  %v2683_v56 = vpop.f32.mrb[85].mxu1  ;;  %v9450_v6 = vpop.f32.mrb[86].mxu0  ;;  %v2055_v12 = vmax.f32 %v2053_v16, %v2054_v35  ;;  %v1823_v3 = vld [vmem:[#allocation2 + $0x6a0] sm:$0x7f]  ;;  %9700 = vmatmul.mubr.msk.bf16.gmra.mrb[192].mxu0 %vm470_vm0, %v11038_v4 }
 0x1a0   : > { %v2154_v26 = vmax.f32 %v2122_v23, 0.0  ;;  %v2033_v32 = vmax.f32 %v2031_v62, %v2032_v44  ;;  %2938 = vst [vmem:[#allocation2 + $0x8] sm:$0xff] %v2683_v56  ;;  %2612 = vst [vmem:[#allocation2 + $0x560] sm:$0xff] %v9450_v6  ;;  %v9478_v24 = vpop.f32.mrb[86].mxu1  ;;  %v2477_v1 = vpop.f32.mrb[87].mxu0  ;;  %v13592_v18 = vmax.f32 %v11227_v33, 0.0  ;;  %v2231_v62 = vsel %vm2197_vm3, %v11263_v52, %v11169_v59  ;;  %9703 = vmatprep.mubr.msk.bf16.mxu0 %vm470_vm0, %v11049_v20 }
 0x1a1   : > { %1769 = vst [vmem:[#allocation2 + $0x7e0] sm:$0x7f] %v1705_v8  ;;  %1767 = vst [vmem:[#allocation2 + $0x7a0] sm:$0x7f] %v1703_v13  ;;  %v2225_v27 = vsel %vm2209_vm7, %v2224_v48, %v2223_v7  ;;  %v2686_v15 = vpop.f32.mrb[87].mxu1  ;;  %v2042_v16 = vsel %vm1481_vm1, %v1823_v3, -inf }
 0x1a2   : > { %v2226_v34 = vrot.slane %v13592_v18, 1  ;;  %2941 = vst [vmem:[#allocation2 + $0x68] sm:$0xff] %v9478_v24  ;;  %2610 = vst [vmem:[#allocation2 + $0x520] sm:$0xff] %v2477_v1  ;;  %v2242_v6 = vrot.slane %v2154_v26, 7  ;;  %v2121_v60 = vadd.f32 %v11141_v0, %v2033_v32  ;;  %v1575_v19 = vrot.slane %v1415_v5, 1  ;;  %v1347_v7 = vld [vmem:[#allocation2 + $0x740] sm:$0xff] }
 0x1a3   : > { %v1413_v13 = vld [vmem:[#allocation2 + $0x788] sm:$0xfe]  ;;  %v2234_v23 = vrot.slane %v2149_v37, 4  ;;  %2939 = vst [vmem:[#allocation2 + $0x28] sm:$0xff] %v2686_v15  ;;  %v2043_v33 = vmax.f32 %v1694_v42, %v2042_v16  ;;  %v13593_v52 = vrot.slane %v11237_v11, 1  ;;  %v11337_v32 = vld [vmem:[%s10316_s17 + $0xb8] sm:$0xff]   ;;  %v1700_v48 = vadd.f32 %v1571_v30, %v1347_v7 }
 0x1a4   : > { %v11334_v26 = vsel %vm2212_vm8, %v2226_v34, %v2225_v27  ;;  %9656 = vmatmul.mubr.msk.bf16.gmra.mrb[192].mxu1 %vm470_vm0, %v11337_v32  ;;  %v2153_v37 = vmax.f32 %v2121_v60, 0.0  ;;  %v1829_v4 = vld [vmem:[#allocation2 + $0x760] sm:$0x7f]  ;;  %v1572_v42 = vrot.slane %v1413_v13, 1  ;;  %v2151_v44 = vmax.f32 %v11308_v29, 0.0  ;;  %v11353_v28 = vpop.f32.mrb[88].mxu0 }
 0x1a5   : > { %v1568_v59 = vsel %vm1481_vm1, %v1566_v9, %v13593_v52  ;;  %13594 = vst [vmem:[#allocation19_spill] sm:$0xff] %v11334_v26  ;;  %v13595_v11 = vrot.slane %v11267_v17, 1  ;;  %v11348_v25 = vld [vmem:[%s10316_s17 + $0xc0] sm:$0xff]   ;;  %v2056_v9 = vrot.slane %v2055_v12, 1  ;;  %v2044_v5 = vrot.slane %v2043_v33, 4  ;;  %v9481_v1 = vpop.f32.mrb[88].mxu1 }
 0x1a6   : > { %9659 = vmatprep.mubr.msk.bf16.mxu1 %vm470_vm0, %v11348_v25  ;;  %v2066_v8 = vsel %vm1481_vm1, %v1829_v4, -inf  ;;  %v1345_v20 = vld [vmem:[#allocation2 + $0x700] sm:$0xff]  ;;  %v11356_v30 = vsel %vm2194_vm2, %v2242_v6, %v2153_v37  ;;  %v11361_v3 = vpop.f32.mrb[89].mxu0  ;;  %v2233_v34 = vsel %vm2200_vm4, %v11259_v22, %v2231_v62  ;;  %v2238_v15 = vrot.slane %v2151_v44, 2  ;;  %2944 = vst [vmem:[#allocation2 + $0xc8] sm:$0xff] %v9481_v1  ;;  %v2699_v6 = vpop.f32.mrb[89].mxu1 }
 0x1a7   : > { %v2025_v35 = vmax.f32 %v11267_v17, %v13595_v11  ;;  %v2067_v29 = vmax.f32 %v1700_v48, %v2066_v8  ;;  %v1698_v56 = vadd.f32 %v1568_v59, %v1345_v20  ;;  %v1827_v24 = vld [vmem:[#allocation2 + $0x720] sm:$0x7f]  ;;  %v1577_v17 = vsel %vm1481_vm1, %v1575_v19, %v1576_v36  ;;  %13596 = vst [vmem:[#allocation20_spill] sm:$0xff] %v11361_v3  ;;  %v9454_v60 = vpop.f32.mrb[90].mxu0  ;;  %v9482_v19 = vpop.f32.mrb[90].mxu1 }
 0x1a8   : > { %v2045_v27 = vmax.f32 %v2043_v33, %v2044_v5  ;;  %v2058_v18 = vsel %vm1481_vm1, %v1827_v24, -inf  ;;  %v1574_v58 = vsel %vm1481_vm1, %v1572_v42, %v1573_v45  ;;  %v2235_v36 = vsel %vm2203_vm5, %v2234_v23, %v2233_v34  ;;  %2942 = vst [vmem:[#allocation2 + $0x88] sm:$0xff] %v2699_v6  ;;  %2616 = vst [vmem:[#allocation2 + $0x5e0] sm:$0xff] %v9454_v60  ;;  %v2493_v33 = vpop.f32.mrb[91].mxu0  ;;  %v1351_v59 = vld [vmem:[#allocation2 + $0x7c0] sm:$0xff]  ;;  %v2702_v62 = vpop.f32.mrb[91].mxu1 }
 0x1a9   : > { %v2068_v16 = vrot.slane %v2067_v29, 4  ;;  %v2059_v13 = vmax.f32 %v1698_v56, %v2058_v18  ;;  %v2057_v7 = vmax.f32 %v2055_v12, %v2056_v9  ;;  %v2237_v22 = vsel %vm2206_vm6, %v11270_v38, %v2235_v36  ;;  %2945 = vst [vmem:[#allocation2 + $0xe8] sm:$0xff] %v9482_v19  ;;  %2614 = vst [vmem:[#allocation2 + $0x5a0] sm:$0xff] %v2493_v33  ;;  %v1833_v45 = vld [vmem:[#allocation2 + $0x7e0] sm:$0x7f]  ;;  %v11384_v5 = vld [vmem:[%s10316_s17 + $0xc8] sm:$0xff]  }
 0x1aa   : > { %v2046_v52 = vrot.slane %v2045_v27, 2  ;;  %v1704_v48 = vadd.f32 %v1577_v17, %v1351_v59  ;;  %v1349_v4 = vld [vmem:[#allocation2 + $0x780] sm:$0xff]  ;;  %v11373_v23 = vsel %vm2209_vm7, %v2238_v15, %v2237_v22  ;;  %2943 = vst [vmem:[#allocation2 + $0xa8] sm:$0xff] %v2702_v62  ;;  %9704 = vmatmul.mubr.msk.bf16.gmra.mrb[196].mxu0 %vm470_vm0, %v11092_v10  ;;  %v2082_v38 = vsel %vm1481_vm1, %v1833_v45, -inf  ;;  %v11378_v11 = vld [vmem:[#allocation2 + $0x68] sm:$0x7f] }
 0x1ab   : > { %v2069_v37 = vmax.f32 %v2067_v29, %v2068_v16  ;;  %v2060_v54 = vrot.slane %v2059_v13, 4  ;;  %v1702_v42 = vadd.f32 %v1574_v58, %v1349_v4  ;;  %v1831_v44 = vld [vmem:[#allocation2 + $0x7a0] sm:$0x7f]  ;;  %v11381_v9 = vadd.f32 %v11141_v0, %v2025_v35  ;;  %9707 = vmatprep.mubr.msk.bf16.mxu0 %vm470_vm0, %v11101_v57  ;;  %v11391_v56 = vld [vmem:[#allocation2 + $0x28] sm:$0x7f]  ;;  %v11394_v24 = vld [vmem:[%s10316_s17 + $0xd0] sm:$0xff]  }
 0x1ac   : > { %v2047_v12 = vmax.f32 %v2045_v27, %v2046_v52  ;;  %9660 = vmatmul.mubr.msk.bf16.gmra.mrb[196].mxu1 %vm470_vm0, %v11384_v5  ;;  %v2083_v20 = vmax.f32 %v1704_v48, %v2082_v38  ;;  %v2074_v29 = vsel %vm1481_vm1, %v1831_v44, -inf  ;;  %v2124_v35 = vadd.f32 %v11141_v0, %v2057_v7  ;;  %v11400_v18 = vpop.f32.mrb[92].mxu0  ;;  %v3374_v6 = vld [vmem:[#allocation2 + $0x60] sm:$0x3f]  ;;  %v9485_v16 = vpop.f32.mrb[92].mxu1 }
 0x1ad   : > { %v2070_v8 = vrot.slane %v2069_v37, 2  ;;  %v2061_v10 = vmax.f32 %v2059_v13, %v2060_v54  ;;  %9663 = vmatprep.mubr.msk.bf16.mxu1 %vm470_vm0, %v11394_v24  ;;  %v2075_v1 = vmax.f32 %v1702_v42, %v2074_v29  ;;  %v13568_v27 = vrot.slane %v11378_v11, 1  ;;  %13597 = vst [vmem:[#allocation21_spill] sm:$0xff] %v11400_v18  ;;  %v11403_v13 = vpop.f32.mrb[93].mxu0  ;;  %2948 = vst [vmem:[#allocation2 + $0x148] sm:$0xff] %v9485_v16  ;;  %v2715_v33 = vpop.f32.mrb[93].mxu1 }
 0x1ae   : > { %v2048_v17 = vrot.slane %v2047_v12, 1  ;;  %v2084_v15 = vrot.slane %v2083_v20, 4  ;;  %v13567_v60 = vrot.slane %v11391_v56, 1  ;;  %13598 = vst [vmem:[#allocation22_spill] sm:$0xff] %v11403_v13  ;;  %v3372_v59 = vld [vmem:[#allocation2 + $0x20] sm:$0x3f] }
 0x1af   : > { %v2071_v57 = vmax.f32 %v2069_v37, %v2070_v8  ;;  %v2062_v34 = vrot.slane %v2061_v10, 2  ;;  %v2076_v36 = vrot.slane %v2075_v1, 4  ;;  %v3726_v19 = vadd.f32 %v13568_v27, %v3374_v6  ;;  %v3378_v22 = vld [vmem:[#allocation2 + $0xe0] sm:$0x3f]  ;;  %2946 = vst [vmem:[#allocation2 + $0x108] sm:$0xff] %v2715_v33  ;;  %v9458_v37 = vpop.f32.mrb[94].mxu0 }
 0x1b0   : > { %v2049_v58 = vmax.f32 %v2047_v12, %v2048_v17  ;;  %v2085_v52 = vmax.f32 %v2083_v20, %v2084_v15  ;;  %v11407_v62 = vld [vmem:[#allocation2 + $0xe8] sm:$0x7f]  ;;  %v2156_v54 = vmax.f32 %v2124_v35, 0.0  ;;  %v2152_v4 = vmax.f32 %v11381_v9, 0.0  ;;  %2620 = vst [vmem:[#allocation2 + $0x660] sm:$0xff] %v9458_v37  ;;  %v9486_v42 = vpop.f32.mrb[94].mxu1 }
 0x1b1   : > { %v2063_v7 = vmax.f32 %v2061_v10, %v2062_v34  ;;  %v2077_v45 = vmax.f32 %v2075_v1, %v2076_v36  ;;  %3790 = vst [vmem:[#allocation2 + $0x60] sm:$0x3f] %v3726_v19  ;;  %v13565_v12 = vrot.slane %v11407_v62, 1  ;;  %v11412_v38 = vld [vmem:[#allocation2 + $0xa8] sm:$0x7f]  ;;  %v2509_v44 = vpop.f32.mrb[95].mxu0  ;;  %v3724_v10 = vadd.f32 %v13567_v60, %v3372_v59 }
 0x1b2   : > { %v2123_v48 = vadd.f32 %v11141_v0, %v2049_v58  ;;  %v2072_v8 = vrot.slane %v2071_v57, 1  ;;  %v13563_v20 = vrot.slane %v11412_v38, 1  ;;  %2949 = vst [vmem:[#allocation2 + $0x168] sm:$0xff] %v9486_v42  ;;  %2618 = vst [vmem:[#allocation2 + $0x620] sm:$0xff] %v2509_v44  ;;  %v2718_v29 = vpop.f32.mrb[95].mxu1  ;;  %9708 = vmatmul.mubr.msk.bf16.gmra.mrb[200].mxu0 %vm470_vm0, %v11148_v47  ;;  %v2086_v17 = vrot.slane %v2085_v52, 2 }
 0x1b3   : > { %v2064_v35 = vrot.slane %v2063_v7, 1  ;;  %v3376_v1 = vld [vmem:[#allocation2 + $0xa0] sm:$0x3f]  ;;  %v3730_v34 = vadd.f32 %v13565_v12, %v3378_v22  ;;  %2947 = vst [vmem:[#allocation2 + $0x128] sm:$0xff] %v2718_v29  ;;  %v11422_v15 = vld [vmem:[%s10316_s17 + $0xd8] sm:$0xff]   ;;  %9711 = vmatprep.mubr.msk.bf16.mxu0 %vm470_vm0, %v11156_v55  ;;  %v2078_v16 = vrot.slane %v2077_v45, 2 }
 0x1b4   : > { %v2155_v9 = vmax.f32 %v2123_v48, 0.0  ;;  %9664 = vmatmul.mubr.msk.bf16.gmra.mrb[200].mxu1 %vm470_vm0, %v11422_v15  ;;  %v2073_v6 = vmax.f32 %v2071_v57, %v2072_v8  ;;  %v8251_v47 = vld [vmem:[%s13554_s3 + $0x80] sm:$0xff]  ;;  %v8252_v58 = vld [vmem:[%s13554_s3 + $0x88] sm:$0xff]  ;;  %3788 = vst [vmem:[#allocation2 + $0x20] sm:$0x3f] %v3724_v10  ;;  %v3728_v36 = vadd.f32 %v13563_v20, %v3376_v1  ;;  %v2240_v55 = vrot.slane %v2152_v4, 1 }
 0x1b5   : > { %v11437_v33 = vld [vmem:[%s10316_s17 + $0xe0] sm:$0xff]   ;;  %3794 = vst [vmem:[#allocation2 + $0xe0] sm:$0x3f] %v3730_v34  ;;  %v2246_v57 = vrot.slane %v2156_v54, 5  ;;  %v11441_v59 = vpop.f32.mrb[96].mxu0  ;;  %v2065_v37 = vmax.f32 %v2063_v7, %v2064_v35  ;;  %v9489_v48 = vpop.f32.mrb[96].mxu1  ;;  %v2087_v44 = vmax.f32 %v2085_v52, %v2086_v17  ;;  %v2079_v8 = vmax.f32 %v2077_v45, %v2078_v16 }
 0x1b6   : > { %v2244_v19 = vrot.slane %v2155_v9, 6  ;;  %9667 = vmatprep.mubr.msk.bf16.mxu1 %vm470_vm0, %v11437_v33  ;;  %13599 = vst [vmem:[#allocation23_spill] sm:$0xff] %v11441_v59  ;;  %v2126_v22 = vadd.f32 %v11141_v0, %v2073_v6  ;;  %3792 = vst [vmem:[#allocation2 + $0xa0] sm:$0x3f] %v3728_v36  ;;  %v11444_v42 = vpop.f32.mrb[97].mxu0  ;;  %v9917_v10 = vpack.c.bf16 %v8252_v58, %v8251_v47  ;;  %v2731_v4 = vpop.f32.mrb[97].mxu1 }
 0x1b7   : > { %13600 = vst [vmem:[#allocation24_spill] sm:$0xff] %v11444_v42  ;;  %v11448_v29 = vsel %vm2212_vm8, %v2240_v55, %v11373_v23  ;;  %2952 = vst [vmem:[#allocation2 + $0x1c8] sm:$0xff] %v9489_v48  ;;  %v9462_v9 = vpop.f32.mrb[98].mxu0  ;;  %v2125_v54 = vadd.f32 %v11141_v0, %v2065_v37  ;;  %v9490_v7 = vpop.f32.mrb[98].mxu1  ;;  %v2088_v16 = vrot.slane %v2087_v44, 1  ;;  %v2080_v47 = vrot.slane %v2079_v8, 1 }
 0x1b8   : > { %13601 = vst [vmem:[#allocation25_spill] sm:$0xff] %v11448_v29  ;;  %v2245_v1 = vsel %vm2197_vm3, %v2244_v19, %v11356_v30  ;;  %2950 = vst [vmem:[#allocation2 + $0x188] sm:$0xff] %v2731_v4  ;;  %v2525_v35 = vpop.f32.mrb[99].mxu0  ;;  %9918 = vmatprep.subr.bf16.mxu1 %v9917_v10  ;;  %v2734_v23 = vpop.f32.mrb[99].mxu1  ;;  %v2158_v17 = vmax.f32 %v2126_v22, 0.0  ;;  %v11463_v19 = vld [vmem:[%s10316_s17 + $0xe8] sm:$0xff]  }
 0x1b9   : > { %2624 = vst [vmem:[#allocation2 + $0x6e0] sm:$0xff] %v9462_v9  ;;  %v2247_v52 = vsel %vm2200_vm4, %v2246_v57, %v2245_v1  ;;  %v11454_v45 = vld [vmem:[#allocation2 + $0x168] sm:$0x7f]  ;;  %2953 = vst [vmem:[#allocation2 + $0x1e8] sm:$0xff] %v9490_v7  ;;  %v2157_v30 = vmax.f32 %v2125_v54, 0.0  ;;  %v2081_v37 = vmax.f32 %v2079_v8, %v2080_v47  ;;  %v11478_v10 = vpop.f32.mrb[100].mxu0  ;;  %v2089_v54 = vmax.f32 %v2087_v44, %v2088_v16 }
 0x1ba   : > { %2622 = vst [vmem:[#allocation2 + $0x6a0] sm:$0xff] %v2525_v35  ;;  %v13562_v34 = vrot.slane %v11454_v45, 1  ;;  %v11457_v6 = vld [vmem:[#allocation2 + $0x128] sm:$0x7f]  ;;  %2951 = vst [vmem:[#allocation2 + $0x1a8] sm:$0xff] %v2734_v23  ;;  %9712 = vmatmul.mubr.msk.bf16.gmra.mrb[204].mxu0 %vm470_vm0, %v11191_v21  ;;  %v11472_v21 = vld [vmem:[%s10316_s17 + $0xf0] sm:$0xff]  }
 0x1bb   : > { %v3382_v58 = vld [vmem:[#allocation2 + $0x160] sm:$0x3f]  ;;  %v13561_v36 = vrot.slane %v11457_v6, 1  ;;  %9715 = vmatprep.mubr.msk.bf16.mxu0 %vm470_vm0, %v11201_v49  ;;  %v2248_v22 = vrot.slane %v2157_v30, 4  ;;  %13602 = vst [vmem:[#allocation26_spill] sm:$0xff] %v11478_v10  ;;  %v2250_v4 = vrot.slane %v2158_v17, 3  ;;  %v2127_v1 = vadd.f32 %v11141_v0, %v2081_v37 }
 0x1bc   : > { %9668 = vmatmul.mubr.msk.bf16.gmra.mrb[204].mxu1 %vm470_vm0, %v11463_v19  ;;  %v3380_v55 = vld [vmem:[#allocation2 + $0x120] sm:$0x3f]  ;;  %v3734_v57 = vadd.f32 %v13562_v34, %v3382_v58  ;;  %v9493_v9 = vpop.f32.mrb[100].mxu1  ;;  %v11480_v49 = vpop.f32.mrb[101].mxu0  ;;  %v3437_v12 = vld [vmem:[#allocation2 + $0x48] sm:$0xfe] }
 0x1bd   : > { %9671 = vmatprep.mubr.msk.bf16.mxu1 %vm470_vm0, %v11472_v21  ;;  %v3732_v48 = vadd.f32 %v13561_v36, %v3380_v55  ;;  %13603 = vst [vmem:[#allocation27_spill] sm:$0xff] %v11480_v49  ;;  %2956 = vst [vmem:[#allocation2 + $0x248] sm:$0xff] %v9493_v9  ;;  %v2747_v7 = vpop.f32.mrb[101].mxu1  ;;  %v2249_v35 = vsel %vm2203_vm5, %v2248_v22, %v2247_v52  ;;  %v9466_v8 = vpop.f32.mrb[102].mxu0  ;;  %v3386_v58 = vld [vmem:[#allocation2 + $0x1e0] sm:$0x3f] }
 0x1be   : > { %3798 = vst [vmem:[#allocation2 + $0x160] sm:$0x3f] %v3734_v57  ;;  %2954 = vst [vmem:[#allocation2 + $0x208] sm:$0xff] %v2747_v7  ;;  %v2251_v30 = vsel %vm2206_vm6, %v2250_v4, %v2249_v35  ;;  %v9494_v44 = vpop.f32.mrb[102].mxu1  ;;  %v2541_v16 = vpop.f32.mrb[103].mxu0  ;;  %v2128_v57 = vadd.f32 %v11141_v0, %v2089_v54  ;;  %v2159_v22 = vmax.f32 %v2127_v1, 0.0 }
 0x1bf   : > { %3796 = vst [vmem:[#allocation2 + $0x120] sm:$0x3f] %v3732_v48  ;;  %2628 = vst [vmem:[#allocation2 + $0x760] sm:$0xff] %v9466_v8  ;;  %v2750_v52 = vpop.f32.mrb[103].mxu1  ;;  %v3384_v37 = vld [vmem:[#allocation2 + $0x1a0] sm:$0x3f] }
 0x1c0   : > { %v11484_v23 = vld [vmem:[#allocation2 + $0x1e8] sm:$0x7f]  ;;  %2957 = vst [vmem:[#allocation2 + $0x268] sm:$0xff] %v9494_v44  ;;  %2626 = vst [vmem:[#allocation2 + $0x720] sm:$0xff] %v2541_v16  ;;  %v11497_v4 = vld [vmem:[%s10316_s17 + $0xf8] sm:$0xff]   ;;  %v2160_v16 = vmax.f32 %v2128_v57, 0.0 }
 0x1c1   : > { %v13560_v47 = vrot.slane %v11484_v23, 1  ;;  %v11488_v17 = vld [vmem:[#allocation2 + $0x1a8] sm:$0x7f]  ;;  %2955 = vst [vmem:[#allocation2 + $0x228] sm:$0xff] %v2750_v52  ;;  %v11510_v0 = vpop.f32.mrb[104].mxu0  ;;  %v8235_v54 = vld [vmem:[%s13554_s3] sm:$0xff] }
 0x1c2   : > { %v13559_v55 = vrot.slane %v11488_v17, 1  ;;  %9716 = vmatmul.mubr.msk.bf16.gmra.mrb[208].mxu0 %vm470_vm0, %v11243_v2  ;;  %v11506_v2 = vld [vmem:[%s10316_s17] sm:$0xff]   ;;  %13604 = vst [vmem:[#allocation28_spill] sm:$0xff] %v11510_v0  ;;  %v8236_v1 = vld [vmem:[%s13554_s3 + $0x8] sm:$0xff]  ;;  %v9497_v7 = vpop.f32.mrb[104].mxu1  ;;  %v11518_v35 = vpop.f32.mrb[105].mxu0 }
 0x1c3   : > { %v3738_v48 = vadd.f32 %v13560_v47, %v3386_v58  ;;  %9719 = vmatprep.mubr.msk.bf16.mxu0 %vm470_vm0, %v11251_v39  ;;  %v2252_v39 = vrot.slane %v2159_v22, 2  ;;  %13605 = vst [vmem:[#allocation29_spill] sm:$0xff] %v11518_v35  ;;  %v8253_v8 = vld [vmem:[%s13554_s3 + $0x90] sm:$0xff]  ;;  %v8254_v44 = vld [vmem:[%s13554_s3 + $0x98] sm:$0xff]  ;;  %2960 = vst [vmem:[#allocation2 + $0x2c8] sm:$0xff] %v9497_v7  ;;  %v2763_v58 = vpop.f32.mrb[105].mxu1 }
 0x1c4   : > { %9672 = vmatmul.mubr.msk.bf16.gmra.mrb[208].mxu1 %vm470_vm0, %v11497_v4  ;;  %v3736_v9 = vadd.f32 %v13559_v55, %v3384_v37  ;;  %v9470_v52 = vpop.f32.mrb[106].mxu0  ;;  %2958 = vst [vmem:[#allocation2 + $0x288] sm:$0xff] %v2763_v58  ;;  %v9498_v22 = vpop.f32.mrb[106].mxu1  ;;  %v9921_v36 = vpack.c.bf16 %v8254_v44, %v8253_v8  ;;  %v8237_v57 = vld [vmem:[%s13554_s3 + $0x10] sm:$0xff]  ;;  %v2254_v8 = vrot.slane %v2160_v16, 1  ;;  %v11656_v29 = vld [vmem:[%s13554_s3 + $0x58] sm:$0xff] }
 0x1c5   : > { %9747 = vmatprep.mubr.msk.bf16.mxu1 %vm470_vm0, %v11506_v2  ;;  %3802 = vst [vmem:[#allocation2 + $0x1e0] sm:$0x3f] %v3738_v48  ;;  %v2253_v37 = vsel %vm2209_vm7, %v2252_v39, %v2251_v30  ;;  %2632 = vst [vmem:[#allocation2 + $0x7e0] sm:$0xff] %v9470_v52  ;;  %v2557_v48 = vpop.f32.mrb[107].mxu0  ;;  %v2766_v47 = vpop.f32.mrb[107].mxu1  ;;  %v8238_v30 = vld [vmem:[%s13554_s3 + $0x18] sm:$0xff] }
 0x1c6   : > { %3800 = vst [vmem:[#allocation2 + $0x1a0] sm:$0x3f] %v3736_v9  ;;  %v9919_v9 = vpack.c.bf16 %v8236_v1, %v8235_v54  ;;  %2961 = vst [vmem:[#allocation2 + $0x2e8] sm:$0xff] %v9498_v22  ;;  %v8255_v54 = vld [vmem:[%s13554_s3 + $0xa0] sm:$0xff]  ;;  %v8256_v1 = vld [vmem:[%s13554_s3 + $0xa8] sm:$0xff]  ;;  %v9923_v16 = vpack.c.bf16 %v8238_v30, %v8237_v57 }
 0x1c7   : > { %v11527_v55 = vld [vmem:[#allocation2 + $0x268] sm:$0x7f]  ;;  %2630 = vst [vmem:[#allocation2 + $0x7a0] sm:$0xff] %v2557_v48  ;;  %2959 = vst [vmem:[#allocation2 + $0x2a8] sm:$0xff] %v2766_v47  ;;  %v3390_v44 = vld [vmem:[#allocation2 + $0x260] sm:$0x3f]  ;;  %v11562_v48 = vsel %vm2212_vm8, %v2254_v8, %v2253_v37 }
 0x1c8   : > { %v13564_v39 = vrot.slane %v11527_v55, 1  ;;  %v11536_v7 = vld [vmem:[#allocation2 + $0x228] sm:$0x7f]  ;;  %v11557_v22 = vld [vmem:[%s10316_s17 + $0x10] sm:$0xff]   ;;  %13606 = vst [vmem:[#allocation30_spill] sm:$0xff] %v11562_v48  ;;  %v11641_v48 = vld [vmem:[%s13554_s3 + $0xd8] sm:$0xff] }
 0x1c9   : > { %v13566_v58 = vrot.slane %v11536_v7, 1  ;;  %v11548_v52 = vld [vmem:[%s10316_s17 + $0x8] sm:$0xff]   ;;  %v9545_v20 = vpop.f32.mrb[108].mxu0  ;;  %v8257_v57 = vld [vmem:[%s13554_s3 + $0xb0] sm:$0xff]  ;;  %v3856_v35 = vld [vmem:[#allocation2 + $0xa0] sm:$0x3f] }
 0x1ca   : > { %9720 = vmatmul.mubr.msk.bf16.gmra.mrb[212].mxu0 %vm470_vm0, %v11288_v63  ;;  %v3388_v63 = vld [vmem:[#allocation2 + $0x220] sm:$0x3f]  ;;  %v3742_v47 = vadd.f32 %v13564_v39, %v3390_v44  ;;  %v8240_v39 = vld [vmem:[%s13554_s3 + $0x28] sm:$0xff]  ;;  %3309 = vst [vmem:[#allocation2 + $0x50] sm:$0xff] %v9545_v20  ;;  %v3052_v37 = vpop.f32.mrb[109].mxu0 }
 0x1cb   : > { %9723 = vmatprep.mubr.msk.bf16.mxu0 %vm470_vm0, %v11297_v61  ;;  %v3740_v34 = vadd.f32 %v13566_v58, %v3388_v63  ;;  %v9925_v61 = vpack.c.bf16 %v8256_v1, %v8255_v54  ;;  %v8239_v44 = vld [vmem:[%s13554_s3 + $0x20] sm:$0xff]  ;;  %3307 = vst [vmem:[#allocation2 + $0x10] sm:$0xff] %v3052_v37  ;;  %v3435_v54 = vld [vmem:[#allocation2 + $0x8] sm:$0xfe]  ;;  %v3566_v58 = vrot.slane %v3437_v12, 1 }
 0x1cc   : > { %9748 = vmatmul.mubr.msk.bf16.vlgmr.msra.gmra.mrb[212].mxu1 %vm470_vm0, %v11548_v52  ;;  %3806 = vst [vmem:[#allocation2 + $0x260] sm:$0x3f] %v3742_v47  ;;  %v3394_v1 = vld [vmem:[#allocation2 + $0x2e0] sm:$0x3f]  ;;  %v9927_v20 = vpack.c.bf16 %v8240_v39, %v8239_v44  ;;  %v11583_v47 = vld [vmem:[%s13554_s3 + $0x30] sm:$0xff]  ;;  %v8242_v39 = vld [vmem:[%s13554_s3 + $0x38] sm:$0xff] }
 0x1cd   : > { %9751 = vmatprep.mubr.msk.bf16.mxu1 %vm470_vm0, %v11557_v22  ;;  %9920 = vmatpush3.bf16.msra.mxu1 %v9919_v9  ;;  %v9501_v9 = vpop.f32.mrb[108].mxu1  ;;  %3804 = vst [vmem:[#allocation2 + $0x220] sm:$0x3f] %v3740_v34  ;;  %v11578_v8 = vld [vmem:[#allocation2 + $0x2e8] sm:$0x7f]  ;;  %v8259_v44 = vld [vmem:[%s13554_s3 + $0xc0] sm:$0xff] }
 0x1ce   : > { %9922 = vmatprep.subr.bf16.mxu1 %v9921_v36  ;;  %v8258_v36 = vld [vmem:[%s13554_s3 + $0xb8] sm:$0xff]  ;;  %2964 = vst [vmem:[#allocation2 + $0x348] sm:$0xff] %v9501_v9  ;;  %v2779_v30 = vpop.f32.mrb[109].mxu1  ;;  %v13569_v60 = vrot.slane %v11578_v8, 1  ;;  %v11586_v34 = vld [vmem:[#allocation2 + $0x2a8] sm:$0x7f] }
 0x1cf   : > { %2962 = vst [vmem:[#allocation2 + $0x308] sm:$0xff] %v2779_v30  ;;  %v9502_v63 = vpop.f32.mrb[110].mxu1  ;;  %v9546_v9 = vpop.f32.mrb[110].mxu0  ;;  %v9929_v27 = vpack.c.bf16 %v8258_v36, %v8257_v57  ;;  %v3563_v57 = vrot.slane %v3435_v54, 1  ;;  %v3392_v36 = vld [vmem:[#allocation2 + $0x2a0] sm:$0x3f] }
 0x1d0   : > { %2965 = vst [vmem:[#allocation2 + $0x368] sm:$0xff] %v9502_v63  ;;  %v2782_v37 = vpop.f32.mrb[111].mxu1  ;;  %3310 = vst [vmem:[#allocation2 + $0x70] sm:$0xff] %v9546_v9  ;;  %v3055_v12 = vpop.f32.mrb[111].mxu0  ;;  %v3441_v30 = vld [vmem:[#allocation2 + $0xc8] sm:$0xfe]  ;;  %v3746_v9 = vadd.f32 %v13569_v60, %v3394_v1  ;;  %v9931_v1 = vpack.c.bf16 %v8242_v39, %v11583_v47 }
 0x1d1   : > { %9924 = vmatpush3.bf16.msra.mxu1 %v9923_v16  ;;  %v13570_v16 = vrot.slane %v11586_v34, 1  ;;  %2963 = vst [vmem:[#allocation2 + $0x328] sm:$0xff] %v2782_v37  ;;  %v11600_v63 = vld [vmem:[#allocation2 + $0x88] sm:$0xfe]  ;;  %3308 = vst [vmem:[#allocation2 + $0x30] sm:$0xff] %v3055_v12  ;;  %v11605_v37 = vld [vmem:[%s10316_s17 + $0x18] sm:$0xff]  }
 0x1d2   : > { %9926 = vmatprep.subr.bf16.mxu1 %v9925_v61  ;;  %9724 = vmatmul.mubr.msk.bf16.gmra.mrb[216].mxu0 %vm470_vm0, %v11337_v32  ;;  %v8260_v61 = vld [vmem:[%s13554_s3 + $0xc8] sm:$0xff]  ;;  %v11614_v54 = vld [vmem:[%s10316_s17 + $0x20] sm:$0xff]   ;;  %3810 = vst [vmem:[#allocation2 + $0x2e0] sm:$0x3f] %v3746_v9  ;;  %v9549_v12 = vpop.f32.mrb[112].mxu0  ;;  %v3572_v39 = vrot.slane %v3441_v30, 1 }
 0x1d3   : > { %9727 = vmatprep.mubr.msk.bf16.mxu0 %vm470_vm0, %v11348_v25  ;;  %v3744_v32 = vadd.f32 %v13570_v16, %v3392_v36  ;;  %v9933_v60 = vpack.c.bf16 %v8260_v61, %v8259_v44  ;;  %v11622_v25 = vld [vmem:[%s13554_s3 + $0x40] sm:$0xff]  ;;  %v11627_v36 = vld [vmem:[%s13554_s3 + $0x48] sm:$0xff]  ;;  %v3569_v9 = vrot.slane %v11600_v63, 1  ;;  %3313 = vst [vmem:[#allocation2 + $0xd0] sm:$0xff] %v9549_v12  ;;  %v3068_v44 = vpop.f32.mrb[113].mxu0  ;;  %v11636_v61 = vld [vmem:[%s13554_s3 + $0xd0] sm:$0xff] }
 0x1d4   : > { %9752 = vmatmul.mubr.msk.bf16.gmra.mrb[216].mxu1 %vm470_vm0, %v11605_v37  ;;  %v3373_v16 = vld [vmem:[#allocation2 + $0x40] sm:$0xff]  ;;  %3311 = vst [vmem:[#allocation2 + $0x90] sm:$0xff] %v3068_v44  ;;  %v3917_v26 = vld [vmem:[#allocation2 + $0x50] sm:$0xfc]  ;;  %v11658_v49 = vld [vmem:[#allocation2 + $0x148] sm:$0xfe]  ;;  %v9935_v0 = vpack.c.bf16 %v11627_v36, %v11622_v25 }
 0x1d5   : > { %9755 = vmatprep.mubr.msk.bf16.mxu1 %vm470_vm0, %v11614_v54  ;;  %9928 = vmatpush3.bf16.msra.mxu1 %v9927_v20  ;;  %v13607_v20 = vrot.slane %v11378_v11, 1  ;;  %3808 = vst [vmem:[#allocation2 + $0x2a0] sm:$0x3f] %v3744_v32  ;;  %v3371_v11 = vld [vmem:[#allocation2] sm:$0xff]  ;;  %v11646_v32 = vpop.f32.mrb[114].mxu0  ;;  %v13609_v25 = vrot.slane %v11407_v62, 1 }
 0x1d6   : > { %9930 = vmatprep.subr.bf16.mxu1 %v9929_v27  ;;  %v9505_v27 = vpop.f32.mrb[112].mxu1  ;;  %v3858_v12 = vld [vmem:[#allocation2 + $0xe0] sm:$0x3f]  ;;  %v13610_v59 = vrot.slane %v11646_v32, 2 }
 0x1d7   : > { %v3568_v47 = vsel %vm1481_vm1, %v3566_v58, %v13607_v20  ;;  %v13608_v58 = vrot.slane %v11391_v56, 1  ;;  %2968 = vst [vmem:[#allocation2 + $0x3c8] sm:$0xff] %v9505_v27  ;;  %v2795_v63 = vpop.f32.mrb[113].mxu1  ;;  %v11651_v20 = vld [vmem:[%s13554_s3 + $0x50] sm:$0xff]  ;;  %v3398_v56 = vld [vmem:[#allocation2 + $0x360] sm:$0x3f]  ;;  %v3574_v36 = vsel %vm1481_vm1, %v3572_v39, %v13609_v25 }
 0x1d8   : > { %2966 = vst [vmem:[#allocation2 + $0x388] sm:$0xff] %v2795_v63  ;;  %v9506_v27 = vpop.f32.mrb[114].mxu1  ;;  %v3725_v10 = vadd.f32 %v3568_v47, %v3373_v16  ;;  %v11670_v42 = vld [vmem:[%s13554_s3 + $0xe0] sm:$0xff]  ;;  %v11673_v13 = vld [vmem:[#allocation2 + $0x328] sm:$0x7f]  ;;  %v3918_v18 = vld [vmem:[#allocation2 + $0x70] sm:$0xff]  ;;  %v4211_v3 = vadd.f32 %v13610_v59, %v3858_v12 }
 0x1d9   : > { %v3565_v30 = vsel %vm1481_vm1, %v3563_v57, %v13608_v58  ;;  %v11660_v57 = vld [vmem:[#allocation2 + $0x368] sm:$0x7f]  ;;  %v11663_v58 = vpop.f32.mrb[115].mxu0  ;;  %9932 = vmatpush3.bf16.msra.mxu1 %v9931_v1  ;;  %2969 = vst [vmem:[#allocation2 + $0x3e8] sm:$0xff] %v9506_v27  ;;  %v2798_v63 = vpop.f32.mrb[115].mxu1  ;;  %v9937_v1 = vpack.c.bf16 %v11641_v48, %v11636_v61  ;;  %v13571_v47 = vrot.slane %v11673_v13, 1 }
 0x1da   : > { %v13572_v44 = vrot.slane %v11663_v58, 2  ;;  %9934 = vmatprep.subr.bf16.mxu1 %v9933_v60  ;;  %v3723_v16 = vadd.f32 %v3565_v30, %v3371_v11  ;;  %2967 = vst [vmem:[#allocation2 + $0x3a8] sm:$0xff] %v2798_v63  ;;  %9728 = vmatmul.mubr.msk.bf16.gmra.mrb[220].mxu0 %vm470_vm0, %v11384_v5  ;;  %v4048_v60 = vrot.slane %v3918_v18, 2  ;;  %v3915_v27 = vld [vmem:[#allocation2 + $0x10] sm:$0xfc]  ;;  %v11689_v61 = vld [vmem:[%s13554_s3 + $0xe8] sm:$0xff] }
 0x1db   : > { %v3916_v48 = vld [vmem:[#allocation2 + $0x30] sm:$0xff]  ;;  %v3396_v62 = vld [vmem:[#allocation2 + $0x320] sm:$0x3f]  ;;  %v13611_v39 = vrot.slane %v11412_v38, 1  ;;  %v11694_v30 = vld [vmem:[#allocation2 + $0x108] sm:$0xfe]  ;;  %9731 = vmatprep.mubr.msk.bf16.mxu0 %vm470_vm0, %v11394_v24 }
 0x1dc   : > { %v13612_v59 = vrot.slane %v11660_v57, 1  ;;  %v4209_v5 = vadd.f32 %v13572_v44, %v3856_v35  ;;  %v11701_v18 = vld [vmem:[%s10316_s17 + $0x28] sm:$0xff]   ;;  %v4047_v63 = vrot.slane %v3917_v26, 2  ;;  %v3748_v38 = vadd.f32 %v13571_v47, %v3396_v62  ;;  %4275 = vst [vmem:[#allocation2 + $0xe0] sm:$0x3f] %v4211_v3  ;;  %v9553_v62 = vpop.f32.mrb[116].mxu0 }
 0x1dd   : > { %v3571_v11 = vsel %vm1481_vm1, %v3569_v9, %v13611_v39  ;;  %9756 = vmatmul.mubr.msk.bf16.gmra.mrb[220].mxu1 %vm470_vm0, %v11701_v18  ;;  %v11710_v9 = vld [vmem:[%s10316_s17 + $0x30] sm:$0xff]   ;;  %v9939_v35 = vpack.c.bf16 %v11656_v29, %v11651_v20  ;;  %v3852_v25 = vld [vmem:[#allocation2 + $0x20] sm:$0x3f]  ;;  %v4044_v39 = vrot.slane %v3915_v27, 2  ;;  %v11728_v20 = vld [vmem:[%s13554_s3 + $0x68] sm:$0xff]  ;;  %3317 = vst [vmem:[#allocation2 + $0x150] sm:$0xff] %v9553_v62 }
 0x1de   : > { %v3750_v12 = vadd.f32 %v13612_v59, %v3398_v56  ;;  %9759 = vmatprep.mubr.msk.bf16.mxu1 %vm470_vm0, %v11710_v9  ;;  %9936 = vmatpush3.bf16.msra.mxu1 %v9935_v0  ;;  %v3854_v56 = vld [vmem:[#allocation2 + $0x60] sm:$0x3f]  ;;  %v4045_v59 = vrot.slane %v3916_v48, 2  ;;  %v3921_v26 = vld [vmem:[#allocation2 + $0xd0] sm:$0xfc]  ;;  %v4049_v3 = vsel %vm4043_vm9, %v4047_v63, %v4048_v60  ;;  %v9941_v0 = vpack.c.bf16 %v11689_v61, %v11670_v42  ;;  %v3084_v24 = vpop.f32.mrb[117].mxu0 }
 0x1df   : > { %4273 = vst [vmem:[#allocation2 + $0xa0] sm:$0x3f] %v4209_v5  ;;  %9938 = vmatprep.subr.bf16.mxu1 %v9937_v1  ;;  %v4207_v47 = vadd.f32 %v4048_v60, %v3854_v56  ;;  %v11723_v29 = vld [vmem:[%s13554_s3 + $0x60] sm:$0xff]  ;;  %3812 = vst [vmem:[#allocation2 + $0x320] sm:$0x3f] %v3748_v38  ;;  %v4053_v27 = vrot.slane %v3921_v26, 2  ;;  %v3729_v61 = vadd.f32 %v10899_v41, %v3574_v36 }
 0x1e0   : > { %3814 = vst [vmem:[#allocation2 + $0x360] sm:$0x3f] %v3750_v12  ;;  %v3919_v48 = vld [vmem:[#allocation2 + $0x90] sm:$0xfc]  ;;  %v9509_v1 = vpop.f32.mrb[116].mxu1  ;;  %v11730_v12 = vadd.f32 %v4049_v3, %v3725_v10  ;;  %v4046_v60 = vsel %vm4043_vm9, %v4044_v39, %v4045_v59  ;;  %v4205_v42 = vadd.f32 %v4045_v59, %v3852_v25  ;;  %v3575_v5 = vrot.slane %v11694_v30, 1 }
 0x1e1   : > { %v4050_v63 = vrot.slane %v3919_v48, 2  ;;  %2972 = vst [vmem:[#allocation2 + $0x448] sm:$0xff] %v9509_v1  ;;  %v2811_v56 = vpop.f32.mrb[117].mxu1  ;;  %4271 = vst [vmem:[#allocation2 + $0x60] sm:$0x3f] %v4207_v47  ;;  %v11735_v44 = vadd.f32 %v4046_v60, %v3723_v16  ;;  %v11740_v38 = vld [vmem:[%s13554_s3 + $0xf0] sm:$0xff]  ;;  %v3727_v41 = vadd.f32 %v3571_v11, %v10902_v51  ;;  %v9943_v26 = vpack.c.bf16 %v11728_v20, %v11723_v29 }
 0x1e2   : > { %v8266_v10 = vld [vmem:[%s13554_s3 + $0xf8] sm:$0xff]  ;;  %v3402_v25 = vld [vmem:[#allocation2 + $0x3e0] sm:$0x3f]  ;;  %v11746_v36 = vld [vmem:[#allocation2 + $0x1c8] sm:$0xfe]  ;;  %v13613_v47 = vrot.slane %v11646_v32, 2  ;;  %9940 = vmatpush3.bf16.msra.mxu1 %v9939_v35  ;;  %9732 = vmatmul.mubr.msk.bf16.gmra.mrb[224].mxu0 %vm470_vm0, %v11422_v15 }
 0x1e3   : > { %v11748_v30 = vld [vmem:[#allocation2 + $0x3e8] sm:$0x7f]  ;;  %2970 = vst [vmem:[#allocation2 + $0x408] sm:$0xff] %v2811_v56  ;;  %3315 = vst [vmem:[#allocation2 + $0x110] sm:$0xff] %v3084_v24  ;;  %v9510_v39 = vpop.f32.mrb[118].mxu1  ;;  %v11753_v59 = vpop.f32.mrb[118].mxu0  ;;  %9942 = vmatprep.subr.bf16.mxu1 %v9941_v0  ;;  %9735 = vmatprep.mubr.msk.bf16.mxu0 %vm470_vm0, %v11437_v33 }
 0x1e4   : > { %v4055_v16 = vsel %vm4043_vm9, %v4053_v27, %v13613_v47  ;;  %4269 = vst [vmem:[#allocation2 + $0x20] sm:$0x3f] %v4205_v42  ;;  %v3609_v51 = vrot.slane %v11748_v30, 1  ;;  %v11758_v62 = vld [vmem:[#allocation2 + $0x3a8] sm:$0x7f]  ;;  %v13614_v3 = vrot.slane %v11663_v58, 2  ;;  %v9945_v58 = vpack.c.bf16 %v8266_v10, %v11740_v38 }
 0x1e5   : > { %v4210_v11 = vadd.f32 %v4055_v16, %v3729_v61  ;;  %2973 = vst [vmem:[#allocation2 + $0x468] sm:$0xff] %v9510_v39  ;;  %v4060_v24 = vrot.slane %v11753_v59, 2  ;;  %v2814_v27 = vpop.f32.mrb[119].mxu1  ;;  %v11764_v48 = vpop.f32.mrb[119].mxu0  ;;  %v3606_v35 = vrot.slane %v11758_v62, 1  ;;  %v8249_v60 = vld [vmem:[%s13554_s3 + $0x70] sm:$0xff] }
 0x1e6   : > { %v4052_v32 = vsel %vm4043_vm9, %v4050_v63, %v13614_v3  ;;  %v3862_v20 = vld [vmem:[#allocation2 + $0x160] sm:$0x3f]  ;;  %2971 = vst [vmem:[#allocation2 + $0x428] sm:$0xff] %v2814_v27  ;;  %v4057_v1 = vrot.slane %v11764_v48, 2  ;;  %v8250_v0 = vld [vmem:[%s13554_s3 + $0x78] sm:$0xff]  ;;  %v3754_v63 = vadd.f32 %v3609_v51, %v3402_v25  ;;  %v13615_v38 = vrot.slane %v11454_v45, 1  ;;  %9944 = vmatpush3.bf16.msra.mxu1 %v9943_v26 }
 0x1e7   : > { %v4208_v29 = vadd.f32 %v4052_v32, %v3727_v41  ;;  %v3400_v42 = vld [vmem:[#allocation2 + $0x3a0] sm:$0x3f]  ;;  %v3447_v61 = vld [vmem:[#allocation2 + $0x188] sm:$0xfe]  ;;  %4274 = vst [vmem:[#allocation2 + $0xc0] sm:$0xff] %v4210_v11  ;;  %v4215_v56 = vadd.f32 %v4060_v24, %v3862_v20  ;;  %v11780_v15 = vld [vmem:[%s10316_s17 + $0x38] sm:$0xff]   ;;  %v9947_v3 = vpack.c.bf16 %v8250_v0, %v8249_v60  ;;  %9946 = vmatprep.subr.bf16.mxu1 %v9945_v58 }
 0x1e8   : > { %v3860_v41 = vld [vmem:[#allocation2 + $0x120] sm:$0x3f]  ;;  %9760 = vmatmul.mubr.msk.bf16.gmra.mrb[224].mxu1 %vm470_vm0, %v11780_v15  ;;  %v13616_v10 = vrot.slane %v11658_v49, 1  ;;  %v3752_v25 = vadd.f32 %v3606_v35, %v3400_v42  ;;  %v13617_v33 = vrot.slane %v11457_v6, 1  ;;  %v3584_v49 = vrot.slane %v11746_v36, 1  ;;  %v9557_v11 = vpop.f32.mrb[120].mxu0 }
 0x1e9   : > { %4272 = vst [vmem:[#allocation2 + $0x80] sm:$0xff] %v4208_v29  ;;  %v4213_v16 = vadd.f32 %v4057_v1, %v3860_v41  ;;  %v11796_v39 = vld [vmem:[%s10316_s17 + $0x40] sm:$0xff]   ;;  %3818 = vst [vmem:[#allocation2 + $0x3e0] sm:$0x3f] %v3754_v63  ;;  %v3925_v59 = vld [vmem:[#allocation2 + $0x150] sm:$0xfc] }
 0x1ea   : > { %v3580_v47 = vsel %vm1481_vm1, %v13616_v10, %v13615_v38  ;;  %9763 = vmatprep.mubr.msk.bf16.mxu1 %vm470_vm0, %v11796_v39  ;;  %v3577_v45 = vsel %vm1481_vm1, %v3575_v5, %v13617_v33  ;;  %4279 = vst [vmem:[#allocation2 + $0x160] sm:$0x3f] %v4215_v56  ;;  %v3581_v32 = vrot.slane %v3447_v61, 1  ;;  %v11804_v27 = vld [vmem:[#allocation2 + $0x248] sm:$0xfe]  ;;  %v4059_v29 = vrot.slane %v3925_v59, 2  ;;  %9948 = vmatpush3.bf16.msra.mxu1 %v9947_v3 }
 0x1eb   : > { %3816 = vst [vmem:[#allocation2 + $0x3a0] sm:$0x3f] %v3752_v25  ;;  %4277 = vst [vmem:[#allocation2 + $0x120] sm:$0x3f] %v4213_v16  ;;  %v9513_v20 = vpop.f32.mrb[120].mxu1  ;;  %v3100_v42 = vpop.f32.mrb[121].mxu0  ;;  %v3733_v6 = vadd.f32 %v10940_v31, %v3580_v47  ;;  %v3731_v0 = vadd.f32 %v3577_v45, %v10946_v50  ;;  %9736 = vmatmul.mubr.msk.bf16.gmra.mrb[228].mxu0 %vm470_vm0, %v11463_v19 }
 0x1ec   : > { %3321 = vst [vmem:[#allocation2 + $0x1d0] sm:$0xff] %v9557_v11  ;;  %v11807_v5 = vld [vmem:[#allocation2 + $0x208] sm:$0xfe]  ;;  %v3923_v63 = vld [vmem:[#allocation2 + $0x110] sm:$0xfc]  ;;  %2976 = vst [vmem:[#allocation2 + $0x4c8] sm:$0xff] %v9513_v20  ;;  %v4061_v41 = vsel %vm4043_vm9, %v4059_v29, %v4060_v24  ;;  %9739 = vmatprep.mubr.msk.bf16.mxu0 %vm470_vm0, %v11472_v21 }
 0x1ed   : > { %v11809_v36 = vld [vmem:[#allocation2 + $0x2c8] sm:$0xfe]  ;;  %v2827_v26 = vpop.f32.mrb[121].mxu1  ;;  %3319 = vst [vmem:[#allocation2 + $0x190] sm:$0xff] %v3100_v42  ;;  %v3406_v60 = vld [vmem:[#allocation2 + $0x460] sm:$0x3f]  ;;  %v4214_v25 = vadd.f32 %v4061_v41, %v3733_v6 }
 0x1ee   : > { %v4056_v61 = vrot.slane %v3923_v63, 2  ;;  %v11812_v56 = vld [vmem:[#allocation2 + $0x468] sm:$0x7f]  ;;  %2974 = vst [vmem:[#allocation2 + $0x488] sm:$0xff] %v2827_v26  ;;  %v9514_v58 = vpop.f32.mrb[122].mxu1  ;;  %v11815_v38 = vpop.f32.mrb[122].mxu0 }
 0x1ef   : > { %v13618_v31 = vrot.slane %v11484_v23, 1  ;;  %v3615_v47 = vrot.slane %v11812_v56, 1  ;;  %v11821_v16 = vld [vmem:[#allocation2 + $0x428] sm:$0x7f]  ;;  %2977 = vst [vmem:[#allocation2 + $0x4e8] sm:$0xff] %v9514_v58  ;;  %v4066_v50 = vrot.slane %v11815_v38, 2 }
 0x1f0   : > { %v2830_v33 = vpop.f32.mrb[123].mxu1  ;;  %v11824_v45 = vpop.f32.mrb[123].mxu0  ;;  %v13619_v24 = vrot.slane %v11488_v17, 1  ;;  %v3612_v23 = vrot.slane %v11821_v16, 1  ;;  %v3866_v11 = vld [vmem:[#allocation2 + $0x1e0] sm:$0x3f] }
 0x1f1   : > { %v3586_v10 = vsel %vm1481_vm1, %v3584_v49, %v13618_v31  ;;  %v4058_v49 = vsel %vm4043_vm9, %v4056_v61, %v4057_v1  ;;  %2975 = vst [vmem:[#allocation2 + $0x4a8] sm:$0xff] %v2830_v33  ;;  %v4063_v29 = vrot.slane %v11824_v45, 2  ;;  %v4335_v20 = vld [vmem:[#allocation2 + $0x60] sm:$0x3f]  ;;  %v3590_v17 = vrot.slane %v11804_v27, 1  ;;  %4278 = vst [vmem:[#allocation2 + $0x140] sm:$0xff] %v4214_v25 }
 0x1f2   : > { %v3583_v59 = vsel %vm1481_vm1, %v3581_v32, %v13619_v24  ;;  %v3404_v3 = vld [vmem:[#allocation2 + $0x420] sm:$0x3f]  ;;  %v3758_v32 = vadd.f32 %v3615_v47, %v3406_v60  ;;  %v4212_v42 = vadd.f32 %v4058_v49, %v3731_v0  ;;  %v4219_v48 = vadd.f32 %v4066_v50, %v3866_v11  ;;  %v11840_v1 = vld [vmem:[%s10316_s17 + $0x48] sm:$0xff]   ;;  %v9561_v61 = vpop.f32.mrb[124].mxu0  ;;  %v11853_v41 = vld [vmem:[%s10316_s17 + $0x50] sm:$0xff]   ;;  %v9517_v21 = vpop.f32.mrb[124].mxu1 }
 0x1f3   : > { %v3864_v6 = vld [vmem:[#allocation2 + $0x1a0] sm:$0x3f]  ;;  %9764 = vmatmul.mubr.msk.bf16.gmra.mrb[228].mxu1 %vm470_vm0, %v11840_v1  ;;  %v3587_v63 = vrot.slane %v11807_v5, 1  ;;  %v3596_v19 = vrot.slane %v11809_v36, 1  ;;  %v3756_v27 = vadd.f32 %v3612_v23, %v3404_v3  ;;  %v11850_v60 = vld [vmem:[#allocation2 + $0x288] sm:$0xfe]  ;;  %v3737_v25 = vadd.f32 %v10981_v40, %v3586_v10  ;;  %9740 = vmatmul.mubr.msk.bf16.gmra.mrb[232].mxu0 %vm470_vm0, %v11497_v4 }
 0x1f4   : > { %v4217_v26 = vadd.f32 %v4063_v29, %v3864_v6  ;;  %3822 = vst [vmem:[#allocation2 + $0x460] sm:$0x3f] %v3758_v32  ;;  %4276 = vst [vmem:[#allocation2 + $0x100] sm:$0xff] %v4212_v42  ;;  %v3929_v0 = vld [vmem:[#allocation2 + $0x1d0] sm:$0xfc]  ;;  %9767 = vmatprep.mubr.msk.bf16.mxu1 %vm470_vm0, %v11853_v41  ;;  %v4404_v5 = vsel %vm4043_vm9, %v4335_v20, -inf  ;;  %v3735_v33 = vadd.f32 %v3583_v59, %v10986_v14  ;;  %9815 = vmatprep.mubr.msk.bf16.mxu0 %vm470_vm0, %v11506_v2 }
 0x1f5   : > { %4283 = vst [vmem:[#allocation2 + $0x1e0] sm:$0x3f] %v4219_v48  ;;  %v11858_v36 = vld [vmem:[#allocation2 + $0x348] sm:$0xfe]  ;;  %3820 = vst [vmem:[#allocation2 + $0x420] sm:$0x3f] %v3756_v27  ;;  %v4405_v31 = vmax.f32 %v11730_v12, %v4404_v5 }
 0x1f6   : > { %v4065_v58 = vrot.slane %v3929_v0, 2  ;;  %v3927_v38 = vld [vmem:[#allocation2 + $0x190] sm:$0xfc]  ;;  %4281 = vst [vmem:[#allocation2 + $0x1a0] sm:$0x3f] %v4217_v26  ;;  %3325 = vst [vmem:[#allocation2 + $0x250] sm:$0xff] %v9561_v61 }
 0x1f7   : > { %v13620_v45 = vrot.slane %v11527_v55, 1  ;;  %v11866_v49 = vld [vmem:[#allocation2 + $0x308] sm:$0xfe]  ;;  %v4062_v20 = vrot.slane %v3927_v38, 2  ;;  %2980 = vst [vmem:[#allocation2 + $0x548] sm:$0xff] %v9517_v21  ;;  %v2843_v3 = vpop.f32.mrb[125].mxu1 }
 0x1f8   : > { %v11868_v11 = vld [vmem:[#allocation2 + $0x3c8] sm:$0xfe]  ;;  %v3116_v32 = vpop.f32.mrb[125].mxu0  ;;  %v3410_v42 = vld [vmem:[#allocation2 + $0x4e0] sm:$0x3f]  ;;  %v13621_v48 = vrot.slane %v11536_v7, 1  ;;  %v4067_v55 = vsel %vm4043_vm9, %v4065_v58, %v4066_v50 }
 0x1f9   : > { %v3592_v24 = vsel %vm1481_vm1, %v3590_v17, %v13620_v45  ;;  %v3593_v40 = vrot.slane %v11850_v60, 1  ;;  %v11874_v14 = vld [vmem:[#allocation2 + $0x4e8] sm:$0x7f]  ;;  %2978 = vst [vmem:[#allocation2 + $0x508] sm:$0xff] %v2843_v3  ;;  %3323 = vst [vmem:[#allocation2 + $0x210] sm:$0xff] %v3116_v32  ;;  %v9518_v10 = vpop.f32.mrb[126].mxu1  ;;  %v4218_v26 = vadd.f32 %v4067_v55, %v3737_v25  ;;  %v4064_v7 = vsel %vm4043_vm9, %v4062_v20, %v4063_v29 }
 0x1fa   : > { %v3589_v12 = vsel %vm1481_vm1, %v3587_v63, %v13621_v48  ;;  %v11877_v59 = vpop.f32.mrb[126].mxu0  ;;  %v4406_v17 = vrot.slane %v4405_v31, 4  ;;  %v3408_v6 = vld [vmem:[#allocation2 + $0x4a0] sm:$0x3f]  ;;  %v3621_v27 = vrot.slane %v11874_v14, 1  ;;  %2981 = vst [vmem:[#allocation2 + $0x568] sm:$0xff] %v9518_v10  ;;  %v4216_v38 = vadd.f32 %v4064_v7, %v3735_v33 }
 0x1fb   : > { %v11880_v0 = vld [vmem:[#allocation2 + $0x4a8] sm:$0x7f]  ;;  %v4072_v63 = vrot.slane %v11877_v59, 2  ;;  %v2846_v60 = vpop.f32.mrb[127].mxu1  ;;  %v11884_v50 = vpop.f32.mrb[127].mxu0  ;;  %v13622_v61 = vrot.slane %v11578_v8, 1  ;;  %v3741_v2 = vadd.f32 %v11017_v43, %v3592_v24  ;;  %9816 = vmatmul.mubr.msk.bf16.vlgmr.msra.gmra.mrb[236].mxu0 %vm470_vm0, %v11548_v52 }
 0x1fc   : > { %v3618_v58 = vrot.slane %v11880_v0, 1  ;;  %v3870_v21 = vld [vmem:[#allocation2 + $0x260] sm:$0x3f]  ;;  %2979 = vst [vmem:[#allocation2 + $0x528] sm:$0xff] %v2846_v60  ;;  %v4069_v45 = vrot.slane %v11884_v50, 2  ;;  %v3602_v29 = vrot.slane %v11858_v36, 1  ;;  %v3762_v8 = vadd.f32 %v3621_v27, %v3410_v42  ;;  %9819 = vmatprep.mubr.msk.bf16.mxu0 %vm470_vm0, %v11557_v22 }
 0x1fd   : > { %v3598_v5 = vsel %vm1481_vm1, %v3596_v19, %v13622_v61  ;;  %v3868_v25 = vld [vmem:[#allocation2 + $0x220] sm:$0x3f]  ;;  %v11894_v20 = vld [vmem:[#allocation2 + $0x388] sm:$0xfe]  ;;  %4282 = vst [vmem:[#allocation2 + $0x1c0] sm:$0xff] %v4218_v26  ;;  %v4223_v19 = vadd.f32 %v4072_v63, %v3870_v21  ;;  %v11899_v3 = vld [vmem:[%s10316_s17 + $0x58] sm:$0xff]   ;;  %v11905_v33 = vmax.f32 %v4405_v31, %v4406_v17 }
 0x1fe   : > { %9768 = vmatmul.mubr.msk.bf16.gmra.mrb[232].mxu1 %vm470_vm0, %v11899_v3  ;;  %v4333_v4 = vld [vmem:[#allocation2 + $0x20] sm:$0x3f]  ;;  %v3599_v36 = vrot.slane %v11866_v49, 1  ;;  %v3608_v32 = vrot.slane %v11868_v11, 1  ;;  %v3760_v42 = vadd.f32 %v3618_v58, %v3408_v6  ;;  %4280 = vst [vmem:[#allocation2 + $0x180] sm:$0xff] %v4216_v38  ;;  %v4221_v48 = vadd.f32 %v4069_v45, %v3868_v25  ;;  %v9565_v49 = vpop.f32.mrb[128].mxu0 }
 0x1ff   : > { %v11914_v55 = vld [vmem:[%s10316_s17 + $0x60] sm:$0xff]   ;;  %3826 = vst [vmem:[#allocation2 + $0x4e0] sm:$0x3f] %v3762_v8  ;;  %v3933_v31 = vld [vmem:[#allocation2 + $0x250] sm:$0xfc]  ;;  %v3739_v11 = vadd.f32 %v3589_v12, %v11020_v46  ;;  %v3605_v10 = vrot.slane %v11894_v20, 1  ;;  %v11923_v7 = vadd.f32 %v11058_v53, %v3598_v5 }
 0x200   : > { %9771 = vmatprep.mubr.msk.bf16.mxu1 %vm470_vm0, %v11914_v55  ;;  %4287 = vst [vmem:[#allocation2 + $0x260] sm:$0x3f] %v4223_v19  ;;  %3824 = vst [vmem:[#allocation2 + $0x4a0] sm:$0x3f] %v3760_v42  ;;  %v4071_v59 = vrot.slane %v3933_v31, 2  ;;  %v9521_v17 = vpop.f32.mrb[128].mxu1 }
 0x201   : > { %4285 = vst [vmem:[#allocation2 + $0x220] sm:$0x3f] %v4221_v48  ;;  %3329 = vst [vmem:[#allocation2 + $0x2d0] sm:$0xff] %v9565_v49  ;;  %v3132_v6 = vpop.f32.mrb[129].mxu0  ;;  %v4396_v26 = vsel %vm4043_vm9, %v4333_v4, -inf  ;;  %v13623_v43 = vrot.slane %v11586_v34, 1  ;;  %v3610_v34 = vsel %vm1481_vm1, %v3608_v32, %v3609_v51 }
 0x202   : > { %v13624_v60 = vrot.slane %v11660_v57, 1  ;;  %v3931_v12 = vld [vmem:[#allocation2 + $0x210] sm:$0xfc]  ;;  %2984 = vst [vmem:[#allocation2 + $0x5c8] sm:$0xff] %v9521_v17  ;;  %v2859_v61 = vpop.f32.mrb[129].mxu1  ;;  %3327 = vst [vmem:[#allocation2 + $0x290] sm:$0xff] %v3132_v6  ;;  %v4073_v5 = vsel %vm4043_vm9, %v4071_v59, %v4072_v63  ;;  %v4397_v63 = vmax.f32 %v11735_v44, %v4396_v26 }
 0x203   : > { %v3595_v24 = vsel %vm1481_vm1, %v3593_v40, %v13623_v43  ;;  %v4408_v38 = vrot.slane %v11905_v33, 2  ;;  %v4337_v21 = vld [vmem:[#allocation2 + $0xa0] sm:$0x3f]  ;;  %v13625_v8 = vrot.slane %v11673_v13, 1  ;;  %v4068_v40 = vrot.slane %v3931_v12, 2  ;;  %2982 = vst [vmem:[#allocation2 + $0x588] sm:$0xff] %v2859_v61  ;;  %9820 = vmatmul.mubr.msk.bf16.gmra.mrb[240].mxu0 %vm470_vm0, %v11605_v37 }
 0x204   : > { %v3604_v46 = vsel %vm1481_vm1, %v3602_v29, %v13624_v60  ;;  %v3414_v25 = vld [vmem:[#allocation2 + $0x560] sm:$0x3f]  ;;  %v11938_v57 = vld [vmem:[#allocation2 + $0x568] sm:$0x7f]  ;;  %v9522_v29 = vpop.f32.mrb[130].mxu1  ;;  %v11941_v19 = vpop.f32.mrb[130].mxu0  ;;  %v4222_v13 = vadd.f32 %v4073_v5, %v3741_v2  ;;  %9823 = vmatprep.mubr.msk.bf16.mxu0 %vm470_vm0, %v11614_v54 }
 0x205   : > { %v3601_v53 = vsel %vm1481_vm1, %v3599_v36, %v13625_v8  ;;  %v4336_v4 = vld [vmem:[#allocation2 + $0x80] sm:$0xff]  ;;  %v3627_v48 = vrot.slane %v11938_v57, 1  ;;  %v11944_v31 = vld [vmem:[#allocation2 + $0x528] sm:$0x7f]  ;;  %2985 = vst [vmem:[#allocation2 + $0x5e8] sm:$0xff] %v9522_v29  ;;  %v4078_v30 = vrot.slane %v11941_v19, 2  ;;  %v4070_v49 = vsel %vm4043_vm9, %v4068_v40, %v4069_v45 }
 0x206   : > { %v3412_v42 = vld [vmem:[#allocation2 + $0x520] sm:$0x3f]  ;;  %v2862_v51 = vpop.f32.mrb[131].mxu1  ;;  %v11947_v36 = vpop.f32.mrb[131].mxu0  ;;  %v3624_v32 = vrot.slane %v11944_v31, 1  ;;  %v4412_v17 = vsel %vm4043_vm9, %v4337_v21, -inf  ;;  %v4220_v26 = vadd.f32 %v4070_v49, %v3739_v11  ;;  %v11968_v60 = vmax.f32 %v11905_v33, %v4408_v38 }
 0x207   : > { %v3874_v59 = vld [vmem:[#allocation2 + $0x2e0] sm:$0x3f]  ;;  %2983 = vst [vmem:[#allocation2 + $0x5a8] sm:$0xff] %v2862_v51  ;;  %v4075_v2 = vrot.slane %v11947_v36, 2  ;;  %v11958_v6 = vld [vmem:[#allocation2 + $0x448] sm:$0xfe]  ;;  %v3766_v44 = vadd.f32 %v3627_v48, %v3414_v25  ;;  %v11982_v40 = vmax.f32 %v4336_v4, %v4412_v17  ;;  %v3607_v29 = vsel %vm1481_vm1, %v3605_v10, %v3606_v35 }
 0x208   : > { %4286 = vst [vmem:[#allocation2 + $0x240] sm:$0xff] %v4222_v13  ;;  %v4227_v50 = vadd.f32 %v4078_v30, %v3874_v59  ;;  %v3872_v43 = vld [vmem:[#allocation2 + $0x2a0] sm:$0x3f]  ;;  %v11963_v45 = vld [vmem:[%s10316_s17 + $0x68] sm:$0xff]   ;;  %v3764_v25 = vadd.f32 %v3624_v32, %v3412_v42  ;;  %v11978_v8 = vld [vmem:[%s10316_s17 + $0x70] sm:$0xff]   ;;  %v9569_v4 = vpop.f32.mrb[132].mxu0 }
 0x209   : > { %9772 = vmatmul.mubr.msk.bf16.gmra.mrb[236].mxu1 %vm470_vm0, %v11963_v45  ;;  %v4339_v52 = vld [vmem:[#allocation2 + $0xe0] sm:$0x3f]  ;;  %v13626_v12 = vld [vmem:[#allocation8_spill] sm:$0xff]  ;;  %v4225_v11 = vadd.f32 %v4075_v2, %v3872_v43  ;;  %v13627_v33 = vld [vmem:[#allocation9_spill] sm:$0xff]  ;;  %3830 = vst [vmem:[#allocation2 + $0x560] sm:$0x3f] %v3766_v44 }
 0x20a   : > { %v3743_v61 = vadd.f32 %v3595_v24, %v13626_v12  ;;  %v11971_v21 = vld [vmem:[#allocation2 + $0x408] sm:$0xfe]  ;;  %9775 = vmatprep.mubr.msk.bf16.mxu1 %vm470_vm0, %v11978_v8  ;;  %v11985_v38 = vadd.f32 %v13627_v33, %v3604_v46  ;;  %v13628_v5 = vld [vmem:[#allocation10_spill] sm:$0xff]  ;;  %4284 = vst [vmem:[#allocation2 + $0x200] sm:$0xff] %v4220_v26  ;;  %v3937_v42 = vld [vmem:[#allocation2 + $0x2d0] sm:$0xfc] }
 0x20b   : > { %v11988_v24 = vadd.f32 %v3601_v53, %v13628_v5  ;;  %v11995_v19 = vld [vmem:[#allocation2 + $0x4c8] sm:$0xfe]  ;;  %4291 = vst [vmem:[#allocation2 + $0x2e0] sm:$0x3f] %v4227_v50  ;;  %v4398_v46 = vrot.slane %v4397_v63, 4  ;;  %v13629_v13 = vld [vmem:[#allocation11_spill] sm:$0xff]  ;;  %9824 = vmatmul.mubr.msk.bf16.gmra.mrb[244].mxu0 %vm470_vm0, %v11701_v18 }
 0x20c   : > { %v12000_v53 = vadd.f32 %v13629_v13, %v3610_v34  ;;  %v3614_v62 = vrot.slane %v11958_v6, 1  ;;  %3828 = vst [vmem:[#allocation2 + $0x520] sm:$0x3f] %v3764_v25  ;;  %v4077_v20 = vrot.slane %v3937_v42, 2  ;;  %v3935_v51 = vld [vmem:[#allocation2 + $0x290] sm:$0xfc]  ;;  %9827 = vmatprep.mubr.msk.bf16.mxu0 %vm470_vm0, %v11710_v9 }
 0x20d   : > { %4289 = vst [vmem:[#allocation2 + $0x2a0] sm:$0x3f] %v4225_v11  ;;  %v9525_v35 = vpop.f32.mrb[132].mxu1  ;;  %3333 = vst [vmem:[#allocation2 + $0x350] sm:$0xff] %v9569_v4  ;;  %v12004_v10 = vsel %vm4043_vm9, %v4339_v52, -inf  ;;  %v3611_v49 = vrot.slane %v11971_v21, 1  ;;  %v12008_v44 = vmax.f32 %v4397_v63, %v4398_v46 }
 0x20e   : > { %v4074_v59 = vrot.slane %v3935_v51, 2  ;;  %2988 = vst [vmem:[#allocation2 + $0x648] sm:$0xff] %v9525_v35  ;;  %v2875_v22 = vpop.f32.mrb[133].mxu1  ;;  %v3148_v17 = vpop.f32.mrb[133].mxu0  ;;  %v4410_v34 = vrot.slane %v11968_v60, 1  ;;  %v13630_v26 = vld [vmem:[#allocation12_spill] sm:$0xff]  ;;  %v4079_v52 = vsel %vm4043_vm9, %v4077_v20, %v4078_v30  ;;  %v3616_v20 = vsel %vm1481_vm1, %v3614_v62, %v3615_v47 }
 0x20f   : > { %v3418_v6 = vld [vmem:[#allocation2 + $0x5e0] sm:$0x3f]  ;;  %v12011_v50 = vadd.f32 %v3607_v29, %v13630_v26  ;;  %v3620_v43 = vrot.slane %v11995_v19, 1  ;;  %v12014_v12 = vld [vmem:[#allocation2 + $0x5e8] sm:$0x7f]  ;;  %2986 = vst [vmem:[#allocation2 + $0x608] sm:$0xff] %v2875_v22  ;;  %v4226_v29 = vadd.f32 %v4079_v52, %v11923_v7 }
 0x210   : > { %3331 = vst [vmem:[#allocation2 + $0x310] sm:$0xff] %v3148_v17  ;;  %v9526_v21 = vpop.f32.mrb[134].mxu1  ;;  %v12017_v25 = vpop.f32.mrb[134].mxu0  ;;  %v3878_v11 = vld [vmem:[#allocation2 + $0x360] sm:$0x3f]  ;;  %v4414_v33 = vrot.slane %v11982_v40, 4  ;;  %v4076_v19 = vsel %vm4043_vm9, %v4074_v59, %v4075_v2  ;;  %v4411_v37 = vmax.f32 %v11968_v60, %v4410_v34  ;;  %v3613_v17 = vsel %vm1481_vm1, %v3611_v49, %v3612_v23 }
 0x211   : > { %v3416_v63 = vld [vmem:[#allocation2 + $0x5a0] sm:$0x3f]  ;;  %v3633_v5 = vrot.slane %v12014_v12, 1  ;;  %v12022_v42 = vld [vmem:[#allocation2 + $0x5a8] sm:$0x7f]  ;;  %2989 = vst [vmem:[#allocation2 + $0x668] sm:$0xff] %v9526_v21  ;;  %v4224_v35 = vadd.f32 %v4076_v19, %v3743_v61 }
 0x212   : > { %v4084_v30 = vrot.slane %v12017_v25, 2  ;;  %v2878_v4 = vpop.f32.mrb[135].mxu1  ;;  %v12028_v46 = vpop.f32.mrb[135].mxu0  ;;  %v3876_v13 = vld [vmem:[#allocation2 + $0x320] sm:$0x3f]  ;;  %v3630_v36 = vrot.slane %v12022_v42, 1  ;;  %v12078_v23 = vmax.f32 %v11982_v40, %v4414_v33 }
 0x213   : > { %v12033_v51 = vld [vmem:[#allocation2 + $0x488] sm:$0xfe]  ;;  %2987 = vst [vmem:[#allocation2 + $0x628] sm:$0xff] %v2878_v4  ;;  %v4081_v2 = vrot.slane %v12028_v46, 2  ;;  %v3770_v56 = vadd.f32 %v3633_v5, %v3418_v6  ;;  %4290 = vst [vmem:[#allocation2 + $0x2c0] sm:$0xff] %v4226_v29  ;;  %v12050_v62 = vld [vmem:[%s10316_s17 + $0x78] sm:$0xff]   ;;  %9828 = vmatmul.mubr.msk.bf16.gmra.mrb[248].mxu0 %vm470_vm0, %v11780_v15 }
 0x214   : > { %v12035_v7 = vld [vmem:[#allocation2 + $0x548] sm:$0xfe]  ;;  %v4231_v47 = vadd.f32 %v4084_v30, %v3878_v11  ;;  %9776 = vmatmul.mubr.msk.bf16.gmra.mrb[240].mxu1 %vm470_vm0, %v12050_v62  ;;  %v4400_v61 = vrot.slane %v12008_v44, 2  ;;  %v3768_v26 = vadd.f32 %v3630_v36, %v3416_v63  ;;  %4288 = vst [vmem:[#allocation2 + $0x280] sm:$0xff] %v4224_v35  ;;  %v12068_v21 = vld [vmem:[%s10316_s17 + $0x80] sm:$0xff]   ;;  %v13631_v60 = vld [vmem:[#allocation13_spill] sm:$0xff]  ;;  %v3622_v11 = vsel %vm1481_vm1, %v3620_v43, %v3621_v27 }
 0x215   : > { %v12041_v59 = vld [vmem:[#allocation2 + $0x508] sm:$0xfe]  ;;  %v4229_v52 = vadd.f32 %v4081_v2, %v3876_v13  ;;  %9779 = vmatprep.mubr.msk.bf16.mxu1 %vm470_vm0, %v12068_v21  ;;  %v12075_v54 = vld [vmem:[%s13553_s2 + $0x1] ss:$0 sm:$0xff]  ;;  %v12081_v49 = vadd.f32 %v13631_v60, %v3616_v20  ;;  %v3617_v34 = vrot.slane %v12033_v51, 1  ;;  %v3626_v63 = vrot.slane %v12035_v7, 1  ;;  %9831 = vmatprep.mubr.msk.bf16.mxu0 %vm470_vm0, %v11796_v39 }
 0x216   : > { %v12043_v22 = vld [vmem:[#allocation2 + $0x5c8] sm:$0xfe]  ;;  %v4338_v16 = vld [vmem:[#allocation2 + $0xc0] sm:$0xff]  ;;  %3834 = vst [vmem:[#allocation2 + $0x5e0] sm:$0x3f] %v3770_v56  ;;  %v9573_v19 = vpop.f32.mrb[136].mxu0  ;;  %v4401_v14 = vmax.f32 %v12008_v44, %v4400_v61 }
 0x217   : > { %v12061_v6 = vld [vmem:[#allocation2 + $0x588] sm:$0xfe]  ;;  %v3941_v29 = vld [vmem:[#allocation2 + $0x350] sm:$0xfc]  ;;  %4295 = vst [vmem:[#allocation2 + $0x360] sm:$0x3f] %v4231_v47 }
 0x218   : > { %v3623_v4 = vrot.slane %v12041_v59, 1  ;;  %v3632_v40 = vrot.slane %v12043_v22, 1  ;;  %3832 = vst [vmem:[#allocation2 + $0x5a0] sm:$0x3f] %v3768_v26  ;;  %v4083_v33 = vrot.slane %v3941_v29, 2  ;;  %v9529_v13 = vpop.f32.mrb[136].mxu1  ;;  %v12098_v26 = vadd.f32 %v12075_v54, %v4411_v37 }
 0x219   : > { %4293 = vst [vmem:[#allocation2 + $0x320] sm:$0x3f] %v4229_v52  ;;  %3337 = vst [vmem:[#allocation2 + $0x3d0] sm:$0xff] %v9573_v19  ;;  %v3164_v20 = vpop.f32.mrb[137].mxu0  ;;  %v13632_v51 = vld [vmem:[#allocation14_spill] sm:$0xff]  ;;  %v3629_v43 = vrot.slane %v12061_v6, 1  ;;  %v12101_v52 = vmax.f32 %v4338_v16, %v12004_v10  ;;  %v3619_v10 = vsel %vm1481_vm1, %v3617_v34, %v3618_v58 }
 0x21a   : > { %v12092_v27 = vadd.f32 %v3613_v17, %v13632_v51  ;;  %v12095_v35 = vld [vmem:[#allocation2 + $0x648] sm:$0xfe]  ;;  %v3939_v56 = vld [vmem:[#allocation2 + $0x310] sm:$0xfc]  ;;  %2992 = vst [vmem:[#allocation2 + $0x6c8] sm:$0xff] %v9529_v13  ;;  %v2891_v47 = vpop.f32.mrb[137].mxu1  ;;  %v4085_v6 = vsel %vm4043_vm9, %v4083_v33, %v4084_v30  ;;  %v3625_v57 = vsel %vm1481_vm1, %v3623_v4, %v3624_v32 }
 0x21b   : > { %3335 = vst [vmem:[#allocation2 + $0x390] sm:$0xff] %v3164_v20  ;;  %v3422_v60 = vld [vmem:[#allocation2 + $0x660] sm:$0x3f]  ;;  %v4080_v61 = vrot.slane %v3939_v56, 2  ;;  %v12106_v17 = vld [vmem:[#allocation2 + $0x668] sm:$0x7f]  ;;  %v3631_v7 = vsel %vm1481_vm1, %v3629_v43, %v3630_v36  ;;  %9832 = vmatmul.mubr.msk.bf16.gmra.mrb[252].mxu0 %vm470_vm0, %v11840_v1 }
 0x21c   : > { %v13633_v29 = vld [vmem:[#allocation15_spill] sm:$0xff]  ;;  %2990 = vst [vmem:[#allocation2 + $0x688] sm:$0xff] %v2891_v47  ;;  %v9530_v19 = vpop.f32.mrb[138].mxu1  ;;  %v12111_v13 = vpop.f32.mrb[138].mxu0  ;;  %v4416_v20 = vrot.slane %v12078_v23, 2  ;;  %v3639_v16 = vrot.slane %v12106_v17, 1  ;;  %9835 = vmatprep.mubr.msk.bf16.mxu0 %vm470_vm0, %v11853_v41 }
 0x21d   : > { %v12104_v44 = vadd.f32 %v13633_v29, %v3622_v11  ;;  %v3882_v37 = vld [vmem:[#allocation2 + $0x3e0] sm:$0x3f]  ;;  %v4230_v11 = vadd.f32 %v4085_v6, %v11985_v38  ;;  %v12119_v51 = vld [vmem:[#allocation2 + $0x628] sm:$0x7f]  ;;  %2993 = vst [vmem:[#allocation2 + $0x6e8] sm:$0xff] %v9530_v19  ;;  %v4090_v25 = vrot.slane %v12111_v13, 2  ;;  %v4082_v0 = vsel %vm4043_vm9, %v4080_v61, %v4081_v2 }
 0x21e   : > { %v2894_v30 = vpop.f32.mrb[139].mxu1  ;;  %v12122_v33 = vpop.f32.mrb[139].mxu0  ;;  %v12124_v56 = vld [vmem:[#allocation2 + $0x608] sm:$0xfe]  ;;  %v3636_v47 = vrot.slane %v12119_v51, 1  ;;  %v4402_v38 = vrot.slane %v4401_v14, 1  ;;  %v3774_v29 = vadd.f32 %v3639_v16, %v3422_v60  ;;  %v4228_v17 = vadd.f32 %v4082_v0, %v11988_v24 }
 0x21f   : > { %2991 = vst [vmem:[#allocation2 + $0x6a8] sm:$0xff] %v2894_v30  ;;  %v4087_v58 = vrot.slane %v12122_v33, 2  ;;  %v3420_v34 = vld [vmem:[#allocation2 + $0x620] sm:$0x3f]  ;;  %4294 = vst [vmem:[#allocation2 + $0x340] sm:$0xff] %v4230_v11  ;;  %v4235_v6 = vadd.f32 %v4090_v25, %v3882_v37  ;;  %v12135_v13 = vld [vmem:[%s10316_s17 + $0x88] sm:$0xff]  }
 0x220   : > { %v3880_v19 = vld [vmem:[#allocation2 + $0x3a0] sm:$0x3f]  ;;  %9780 = vmatmul.mubr.msk.bf16.gmra.mrb[244].mxu1 %vm470_vm0, %v12135_v13  ;;  %v4692_v46 = vmax.f32 %v12098_v26, 0.0  ;;  %v3638_v2 = vrot.slane %v12095_v35, 1  ;;  %v3772_v18 = vadd.f32 %v3636_v47, %v3420_v34  ;;  %v12144_v30 = vld [vmem:[%s10316_s17 + $0x90] sm:$0xff]   ;;  %v4422_v24 = vrot.slane %v12101_v52, 4 }
 0x221   : > { %v4233_v61 = vadd.f32 %v4087_v58, %v3880_v19  ;;  %9783 = vmatprep.mubr.msk.bf16.mxu1 %vm470_vm0, %v12144_v30  ;;  %v13634_v60 = vld [vmem:[#allocation16_spill] sm:$0xff]  ;;  %v12157_v35 = vsel %vm1481_vm1, %v3626_v63, %v3627_v48  ;;  %v3635_v26 = vrot.slane %v12124_v56, 1  ;;  %3838 = vst [vmem:[#allocation2 + $0x660] sm:$0x3f] %v3774_v29  ;;  %4292 = vst [vmem:[#allocation2 + $0x300] sm:$0xff] %v4228_v17  ;;  %v9577_v33 = vpop.f32.mrb[140].mxu0 }
 0x222   : > { %v12150_v37 = vadd.f32 %v3619_v10, %v13634_v60  ;;  %v3945_v11 = vld [vmem:[#allocation2 + $0x3d0] sm:$0xfc]  ;;  %4299 = vst [vmem:[#allocation2 + $0x3e0] sm:$0x3f] %v4235_v6  ;;  %v4403_v0 = vmax.f32 %v4401_v14, %v4402_v38  ;;  %v3634_v48 = vsel %vm1481_vm1, %v3632_v40, %v3633_v5  ;;  %3836 = vst [vmem:[#allocation2 + $0x620] sm:$0x3f] %v3772_v18 }
 0x223   : > { %v3489_v63 = vld [vmem:[#allocation2 + $0x6c8] sm:$0xfe]  ;;  %v4089_v9 = vrot.slane %v3945_v11, 2  ;;  %v3943_v14 = vld [vmem:[#allocation2 + $0x390] sm:$0xfc]  ;;  %v9533_v31 = vpop.f32.mrb[140].mxu1  ;;  %v12181_v5 = vmax.f32 %v12078_v23, %v4416_v20  ;;  %v3640_v36 = vsel %vm1481_vm1, %v3638_v2, %v3639_v16  ;;  %v12188_v34 = vmax.f32 %v12101_v52, %v4422_v24  ;;  %9836 = vmatmul.mubr.msk.bf16.gmra.mrb[0].mxu0 %vm470_vm0, %v11899_v3 }
 0x224   : > { %4297 = vst [vmem:[#allocation2 + $0x3a0] sm:$0x3f] %v4233_v61  ;;  %3341 = vst [vmem:[#allocation2 + $0x450] sm:$0xff] %v9577_v33  ;;  %v4086_v59 = vrot.slane %v3943_v14, 2  ;;  %v2907_v32 = vpop.f32.mrb[141].mxu1  ;;  %v3180_v4 = vpop.f32.mrb[141].mxu0  ;;  %v12178_v22 = vadd.f32 %v12075_v54, %v4403_v0  ;;  %v3637_v52 = vsel %vm1481_vm1, %v3635_v26, %v3636_v47  ;;  %9839 = vmatprep.mubr.msk.bf16.mxu0 %vm470_vm0, %v11914_v55 }
 0x225   : > { %2996 = vst [vmem:[#allocation2 + $0x748] sm:$0xff] %v9533_v31  ;;  %v12175_v12 = vrot.slane %v4692_v46, 7  ;;  %v3426_v42 = vld [vmem:[#allocation2 + $0x6e0] sm:$0x3f]  ;;  %v3644_v40 = vrot.slane %v3489_v63, 1  ;;  %v4091_v10 = vsel %vm4043_vm9, %v4089_v9, %v4090_v25  ;;  %2994 = vst [vmem:[#allocation2 + $0x708] sm:$0xff] %v2907_v32 }
 0x226   : > { %v3490_v43 = vld [vmem:[#allocation2 + $0x6e8] sm:$0x7f]  ;;  %3339 = vst [vmem:[#allocation2 + $0x410] sm:$0xff] %v3180_v4  ;;  %v9534_v56 = vpop.f32.mrb[142].mxu1  ;;  %v12185_v38 = vpop.f32.mrb[142].mxu0  ;;  %v4234_v17 = vadd.f32 %v4091_v10, %v12000_v53  ;;  %v4088_v20 = vsel %vm4043_vm9, %v4086_v59, %v4087_v58  ;;  %v12208_v60 = vld [vmem:[%s10316_s17 + $0x98] sm:$0xff]   ;;  %v12235_v59 = vadd.f32 %v11353_v28, %v3634_v48 }
 0x227   : > { %v3645_v29 = vrot.slane %v3490_v43, 1  ;;  %v12191_v23 = vld [vmem:[#allocation2 + $0x6a8] sm:$0x7f]  ;;  %2997 = vst [vmem:[#allocation2 + $0x768] sm:$0xff] %v9534_v56  ;;  %v4096_v16 = vrot.slane %v12185_v38, 2  ;;  %v2910_v25 = vpop.f32.mrb[143].mxu1  ;;  %v4232_v53 = vadd.f32 %v4088_v20, %v12011_v50 }
 0x228   : > { %v12195_v6 = vpop.f32.mrb[143].mxu0  ;;  %v3424_v19 = vld [vmem:[#allocation2 + $0x6a0] sm:$0x3f]  ;;  %v3642_v46 = vrot.slane %v12191_v23, 1  ;;  %2995 = vst [vmem:[#allocation2 + $0x728] sm:$0xff] %v2910_v25  ;;  %4298 = vst [vmem:[#allocation2 + $0x3c0] sm:$0xff] %v4234_v17  ;;  %9784 = vmatmul.mubr.msk.bf16.gmra.mrb[248].mxu1 %vm470_vm0, %v12208_v60 }
 0x229   : > { %v3886_v2 = vld [vmem:[#allocation2 + $0x460] sm:$0x3f]  ;;  %v4093_v58 = vrot.slane %v12195_v6, 2  ;;  %v12205_v18 = vld [vmem:[#allocation2 + $0x688] sm:$0xfe]  ;;  %v3778_v61 = vadd.f32 %v3645_v29, %v3426_v42  ;;  %v4691_v50 = vmax.f32 %v12178_v22, 0.0  ;;  %v3646_v15 = vsel %vm1481_vm1, %v3644_v40, %v3645_v29 }
 0x22a   : > { %v4239_v24 = vadd.f32 %v4096_v16, %v3886_v2  ;;  %v3884_v51 = vld [vmem:[#allocation2 + $0x420] sm:$0x3f]  ;;  %v4418_v47 = vrot.slane %v12181_v5, 1  ;;  %v3776_v26 = vadd.f32 %v3642_v46, %v3424_v19  ;;  %4296 = vst [vmem:[#allocation2 + $0x380] sm:$0xff] %v4232_v53  ;;  %v4424_v39 = vrot.slane %v12188_v34, 2  ;;  %v13635_v63 = vld [vmem:[#allocation17_spill] sm:$0xff] }
 0x22b   : > { %v4237_v11 = vadd.f32 %v4093_v58, %v3884_v51  ;;  %v12222_v33 = vld [vmem:[%s10316_s17 + $0xa0] sm:$0xff]   ;;  %v12229_v9 = vadd.f32 %v13635_v63, %v12157_v35  ;;  %v13636_v14 = vld [vmem:[#allocation18_spill] sm:$0xff]  ;;  %v13637_v32 = vld [vmem:[#allocation20_spill] sm:$0xff]  ;;  %3842 = vst [vmem:[#allocation2 + $0x6e0] sm:$0x3f] %v3778_v61  ;;  %v9581_v42 = vpop.f32.mrb[144].mxu0  ;;  %v12256_v53 = vsel %vm2194_vm2, %v12175_v12, %v4691_v50  ;;  %9840 = vmatmul.mubr.msk.bf16.gmra.mrb[4].mxu0 %vm470_vm0, %v11963_v45 }
 0x22c   : > { %9787 = vmatprep.mubr.msk.bf16.mxu1 %vm470_vm0, %v12222_v33  ;;  %v4341_v0 = vld [vmem:[#allocation2 + $0x120] sm:$0x3f]  ;;  %v12232_v31 = vadd.f32 %v3625_v57, %v13636_v14  ;;  %v12238_v4 = vadd.f32 %v3631_v7, %v13637_v32  ;;  %v3949_v22 = vld [vmem:[#allocation2 + $0x450] sm:$0xfc]  ;;  %4303 = vst [vmem:[#allocation2 + $0x460] sm:$0x3f] %v4239_v24  ;;  %v12251_v19 = vmax.f32 %v12181_v5, %v4418_v47 }
 0x22d   : > { %v4340_v40 = vld [vmem:[#allocation2 + $0x100] sm:$0xff]  ;;  %v13638_v43 = vld [vmem:[#allocation21_spill] sm:$0xff]  ;;  %v13639_v56 = vld [vmem:[#allocation22_spill] sm:$0xff]  ;;  %v3641_v57 = vrot.slane %v12205_v18, 1  ;;  %3840 = vst [vmem:[#allocation2 + $0x6a0] sm:$0x3f] %v3776_v26  ;;  %v12262_v5 = vmax.f32 %v12188_v34, %v4424_v39  ;;  %9843 = vmatprep.mubr.msk.bf16.mxu0 %vm470_vm0, %v11978_v8 }
 0x22e   : > { %v12241_v10 = vadd.f32 %v13638_v43, %v3640_v36  ;;  %v12244_v35 = vadd.f32 %v3637_v52, %v13639_v56  ;;  %v3493_v38 = vld [vmem:[#allocation2 + $0x748] sm:$0xfe]  ;;  %v4095_v28 = vrot.slane %v3949_v22, 2  ;;  %4301 = vst [vmem:[#allocation2 + $0x420] sm:$0x3f] %v4237_v11  ;;  %v9537_v48 = vpop.f32.mrb[144].mxu1 }
 0x22f   : > { %3345 = vst [vmem:[#allocation2 + $0x4d0] sm:$0xff] %v9581_v42  ;;  %v3196_v7 = vpop.f32.mrb[145].mxu0  ;;  %v13640_v29 = vld [vmem:[#allocation23_spill] sm:$0xff]  ;;  %v3947_v20 = vld [vmem:[#allocation2 + $0x410] sm:$0xfc]  ;;  %3000 = vst [vmem:[#allocation2 + $0x7c8] sm:$0xff] %v9537_v48  ;;  %v3643_v22 = vsel %vm1481_vm1, %v3641_v57, %v3642_v46 }
 0x230   : > { %v12248_v17 = vadd.f32 %v13640_v29, %v3646_v15  ;;  %v2923_v25 = vpop.f32.mrb[145].mxu1  ;;  %3343 = vst [vmem:[#allocation2 + $0x490] sm:$0xff] %v3196_v7  ;;  %v4343_v36 = vld [vmem:[#allocation2 + $0x160] sm:$0x3f]  ;;  %v4428_v52 = vsel %vm4043_vm9, %v4341_v0, -inf  ;;  %v3650_v18 = vrot.slane %v3493_v38, 1  ;;  %v4097_v51 = vsel %vm4043_vm9, %v4095_v28, %v4096_v16 }
 0x231   : > { %v3430_v2 = vld [vmem:[#allocation2 + $0x760] sm:$0x3f]  ;;  %v4092_v61 = vrot.slane %v3947_v20, 2  ;;  %v3494_v24 = vld [vmem:[#allocation2 + $0x768] sm:$0x7f]  ;;  %2998 = vst [vmem:[#allocation2 + $0x788] sm:$0xff] %v2923_v25  ;;  %v4238_v63 = vadd.f32 %v4097_v51, %v12081_v49  ;;  %v4429_v32 = vmax.f32 %v4340_v40, %v4428_v52 }
 0x232   : > { %v9538_v15 = vpop.f32.mrb[146].mxu1  ;;  %v12259_v26 = vpop.f32.mrb[146].mxu0  ;;  %v4345_v11 = vld [vmem:[#allocation2 + $0x1a0] sm:$0x3f]  ;;  %v3651_v0 = vrot.slane %v3494_v24, 1  ;;  %v12284_v57 = vld [vmem:[%s10316_s17 + $0xa8] sm:$0xff]  }
 0x233   : > { %v3428_v47 = vld [vmem:[#allocation2 + $0x720] sm:$0x3f]  ;;  %v12265_v12 = vld [vmem:[#allocation2 + $0x728] sm:$0x7f]  ;;  %3001 = vst [vmem:[#allocation2 + $0x7e8] sm:$0xff] %v9538_v15  ;;  %v4102_v50 = vrot.slane %v12259_v26, 2  ;;  %v4094_v49 = vsel %vm4043_vm9, %v4092_v61, %v4093_v58  ;;  %9788 = vmatmul.mubr.msk.bf16.gmra.mrb[252].mxu1 %vm470_vm0, %v12284_v57  ;;  %9844 = vmatmul.mubr.msk.bf16.gmra.mrb[8].mxu0 %vm470_vm0, %v12050_v62 }
 0x234   : > { %v2926_v14 = vpop.f32.mrb[147].mxu1  ;;  %v12268_v16 = vpop.f32.mrb[147].mxu0  ;;  %v12273_v34 = vld [vmem:[#allocation2 + $0x708] sm:$0xfe]  ;;  %v3648_v39 = vrot.slane %v12265_v12, 1  ;;  %v3782_v40 = vadd.f32 %v3651_v0, %v3430_v2  ;;  %4302 = vst [vmem:[#allocation2 + $0x440] sm:$0xff] %v4238_v63  ;;  %v4236_v23 = vadd.f32 %v4094_v49, %v12092_v27  ;;  %v3652_v28 = vsel %vm1481_vm1, %v3650_v18, %v3651_v0  ;;  %9847 = vmatprep.mubr.msk.bf16.mxu0 %vm470_vm0, %v12068_v21 }
 0x235   : > { %v3890_v42 = vld [vmem:[#allocation2 + $0x4e0] sm:$0x3f]  ;;  %2999 = vst [vmem:[#allocation2 + $0x7a8] sm:$0xff] %v2926_v14  ;;  %v4099_v43 = vrot.slane %v12268_v16, 2  ;;  %v4436_v38 = vsel %vm4043_vm9, %v4343_v36, -inf  ;;  %v12293_v7 = vld [vmem:[%s10316_s17 + $0xb0] sm:$0xff]   ;;  %v12309_v0 = vadd.f32 %v12075_v54, %v12251_v19 }
 0x236   : > { %v4243_v46 = vadd.f32 %v4102_v50, %v3890_v42  ;;  %v3888_v56 = vld [vmem:[#allocation2 + $0x4a0] sm:$0x3f]  ;;  %v3780_v1 = vadd.f32 %v3648_v39, %v3428_v47  ;;  %9791 = vmatprep.mubr.msk.bf16.mxu1 %vm470_vm0, %v12293_v7  ;;  %v4426_v27 = vrot.slane %v12262_v5, 1  ;;  %v13641_v29 = vld [vmem:[#allocation24_spill] sm:$0xff]  ;;  %v3647_v25 = vrot.slane %v12273_v34, 1  ;;  %4300 = vst [vmem:[#allocation2 + $0x400] sm:$0xff] %v4236_v23 }
 0x237   : > { %v4342_v6 = vld [vmem:[#allocation2 + $0x140] sm:$0xff]  ;;  %v4241_v48 = vadd.f32 %v4099_v43, %v3888_v56  ;;  %v12299_v20 = vadd.f32 %v3643_v22, %v13641_v29  ;;  %3846 = vst [vmem:[#allocation2 + $0x760] sm:$0x3f] %v3782_v40  ;;  %v3953_v36 = vld [vmem:[#allocation2 + $0x4d0] sm:$0xfc]  ;;  %v9585_v52 = vpop.f32.mrb[148].mxu0 }
 0x238   : > { %v4344_v58 = vld [vmem:[#allocation2 + $0x180] sm:$0xff]  ;;  %4307 = vst [vmem:[#allocation2 + $0x4e0] sm:$0x3f] %v4243_v46  ;;  %v4430_v2 = vrot.slane %v4429_v32, 4  ;;  %v4444_v18 = vsel %vm4043_vm9, %v4345_v11, -inf  ;;  %v4101_v24 = vrot.slane %v3953_v36, 2  ;;  %v4437_v26 = vmax.f32 %v4342_v6, %v4436_v38 }
 0x239   : > { %3844 = vst [vmem:[#allocation2 + $0x720] sm:$0x3f] %v3780_v1  ;;  %v3497_v61 = vld [vmem:[#allocation2 + $0x7c8] sm:$0xfe]  ;;  %v3951_v51 = vld [vmem:[#allocation2 + $0x490] sm:$0xfc]  ;;  %v12305_v47 = vmax.f32 %v4344_v58, %v4444_v18  ;;  %v12353_v55 = vsel %vm1481_vm1, %v3647_v25, %v3648_v39 }
 0x23a   : > { %4305 = vst [vmem:[#allocation2 + $0x4a0] sm:$0x3f] %v4241_v48  ;;  %3349 = vst [vmem:[#allocation2 + $0x550] sm:$0xff] %v9585_v52  ;;  %v3212_v15 = vpop.f32.mrb[149].mxu0  ;;  %v13642_v63 = vld [vmem:[#allocation26_spill] sm:$0xff]  ;;  %v3656_v41 = vrot.slane %v3497_v61, 1  ;;  %v4431_v40 = vmax.f32 %v4429_v32, %v4430_v2  ;;  %v4103_v6 = vsel %vm4043_vm9, %v4101_v24, %v4102_v50 }
 0x23b   : > { %v12312_v14 = vadd.f32 %v13642_v63, %v3652_v28  ;;  %v3495_v16 = vld [vmem:[#allocation2 + $0x788] sm:$0xfe]  ;;  %v4098_v11 = vrot.slane %v3951_v51, 2  ;;  %3347 = vst [vmem:[#allocation2 + $0x510] sm:$0xff] %v3212_v15  ;;  %v12314_v22 = vpop.f32.mrb[150].mxu0  ;;  %v12316_v42 = vpop.f32.mrb[148].mxu1  ;;  %v4427_v28 = vmax.f32 %v12262_v5, %v4426_v27  ;;  %v4242_v48 = vadd.f32 %v4103_v6, %v12104_v44  ;;  %9848 = vmatmul.mubr.msk.bf16.gmra.mrb[12].mxu0 %vm470_vm0, %v12135_v13 }
 0x23c   : > { %v3894_v49 = vld [vmem:[#allocation2 + $0x560] sm:$0x3f]  ;;  %v3653_v46 = vrot.slane %v3495_v16, 1  ;;  %v3498_v56 = vld [vmem:[#allocation2 + $0x7e8] sm:$0x7f]  ;;  %v4108_v19 = vrot.slane %v12314_v22, 2  ;;  %9851 = vmatprep.mubr.msk.bf16.mxu0 %vm470_vm0, %v12144_v30 }
 0x23d   : > { %v3434_v23 = vld [vmem:[#allocation2 + $0x7e0] sm:$0x3f]  ;;  %v12320_v58 = vpop.f32.mrb[151].mxu0  ;;  %v12322_v38 = vpop.f32.mrb[149].mxu1  ;;  %v3657_v1 = vrot.slane %v3498_v56, 1  ;;  %v4100_v36 = vsel %vm4043_vm9, %v4098_v11, %v4099_v43  ;;  %v4432_v5 = vrot.slane %v4431_v40, 2  ;;  %v4662_v39 = vadd.f32 %v12075_v54, %v4427_v28 }
 0x23e   : > { %v3496_v29 = vld [vmem:[#allocation2 + $0x7a8] sm:$0x7f]  ;;  %v4105_v32 = vrot.slane %v12320_v58, 2  ;;  %v9614_v52 = vpop.f32.mrb[150].mxu1  ;;  %v4240_v50 = vadd.f32 %v4100_v36, %v12150_v37  ;;  %v4247_v18 = vadd.f32 %v4108_v19, %v3894_v49  ;;  %v3892_v61 = vld [vmem:[#allocation2 + $0x520] sm:$0x3f] }
 0x23f   : > { %v3654_v2 = vrot.slane %v3496_v29, 1  ;;  %5127 = vst [vmem:[#allocation2 + $0x60] sm:$0xff] %v9614_v52  ;;  %v4872_v27 = vpop.f32.mrb[151].mxu1  ;;  %v3432_v24 = vld [vmem:[#allocation2 + $0x7a0] sm:$0x3f]  ;;  %v3658_v44 = vsel %vm1481_vm1, %v3656_v41, %v3657_v1  ;;  %v3786_v43 = vadd.f32 %v3657_v1, %v3434_v23  ;;  %4306 = vst [vmem:[#allocation2 + $0x4c0] sm:$0xff] %v4242_v48  ;;  %v4433_v23 = vmax.f32 %v4431_v40, %v4432_v5 }
 0x240   : > { %v4245_v51 = vadd.f32 %v4105_v32, %v3892_v61  ;;  %v12333_v15 = vld [vmem:[%s10316_s17 + $0xb8] sm:$0xff]   ;;  %v4347_v37 = vld [vmem:[#allocation2 + $0x1e0] sm:$0x3f]  ;;  %v4438_v3 = vrot.slane %v4437_v26, 4  ;;  %5125 = vst [vmem:[#allocation2 + $0x20] sm:$0xff] %v4872_v27  ;;  %v13643_v63 = vld [vmem:[#allocation28_spill] sm:$0xff] }
 0x241   : > { %9792 = vmatmul.mubr.msk.bf16.gmra.mrb[0].mxu1 %vm470_vm0, %v12333_v15  ;;  %v12340_v16 = vadd.f32 %v13643_v63, %v3658_v44  ;;  %v3655_v11 = vsel %vm1481_vm1, %v3653_v46, %v3654_v2  ;;  %v3784_v41 = vadd.f32 %v3654_v2, %v3432_v24  ;;  %4304 = vst [vmem:[#allocation2 + $0x480] sm:$0xff] %v4240_v50  ;;  %4311 = vst [vmem:[#allocation2 + $0x560] sm:$0x3f] %v4247_v18  ;;  %v12344_v22 = vld [vmem:[%s10316_s17 + $0xc0] sm:$0xff]   ;;  %v13644_v56 = vld [vmem:[#allocation29_spill] sm:$0xff]  ;;  %v9589_v58 = vpop.f32.mrb[152].mxu0 }
 0x242   : > { %9795 = vmatprep.mubr.msk.bf16.mxu1 %vm470_vm0, %v12344_v22  ;;  %v4346_v49 = vld [vmem:[#allocation2 + $0x1c0] sm:$0xff]  ;;  %3850 = vst [vmem:[#allocation2 + $0x7e0] sm:$0x3f] %v3786_v43  ;;  %v12356_v46 = vadd.f32 %v3655_v11, %v13644_v56  ;;  %v3957_v6 = vld [vmem:[#allocation2 + $0x550] sm:$0xfc]  ;;  %v4439_v1 = vmax.f32 %v4437_v26, %v4438_v3  ;;  %v4446_v48 = vrot.slane %v12305_v47, 4 }
 0x243   : > { %4309 = vst [vmem:[#allocation2 + $0x520] sm:$0x3f] %v4245_v51  ;;  %3848 = vst [vmem:[#allocation2 + $0x7a0] sm:$0x3f] %v3784_v41  ;;  %v4107_v29 = vrot.slane %v3957_v6, 2  ;;  %v3228_v12 = vpop.f32.mrb[153].mxu0  ;;  %9852 = vmatmul.mubr.msk.bf16.gmra.mrb[16].mxu0 %vm470_vm0, %v12208_v60 }
 0x244   : > { %v3955_v40 = vld [vmem:[#allocation2 + $0x510] sm:$0xfc]  ;;  %3353 = vst [vmem:[#allocation2 + $0x5d0] sm:$0xff] %v9589_v58  ;;  %v4434_v36 = vrot.slane %v4433_v23, 1  ;;  %v4452_v34 = vsel %vm4043_vm9, %v4347_v37, -inf  ;;  %3351 = vst [vmem:[#allocation2 + $0x590] sm:$0xff] %v3228_v12  ;;  %v4447_v50 = vmax.f32 %v12305_v47, %v4446_v48  ;;  %9855 = vmatprep.mubr.msk.bf16.mxu0 %vm470_vm0, %v12222_v33 }
 0x245   : > { %v4104_v25 = vrot.slane %v3955_v40, 2  ;;  %v12361_v52 = vpop.f32.mrb[154].mxu0  ;;  %v4440_v2 = vrot.slane %v4439_v1, 2  ;;  %v4453_v26 = vmax.f32 %v4346_v49, %v4452_v34  ;;  %v12364_v18 = vpop.f32.mrb[152].mxu1  ;;  %v4109_v61 = vsel %vm4043_vm9, %v4107_v29, %v4108_v19  ;;  %v3898_v37 = vld [vmem:[#allocation2 + $0x5e0] sm:$0x3f] }
 0x246   : > { %v4114_v5 = vrot.slane %v12361_v52, 2  ;;  %v12368_v27 = vpop.f32.mrb[155].mxu0  ;;  %v4435_v24 = vmax.f32 %v4433_v23, %v4434_v36  ;;  %v4693_v44 = vmax.f32 %v12309_v0, 0.0  ;;  %v12371_v28 = vpop.f32.mrb[153].mxu1  ;;  %v4246_v43 = vadd.f32 %v4109_v61, %v12229_v9  ;;  %v4349_v19 = vld [vmem:[#allocation2 + $0x220] sm:$0x3f] }
 0x247   : > { %v4106_v51 = vsel %vm4043_vm9, %v4104_v25, %v4105_v32  ;;  %v4111_v47 = vrot.slane %v12368_v27, 2  ;;  %v4441_v3 = vmax.f32 %v4439_v1, %v4440_v2  ;;  %v9618_v63 = vpop.f32.mrb[154].mxu1  ;;  %v3896_v49 = vld [vmem:[#allocation2 + $0x5a0] sm:$0x3f]  ;;  %v4448_v0 = vrot.slane %v4447_v50, 2  ;;  %v12380_v6 = vld [vmem:[%s10316_s17 + $0xc8] sm:$0xff]  }
 0x248   : > { %v4244_v11 = vadd.f32 %v4106_v51, %v12232_v31  ;;  %v4251_v41 = vadd.f32 %v4114_v5, %v3898_v37  ;;  %v4454_v23 = vrot.slane %v4453_v26, 4  ;;  %5131 = vst [vmem:[#allocation2 + $0xe0] sm:$0xff] %v9618_v63  ;;  %v4348_v9 = vld [vmem:[#allocation2 + $0x200] sm:$0xff]  ;;  %v4888_v32 = vpop.f32.mrb[155].mxu1  ;;  %4310 = vst [vmem:[#allocation2 + $0x540] sm:$0xff] %v4246_v43  ;;  %v4663_v58 = vadd.f32 %v12075_v54, %v4435_v24  ;;  %v12388_v1 = vld [vmem:[%s10316_s17 + $0xd0] sm:$0xff]  }
 0x249   : > { %v4249_v56 = vadd.f32 %v4111_v47, %v3896_v49  ;;  %9796 = vmatmul.mubr.msk.bf16.gmra.mrb[4].mxu1 %vm470_vm0, %v12380_v6  ;;  %v4442_v31 = vrot.slane %v4441_v3, 1  ;;  %v4694_v45 = vmax.f32 %v4662_v39, 0.0  ;;  %5129 = vst [vmem:[#allocation2 + $0xa0] sm:$0xff] %v4888_v32  ;;  %v4449_v48 = vmax.f32 %v4447_v50, %v4448_v0  ;;  %v9593_v8 = vpop.f32.mrb[156].mxu0  ;;  %v4351_v63 = vld [vmem:[#allocation2 + $0x260] sm:$0x3f] }
 0x24a   : > { %4308 = vst [vmem:[#allocation2 + $0x500] sm:$0xff] %v4244_v11  ;;  %4315 = vst [vmem:[#allocation2 + $0x5e0] sm:$0x3f] %v4251_v41  ;;  %9799 = vmatprep.mubr.msk.bf16.mxu1 %vm470_vm0, %v12388_v1  ;;  %v4455_v29 = vmax.f32 %v4453_v26, %v4454_v23  ;;  %v4757_v40 = vrot.slane %v4693_v44, 6  ;;  %v4460_v12 = vsel %vm4043_vm9, %v4349_v19, -inf  ;;  %v4695_v25 = vmax.f32 %v4663_v58, 0.0 }
 0x24b   : > { %v3961_v36 = vld [vmem:[#allocation2 + $0x5d0] sm:$0xfc]  ;;  %4313 = vst [vmem:[#allocation2 + $0x5a0] sm:$0x3f] %v4249_v56  ;;  %v4443_v34 = vmax.f32 %v4441_v3, %v4442_v31  ;;  %v4759_v52 = vrot.slane %v4694_v45, 5  ;;  %v4461_v39 = vmax.f32 %v4348_v9, %v4460_v12  ;;  %3357 = vst [vmem:[#allocation2 + $0x650] sm:$0xff] %v9593_v8  ;;  %9856 = vmatmul.mubr.msk.bf16.gmra.mrb[20].mxu0 %vm470_vm0, %v12284_v57 }
 0x24c   : > { %v4113_v2 = vrot.slane %v3961_v36, 2  ;;  %v3959_v61 = vld [vmem:[#allocation2 + $0x590] sm:$0xfc]  ;;  %v3244_v27 = vpop.f32.mrb[157].mxu0  ;;  %v4450_v24 = vrot.slane %v4449_v48, 1  ;;  %v4456_v43 = vrot.slane %v4455_v29, 2  ;;  %v4758_v50 = vsel %vm2197_vm3, %v4757_v40, %v12256_v53  ;;  %9859 = vmatprep.mubr.msk.bf16.mxu0 %vm470_vm0, %v12293_v7 }
 0x24d   : > { %v4110_v26 = vrot.slane %v3959_v61, 2  ;;  %3355 = vst [vmem:[#allocation2 + $0x610] sm:$0xff] %v3244_v27  ;;  %v12395_v44 = vpop.f32.mrb[158].mxu0  ;;  %v4664_v51 = vadd.f32 %v12075_v54, %v4443_v34  ;;  %v4760_v37 = vsel %vm2200_vm4, %v4759_v52, %v4758_v50  ;;  %v4761_v3 = vrot.slane %v4695_v25, 4  ;;  %v12399_v19 = vpop.f32.mrb[156].mxu1  ;;  %v4350_v36 = vld [vmem:[#allocation2 + $0x240] sm:$0xff] }
 0x24e   : > { %v4115_v11 = vsel %vm4043_vm9, %v4113_v2, %v4114_v5  ;;  %v4120_v41 = vrot.slane %v12395_v44, 2  ;;  %v12403_v49 = vpop.f32.mrb[159].mxu0  ;;  %v4451_v0 = vmax.f32 %v4449_v48, %v4450_v24  ;;  %v4457_v53 = vmax.f32 %v4455_v29, %v4456_v43  ;;  %v4353_v23 = vld [vmem:[#allocation2 + $0x2a0] sm:$0x3f]  ;;  %v12405_v9 = vpop.f32.mrb[157].mxu1  ;;  %v12417_v25 = vld [vmem:[%s10316_s17 + $0xd8] sm:$0xff]  }
 0x24f   : > { %v4250_v32 = vadd.f32 %v4115_v11, %v12235_v59  ;;  %v4112_v56 = vsel %vm4043_vm9, %v4110_v26, %v4111_v47  ;;  %v3902_v31 = vld [vmem:[#allocation2 + $0x660] sm:$0x3f]  ;;  %v4117_v58 = vrot.slane %v12403_v49, 2  ;;  %v4696_v45 = vmax.f32 %v4664_v51, 0.0  ;;  %v9622_v40 = vpop.f32.mrb[158].mxu1  ;;  %v9597_v26 = vpop.f32.mrb[160].mxu0 }
 0x250   : > { %v4248_v5 = vadd.f32 %v4112_v56, %v12238_v4  ;;  %v4255_v12 = vadd.f32 %v4120_v41, %v3902_v31  ;;  %v3900_v48 = vld [vmem:[#allocation2 + $0x620] sm:$0x3f]  ;;  %v4458_v29 = vrot.slane %v4457_v53, 1  ;;  %v4665_v59 = vadd.f32 %v12075_v54, %v4451_v0  ;;  %5135 = vst [vmem:[#allocation2 + $0x160] sm:$0xff] %v9622_v40  ;;  %v4904_v8 = vpop.f32.mrb[159].mxu1  ;;  %3361 = vst [vmem:[#allocation2 + $0x6d0] sm:$0xff] %v9597_v26 }
 0x251   : > { %v4352_v47 = vld [vmem:[#allocation2 + $0x280] sm:$0xff]  ;;  %4314 = vst [vmem:[#allocation2 + $0x5c0] sm:$0xff] %v4250_v32  ;;  %v4253_v34 = vadd.f32 %v4117_v58, %v3900_v48  ;;  %9800 = vmatmul.mubr.msk.bf16.gmra.mrb[8].mxu1 %vm470_vm0, %v12417_v25  ;;  %v4762_v62 = vsel %vm2203_vm5, %v4761_v3, %v4760_v37  ;;  %v4763_v4 = vrot.slane %v4696_v45, 3  ;;  %v4462_v2 = vrot.slane %v4461_v39, 4  ;;  %5133 = vst [vmem:[#allocation2 + $0x120] sm:$0xff] %v4904_v8  ;;  %v3260_v32 = vpop.f32.mrb[161].mxu0 }
 0x252   : > { %v4355_v52 = vld [vmem:[#allocation2 + $0x2e0] sm:$0x3f]  ;;  %4312 = vst [vmem:[#allocation2 + $0x580] sm:$0xff] %v4248_v5  ;;  %4319 = vst [vmem:[#allocation2 + $0x660] sm:$0x3f] %v4255_v12  ;;  %v4459_v27 = vmax.f32 %v4457_v53, %v4458_v29  ;;  %v4697_v24 = vmax.f32 %v4665_v59, 0.0 }
 0x253   : > { %v12425_v61 = vld [vmem:[%s10316_s17 + $0xe0] sm:$0xff]   ;;  %v4468_v43 = vsel %vm4043_vm9, %v4351_v63, -inf  ;;  %v4476_v50 = vsel %vm4043_vm9, %v4353_v23, -inf  ;;  %v3965_v21 = vld [vmem:[#allocation2 + $0x650] sm:$0xfc]  ;;  %v4764_v51 = vsel %vm2206_vm6, %v4763_v4, %v4762_v62  ;;  %v4463_v37 = vmax.f32 %v4461_v39, %v4462_v2  ;;  %3359 = vst [vmem:[#allocation2 + $0x690] sm:$0xff] %v3260_v32  ;;  %9860 = vmatmul.mubr.msk.bf16.gmra.mrb[24].mxu0 %vm470_vm0, %v12333_v15 }
 0x254   : > { %9803 = vmatprep.mubr.msk.bf16.mxu1 %vm470_vm0, %v12425_v61  ;;  %4317 = vst [vmem:[#allocation2 + $0x620] sm:$0x3f] %v4253_v34  ;;  %v4469_v3 = vmax.f32 %v4350_v36, %v4468_v43  ;;  %v4477_v11 = vmax.f32 %v4352_v47, %v4476_v50  ;;  %v4119_v49 = vrot.slane %v3965_v21, 2  ;;  %v3963_v0 = vld [vmem:[#allocation2 + $0x610] sm:$0xfc]  ;;  %v4666_v56 = vadd.f32 %v12075_v54, %v4459_v27  ;;  %v4354_v31 = vld [vmem:[#allocation2 + $0x2c0] sm:$0xff] }
 0x255   : > { %v4765_v53 = vrot.slane %v4697_v24, 2  ;;  %v4484_v63 = vsel %vm4043_vm9, %v4355_v52, -inf  ;;  %v4116_v45 = vrot.slane %v3963_v0, 2  ;;  %v12434_v23 = vpop.f32.mrb[162].mxu0  ;;  %v4464_v40 = vrot.slane %v4463_v37, 2  ;;  %v12436_v39 = vpop.f32.mrb[160].mxu1  ;;  %9863 = vmatprep.mubr.msk.bf16.mxu0 %vm470_vm0, %v12344_v22 }
 0x256   : > { %v4470_v5 = vrot.slane %v4469_v3, 4  ;;  %v4478_v12 = vrot.slane %v4477_v11, 4  ;;  %v4121_v48 = vsel %vm4043_vm9, %v4119_v49, %v4120_v41  ;;  %v4126_v29 = vrot.slane %v12434_v23, 2  ;;  %v12442_v54 = vpop.f32.mrb[163].mxu0  ;;  %v4359_v47 = vld [vmem:[#allocation2 + $0x360] sm:$0x3f] }
 0x257   : > { %v4698_v59 = vmax.f32 %v4666_v56, 0.0  ;;  %v4766_v36 = vsel %vm2209_vm7, %v4765_v53, %v4764_v51  ;;  %v12445_v8 = vpop.f32.mrb[161].mxu1  ;;  %v4254_v34 = vadd.f32 %v4121_v48, %v12241_v10  ;;  %v4118_v62 = vsel %vm4043_vm9, %v4116_v45, %v4117_v58  ;;  %v3906_v4 = vld [vmem:[#allocation2 + $0x6e0] sm:$0x3f]  ;;  %v12458_v51 = vld [vmem:[%s10316_s17 + $0xe8] sm:$0xff]   ;;  %v12465_v0 = vld [vmem:[%s10316_s17 + $0xf0] sm:$0xff]  }
 0x258   : > { %v4123_v44 = vrot.slane %v12442_v54, 2  ;;  %v4357_v52 = vld [vmem:[#allocation2 + $0x320] sm:$0x3f]  ;;  %v4465_v41 = vmax.f32 %v4463_v37, %v4464_v40  ;;  %v9626_v2 = vpop.f32.mrb[162].mxu1  ;;  %v4252_v27 = vadd.f32 %v4118_v62, %v12244_v35  ;;  %v4259_v24 = vadd.f32 %v4126_v29, %v3906_v4  ;;  %v3969_v45 = vld [vmem:[#allocation2 + $0x6d0] sm:$0xfc] }
 0x259   : > { %v3904_v43 = vld [vmem:[#allocation2 + $0x6a0] sm:$0x3f]  ;;  %v4767_v50 = vrot.slane %v4698_v59, 1  ;;  %v4471_v21 = vmax.f32 %v4469_v3, %v4470_v5  ;;  %5139 = vst [vmem:[#allocation2 + $0x1e0] sm:$0xff] %v9626_v2  ;;  %v4920_v58 = vpop.f32.mrb[163].mxu1  ;;  %4318 = vst [vmem:[#allocation2 + $0x640] sm:$0xff] %v4254_v34  ;;  %9804 = vmatmul.mubr.msk.bf16.gmra.mrb[12].mxu1 %vm470_vm0, %v12458_v51  ;;  %v4479_v49 = vmax.f32 %v4477_v11, %v4478_v12 }
 0x25a   : > { %v4356_v10 = vld [vmem:[#allocation2 + $0x300] sm:$0xff]  ;;  %v4257_v26 = vadd.f32 %v4123_v44, %v3904_v43  ;;  %v4466_v37 = vrot.slane %v4465_v41, 1  ;;  %v4485_v3 = vmax.f32 %v4354_v31, %v4484_v63  ;;  %5137 = vst [vmem:[#allocation2 + $0x1a0] sm:$0xff] %v4920_v58  ;;  %4316 = vst [vmem:[#allocation2 + $0x600] sm:$0xff] %v4252_v27  ;;  %9807 = vmatprep.mubr.msk.bf16.mxu1 %vm470_vm0, %v12465_v0  ;;  %v4492_v53 = vsel %vm4043_vm9, %v4357_v52, -inf  ;;  %v9601_v40 = vpop.f32.mrb[164].mxu0 }
 0x25b   : > { %v4358_v35 = vld [vmem:[#allocation2 + $0x340] sm:$0xff]  ;;  %4323 = vst [vmem:[#allocation2 + $0x6e0] sm:$0x3f] %v4259_v24  ;;  %v4768_v32 = vsel %vm2212_vm8, %v4767_v50, %v4766_v36  ;;  %v4472_v56 = vrot.slane %v4471_v21, 2  ;;  %v4500_v30 = vsel %vm4043_vm9, %v4359_v47, -inf  ;;  %v4480_v31 = vrot.slane %v4479_v49, 2  ;;  %9864 = vmatmul.mubr.msk.bf16.gmra.mrb[28].mxu0 %vm470_vm0, %v12380_v6 }
 0x25c   : > { %v4361_v13 = vld [vmem:[#allocation2 + $0x3a0] sm:$0x3f]  ;;  %4321 = vst [vmem:[#allocation2 + $0x6a0] sm:$0x3f] %v4257_v26  ;;  %v12472_v11 = vmax.f32 %v4465_v41, %v4466_v37  ;;  %v4486_v63 = vrot.slane %v4485_v3, 4  ;;  %v4493_v5 = vmax.f32 %v4356_v10, %v4492_v53  ;;  %v4125_v12 = vrot.slane %v3969_v45, 2  ;;  %9867 = vmatprep.mubr.msk.bf16.mxu0 %vm470_vm0, %v12388_v1 }
 0x25d   : > { %v3967_v48 = vld [vmem:[#allocation2 + $0x690] sm:$0xfc]  ;;  %3365 = vst [vmem:[#allocation2 + $0x750] sm:$0xff] %v9601_v40  ;;  %v3276_v59 = vpop.f32.mrb[165].mxu0  ;;  %v4473_v34 = vmax.f32 %v4471_v21, %v4472_v56  ;;  %v4501_v62 = vmax.f32 %v4358_v35, %v4500_v30  ;;  %v4508_v36 = vsel %vm4043_vm9, %v4361_v13, -inf  ;;  %v12475_v4 = vpop.f32.mrb[164].mxu1  ;;  %v4481_v41 = vmax.f32 %v4479_v49, %v4480_v31 }
 0x25e   : > { %v4122_v52 = vrot.slane %v3967_v48, 2  ;;  %3363 = vst [vmem:[#allocation2 + $0x710] sm:$0xff] %v3276_v59  ;;  %v12477_v47 = vpop.f32.mrb[166].mxu0  ;;  %v4363_v2 = vld [vmem:[#allocation2 + $0x3e0] sm:$0x3f]  ;;  %v4487_v27 = vmax.f32 %v4485_v3, %v4486_v63  ;;  %v4494_v24 = vrot.slane %v4493_v5, 4  ;;  %v4127_v50 = vsel %vm4043_vm9, %v4125_v12, %v4126_v29 }
 0x25f   : > { %v12479_v43 = vpop.f32.mrb[165].mxu1  ;;  %v4132_v10 = vrot.slane %v12477_v47, 2  ;;  %v12485_v21 = vpop.f32.mrb[167].mxu0  ;;  %v4362_v58 = vld [vmem:[#allocation2 + $0x3c0] sm:$0xff]  ;;  %v4474_v26 = vrot.slane %v4473_v34, 1  ;;  %v4502_v35 = vrot.slane %v4501_v62, 4  ;;  %v4258_v37 = vadd.f32 %v4127_v50, %v12248_v17 }
 0x260   : > { %v9630_v13 = vpop.f32.mrb[166].mxu1  ;;  %v4124_v49 = vsel %vm4043_vm9, %v4122_v52, %v4123_v44  ;;  %v3910_v3 = vld [vmem:[#allocation2 + $0x760] sm:$0x3f]  ;;  %v4129_v23 = vrot.slane %v12485_v21, 2  ;;  %v4482_v29 = vrot.slane %v4481_v41, 1  ;;  %v4488_v31 = vrot.slane %v4487_v27, 2 }
 0x261   : > { %v4360_v56 = vld [vmem:[#allocation2 + $0x380] sm:$0xff]  ;;  %5143 = vst [vmem:[#allocation2 + $0x260] sm:$0xff] %v9630_v13  ;;  %v4936_v53 = vpop.f32.mrb[167].mxu1  ;;  %v4256_v30 = vadd.f32 %v4124_v49, %v12299_v20  ;;  %v4263_v45 = vadd.f32 %v4132_v10, %v3910_v3  ;;  %v4475_v17 = vmax.f32 %v4473_v34, %v4474_v26  ;;  %4322 = vst [vmem:[#allocation2 + $0x6c0] sm:$0xff] %v4258_v37  ;;  %v12496_v44 = vld [vmem:[%s10316_s17 + $0xf8] sm:$0xff]   ;;  %v4516_v12 = vsel %vm4043_vm9, %v4363_v2, -inf }
 0x262   : > { %v3908_v40 = vld [vmem:[#allocation2 + $0x720] sm:$0x3f]  ;;  %5141 = vst [vmem:[#allocation2 + $0x220] sm:$0xff] %v4936_v53  ;;  %9808 = vmatmul.mubr.msk.bf16.gmra.mrb[16].mxu1 %vm470_vm0, %v12496_v44  ;;  %v4483_v63 = vmax.f32 %v4481_v41, %v4482_v29  ;;  %v4495_v20 = vmax.f32 %v4493_v5, %v4494_v24  ;;  %v4489_v60 = vmax.f32 %v4487_v27, %v4488_v31  ;;  %v9605_v21 = vpop.f32.mrb[168].mxu0  ;;  %v12518_v49 = vpop.f32.mrb[168].mxu1 }
 0x263   : > { %v4261_v54 = vadd.f32 %v4129_v23, %v3908_v40  ;;  %4320 = vst [vmem:[#allocation2 + $0x680] sm:$0xff] %v4256_v30  ;;  %4327 = vst [vmem:[#allocation2 + $0x760] sm:$0x3f] %v4263_v45  ;;  %8354 = vmatprep.mubr.f32.mxu1 %v4768_v32  ;;  %v4503_v48 = vmax.f32 %v4501_v62, %v4502_v35  ;;  %v4509_v59 = vmax.f32 %v4360_v56, %v4508_v36  ;;  %v13645_v52 = vld [vmem:[#allocation27_spill] sm:$0xff]  ;;  %v3292_v2 = vpop.f32.mrb[169].mxu0  ;;  %v12524_v30 = vpop.f32.mrb[169].mxu1 }
 0x264   : > { %v4517_v34 = vmax.f32 %v4362_v58, %v4516_v12  ;;  %v3779_v47 = vadd.f32 %v12353_v55, %v13645_v52  ;;  %v3973_v50 = vld [vmem:[#allocation2 + $0x750] sm:$0xfc]  ;;  %v4496_v26 = vrot.slane %v4495_v20, 2  ;;  %v12508_v33 = vld [vmem:[%s13553_s2 + $0x1] ss:$0 sm:$0xff]  ;;  %3369 = vst [vmem:[#allocation2 + $0x7d0] sm:$0xff] %v9605_v21  ;;  %9868 = vmatmul.mubr.msk.bf16.gmra.mrb[32].mxu0 %vm470_vm0, %v12417_v25 }
 0x265   : > { %4325 = vst [vmem:[#allocation2 + $0x720] sm:$0x3f] %v4261_v54  ;;  %v12512_v5 = vadd.f32 %v12508_v33, %v12472_v11  ;;  %v4668_v32 = vadd.f32 %v12508_v33, %v4475_v17  ;;  %v4131_v62 = vrot.slane %v3973_v50, 2  ;;  %v3971_v36 = vld [vmem:[#allocation2 + $0x710] sm:$0xfc]  ;;  %v4490_v55 = vrot.slane %v4489_v60, 1  ;;  %9871 = vmatprep.mubr.msk.bf16.mxu0 %vm470_vm0, %v12425_v61 }
 0x266   : > { %v4504_v41 = vrot.slane %v4503_v48, 2  ;;  %v4669_v27 = vadd.f32 %v12508_v33, %v4483_v63  ;;  %v4128_v24 = vrot.slane %v3971_v36, 2  ;;  %3367 = vst [vmem:[#allocation2 + $0x790] sm:$0xff] %v3292_v2  ;;  %v12516_v58 = vpop.f32.mrb[170].mxu0  ;;  %v4497_v35 = vmax.f32 %v4495_v20, %v4496_v26  ;;  %v3914_v17 = vld [vmem:[#allocation2 + $0x7e0] sm:$0x3f] }
 0x267   : > { %v4510_v13 = vrot.slane %v4509_v59, 4  ;;  %v4518_v37 = vrot.slane %v4517_v34, 4  ;;  %v4133_v11 = vsel %vm4043_vm9, %v4131_v62, %v4132_v10  ;;  %v4138_v3 = vrot.slane %v12516_v58, 2  ;;  %v12522_v56 = vpop.f32.mrb[171].mxu0  ;;  %v9634_v63 = vpop.f32.mrb[170].mxu1  ;;  %v4376_v6 = vld [vmem:[#allocation2 + $0x580] sm:$0xff] }
 0x268   : > { %v4491_v29 = vmax.f32 %v4489_v60, %v4490_v55  ;;  %v4505_v53 = vmax.f32 %v4503_v48, %v4504_v41  ;;  %v4262_v45 = vadd.f32 %v4133_v11, %v12312_v14  ;;  %v4130_v40 = vsel %vm4043_vm9, %v4128_v24, %v4129_v23  ;;  %v3912_v10 = vld [vmem:[#allocation2 + $0x7a0] sm:$0x3f]  ;;  %5147 = vst [vmem:[#allocation2 + $0x2e0] sm:$0xff] %v9634_v63  ;;  %v4952_v48 = vpop.f32.mrb[171].mxu1  ;;  %v9681_v24 = vpop.f32.mrb[172].mxu0 }
 0x269   : > { %v4135_v31 = vrot.slane %v12522_v56, 2  ;;  %v4498_v54 = vrot.slane %v4497_v35, 1  ;;  %v4260_v20 = vadd.f32 %v4130_v40, %v3779_v47  ;;  %v4267_v12 = vadd.f32 %v4138_v3, %v3914_v17  ;;  %v13646_v14 = vld [vmem:[#allocation7_spill] sm:$0xff]  ;;  %5145 = vst [vmem:[#allocation2 + $0x2a0] sm:$0xff] %v4952_v48  ;;  %5495 = vst [vmem:[#allocation2 + $0x48] sm:$0xff] %v9681_v24  ;;  %v12538_v56 = vpop.f32.mrb[172].mxu1 }
 0x26a   : > { %v4506_v52 = vrot.slane %v4505_v53, 1  ;;  %v4511_v60 = vmax.f32 %v4509_v59, %v4510_v13  ;;  %4326 = vst [vmem:[#allocation2 + $0x740] sm:$0xff] %v4262_v45  ;;  %8355 = vmatmul.mubr.f32.vlgmr.msra.gmra.mrb[20].mxu1 %v13646_v14  ;;  %v4519_v21 = vmax.f32 %v4517_v34, %v4518_v37  ;;  %v4670_v26 = vadd.f32 %v12508_v33, %v4491_v29 }
 0x26b   : > { %v4265_v50 = vadd.f32 %v4135_v31, %v3912_v10  ;;  %v4499_v23 = vmax.f32 %v4497_v35, %v4498_v54  ;;  %4324 = vst [vmem:[#allocation2 + $0x700] sm:$0xff] %v4260_v20  ;;  %4331 = vst [vmem:[#allocation2 + $0x7e0] sm:$0x3f] %v4267_v12  ;;  %v4699_v36 = vmax.f32 %v12512_v5, 0.0  ;;  %v4700_v57 = vmax.f32 %v4668_v32, 0.0  ;;  %v5238_v5 = vpop.f32.mrb[173].mxu0 }
 0x26c   : > { %v4507_v47 = vmax.f32 %v4505_v53, %v4506_v52  ;;  %v4512_v62 = vrot.slane %v4511_v60, 2  ;;  %v3977_v59 = vld [vmem:[#allocation2 + $0x7d0] sm:$0xfc]  ;;  %v4520_v2 = vrot.slane %v4519_v21, 2  ;;  %v4701_v41 = vmax.f32 %v4669_v27, 0.0  ;;  %5493 = vst [vmem:[#allocation2 + $0x8] sm:$0xff] %v5238_v5  ;;  %9872 = vmatmul.mubr.msk.bf16.gmra.mrb[36].mxu0 %vm470_vm0, %v12458_v51 }
 0x26d   : > { %4329 = vst [vmem:[#allocation2 + $0x7a0] sm:$0x3f] %v4265_v50  ;;  %v4671_v55 = vadd.f32 %v12508_v33, %v4499_v23  ;;  %v4702_v34 = vmax.f32 %v4670_v26, 0.0  ;;  %v4137_v58 = vrot.slane %v3977_v59, 2  ;;  %v3975_v35 = vld [vmem:[#allocation2 + $0x790] sm:$0xfc]  ;;  %9875 = vmatprep.mubr.msk.bf16.mxu0 %vm470_vm0, %v12465_v0 }
 0x26e   : > { %v4513_v13 = vmax.f32 %v4511_v60, %v4512_v62  ;;  %v4672_v37 = vadd.f32 %v12508_v33, %v4507_v47  ;;  %v4769_v11 = vrot.slane %v4700_v57, 7  ;;  %v4367_v32 = vld [vmem:[#allocation2 + $0x460] sm:$0x3f]  ;;  %v4134_v7 = vrot.slane %v3975_v35, 2  ;;  %v9682_v40 = vpop.f32.mrb[174].mxu0  ;;  %v12540_v27 = vpop.f32.mrb[173].mxu1 }
 0x26f   : > { %v4521_v29 = vmax.f32 %v4519_v21, %v4520_v2  ;;  %v4703_v53 = vmax.f32 %v4671_v55, 0.0  ;;  %v4771_v45 = vrot.slane %v4701_v41, 6  ;;  %v4139_v17 = vsel %vm4043_vm9, %v4137_v58, %v4138_v3  ;;  %5496 = vst [vmem:[#allocation2 + $0x68] sm:$0xff] %v9682_v40  ;;  %v5241_v12 = vpop.f32.mrb[175].mxu0  ;;  %v4365_v10 = vld [vmem:[#allocation2 + $0x420] sm:$0x3f] }
 0x270   : > { %v4514_v54 = vrot.slane %v4513_v13, 1  ;;  %v4704_v63 = vmax.f32 %v4672_v37, 0.0  ;;  %v4770_v20 = vsel %vm2194_vm2, %v4769_v11, %v4699_v36  ;;  %v9638_v52 = vpop.f32.mrb[174].mxu1  ;;  %v12545_v60 = vadd.f32 %v4139_v17, %v12340_v16  ;;  %5494 = vst [vmem:[#allocation2 + $0x28] sm:$0xff] %v5241_v12  ;;  %v4364_v23 = vld [vmem:[#allocation2 + $0x400] sm:$0xff] }
 0x271   : > { %v4136_v48 = vsel %vm4043_vm9, %v4134_v7, %v4135_v31  ;;  %v4522_v50 = vrot.slane %v4521_v29, 1  ;;  %v4772_v14 = vsel %vm2197_vm3, %v4771_v45, %v4770_v20  ;;  %v4366_v21 = vld [vmem:[#allocation2 + $0x440] sm:$0xff]  ;;  %5151 = vst [vmem:[#allocation2 + $0x360] sm:$0xff] %v9638_v52  ;;  %v4968_v3 = vpop.f32.mrb[175].mxu1  ;;  %v4773_v62 = vrot.slane %v4702_v34, 5 }
 0x272   : > { %v12550_v26 = vadd.f32 %v4136_v48, %v12356_v46  ;;  %v4515_v47 = vmax.f32 %v4513_v13, %v4514_v54  ;;  %v4775_v36 = vrot.slane %v4703_v53, 4  ;;  %v4369_v16 = vld [vmem:[#allocation2 + $0x4a0] sm:$0x3f]  ;;  %5149 = vst [vmem:[#allocation2 + $0x320] sm:$0xff] %v4968_v3  ;;  %v4777_v59 = vrot.slane %v4704_v63, 3 }
 0x273   : > { %v4371_v57 = vld [vmem:[#allocation2 + $0x4e0] sm:$0x3f]  ;;  %v4523_v31 = vmax.f32 %v4521_v29, %v4522_v50  ;;  %v4524_v2 = vsel %vm4043_vm9, %v4365_v10, -inf  ;;  %v4532_v55 = vsel %vm4043_vm9, %v4367_v32, -inf  ;;  %v4774_v41 = vsel %vm2200_vm4, %v4773_v62, %v4772_v14  ;;  %v6361_v13 = vld [vmem:[#allocation2 + $0x48] sm:$0xfe] }
 0x274   : > { %v4673_v46 = vadd.f32 %v12508_v33, %v4515_v47  ;;  %v4368_v34 = vld [vmem:[#allocation2 + $0x480] sm:$0xff]  ;;  %v4525_v24 = vmax.f32 %v4364_v23, %v4524_v2  ;;  %v4533_v58 = vmax.f32 %v4366_v21, %v4532_v55  ;;  %v4776_v35 = vsel %vm2203_vm5, %v4775_v36, %v4774_v41  ;;  %v9685_v32 = vpop.f32.mrb[176].mxu0  ;;  %v6359_v53 = vld [vmem:[#allocation2 + $0x8] sm:$0xfe]  ;;  %v12565_v62 = vpop.f32.mrb[176].mxu1  ;;  %9876 = vmatmul.mubr.msk.bf16.gmra.mrb[40].mxu0 %vm470_vm0, %v12496_v44 }
 0x275   : > { %v4674_v15 = vadd.f32 %v12508_v33, %v4523_v31  ;;  %v4370_v37 = vld [vmem:[#allocation2 + $0x4c0] sm:$0xff]  ;;  %v4540_v11 = vsel %vm4043_vm9, %v4369_v16, -inf  ;;  %v4548_v5 = vsel %vm4043_vm9, %v4371_v57, -inf  ;;  %v4778_v22 = vsel %vm2206_vm6, %v4777_v59, %v4776_v35  ;;  %5499 = vst [vmem:[#allocation2 + $0xc8] sm:$0xff] %v9685_v32  ;;  %v5254_v40 = vpop.f32.mrb[177].mxu0  ;;  %v12567_v2 = vpop.f32.mrb[177].mxu1 }
 0x276   : > { %v4705_v7 = vmax.f32 %v4673_v46, 0.0  ;;  %v6490_v29 = vrot.slane %v6361_v13, 1  ;;  %v4526_v45 = vrot.slane %v4525_v24, 4  ;;  %v6487_v54 = vrot.slane %v6359_v53, 1  ;;  %v6298_v63 = vld [vmem:[#allocation2 + $0x60] sm:$0x1f] }
 0x277   : > { %v4706_v17 = vmax.f32 %v4674_v15, 0.0  ;;  %v6362_v20 = vld [vmem:[#allocation2 + $0x68] sm:$0x3f]  ;;  %v4534_v12 = vrot.slane %v4533_v58, 4  ;;  %v4541_v10 = vmax.f32 %v4368_v34, %v4540_v11  ;;  %5497 = vst [vmem:[#allocation2 + $0x88] sm:$0xff] %v5254_v40  ;;  %v9686_v52 = vpop.f32.mrb[178].mxu0  ;;  %v4549_v3 = vmax.f32 %v4370_v37, %v4548_v5 }
 0x278   : > { %v4779_v48 = vrot.slane %v4705_v7, 2  ;;  %v6491_v50 = vrot.slane %v6362_v20, 1  ;;  %v6296_v14 = vld [vmem:[#allocation2 + $0x20] sm:$0x1f]  ;;  %v6360_v23 = vld [vmem:[#allocation2 + $0x28] sm:$0x3f]  ;;  %v4527_v21 = vmax.f32 %v4525_v24, %v4526_v45 }
 0x279   : > { %5500 = vst [vmem:[#allocation2 + $0xe8] sm:$0xff] %v9686_v52  ;;  %v5257_v47 = vpop.f32.mrb[179].mxu0  ;;  %v4781_v36 = vrot.slane %v4706_v17, 1  ;;  %v6488_v16 = vrot.slane %v6360_v23, 1  ;;  %v4375_v57 = vld [vmem:[#allocation2 + $0x560] sm:$0x3f]  ;;  %v4535_v31 = vmax.f32 %v4533_v58, %v4534_v12 }
 0x27a   : > { %v4542_v59 = vrot.slane %v4541_v10, 4  ;;  %5498 = vst [vmem:[#allocation2 + $0xa8] sm:$0xff] %v5257_v47  ;;  %v4780_v55 = vsel %vm2209_vm7, %v4779_v48, %v4778_v22  ;;  %v6492_v46 = vsel %vm1481_vm1, %v6490_v29, %v6491_v50  ;;  %v6650_v41 = vadd.f32 %v6491_v50, %v6298_v63  ;;  %v4373_v34 = vld [vmem:[#allocation2 + $0x520] sm:$0x3f]  ;;  %v9642_v35 = vpop.f32.mrb[178].mxu1  ;;  %v9689_v50 = vpop.f32.mrb[180].mxu0 }
 0x27b   : > { %v4377_v24 = vld [vmem:[#allocation2 + $0x5a0] sm:$0x3f]  ;;  %v4528_v15 = vrot.slane %v4527_v21, 2  ;;  %v4782_v13 = vsel %vm2212_vm8, %v4781_v36, %v4780_v55  ;;  %v6649_v58 = vadd.f32 %v12316_v42, %v6492_v46  ;;  %v6489_v37 = vsel %vm1481_vm1, %v6487_v54, %v6488_v16  ;;  %5155 = vst [vmem:[#allocation2 + $0x3e0] sm:$0xff] %v9642_v35  ;;  %v4984_v32 = vpop.f32.mrb[179].mxu1  ;;  %5503 = vst [vmem:[#allocation2 + $0x148] sm:$0xff] %v9689_v50 }
 0x27c   : > { %v6648_v11 = vadd.f32 %v6488_v16, %v6296_v14  ;;  %v4372_v5 = vld [vmem:[#allocation2 + $0x500] sm:$0xff]  ;;  %8359 = vmatprep.mubr.f32.mxu1 %v4782_v13  ;;  %6714 = vst [vmem:[#allocation2 + $0x60] sm:$0x1f] %v6650_v41  ;;  %v6647_v7 = vadd.f32 %v6489_v37, %v12322_v38  ;;  %v4536_v45 = vrot.slane %v4535_v31, 2  ;;  %v4543_v40 = vmax.f32 %v4541_v10, %v4542_v59  ;;  %v12583_v10 = vpop.f32.mrb[180].mxu1  ;;  %v5270_v36 = vpop.f32.mrb[181].mxu0 }
 0x27d   : > { %v4374_v22 = vld [vmem:[#allocation2 + $0x540] sm:$0xff]  ;;  %v4529_v53 = vmax.f32 %v4527_v21, %v4528_v15  ;;  %5153 = vst [vmem:[#allocation2 + $0x3a0] sm:$0xff] %v4984_v32  ;;  %6713 = vst [vmem:[#allocation2 + $0x40] sm:$0xff] %v6649_v58  ;;  %v4550_v17 = vrot.slane %v4549_v3, 4  ;;  %v4556_v1 = vsel %vm4043_vm9, %v4373_v34, -inf  ;;  %v4564_v54 = vsel %vm4043_vm9, %v4375_v57, -inf }
 0x27e   : > { %v4379_v29 = vld [vmem:[#allocation2 + $0x5e0] sm:$0x3f]  ;;  %6712 = vst [vmem:[#allocation2 + $0x20] sm:$0x1f] %v6648_v11  ;;  %v4572_v63 = vsel %vm4043_vm9, %v4377_v24, -inf  ;;  %6711 = vst [vmem:[#allocation2] sm:$0xff] %v6647_v7  ;;  %v4537_v12 = vmax.f32 %v4535_v31, %v4536_v45  ;;  %v4557_v48 = vmax.f32 %v4372_v5, %v4556_v1  ;;  %v4565_v23 = vmax.f32 %v4374_v22, %v4564_v54 }
 0x27f   : > { %v13647_v42 = vld [vmem:[#allocation19_spill] sm:$0xff]  ;;  %v4530_v20 = vrot.slane %v4529_v53, 1  ;;  %v4544_v52 = vrot.slane %v4543_v40, 2  ;;  %v4551_v14 = vmax.f32 %v4549_v3, %v4550_v17  ;;  %v4573_v21 = vmax.f32 %v4376_v6, %v4572_v63  ;;  %v12586_v16 = vpop.f32.mrb[181].mxu1  ;;  %5501 = vst [vmem:[#allocation2 + $0x108] sm:$0xff] %v5270_v36  ;;  %v9690_v31 = vpop.f32.mrb[182].mxu0 }
 0x280   : > { %8360 = vmatmul.mubr.f32.gmra.mrb[22].mxu1 %v13647_v42  ;;  %v4378_v38 = vld [vmem:[#allocation2 + $0x5c0] sm:$0xff]  ;;  %v4580_v47 = vsel %vm4043_vm9, %v4379_v29, -inf  ;;  %v4538_v59 = vrot.slane %v4537_v12, 1  ;;  %v4558_v46 = vrot.slane %v4557_v48, 4  ;;  %v9646_v41 = vpop.f32.mrb[182].mxu1  ;;  %v4566_v24 = vrot.slane %v4565_v23, 4 }
 0x281   : > { %v4531_v57 = vmax.f32 %v4529_v53, %v4530_v20  ;;  %v4545_v55 = vmax.f32 %v4543_v40, %v4544_v52  ;;  %v4552_v34 = vrot.slane %v4551_v14, 2  ;;  %v4574_v15 = vrot.slane %v4573_v21, 4  ;;  %5504 = vst [vmem:[#allocation2 + $0x168] sm:$0xff] %v9690_v31  ;;  %v5273_v3 = vpop.f32.mrb[183].mxu0  ;;  %5159 = vst [vmem:[#allocation2 + $0x460] sm:$0xff] %v9646_v41  ;;  %v5000_v13 = vpop.f32.mrb[183].mxu1 }
 0x282   : > { %v4581_v35 = vmax.f32 %v4378_v38, %v4580_v47  ;;  %v4539_v58 = vmax.f32 %v4537_v12, %v4538_v59  ;;  %v4559_v11 = vmax.f32 %v4557_v48, %v4558_v46  ;;  %5502 = vst [vmem:[#allocation2 + $0x128] sm:$0xff] %v5273_v3  ;;  %5157 = vst [vmem:[#allocation2 + $0x420] sm:$0xff] %v5000_v13  ;;  %v6365_v29 = vld [vmem:[#allocation2 + $0xc8] sm:$0xfe]  ;;  %v9693_v25 = vpop.f32.mrb[184].mxu0  ;;  %v12597_v61 = vpop.f32.mrb[184].mxu1 }
 0x283   : > { %v4546_v37 = vrot.slane %v4545_v55, 1  ;;  %v4675_v5 = vadd.f32 %v12508_v33, %v4531_v57  ;;  %v4553_v32 = vmax.f32 %v4551_v14, %v4552_v34  ;;  %v4567_v7 = vmax.f32 %v4565_v23, %v4566_v24  ;;  %v12594_v38 = vld [vmem:[#allocation2 + $0x88] sm:$0xfe]  ;;  %5507 = vst [vmem:[#allocation2 + $0x1c8] sm:$0xff] %v9693_v25  ;;  %v5286_v50 = vpop.f32.mrb[185].mxu0  ;;  %v12599_v59 = vpop.f32.mrb[185].mxu1 }
 0x284   : > { %v4575_v22 = vmax.f32 %v4573_v21, %v4574_v15  ;;  %v4582_v6 = vrot.slane %v4581_v35, 4  ;;  %v4560_v45 = vrot.slane %v4559_v11, 2  ;;  %v4676_v40 = vadd.f32 %v12508_v33, %v4539_v58  ;;  %v6366_v36 = vld [vmem:[#allocation2 + $0xe8] sm:$0x3f]  ;;  %5505 = vst [vmem:[#allocation2 + $0x188] sm:$0xff] %v5286_v50  ;;  %v9694_v57 = vpop.f32.mrb[186].mxu0 }
 0x285   : > { %v4547_v53 = vmax.f32 %v4545_v55, %v4546_v37  ;;  %v4707_v42 = vmax.f32 %v4675_v5, 0.0  ;;  %v4554_v17 = vrot.slane %v4553_v32, 1  ;;  %v4568_v1 = vrot.slane %v4567_v7, 2  ;;  %5508 = vst [vmem:[#allocation2 + $0x1e8] sm:$0xff] %v9694_v57  ;;  %v5289_v3 = vpop.f32.mrb[187].mxu0  ;;  %v9650_v13 = vpop.f32.mrb[186].mxu1 }
 0x286   : > { %v4576_v54 = vrot.slane %v4575_v22, 2  ;;  %v4583_v63 = vmax.f32 %v4581_v35, %v4582_v6  ;;  %v4561_v20 = vmax.f32 %v4559_v11, %v4560_v45  ;;  %v4708_v52 = vmax.f32 %v4676_v40, 0.0  ;;  %v6302_v5 = vld [vmem:[#allocation2 + $0xe0] sm:$0x1f]  ;;  %5506 = vst [vmem:[#allocation2 + $0x1a8] sm:$0xff] %v5289_v3  ;;  %5163 = vst [vmem:[#allocation2 + $0x4e0] sm:$0xff] %v9650_v13 }
 0x287   : > { %v4677_v12 = vadd.f32 %v12508_v33, %v4547_v53  ;;  %v6496_v48 = vrot.slane %v6365_v29, 1  ;;  %v4555_v14 = vmax.f32 %v4553_v32, %v4554_v17  ;;  %v4569_v23 = vmax.f32 %v4567_v7, %v4568_v1  ;;  %v5016_v7 = vpop.f32.mrb[187].mxu1  ;;  %v6364_v45 = vld [vmem:[#allocation2 + $0xa8] sm:$0x3f]  ;;  %v9697_v0 = vpop.f32.mrb[188].mxu0 }
 0x288   : > { %v4577_v21 = vmax.f32 %v4575_v22, %v4576_v54  ;;  %v4584_v47 = vrot.slane %v4583_v63, 2  ;;  %v4562_v55 = vrot.slane %v4561_v20, 1  ;;  %v4783_v31 = vrot.slane %v4708_v52, 7  ;;  %v12606_v40 = vld [vmem:[#allocation2 + $0x148] sm:$0xfe]  ;;  %5161 = vst [vmem:[#allocation2 + $0x4a0] sm:$0xff] %v5016_v7 }
 0x289   : > { %v4709_v46 = vmax.f32 %v4677_v12, 0.0  ;;  %v6493_v41 = vrot.slane %v12594_v38, 1  ;;  %v4570_v34 = vrot.slane %v4569_v23, 1  ;;  %v4678_v35 = vadd.f32 %v12508_v33, %v4555_v14  ;;  %v12613_v54 = vld [vmem:[#allocation2 + $0x108] sm:$0xfe]  ;;  %5511 = vst [vmem:[#allocation2 + $0x248] sm:$0xff] %v9697_v0 }
 0x28a   : > { %v4578_v24 = vrot.slane %v4577_v21, 1  ;;  %v4585_v15 = vmax.f32 %v4583_v63, %v4584_v47  ;;  %v4563_v58 = vmax.f32 %v4561_v20, %v4562_v55  ;;  %v4784_v37 = vsel %vm2194_vm2, %v4783_v31, %v4707_v42  ;;  %v6300_v12 = vld [vmem:[#allocation2 + $0xa0] sm:$0x1f]  ;;  %v6370_v52 = vld [vmem:[#allocation2 + $0x168] sm:$0x3f] }
 0x28b   : > { %v4785_v11 = vrot.slane %v4709_v46, 6  ;;  %v6497_v32 = vrot.slane %v6366_v36, 1  ;;  %v4571_v22 = vmax.f32 %v4569_v23, %v4570_v34  ;;  %v4710_v53 = vmax.f32 %v4678_v35, 0.0  ;;  %v12617_v50 = vld [vmem:[#allocation2 + $0x128] sm:$0x3f]  ;;  %v5302_v36 = vpop.f32.mrb[189].mxu0 }
 0x28c   : > { %v4579_v6 = vmax.f32 %v4577_v21, %v4578_v24  ;;  %v4586_v29 = vrot.slane %v4585_v15, 1  ;;  %v4679_v42 = vadd.f32 %v12508_v33, %v4563_v58  ;;  %v6494_v21 = vrot.slane %v6364_v45, 1  ;;  %v12621_v47 = vld [vmem:[#allocation2 + $0x1c8] sm:$0xfe]  ;;  %5509 = vst [vmem:[#allocation2 + $0x208] sm:$0xff] %v5302_v36  ;;  %v9698_v24 = vpop.f32.mrb[190].mxu0 }
 0x28d   : > { %v4786_v17 = vsel %vm2197_vm3, %v4785_v11, %v4784_v37  ;;  %v6498_v1 = vsel %vm1481_vm1, %v6496_v48, %v6497_v32  ;;  %v6654_v51 = vadd.f32 %v6497_v32, %v6302_v5  ;;  %v4680_v38 = vadd.f32 %v12508_v33, %v4571_v22  ;;  %v12625_v34 = vld [vmem:[#allocation2 + $0x188] sm:$0xfe]  ;;  %5512 = vst [vmem:[#allocation2 + $0x268] sm:$0xff] %v9698_v24  ;;  %v5305_v37 = vpop.f32.mrb[191].mxu0  ;;  %v6304_v45 = vld [vmem:[#allocation2 + $0x120] sm:$0x1f] }
 0x28e   : > { %v4587_v63 = vmax.f32 %v4585_v15, %v4586_v29  ;;  %v4681_v25 = vadd.f32 %v12508_v33, %v4579_v6  ;;  %v4787_v20 = vrot.slane %v4710_v53, 5  ;;  %v4711_v14 = vmax.f32 %v4679_v42, 0.0  ;;  %v12627_v15 = vpop.f32.mrb[188].mxu1  ;;  %v6374_v58 = vld [vmem:[#allocation2 + $0x1e8] sm:$0x3f]  ;;  %5510 = vst [vmem:[#allocation2 + $0x228] sm:$0xff] %v5305_v37 }
 0x28f   : > { %v6653_v23 = vadd.f32 %v12364_v18, %v6498_v1  ;;  %6718 = vst [vmem:[#allocation2 + $0xe0] sm:$0x1f] %v6654_v51  ;;  %v6502_v48 = vrot.slane %v12606_v40, 1  ;;  %v4712_v55 = vmax.f32 %v4680_v38, 0.0  ;;  %v6495_v35 = vsel %vm1481_vm1, %v6493_v41, %v6494_v21  ;;  %v12631_v11 = vpop.f32.mrb[189].mxu1  ;;  %v4380_v0 = vld [vmem:[#allocation2 + $0x600] sm:$0xff] }
 0x290   : > { %v4682_v57 = vadd.f32 %v12508_v33, %v4587_v63  ;;  %v4713_v46 = vmax.f32 %v4681_v25, 0.0  ;;  %v4788_v31 = vsel %vm2200_vm4, %v4787_v20, %v4786_v17  ;;  %v4789_v18 = vrot.slane %v4711_v14, 4  ;;  %v6306_v6 = vld [vmem:[#allocation2 + $0x160] sm:$0x1f]  ;;  %v9654_v29 = vpop.f32.mrb[190].mxu1 }
 0x291   : > { %6717 = vst [vmem:[#allocation2 + $0xc0] sm:$0xff] %v6653_v23  ;;  %v6652_v3 = vadd.f32 %v6494_v21, %v6300_v12  ;;  %v6499_v13 = vrot.slane %v12613_v54, 1  ;;  %v4791_v32 = vrot.slane %v4712_v55, 3  ;;  %v6651_v22 = vadd.f32 %v6495_v35, %v12371_v28  ;;  %v4381_v17 = vld [vmem:[#allocation2 + $0x620] sm:$0x3f]  ;;  %5167 = vst [vmem:[#allocation2 + $0x560] sm:$0xff] %v9654_v29 }
 0x292   : > { %v4714_v5 = vmax.f32 %v4682_v57, 0.0  ;;  %v4793_v7 = vrot.slane %v4713_v46, 2  ;;  %v4790_v53 = vsel %vm2203_vm5, %v4789_v18, %v4788_v31  ;;  %v6503_v41 = vrot.slane %v6370_v52, 1  ;;  %v4383_v1 = vld [vmem:[#allocation2 + $0x660] sm:$0x3f]  ;;  %v5032_v51 = vpop.f32.mrb[191].mxu1 }
 0x293   : > { %6716 = vst [vmem:[#allocation2 + $0xa0] sm:$0x1f] %v6652_v3  ;;  %v6500_v40 = vrot.slane %v12617_v50, 1  ;;  %v6508_v42 = vrot.slane %v12621_v47, 1  ;;  %v4792_v28 = vsel %vm2206_vm6, %v4791_v32, %v4790_v53  ;;  %6715 = vst [vmem:[#allocation2 + $0x80] sm:$0xff] %v6651_v22  ;;  %v6505_v63 = vrot.slane %v12625_v34, 1 }
 0x294   : > { %v4795_v54 = vrot.slane %v4714_v5, 1  ;;  %v6509_v38 = vrot.slane %v6374_v58, 1  ;;  %v6372_v25 = vld [vmem:[#allocation2 + $0x1a8] sm:$0x3f]  ;;  %5165 = vst [vmem:[#allocation2 + $0x520] sm:$0xff] %v5032_v51  ;;  %v4794_v20 = vsel %vm2209_vm7, %v4793_v7, %v4792_v28  ;;  %v6504_v12 = vsel %vm1481_vm1, %v6502_v48, %v6503_v41  ;;  %v4382_v14 = vld [vmem:[#allocation2 + $0x640] sm:$0xff] }
 0x295   : > { %v6658_v52 = vadd.f32 %v6503_v41, %v6306_v6  ;;  %v6501_v44 = vsel %vm1481_vm1, %v6499_v13, %v6500_v40  ;;  %v6310_v50 = vld [vmem:[#allocation2 + $0x1e0] sm:$0x1f]  ;;  %v6657_v21 = vadd.f32 %v12399_v19, %v6504_v12  ;;  %v6656_v36 = vadd.f32 %v6500_v40, %v6304_v45  ;;  %v6377_v55 = vld [vmem:[#allocation2 + $0x248] sm:$0xfe]  ;;  %v9701_v34 = vpop.f32.mrb[192].mxu0  ;;  %v12648_v58 = vpop.f32.mrb[192].mxu1 }
 0x296   : > { %v4796_v23 = vsel %vm2212_vm8, %v4795_v54, %v4794_v20  ;;  %v6655_v47 = vadd.f32 %v6501_v44, %v12405_v9  ;;  %v6308_v57 = vld [vmem:[#allocation2 + $0x1a0] sm:$0x1f]  ;;  %v6510_v48 = vsel %vm1481_vm1, %v6508_v42, %v6509_v38  ;;  %v6662_v24 = vadd.f32 %v6509_v38, %v6310_v50  ;;  %v6375_v3 = vld [vmem:[#allocation2 + $0x208] sm:$0xfe]  ;;  %5515 = vst [vmem:[#allocation2 + $0x2c8] sm:$0xff] %v9701_v34  ;;  %v5318_v13 = vpop.f32.mrb[193].mxu0 }
 0x297   : > { %v4384_v46 = vld [vmem:[#allocation2 + $0x680] sm:$0xff]  ;;  %8364 = vmatprep.mubr.f32.mxu1 %v4796_v23  ;;  %6722 = vst [vmem:[#allocation2 + $0x160] sm:$0x1f] %v6658_v52  ;;  %v6506_v18 = vrot.slane %v6372_v25, 1  ;;  %v6514_v35 = vrot.slane %v6377_v55, 1  ;;  %v13648_v19 = vld [vmem:[#allocation25_spill] sm:$0xff]  ;;  %v6661_v9 = vadd.f32 %v12436_v39, %v6510_v48 }
 0x298   : > { %v4385_v31 = vld [vmem:[#allocation2 + $0x6a0] sm:$0x3f]  ;;  %8365 = vmatmul.mubr.f32.gmra.mrb[24].mxu1 %v13648_v19  ;;  %6721 = vst [vmem:[#allocation2 + $0x140] sm:$0xff] %v6657_v21  ;;  %6719 = vst [vmem:[#allocation2 + $0x100] sm:$0xff] %v6655_v47  ;;  %v6511_v37 = vrot.slane %v6375_v3, 1  ;;  %v4588_v22 = vsel %vm4043_vm9, %v4381_v17, -inf }
 0x299   : > { %6720 = vst [vmem:[#allocation2 + $0x120] sm:$0x1f] %v6656_v36  ;;  %v6314_v5 = vld [vmem:[#allocation2 + $0x260] sm:$0x1f]  ;;  %v6378_v32 = vld [vmem:[#allocation2 + $0x268] sm:$0x3f]  ;;  %v6507_v53 = vsel %vm1481_vm1, %v6505_v63, %v6506_v18  ;;  %v6660_v41 = vadd.f32 %v6506_v18, %v6308_v57  ;;  %v4589_v42 = vmax.f32 %v4380_v0, %v4588_v22 }
 0x29a   : > { %v4387_v7 = vld [vmem:[#allocation2 + $0x6e0] sm:$0x3f]  ;;  %v4596_v6 = vsel %vm4043_vm9, %v4383_v1, -inf  ;;  %5513 = vst [vmem:[#allocation2 + $0x288] sm:$0xff] %v5318_v13  ;;  %v9702_v29 = vpop.f32.mrb[194].mxu0  ;;  %v6515_v45 = vrot.slane %v6378_v32, 1  ;;  %v6659_v28 = vadd.f32 %v6507_v53, %v12445_v8 }
 0x29b   : > { %6726 = vst [vmem:[#allocation2 + $0x1e0] sm:$0x1f] %v6662_v24  ;;  %v6376_v40 = vld [vmem:[#allocation2 + $0x228] sm:$0x3f]  ;;  %5516 = vst [vmem:[#allocation2 + $0x2e8] sm:$0xff] %v9702_v29  ;;  %v5321_v51 = vpop.f32.mrb[195].mxu0  ;;  %v4597_v1 = vmax.f32 %v4382_v14, %v4596_v6 }
 0x29c   : > { %v12655_v39 = vpop.f32.mrb[193].mxu1  ;;  %6725 = vst [vmem:[#allocation2 + $0x1c0] sm:$0xff] %v6661_v9  ;;  %v6312_v54 = vld [vmem:[#allocation2 + $0x220] sm:$0x1f]  ;;  %v6512_v17 = vrot.slane %v6376_v40, 1  ;;  %v4604_v25 = vsel %vm4043_vm9, %v4385_v31, -inf  ;;  %v6516_v63 = vsel %vm1481_vm1, %v6514_v35, %v6515_v45  ;;  %v6666_v12 = vadd.f32 %v6515_v45, %v6314_v5 }
 0x29d   : > { %v4386_v38 = vld [vmem:[#allocation2 + $0x6c0] sm:$0xff]  ;;  %5514 = vst [vmem:[#allocation2 + $0x2a8] sm:$0xff] %v5321_v51  ;;  %v9658_v20 = vpop.f32.mrb[194].mxu1  ;;  %6724 = vst [vmem:[#allocation2 + $0x1a0] sm:$0x1f] %v6660_v41  ;;  %v4590_v50 = vrot.slane %v4589_v42, 4  ;;  %v4605_v0 = vmax.f32 %v4384_v46, %v4604_v25  ;;  %v6665_v8 = vadd.f32 %v12475_v4, %v6516_v63 }
 0x29e   : > { %v4389_v52 = vld [vmem:[#allocation2 + $0x720] sm:$0x3f]  ;;  %5171 = vst [vmem:[#allocation2 + $0x5e0] sm:$0xff] %v9658_v20  ;;  %v5048_v23 = vpop.f32.mrb[195].mxu1  ;;  %6723 = vst [vmem:[#allocation2 + $0x180] sm:$0xff] %v6659_v28  ;;  %v6513_v21 = vsel %vm1481_vm1, %v6511_v37, %v6512_v17  ;;  %v6664_v14 = vadd.f32 %v6512_v17, %v6312_v54  ;;  %v4598_v57 = vrot.slane %v4597_v1, 4 }
 0x29f   : > { %v4391_v44 = vld [vmem:[#allocation2 + $0x760] sm:$0x3f]  ;;  %5169 = vst [vmem:[#allocation2 + $0x5a0] sm:$0xff] %v5048_v23  ;;  %6730 = vst [vmem:[#allocation2 + $0x260] sm:$0x1f] %v6666_v12  ;;  %v6663_v55 = vadd.f32 %v6513_v21, %v12479_v43  ;;  %v4591_v48 = vmax.f32 %v4589_v42, %v4590_v50  ;;  %v4606_v24 = vrot.slane %v4605_v0, 4 }
 0x2a0   : > { %v4388_v47 = vld [vmem:[#allocation2 + $0x700] sm:$0xff]  ;;  %v4612_v46 = vsel %vm4043_vm9, %v4387_v7, -inf  ;;  %6729 = vst [vmem:[#allocation2 + $0x240] sm:$0xff] %v6665_v8  ;;  %6728 = vst [vmem:[#allocation2 + $0x220] sm:$0x1f] %v6664_v14  ;;  %v4599_v18 = vmax.f32 %v4597_v1, %v4598_v57  ;;  %v4620_v35 = vsel %vm4043_vm9, %v4389_v52, -inf }
 0x2a1   : > { %v4390_v36 = vld [vmem:[#allocation2 + $0x740] sm:$0xff]  ;;  %v4613_v4 = vmax.f32 %v4386_v38, %v4612_v46  ;;  %v4628_v3 = vsel %vm4043_vm9, %v4391_v44, -inf  ;;  %v9705_v13 = vpop.f32.mrb[196].mxu0  ;;  %6727 = vst [vmem:[#allocation2 + $0x200] sm:$0xff] %v6663_v55  ;;  %v4592_v19 = vrot.slane %v4591_v48, 2  ;;  %v4607_v9 = vmax.f32 %v4605_v0, %v4606_v24  ;;  %v12666_v32 = vpop.f32.mrb[196].mxu1 }
 0x2a2   : > { %v4393_v31 = vld [vmem:[#allocation2 + $0x7a0] sm:$0x3f]  ;;  %v4621_v37 = vmax.f32 %v4388_v47, %v4620_v35  ;;  %v4629_v43 = vmax.f32 %v4390_v36, %v4628_v3  ;;  %5519 = vst [vmem:[#allocation2 + $0x348] sm:$0xff] %v9705_v13  ;;  %v5334_v5 = vpop.f32.mrb[197].mxu0  ;;  %v4600_v22 = vrot.slane %v4599_v18, 2  ;;  %v12672_v1 = vpop.f32.mrb[197].mxu1 }
 0x2a3   : > { %v4395_v34 = vld [vmem:[#allocation2 + $0x7e0] sm:$0x3f]  ;;  %v4614_v7 = vrot.slane %v4613_v4, 4  ;;  %v4636_v6 = vsel %vm4043_vm9, %v4393_v31, -inf  ;;  %5517 = vst [vmem:[#allocation2 + $0x308] sm:$0xff] %v5334_v5  ;;  %v4593_v53 = vmax.f32 %v4591_v48, %v4592_v19  ;;  %v4608_v41 = vrot.slane %v4607_v9, 2 }
 0x2a4   : > { %v4644_v29 = vsel %vm4043_vm9, %v4395_v34, -inf  ;;  %v4622_v45 = vrot.slane %v4621_v37, 4  ;;  %v4630_v40 = vrot.slane %v4629_v43, 4  ;;  %v9706_v42 = vpop.f32.mrb[198].mxu0  ;;  %v4601_v51 = vmax.f32 %v4599_v18, %v4600_v22  ;;  %v9662_v52 = vpop.f32.mrb[198].mxu1 }
 0x2a5   : > { %v4615_v28 = vmax.f32 %v4613_v4, %v4614_v7  ;;  %v4637_v54 = vmax.f32 %v12550_v26, %v4636_v6  ;;  %v4645_v17 = vmax.f32 %v12545_v60, %v4644_v29  ;;  %5520 = vst [vmem:[#allocation2 + $0x368] sm:$0xff] %v9706_v42  ;;  %v5337_v38 = vpop.f32.mrb[199].mxu0  ;;  %v4594_v25 = vrot.slane %v4593_v53, 1  ;;  %5175 = vst [vmem:[#allocation2 + $0x660] sm:$0xff] %v9662_v52  ;;  %v5064_v8 = vpop.f32.mrb[199].mxu1 }
 0x2a6   : > { %v4609_v20 = vmax.f32 %v4607_v9, %v4608_v41  ;;  %v4623_v63 = vmax.f32 %v4621_v37, %v4622_v45  ;;  %v4631_v12 = vmax.f32 %v4629_v43, %v4630_v40  ;;  %5518 = vst [vmem:[#allocation2 + $0x328] sm:$0xff] %v5337_v38  ;;  %v4602_v44 = vrot.slane %v4601_v51, 1  ;;  %5173 = vst [vmem:[#allocation2 + $0x620] sm:$0xff] %v5064_v8  ;;  %v9709_v31 = vpop.f32.mrb[200].mxu0  ;;  %v12675_v18 = vld [vmem:[#allocation2 + $0x2c8] sm:$0xfe] }
 0x2a7   : > { %v4616_v50 = vrot.slane %v4615_v28, 2  ;;  %v4638_v0 = vrot.slane %v4637_v54, 4  ;;  %v4646_v23 = vrot.slane %v4645_v17, 4  ;;  %v4595_v21 = vmax.f32 %v4593_v53, %v4594_v25  ;;  %5523 = vst [vmem:[#allocation2 + $0x3c8] sm:$0xff] %v9709_v31  ;;  %v5350_v4 = vpop.f32.mrb[201].mxu0  ;;  %v12677_v35 = vpop.f32.mrb[200].mxu1 }
 0x2a8   : > { %v4610_v26 = vrot.slane %v4609_v20, 1  ;;  %v4624_v14 = vrot.slane %v4623_v63, 2  ;;  %v4632_v60 = vrot.slane %v4631_v12, 2  ;;  %v4603_v47 = vmax.f32 %v4601_v51, %v4602_v44  ;;  %5521 = vst [vmem:[#allocation2 + $0x388] sm:$0xff] %v5350_v4  ;;  %v9710_v37 = vpop.f32.mrb[202].mxu0  ;;  %v12680_v43 = vpop.f32.mrb[201].mxu1 }
 0x2a9   : > { %v4617_v36 = vmax.f32 %v4615_v28, %v4616_v50  ;;  %v4639_v57 = vmax.f32 %v4637_v54, %v4638_v0  ;;  %v4647_v55 = vmax.f32 %v4645_v17, %v4646_v23  ;;  %v4683_v46 = vadd.f32 %v12508_v33, %v4595_v21  ;;  %5524 = vst [vmem:[#allocation2 + $0x3e8] sm:$0xff] %v9710_v37  ;;  %v5353_v29 = vpop.f32.mrb[203].mxu0  ;;  %v12683_v42 = vld [vmem:[#allocation2 + $0x288] sm:$0xfe]  ;;  %v9666_v51 = vpop.f32.mrb[202].mxu1 }
 0x2aa   : > { %v4611_v34 = vmax.f32 %v4609_v20, %v4610_v26  ;;  %v4625_v48 = vmax.f32 %v4623_v63, %v4624_v14  ;;  %v4633_v24 = vmax.f32 %v4631_v12, %v4632_v60  ;;  %v4684_v9 = vadd.f32 %v12508_v33, %v4603_v47  ;;  %5522 = vst [vmem:[#allocation2 + $0x3a8] sm:$0xff] %v5353_v29  ;;  %v5080_v25 = vpop.f32.mrb[203].mxu1  ;;  %v6382_v44 = vld [vmem:[#allocation2 + $0x2e8] sm:$0x3f]  ;;  %v10153_v50 = vld [vmem:[%s13553_s2 + $0x1] ss:$0 sm:$0xff] }
 0x2ab   : > { %v4618_v3 = vrot.slane %v4617_v36, 1  ;;  %v4640_v13 = vrot.slane %v4639_v57, 2  ;;  %v4648_v19 = vrot.slane %v4647_v55, 2  ;;  %v4715_v6 = vmax.f32 %v4683_v46, 0.0  ;;  %5179 = vst [vmem:[#allocation2 + $0x6e0] sm:$0xff] %v9666_v51  ;;  %5177 = vst [vmem:[#allocation2 + $0x6a0] sm:$0xff] %v5080_v25 }
 0x2ac   : > { %v4626_v5 = vrot.slane %v4625_v48, 1  ;;  %v4634_v22 = vrot.slane %v4633_v24, 1  ;;  %v4685_v7 = vadd.f32 %v12508_v33, %v4611_v34  ;;  %v4716_v40 = vmax.f32 %v4684_v9, 0.0  ;;  %v6380_v26 = vld [vmem:[#allocation2 + $0x2a8] sm:$0x3f] }
 0x2ad   : > { %v4619_v53 = vmax.f32 %v4617_v36, %v4618_v3  ;;  %v4641_v41 = vmax.f32 %v4639_v57, %v4640_v13  ;;  %v4649_v45 = vmax.f32 %v4647_v55, %v4648_v19  ;;  %v6520_v38 = vrot.slane %v12675_v18, 1  ;;  %v6318_v57 = vld [vmem:[#allocation2 + $0x2e0] sm:$0x1f]  ;;  %v6383_v9 = vld [vmem:[#allocation2 + $0x308] sm:$0xfe] }
 0x2ae   : > { %v4627_v28 = vmax.f32 %v4625_v48, %v4626_v5  ;;  %v4635_v54 = vmax.f32 %v4633_v24, %v4634_v22  ;;  %v4717_v17 = vmax.f32 %v4685_v7, 0.0  ;;  %v4797_v52 = vrot.slane %v4716_v40, 7  ;;  %v6385_v24 = vld [vmem:[#allocation2 + $0x348] sm:$0xfe]  ;;  %v6316_v13 = vld [vmem:[#allocation2 + $0x2a0] sm:$0x1f] }
 0x2af   : > { %v4642_v20 = vrot.slane %v4641_v41, 1  ;;  %v4650_v63 = vrot.slane %v4649_v45, 1  ;;  %v4686_v12 = vadd.f32 %v12508_v33, %v4619_v53  ;;  %v6517_v21 = vrot.slane %v12683_v42, 1  ;;  %v9713_v33 = vpop.f32.mrb[204].mxu0  ;;  %v6386_v37 = vld [vmem:[#allocation2 + $0x368] sm:$0x3f] }
 0x2b0   : > { %v4687_v0 = vadd.f32 %v10153_v50, %v4627_v28  ;;  %v4688_v23 = vadd.f32 %v10153_v50, %v4635_v54  ;;  %v4799_v8 = vrot.slane %v4717_v17, 6  ;;  %v4798_v36 = vsel %vm2194_vm2, %v4797_v52, %v4715_v6  ;;  %5527 = vst [vmem:[#allocation2 + $0x448] sm:$0xff] %v9713_v33  ;;  %v5366_v46 = vpop.f32.mrb[205].mxu0  ;;  %v6384_v5 = vld [vmem:[#allocation2 + $0x328] sm:$0x3f]  ;;  %v12693_v7 = vpop.f32.mrb[204].mxu1 }
 0x2b1   : > { %v4643_v14 = vmax.f32 %v4641_v41, %v4642_v20  ;;  %v4651_v60 = vmax.f32 %v4649_v45, %v4650_v63  ;;  %v4718_v47 = vmax.f32 %v4686_v12, 0.0  ;;  %v6521_v48 = vrot.slane %v6382_v44, 1  ;;  %5525 = vst [vmem:[#allocation2 + $0x408] sm:$0xff] %v5366_v46  ;;  %v9714_v22 = vpop.f32.mrb[206].mxu0  ;;  %v6389_v45 = vld [vmem:[#allocation2 + $0x3c8] sm:$0xfe] }
 0x2b2   : > { %v4719_v55 = vmax.f32 %v4687_v0, 0.0  ;;  %v4720_v31 = vmax.f32 %v4688_v23, 0.0  ;;  %v4800_v34 = vsel %vm2197_vm3, %v4799_v8, %v4798_v36  ;;  %v6518_v19 = vrot.slane %v6380_v26, 1  ;;  %5528 = vst [vmem:[#allocation2 + $0x468] sm:$0xff] %v9714_v22  ;;  %v5369_v40 = vpop.f32.mrb[207].mxu0  ;;  %v12696_v42 = vpop.f32.mrb[205].mxu1 }
 0x2b3   : > { %v4689_v18 = vadd.f32 %v10153_v50, %v4643_v14  ;;  %v4690_v4 = vadd.f32 %v10153_v50, %v4651_v60  ;;  %v4801_v3 = vrot.slane %v4718_v47, 5  ;;  %v6522_v53 = vsel %vm1481_vm1, %v6520_v38, %v6521_v48  ;;  %v6387_v25 = vld [vmem:[#allocation2 + $0x388] sm:$0xfe]  ;;  %5526 = vst [vmem:[#allocation2 + $0x428] sm:$0xff] %v5369_v40  ;;  %v9670_v20 = vpop.f32.mrb[206].mxu1  ;;  %v13649_v40 = vld [vmem:[#allocation30_spill] sm:$0xff] }
 0x2b4   : > { %v4803_v6 = vrot.slane %v4719_v55, 4  ;;  %v4805_v29 = vrot.slane %v4720_v31, 3  ;;  %v6670_v41 = vadd.f32 %v6521_v48, %v6318_v57  ;;  %v6669_v17 = vadd.f32 %v12518_v49, %v6522_v53  ;;  %v6390_v44 = vld [vmem:[#allocation2 + $0x3e8] sm:$0x3f]  ;;  %5183 = vst [vmem:[#allocation2 + $0x760] sm:$0xff] %v9670_v20  ;;  %v5096_v0 = vpop.f32.mrb[207].mxu1 }
 0x2b5   : > { %v4721_v51 = vmax.f32 %v4689_v18, 0.0  ;;  %v4722_v28 = vmax.f32 %v4690_v4, 0.0  ;;  %v4802_v54 = vsel %vm2200_vm4, %v4801_v3, %v4800_v34  ;;  %v6519_v38 = vsel %vm1481_vm1, %v6517_v21, %v6518_v19  ;;  %v6388_v50 = vld [vmem:[#allocation2 + $0x3a8] sm:$0x3f]  ;;  %v6322_v14 = vld [vmem:[#allocation2 + $0x360] sm:$0x1f] }
 0x2b6   : > { %v4804_v63 = vsel %vm2203_vm5, %v4803_v6, %v4802_v54  ;;  %6734 = vst [vmem:[#allocation2 + $0x2e0] sm:$0x1f] %v6670_v41  ;;  %v6668_v12 = vadd.f32 %v6518_v19, %v6316_v13  ;;  %v6526_v52 = vrot.slane %v6385_v24, 1  ;;  %6733 = vst [vmem:[#allocation2 + $0x2c0] sm:$0xff] %v6669_v17  ;;  %v6667_v49 = vadd.f32 %v6519_v38, %v12524_v30  ;;  %v6320_v36 = vld [vmem:[#allocation2 + $0x320] sm:$0x1f] }
 0x2b7   : > { %v4806_v23 = vsel %vm2206_vm6, %v4805_v29, %v4804_v63  ;;  %v4807_v8 = vrot.slane %v4721_v51, 2  ;;  %v4809_v26 = vrot.slane %v4722_v28, 1  ;;  %5181 = vst [vmem:[#allocation2 + $0x720] sm:$0xff] %v5096_v0  ;;  %v6523_v60 = vrot.slane %v6383_v9, 1  ;;  %v6326_v31 = vld [vmem:[#allocation2 + $0x3e0] sm:$0x1f] }
 0x2b8   : > { %6732 = vst [vmem:[#allocation2 + $0x2a0] sm:$0x1f] %v6668_v12  ;;  %v6527_v47 = vrot.slane %v6386_v37, 1  ;;  %v6524_v21 = vrot.slane %v6384_v5, 1  ;;  %v6532_v57 = vrot.slane %v6389_v45, 1  ;;  %6731 = vst [vmem:[#allocation2 + $0x280] sm:$0xff] %v6667_v49 }
 0x2b9   : > { %v4808_v33 = vsel %vm2209_vm7, %v4807_v8, %v4806_v23  ;;  %v6529_v55 = vrot.slane %v6387_v25, 1  ;;  %v6533_v34 = vrot.slane %v6390_v44, 1  ;;  %v6530_v48 = vrot.slane %v6388_v50, 1  ;;  %v9717_v24 = vpop.f32.mrb[208].mxu0  ;;  %v6324_v3 = vld [vmem:[#allocation2 + $0x3a0] sm:$0x1f] }
 0x2ba   : > { %v4810_v46 = vsel %vm2212_vm8, %v4809_v26, %v4808_v33  ;;  %v6528_v30 = vsel %vm1481_vm1, %v6526_v52, %v6527_v47  ;;  %v6674_v18 = vadd.f32 %v6527_v47, %v6322_v14  ;;  %v6525_v4 = vsel %vm1481_vm1, %v6523_v60, %v6524_v21  ;;  %v6393_v13 = vld [vmem:[#allocation2 + $0x448] sm:$0xfe]  ;;  %5531 = vst [vmem:[#allocation2 + $0x4c8] sm:$0xff] %v9717_v24  ;;  %v5382_v19 = vpop.f32.mrb[209].mxu0  ;;  %v12708_v9 = vpop.f32.mrb[208].mxu1 }
 0x2bb   : > { %8369 = vmatprep.mubr.f32.mxu1 %v4810_v46  ;;  %v6673_v37 = vadd.f32 %v12538_v56, %v6528_v30  ;;  %v6671_v5 = vadd.f32 %v6525_v4, %v12540_v27  ;;  %v6672_v22 = vadd.f32 %v6524_v21, %v6320_v36  ;;  %v6534_v6 = vsel %vm1481_vm1, %v6532_v57, %v6533_v34  ;;  %v6391_v29 = vld [vmem:[#allocation2 + $0x408] sm:$0xfe]  ;;  %v9718_v41 = vpop.f32.mrb[210].mxu0  ;;  %v12713_v45 = vpop.f32.mrb[209].mxu1  ;;  %v6330_v52 = vld [vmem:[#allocation2 + $0x460] sm:$0x1f] }
 0x2bc   : > { %v6394_v53 = vld [vmem:[#allocation2 + $0x468] sm:$0x3f]  ;;  %5529 = vst [vmem:[#allocation2 + $0x488] sm:$0xff] %v5382_v19  ;;  %8370 = vmatmul.mubr.f32.gmra.mrb[26].mxu1 %v13649_v40  ;;  %6738 = vst [vmem:[#allocation2 + $0x360] sm:$0x1f] %v6674_v18  ;;  %v6677_v51 = vadd.f32 %v12565_v62, %v6534_v6  ;;  %v6678_v28 = vadd.f32 %v6533_v34, %v6326_v31  ;;  %v6531_v54 = vsel %vm1481_vm1, %v6529_v55, %v6530_v48  ;;  %v5385_v27 = vpop.f32.mrb[211].mxu0 }
 0x2bd   : > { %v6676_v56 = vadd.f32 %v6530_v48, %v6324_v3  ;;  %v6392_v17 = vld [vmem:[#allocation2 + $0x428] sm:$0x3f]  ;;  %5532 = vst [vmem:[#allocation2 + $0x4e8] sm:$0xff] %v9718_v41  ;;  %v9674_v25 = vpop.f32.mrb[210].mxu1  ;;  %6737 = vst [vmem:[#allocation2 + $0x340] sm:$0xff] %v6673_v37  ;;  %v6675_v20 = vadd.f32 %v6531_v54, %v12567_v2  ;;  %v6538_v63 = vrot.slane %v6393_v13, 1 }
 0x2be   : > { %6735 = vst [vmem:[#allocation2 + $0x300] sm:$0xff] %v6671_v5  ;;  %6736 = vst [vmem:[#allocation2 + $0x320] sm:$0x1f] %v6672_v22  ;;  %v6539_v38 = vrot.slane %v6394_v53, 1  ;;  %v5112_v12 = vpop.f32.mrb[211].mxu1  ;;  %v6535_v62 = vrot.slane %v6391_v29, 1 }
 0x2bf   : > { %5530 = vst [vmem:[#allocation2 + $0x4a8] sm:$0xff] %v5385_v27  ;;  %5187 = vst [vmem:[#allocation2 + $0x7e0] sm:$0xff] %v9674_v25  ;;  %v6536_v44 = vrot.slane %v6392_v17, 1  ;;  %v6328_v23 = vld [vmem:[#allocation2 + $0x420] sm:$0x1f]  ;;  %v9721_v60 = vpop.f32.mrb[212].mxu0 }
 0x2c0   : > { %6741 = vst [vmem:[#allocation2 + $0x3c0] sm:$0xff] %v6677_v51  ;;  %6742 = vst [vmem:[#allocation2 + $0x3e0] sm:$0x1f] %v6678_v28  ;;  %v6540_v50 = vsel %vm1481_vm1, %v6538_v63, %v6539_v38  ;;  %v6682_v0 = vadd.f32 %v6539_v38, %v6330_v52  ;;  %v9749_v36 = vpop.f32.mrb[212].mxu1  ;;  %v5398_v21 = vpop.f32.mrb[213].mxu0  ;;  %v8267_v57 = vld [vmem:[%s13554_s3 + $0x100] sm:$0xff] }
 0x2c1   : > { %6740 = vst [vmem:[#allocation2 + $0x3a0] sm:$0x1f] %v6676_v56  ;;  %5185 = vst [vmem:[#allocation2 + $0x7a0] sm:$0xff] %v5112_v12  ;;  %v6681_v8 = vadd.f32 %v12583_v10, %v6540_v50  ;;  %v6537_v2 = vsel %vm1481_vm1, %v6535_v62, %v6536_v44  ;;  %v6680_v26 = vadd.f32 %v6536_v44, %v6328_v23  ;;  %v6397_v14 = vld [vmem:[#allocation2 + $0x4c8] sm:$0xfe]  ;;  %v5607_v33 = vpop.f32.mrb[213].mxu1 }
 0x2c2   : > { %6739 = vst [vmem:[#allocation2 + $0x380] sm:$0xff] %v6675_v20  ;;  %6746 = vst [vmem:[#allocation2 + $0x460] sm:$0x1f] %v6682_v0  ;;  %v6679_v49 = vadd.f32 %v6537_v2, %v12586_v16  ;;  %v9722_v55 = vpop.f32.mrb[214].mxu0  ;;  %v8268_v16 = vld [vmem:[%s13554_s3 + $0x108] sm:$0xff]  ;;  %v6544_v31 = vrot.slane %v6397_v14, 1 }
 0x2c3   : > { %6745 = vst [vmem:[#allocation2 + $0x440] sm:$0xff] %v6681_v8  ;;  %6744 = vst [vmem:[#allocation2 + $0x420] sm:$0x1f] %v6680_v26  ;;  %v6395_v47 = vld [vmem:[#allocation2 + $0x488] sm:$0xfe]  ;;  %v9750_v24 = vpop.f32.mrb[214].mxu1  ;;  %v9949_v30 = vpack.c.bf16 %v8268_v16, %v8267_v57 }
 0x2c4   : > { %5535 = vst [vmem:[#allocation2 + $0x548] sm:$0xff] %v9721_v60  ;;  %6743 = vst [vmem:[#allocation2 + $0x400] sm:$0xff] %v6679_v49  ;;  %v6398_v10 = vld [vmem:[#allocation2 + $0x4e8] sm:$0x3f]  ;;  %v5401_v46 = vpop.f32.mrb[215].mxu0  ;;  %v6541_v18 = vrot.slane %v6395_v47, 1 }
 0x2c5   : > { %5864 = vst [vmem:[#allocation2 + $0x50] sm:$0xff] %v9749_v36  ;;  %5533 = vst [vmem:[#allocation2 + $0x508] sm:$0xff] %v5398_v21  ;;  %v6545_v34 = vrot.slane %v6398_v10, 1  ;;  %v6334_v4 = vld [vmem:[#allocation2 + $0x4e0] sm:$0x1f]  ;;  %v5610_v13 = vpop.f32.mrb[215].mxu1  ;;  %9950 = vmatprep.subr.bf16.mxu1 %v9949_v30 }
 0x2c6   : > { %v6396_v48 = vld [vmem:[#allocation2 + $0x4a8] sm:$0x3f]  ;;  %5862 = vst [vmem:[#allocation2 + $0x10] sm:$0xff] %v5607_v33  ;;  %5536 = vst [vmem:[#allocation2 + $0x568] sm:$0xff] %v9722_v55  ;;  %v6332_v5 = vld [vmem:[#allocation2 + $0x4a0] sm:$0x1f]  ;;  %9952 = vmatpush3.bf16.msra.mxu1 %v9949_v30 }
 0x2c7   : > { %v6542_v3 = vrot.slane %v6396_v48, 1  ;;  %5865 = vst [vmem:[#allocation2 + $0x70] sm:$0xff] %v9750_v24  ;;  %5534 = vst [vmem:[#allocation2 + $0x528] sm:$0xff] %v5401_v46  ;;  %v6546_v19 = vsel %vm1481_vm1, %v6544_v31, %v6545_v34  ;;  %v6686_v37 = vadd.f32 %v6545_v34, %v6334_v4  ;;  %v9725_v40 = vpop.f32.mrb[216].mxu0  ;;  %v9753_v28 = vpop.f32.mrb[216].mxu1  ;;  %v8270_v55 = vld [vmem:[%s13554_s3 + $0x118] sm:$0xff] }
 0x2c8   : > { %5863 = vst [vmem:[#allocation2 + $0x30] sm:$0xff] %v5610_v13  ;;  %v6685_v22 = vadd.f32 %v12597_v61, %v6546_v19  ;;  %5539 = vst [vmem:[#allocation2 + $0x5c8] sm:$0xff] %v9725_v40  ;;  %v6338_v56 = vld [vmem:[#allocation2 + $0x560] sm:$0x1f]  ;;  %v5414_v12 = vpop.f32.mrb[217].mxu0  ;;  %v5623_v62 = vpop.f32.mrb[217].mxu1 }
 0x2c9   : > { %v6543_v6 = vsel %vm1481_vm1, %v6541_v18, %v6542_v3  ;;  %v6684_v29 = vadd.f32 %v6542_v3, %v6332_v5  ;;  %6750 = vst [vmem:[#allocation2 + $0x4e0] sm:$0x1f] %v6686_v37  ;;  %5868 = vst [vmem:[#allocation2 + $0xd0] sm:$0xff] %v9753_v28  ;;  %v6778_v50 = vld [vmem:[#allocation2 + $0x60] sm:$0x1f]  ;;  %v9726_v23 = vpop.f32.mrb[218].mxu0 }
 0x2ca   : > { %v6683_v53 = vadd.f32 %v6543_v6, %v12599_v59  ;;  %6749 = vst [vmem:[#allocation2 + $0x4c0] sm:$0xff] %v6685_v22  ;;  %5537 = vst [vmem:[#allocation2 + $0x588] sm:$0xff] %v5414_v12  ;;  %v9754_v8 = vpop.f32.mrb[218].mxu1  ;;  %v6336_v49 = vld [vmem:[#allocation2 + $0x520] sm:$0x1f]  ;;  %v5417_v60 = vpop.f32.mrb[219].mxu0 }
 0x2cb   : > { %6748 = vst [vmem:[#allocation2 + $0x4a0] sm:$0x1f] %v6684_v29  ;;  %v6401_v41 = vld [vmem:[#allocation2 + $0x548] sm:$0xfe]  ;;  %5866 = vst [vmem:[#allocation2 + $0x90] sm:$0xff] %v5623_v62  ;;  %v5626_v47 = vpop.f32.mrb[219].mxu1 }
 0x2cc   : > { %6747 = vst [vmem:[#allocation2 + $0x480] sm:$0xff] %v6683_v53  ;;  %v6399_v51 = vld [vmem:[#allocation2 + $0x508] sm:$0xfe]  ;;  %v6550_v54 = vrot.slane %v6401_v41, 1  ;;  %5540 = vst [vmem:[#allocation2 + $0x5e8] sm:$0xff] %v9726_v23  ;;  %v9729_v33 = vpop.f32.mrb[220].mxu0 }
 0x2cd   : > { %v6402_v17 = vld [vmem:[#allocation2 + $0x568] sm:$0x3f]  ;;  %v6547_v61 = vrot.slane %v6399_v51, 1  ;;  %5869 = vst [vmem:[#allocation2 + $0xf0] sm:$0xff] %v9754_v8  ;;  %v6776_v57 = vld [vmem:[#allocation2 + $0x20] sm:$0x1f] }
 0x2ce   : > { %v6551_v27 = vrot.slane %v6402_v17, 1  ;;  %v12733_v25 = vld [vmem:[#allocation2 + $0x70] sm:$0x7f]  ;;  %v6400_v20 = vld [vmem:[#allocation2 + $0x528] sm:$0x3f]  ;;  %5538 = vst [vmem:[#allocation2 + $0x5a8] sm:$0xff] %v5417_v60 }
 0x2cf   : > { %v6971_v63 = vrot.slane %v12733_v25, 2  ;;  %v6548_v59 = vrot.slane %v6400_v20, 1  ;;  %v12736_v38 = vld [vmem:[#allocation2 + $0x30] sm:$0x7f]  ;;  %5867 = vst [vmem:[#allocation2 + $0xb0] sm:$0xff] %v5626_v47  ;;  %5543 = vst [vmem:[#allocation2 + $0x648] sm:$0xff] %v9729_v33 }
 0x2d0   : > { %v6552_v52 = vsel %vm1481_vm1, %v6550_v54, %v6551_v27  ;;  %v6690_v44 = vadd.f32 %v6551_v27, %v6338_v56  ;;  %v6968_v0 = vrot.slane %v12736_v38, 2  ;;  %v9757_v16 = vpop.f32.mrb[220].mxu1  ;;  %v5430_v31 = vpop.f32.mrb[221].mxu0  ;;  %v8271_v48 = vld [vmem:[%s13554_s3 + $0x120] sm:$0xff]  ;;  %v8272_v30 = vld [vmem:[%s13554_s3 + $0x128] sm:$0xff]  ;;  %v8273_v18 = vld [vmem:[%s13554_s3 + $0x130] sm:$0xff] }
 0x2d1   : > { %v6689_v2 = vadd.f32 %v12627_v15, %v6552_v52  ;;  %v7130_v26 = vadd.f32 %v6971_v63, %v6778_v50  ;;  %v6549_v14 = vsel %vm1481_vm1, %v6547_v61, %v6548_v59  ;;  %v6688_v21 = vadd.f32 %v6548_v59, %v6336_v49  ;;  %v8269_v15 = vld [vmem:[%s13554_s3 + $0x110] sm:$0xff]  ;;  %5872 = vst [vmem:[#allocation2 + $0x150] sm:$0xff] %v9757_v16  ;;  %v5639_v24 = vpop.f32.mrb[221].mxu1  ;;  %v9730_v46 = vpop.f32.mrb[222].mxu0  ;;  %v8274_v4 = vld [vmem:[%s13554_s3 + $0x138] sm:$0xff] }
 0x2d2   : > { %6754 = vst [vmem:[#allocation2 + $0x560] sm:$0x1f] %v6690_v44  ;;  %v6687_v36 = vadd.f32 %v6549_v14, %v12631_v11  ;;  %v7128_v10 = vadd.f32 %v6968_v0, %v6776_v57  ;;  %v6405_v11 = vld [vmem:[#allocation2 + $0x5c8] sm:$0xfe]  ;;  %v9953_v34 = vpack.c.bf16 %v8270_v55, %v8269_v15  ;;  %5541 = vst [vmem:[#allocation2 + $0x608] sm:$0xff] %v5430_v31  ;;  %v9758_v3 = vpop.f32.mrb[222].mxu1 }
 0x2d3   : > { %6753 = vst [vmem:[#allocation2 + $0x540] sm:$0xff] %v6689_v2  ;;  %7194 = vst [vmem:[#allocation2 + $0x60] sm:$0x1f] %v7130_v26  ;;  %v5433_v13 = vpop.f32.mrb[223].mxu0  ;;  %v9957_v19 = vpack.c.bf16 %v8272_v30, %v8271_v48  ;;  %v6403_v37 = vld [vmem:[#allocation2 + $0x588] sm:$0xfe]  ;;  %v9961_v41 = vpack.c.bf16 %v8274_v4, %v8273_v18 }
 0x2d4   : > { %6751 = vst [vmem:[#allocation2 + $0x500] sm:$0xff] %v6687_v36  ;;  %6752 = vst [vmem:[#allocation2 + $0x520] sm:$0x1f] %v6688_v21  ;;  %9954 = vmatprep.subr.bf16.mxu1 %v9953_v34  ;;  %v5642_v5 = vpop.f32.mrb[223].mxu1  ;;  %v6556_v22 = vrot.slane %v6405_v11, 1  ;;  %v6553_v56 = vrot.slane %v6403_v37, 1 }
 0x2d5   : > { %7192 = vst [vmem:[#allocation2 + $0x20] sm:$0x1f] %v7128_v10  ;;  %5870 = vst [vmem:[#allocation2 + $0x110] sm:$0xff] %v5639_v24  ;;  %9956 = vmatpush3.bf16.msra.mxu1 %v9953_v34  ;;  %v6406_v6 = vld [vmem:[#allocation2 + $0x5e8] sm:$0x3f]  ;;  %v9733_v44 = vpop.f32.mrb[224].mxu0 }
 0x2d6   : > { %5544 = vst [vmem:[#allocation2 + $0x668] sm:$0xff] %v9730_v46  ;;  %5873 = vst [vmem:[#allocation2 + $0x170] sm:$0xff] %v9758_v3  ;;  %v6782_v29 = vld [vmem:[#allocation2 + $0xe0] sm:$0x1f]  ;;  %v12765_v53 = vld [vmem:[#allocation2 + $0xf0] sm:$0x7f]  ;;  %9958 = vmatprep.subr.bf16.mxu1 %v9957_v19 }
 0x2d7   : > { %5542 = vst [vmem:[#allocation2 + $0x628] sm:$0xff] %v5433_v13  ;;  %5871 = vst [vmem:[#allocation2 + $0x130] sm:$0xff] %v5642_v5  ;;  %v6557_v40 = vrot.slane %v6406_v6, 1  ;;  %v6977_v51 = vrot.slane %v12765_v53, 2  ;;  %v6404_v28 = vld [vmem:[#allocation2 + $0x5a8] sm:$0x3f] }
 0x2d8   : > { %v12768_v54 = vld [vmem:[#allocation2 + $0xb0] sm:$0x7f]  ;;  %v6342_v17 = vld [vmem:[#allocation2 + $0x5e0] sm:$0x1f]  ;;  %v6554_v61 = vrot.slane %v6404_v28, 1  ;;  %5547 = vst [vmem:[#allocation2 + $0x6c8] sm:$0xff] %v9733_v44 }
 0x2d9   : > { %v6974_v27 = vrot.slane %v12768_v54, 2  ;;  %v6558_v20 = vsel %vm1481_vm1, %v6556_v22, %v6557_v40  ;;  %v6694_v59 = vadd.f32 %v6557_v40, %v6342_v17  ;;  %v7134_v12 = vadd.f32 %v6977_v51, %v6782_v29  ;;  %v6340_v62 = vld [vmem:[#allocation2 + $0x5a0] sm:$0x1f]  ;;  %v6409_v52 = vld [vmem:[#allocation2 + $0x648] sm:$0xfe]  ;;  %9960 = vmatpush3.bf16.msra.mxu1 %v9957_v19  ;;  %v9761_v26 = vpop.f32.mrb[224].mxu1 }
 0x2da   : > { %v6693_v50 = vadd.f32 %v12648_v58, %v6558_v20  ;;  %v6555_v23 = vsel %vm1481_vm1, %v6553_v56, %v6554_v61  ;;  %v6692_v8 = vadd.f32 %v6554_v61, %v6340_v62  ;;  %v6780_v2 = vld [vmem:[#allocation2 + $0xa0] sm:$0x1f]  ;;  %v5446_v49 = vpop.f32.mrb[225].mxu0  ;;  %9962 = vmatprep.subr.bf16.mxu1 %v9961_v41  ;;  %v6407_v47 = vld [vmem:[#allocation2 + $0x608] sm:$0xfe]  ;;  %5876 = vst [vmem:[#allocation2 + $0x1d0] sm:$0xff] %v9761_v26 }
 0x2db   : > { %6758 = vst [vmem:[#allocation2 + $0x5e0] sm:$0x1f] %v6694_v59  ;;  %7198 = vst [vmem:[#allocation2 + $0xe0] sm:$0x1f] %v7134_v12  ;;  %v6691_v14 = vadd.f32 %v6555_v23, %v12655_v39  ;;  %v7132_v60 = vadd.f32 %v6974_v27, %v6780_v2  ;;  %v5655_v58 = vpop.f32.mrb[225].mxu1  ;;  %v6562_v21 = vrot.slane %v6409_v52, 1 }
 0x2dc   : > { %5545 = vst [vmem:[#allocation2 + $0x688] sm:$0xff] %v5446_v49  ;;  %6757 = vst [vmem:[#allocation2 + $0x5c0] sm:$0xff] %v6693_v50  ;;  %v6346_v57 = vld [vmem:[#allocation2 + $0x660] sm:$0x1f]  ;;  %v9734_v33 = vpop.f32.mrb[226].mxu0  ;;  %v6559_v31 = vrot.slane %v6407_v47, 1 }
 0x2dd   : > { %v6410_v36 = vld [vmem:[#allocation2 + $0x668] sm:$0x3f]  ;;  %6756 = vst [vmem:[#allocation2 + $0x5a0] sm:$0x1f] %v6692_v8  ;;  %v6786_v15 = vld [vmem:[#allocation2 + $0x160] sm:$0x1f]  ;;  %9964 = vmatpush3.bf16.msra.mxu1 %v9961_v41 }
 0x2de   : > { %v12779_v10 = vld [vmem:[#allocation2 + $0x170] sm:$0x7f]  ;;  %5874 = vst [vmem:[#allocation2 + $0x190] sm:$0xff] %v5655_v58  ;;  %6755 = vst [vmem:[#allocation2 + $0x580] sm:$0xff] %v6691_v14  ;;  %v6563_v39 = vrot.slane %v6410_v36, 1  ;;  %v9762_v24 = vpop.f32.mrb[226].mxu1 }
 0x2df   : > { %7196 = vst [vmem:[#allocation2 + $0xa0] sm:$0x1f] %v7132_v60  ;;  %v6983_v55 = vrot.slane %v12779_v10, 2  ;;  %v6408_v11 = vld [vmem:[#allocation2 + $0x628] sm:$0x3f]  ;;  %5548 = vst [vmem:[#allocation2 + $0x6e8] sm:$0xff] %v9734_v33 }
 0x2e0   : > { %v12782_v16 = vld [vmem:[#allocation2 + $0x130] sm:$0x7f]  ;;  %v6560_v34 = vrot.slane %v6408_v11, 1  ;;  %v5449_v46 = vpop.f32.mrb[227].mxu0  ;;  %v8275_v30 = vld [vmem:[%s13554_s3 + $0x140] sm:$0xff]  ;;  %v6564_v18 = vsel %vm1481_vm1, %v6562_v21, %v6563_v39  ;;  %v6698_v4 = vadd.f32 %v6563_v39, %v6346_v57  ;;  %5877 = vst [vmem:[#allocation2 + $0x1f0] sm:$0xff] %v9762_v24 }
 0x2e1   : > { %v6980_v48 = vrot.slane %v12782_v16, 2  ;;  %v7138_v3 = vadd.f32 %v6983_v55, %v6786_v15  ;;  %v6344_v13 = vld [vmem:[#allocation2 + $0x620] sm:$0x1f]  ;;  %5546 = vst [vmem:[#allocation2 + $0x6a8] sm:$0xff] %v5449_v46  ;;  %v5658_v19 = vpop.f32.mrb[227].mxu1  ;;  %v8276_v37 = vld [vmem:[%s13554_s3 + $0x148] sm:$0xff]  ;;  %v6697_v5 = vadd.f32 %v12666_v32, %v6564_v18 }
 0x2e2   : > { %v6561_v22 = vsel %vm1481_vm1, %v6559_v31, %v6560_v34  ;;  %v6696_v6 = vadd.f32 %v6560_v34, %v6344_v13  ;;  %v6784_v29 = vld [vmem:[#allocation2 + $0x120] sm:$0x1f]  ;;  %5875 = vst [vmem:[#allocation2 + $0x1b0] sm:$0xff] %v5658_v19  ;;  %6762 = vst [vmem:[#allocation2 + $0x660] sm:$0x1f] %v6698_v4  ;;  %v9737_v28 = vpop.f32.mrb[228].mxu0  ;;  %v9965_v56 = vpack.c.bf16 %v8276_v37, %v8275_v30 }
 0x2e3   : > { %7202 = vst [vmem:[#allocation2 + $0x160] sm:$0x1f] %v7138_v3  ;;  %v6695_v41 = vadd.f32 %v6561_v22, %v12672_v1  ;;  %v7136_v40 = vadd.f32 %v6980_v48, %v6784_v29  ;;  %6761 = vst [vmem:[#allocation2 + $0x640] sm:$0xff] %v6697_v5  ;;  %v6413_v17 = vld [vmem:[#allocation2 + $0x6c8] sm:$0xfe]  ;;  %v9765_v61 = vpop.f32.mrb[228].mxu1 }
 0x2e4   : > { %6760 = vst [vmem:[#allocation2 + $0x620] sm:$0x1f] %v6696_v6  ;;  %5551 = vst [vmem:[#allocation2 + $0x748] sm:$0xff] %v9737_v28  ;;  %v6411_v32 = vld [vmem:[#allocation2 + $0x688] sm:$0xfe]  ;;  %v5462_v20 = vpop.f32.mrb[229].mxu0  ;;  %9966 = vmatprep.subr.bf16.mxu1 %v9965_v56 }
 0x2e5   : > { %6759 = vst [vmem:[#allocation2 + $0x600] sm:$0xff] %v6695_v41  ;;  %7200 = vst [vmem:[#allocation2 + $0x120] sm:$0x1f] %v7136_v40  ;;  %v5671_v59 = vpop.f32.mrb[229].mxu1  ;;  %v9738_v1 = vpop.f32.mrb[230].mxu0  ;;  %9968 = vmatpush3.bf16.msra.mxu1 %v9965_v56  ;;  %v6568_v52 = vrot.slane %v6413_v17, 1 }
 0x2e6   : > { %5880 = vst [vmem:[#allocation2 + $0x250] sm:$0xff] %v9765_v61  ;;  %v6414_v12 = vld [vmem:[#allocation2 + $0x6e8] sm:$0x3f]  ;;  %5549 = vst [vmem:[#allocation2 + $0x708] sm:$0xff] %v5462_v20  ;;  %v9766_v62 = vpop.f32.mrb[230].mxu1  ;;  %v5465_v23 = vpop.f32.mrb[231].mxu0 }
 0x2e7   : > { %5878 = vst [vmem:[#allocation2 + $0x210] sm:$0xff] %v5671_v59  ;;  %v6350_v44 = vld [vmem:[#allocation2 + $0x6e0] sm:$0x1f]  ;;  %v6569_v50 = vrot.slane %v6414_v12, 1  ;;  %5552 = vst [vmem:[#allocation2 + $0x768] sm:$0xff] %v9738_v1  ;;  %v5674_v8 = vpop.f32.mrb[231].mxu1 }
 0x2e8   : > { %5881 = vst [vmem:[#allocation2 + $0x270] sm:$0xff] %v9766_v62  ;;  %v6565_v2 = vrot.slane %v6411_v32, 1  ;;  %v12799_v26 = vld [vmem:[#allocation2 + $0x1f0] sm:$0x7f]  ;;  %v6412_v49 = vld [vmem:[#allocation2 + $0x6a8] sm:$0x3f] }
 0x2e9   : > { %5550 = vst [vmem:[#allocation2 + $0x728] sm:$0xff] %v5465_v23  ;;  %5879 = vst [vmem:[#allocation2 + $0x230] sm:$0xff] %v5674_v8  ;;  %v6570_v14 = vsel %vm1481_vm1, %v6568_v52, %v6569_v50  ;;  %v6702_v60 = vadd.f32 %v6569_v50, %v6350_v44  ;;  %v6989_v47 = vrot.slane %v12799_v26, 2  ;;  %v6566_v36 = vrot.slane %v6412_v49, 1  ;;  %v12803_v58 = vld [vmem:[#allocation2 + $0x1b0] sm:$0x7f] }
 0x2ea   : > { %v6701_v21 = vadd.f32 %v12677_v35, %v6570_v14  ;;  %v6790_v57 = vld [vmem:[#allocation2 + $0x1e0] sm:$0x1f]  ;;  %v6986_v33 = vrot.slane %v12803_v58, 2  ;;  %v9741_v46 = vpop.f32.mrb[232].mxu0  ;;  %v9769_v18 = vpop.f32.mrb[232].mxu1  ;;  %v8277_v20 = vld [vmem:[%s13554_s3 + $0x150] sm:$0xff] }
 0x2eb   : > { %v6348_v15 = vld [vmem:[#allocation2 + $0x6a0] sm:$0x1f]  ;;  %6766 = vst [vmem:[#allocation2 + $0x6e0] sm:$0x1f] %v6702_v60  ;;  %v7142_v39 = vadd.f32 %v6989_v47, %v6790_v57  ;;  %v6567_v11 = vsel %vm1481_vm1, %v6565_v2, %v6566_v36  ;;  %v6417_v24 = vld [vmem:[#allocation2 + $0x748] sm:$0xfe] }
 0x2ec   : > { %v6700_v31 = vadd.f32 %v6566_v36, %v6348_v15  ;;  %v6788_v34 = vld [vmem:[#allocation2 + $0x1a0] sm:$0x1f]  ;;  %6765 = vst [vmem:[#allocation2 + $0x6c0] sm:$0xff] %v6701_v21  ;;  %v6699_v30 = vadd.f32 %v6567_v11, %v12680_v43  ;;  %5555 = vst [vmem:[#allocation2 + $0x7c8] sm:$0xff] %v9741_v46  ;;  %v5478_v4 = vpop.f32.mrb[233].mxu0  ;;  %v6574_v13 = vrot.slane %v6417_v24, 1 }
 0x2ed   : > { %v7140_v35 = vadd.f32 %v6986_v33, %v6788_v34  ;;  %7206 = vst [vmem:[#allocation2 + $0x1e0] sm:$0x1f] %v7142_v39  ;;  %v6415_v3 = vld [vmem:[#allocation2 + $0x708] sm:$0xfe]  ;;  %5884 = vst [vmem:[#allocation2 + $0x2d0] sm:$0xff] %v9769_v18  ;;  %v5687_v61 = vpop.f32.mrb[233].mxu1 }
 0x2ee   : > { %6764 = vst [vmem:[#allocation2 + $0x6a0] sm:$0x1f] %v6700_v31  ;;  %5553 = vst [vmem:[#allocation2 + $0x788] sm:$0xff] %v5478_v4  ;;  %v6354_v19 = vld [vmem:[#allocation2 + $0x760] sm:$0x1f]  ;;  %v6571_v40 = vrot.slane %v6415_v3, 1 }
 0x2ef   : > { %6763 = vst [vmem:[#allocation2 + $0x680] sm:$0xff] %v6699_v30  ;;  %7204 = vst [vmem:[#allocation2 + $0x1a0] sm:$0x1f] %v7140_v35  ;;  %v6418_v37 = vld [vmem:[#allocation2 + $0x768] sm:$0x3f]  ;;  %v9742_v32 = vpop.f32.mrb[234].mxu0 }
 0x2f0   : > { %v6794_v5 = vld [vmem:[#allocation2 + $0x260] sm:$0x1f]  ;;  %v12813_v22 = vld [vmem:[#allocation2 + $0x270] sm:$0x7f]  ;;  %v6575_v43 = vrot.slane %v6418_v37, 1  ;;  %5882 = vst [vmem:[#allocation2 + $0x290] sm:$0xff] %v5687_v61 }
 0x2f1   : > { %v6995_v6 = vrot.slane %v12813_v22, 2  ;;  %v6416_v29 = vld [vmem:[#allocation2 + $0x728] sm:$0x3f]  ;;  %v12816_v41 = vld [vmem:[#allocation2 + $0x230] sm:$0x7f]  ;;  %5556 = vst [vmem:[#allocation2 + $0x7e8] sm:$0xff] %v9742_v32 }
 0x2f2   : > { %v6572_v28 = vrot.slane %v6416_v29, 1  ;;  %v6792_v56 = vld [vmem:[#allocation2 + $0x220] sm:$0x1f]  ;;  %v6992_v17 = vrot.slane %v12816_v41, 2  ;;  %v6576_v59 = vsel %vm1481_vm1, %v6574_v13, %v6575_v43  ;;  %v6706_v12 = vadd.f32 %v6575_v43, %v6354_v19  ;;  %v9770_v52 = vpop.f32.mrb[234].mxu1  ;;  %v5481_v44 = vpop.f32.mrb[235].mxu0 }
 0x2f3   : > { %v7146_v1 = vadd.f32 %v6995_v6, %v6794_v5  ;;  %v6352_v62 = vld [vmem:[#allocation2 + $0x720] sm:$0x1f]  ;;  %v8278_v50 = vld [vmem:[%s13554_s3 + $0x158] sm:$0xff]  ;;  %v6841_v23 = vld [vmem:[#allocation2 + $0x50] sm:$0xfc]  ;;  %v6705_v8 = vadd.f32 %v12693_v7, %v6576_v59  ;;  %5885 = vst [vmem:[#allocation2 + $0x2f0] sm:$0xff] %v9770_v52 }
 0x2f4   : > { %v6573_v2 = vsel %vm1481_vm1, %v6571_v40, %v6572_v28  ;;  %v6704_v49 = vadd.f32 %v6572_v28, %v6352_v62  ;;  %5554 = vst [vmem:[#allocation2 + $0x7a8] sm:$0xff] %v5481_v44  ;;  %v5690_v14 = vpop.f32.mrb[235].mxu1  ;;  %v8279_v60 = vld [vmem:[%s13554_s3 + $0x160] sm:$0xff]  ;;  %v8280_v36 = vld [vmem:[%s13554_s3 + $0x168] sm:$0xff]  ;;  %6770 = vst [vmem:[#allocation2 + $0x760] sm:$0x1f] %v6706_v12  ;;  %v7144_v7 = vadd.f32 %v6992_v17, %v6792_v56 }
 0x2f5   : > { %7210 = vst [vmem:[#allocation2 + $0x260] sm:$0x1f] %v7146_v1  ;;  %v6703_v21 = vadd.f32 %v6573_v2, %v12696_v42  ;;  %5883 = vst [vmem:[#allocation2 + $0x2b0] sm:$0xff] %v5690_v14  ;;  %v9817_v57 = vpop.f32.mrb[236].mxu0  ;;  %v9969_v15 = vpack.c.bf16 %v8278_v50, %v8277_v20  ;;  %v6839_v39 = vld [vmem:[#allocation2 + $0x10] sm:$0xfc]  ;;  %v9973_v31 = vpack.c.bf16 %v8280_v36, %v8279_v60 }
 0x2f6   : > { %6769 = vst [vmem:[#allocation2 + $0x740] sm:$0xff] %v6705_v8  ;;  %6768 = vst [vmem:[#allocation2 + $0x720] sm:$0x1f] %v6704_v49  ;;  %v9773_v11 = vpop.f32.mrb[236].mxu1  ;;  %v8281_v34 = vld [vmem:[%s13554_s3 + $0x170] sm:$0xff]  ;;  %v6970_v24 = vrot.slane %v6841_v23, 2 }
 0x2f7   : > { %6233 = vst [vmem:[#allocation2 + $0x58] sm:$0xff] %v9817_v57  ;;  %v12842_v46 = vld [vmem:[#allocation2 + $0xd0] sm:$0xfc]  ;;  %6767 = vst [vmem:[#allocation2 + $0x700] sm:$0xff] %v6703_v21  ;;  %v5703_v42 = vpop.f32.mrb[237].mxu1  ;;  %v5976_v30 = vpop.f32.mrb[237].mxu0  ;;  %9970 = vmatprep.subr.bf16.mxu1 %v9969_v15 }
 0x2f8   : > { %7208 = vst [vmem:[#allocation2 + $0x220] sm:$0x1f] %v7144_v7  ;;  %5888 = vst [vmem:[#allocation2 + $0x350] sm:$0xff] %v9773_v11  ;;  %v6421_v35 = vld [vmem:[#allocation2 + $0x7c8] sm:$0xfe]  ;;  %v9774_v18 = vpop.f32.mrb[238].mxu1  ;;  %9972 = vmatpush3.bf16.msra.mxu1 %v9969_v15  ;;  %v6972_v12 = vsel %vm4043_vm9, %v6970_v24, %v6971_v63 }
 0x2f9   : > { %5886 = vst [vmem:[#allocation2 + $0x310] sm:$0xff] %v5703_v42  ;;  %6231 = vst [vmem:[#allocation2 + $0x18] sm:$0xff] %v5976_v30  ;;  %v12844_v4 = vpop.f32.mrb[238].mxu0  ;;  %v7258_v3 = vld [vmem:[#allocation2 + $0x60] sm:$0x1f]  ;;  %v8282_v13 = vld [vmem:[%s13554_s3 + $0x178] sm:$0xff]  ;;  %9974 = vmatprep.subr.bf16.mxu1 %v9973_v31 }
 0x2fa   : > { %v6967_v19 = vrot.slane %v6839_v39, 2  ;;  %v12849_v37 = vld [vmem:[#allocation2 + $0x90] sm:$0xfc]  ;;  %v6419_v5 = vld [vmem:[#allocation2 + $0x788] sm:$0xfe]  ;;  %5889 = vst [vmem:[#allocation2 + $0x370] sm:$0xff] %v9774_v18  ;;  %v9977_v28 = vpack.c.bf16 %v8282_v13, %v8281_v34 }
 0x2fb   : > { %v7452_v43 = vrot.slane %v12844_v4, 3  ;;  %v5706_v29 = vpop.f32.mrb[239].mxu1  ;;  %v12852_v40 = vpop.f32.mrb[239].mxu0  ;;  %v6976_v56 = vrot.slane %v12842_v46, 2  ;;  %v6358_v61 = vld [vmem:[#allocation2 + $0x7e0] sm:$0x1f] }
 0x2fc   : > { %v6422_v32 = vld [vmem:[#allocation2 + $0x7e8] sm:$0x3f]  ;;  %5887 = vst [vmem:[#allocation2 + $0x330] sm:$0xff] %v5706_v29  ;;  %v7256_v20 = vld [vmem:[#allocation2 + $0x20] sm:$0x1f]  ;;  %v7449_v59 = vrot.slane %v12852_v40, 3  ;;  %9976 = vmatpush3.bf16.msra.mxu1 %v9973_v31  ;;  %v6969_v63 = vsel %vm4043_vm9, %v6967_v19, %v6968_v0 }
 0x2fd   : > { %v6580_v1 = vrot.slane %v6421_v35, 1  ;;  %v6581_v62 = vrot.slane %v6422_v32, 1  ;;  %v6798_v52 = vld [vmem:[#allocation2 + $0x2e0] sm:$0x1f]  ;;  %v12859_v44 = vld [vmem:[#allocation2 + $0x2f0] sm:$0x7f]  ;;  %v7611_v23 = vadd.f32 %v7452_v43, %v7258_v3  ;;  %9978 = vmatprep.subr.bf16.mxu1 %v9977_v28  ;;  %v6978_v29 = vsel %vm4043_vm9, %v6976_v56, %v6977_v51 }
 0x2fe   : > { %v6420_v50 = vld [vmem:[#allocation2 + $0x7a8] sm:$0x3f]  ;;  %v6777_v8 = vld [vmem:[#allocation2 + $0x40] sm:$0xff]  ;;  %v6577_v2 = vrot.slane %v6419_v5, 1  ;;  %v7001_v49 = vrot.slane %v12859_v44, 2  ;;  %v7609_v25 = vadd.f32 %v7449_v59, %v7256_v20  ;;  %v9821_v11 = vpop.f32.mrb[240].mxu0 }
 0x2ff   : > { %v6578_v14 = vrot.slane %v6420_v50, 1  ;;  %v12864_v60 = vld [vmem:[#allocation2 + $0x2b0] sm:$0x7f]  ;;  %v6582_v36 = vsel %vm1481_vm1, %v6580_v1, %v6581_v62  ;;  %v6710_v21 = vadd.f32 %v6581_v62, %v6358_v61  ;;  %v6356_v7 = vld [vmem:[#allocation2 + $0x7a0] sm:$0x1f]  ;;  %v6973_v24 = vrot.slane %v12849_v37, 2 }
 0x300   : > { %v6796_v57 = vld [vmem:[#allocation2 + $0x2a0] sm:$0x1f]  ;;  %v6998_v15 = vrot.slane %v12864_v60, 2  ;;  %v7321_v39 = vld [vmem:[#allocation2 + $0x58] sm:$0xf8]  ;;  %v6709_v38 = vadd.f32 %v12708_v9, %v6582_v36  ;;  %v7150_v0 = vadd.f32 %v7001_v49, %v6798_v52  ;;  %v9777_v42 = vpop.f32.mrb[240].mxu1  ;;  %v7129_v35 = vadd.f32 %v6972_v12, %v6777_v8  ;;  %9980 = vmatpush3.bf16.msra.mxu1 %v9977_v28 }
 0x301   : > { %7675 = vst [vmem:[#allocation2 + $0x60] sm:$0x1f] %v7611_v23  ;;  %v6775_v34 = vld [vmem:[#allocation2] sm:$0xff]  ;;  %v12874_v46 = vld [vmem:[#allocation2 + $0x150] sm:$0xfc]  ;;  %v6579_v31 = vsel %vm1481_vm1, %v6577_v2, %v6578_v14  ;;  %6237 = vst [vmem:[#allocation2 + $0xd8] sm:$0xff] %v9821_v11  ;;  %v6708_v13 = vadd.f32 %v6578_v14, %v6356_v7  ;;  %v6975_v36 = vsel %vm4043_vm9, %v6973_v24, %v6974_v27 }
 0x302   : > { %7673 = vst [vmem:[#allocation2 + $0x20] sm:$0x1f] %v7609_v25  ;;  %v5992_v30 = vpop.f32.mrb[241].mxu0  ;;  %v12880_v18 = vld [vmem:[#allocation2 + $0x110] sm:$0xfc]  ;;  %v6707_v3 = vadd.f32 %v6579_v31, %v12713_v45  ;;  %5892 = vst [vmem:[#allocation2 + $0x3d0] sm:$0xff] %v9777_v42  ;;  %v7127_v5 = vadd.f32 %v6969_v63, %v6775_v34  ;;  %v7148_v61 = vadd.f32 %v6998_v15, %v6796_v57 }
 0x303   : > { %6774 = vst [vmem:[#allocation2 + $0x7e0] sm:$0x1f] %v6710_v21  ;;  %v7319_v19 = vld [vmem:[#allocation2 + $0x18] sm:$0xf8]  ;;  %v5719_v37 = vpop.f32.mrb[241].mxu1  ;;  %6235 = vst [vmem:[#allocation2 + $0x98] sm:$0xff] %v5992_v30 }
 0x304   : > { %v12883_v9 = vpop.f32.mrb[242].mxu0  ;;  %6773 = vst [vmem:[#allocation2 + $0x7c0] sm:$0xff] %v6709_v38  ;;  %7214 = vst [vmem:[#allocation2 + $0x2e0] sm:$0x1f] %v7150_v0  ;;  %v7451_v32 = vrot.slane %v7321_v39, 3  ;;  %v9778_v12 = vpop.f32.mrb[242].mxu1 }
 0x305   : > { %v6802_v20 = vld [vmem:[#allocation2 + $0x360] sm:$0x1f]  ;;  %v12890_v45 = vld [vmem:[#allocation2 + $0x370] sm:$0x7f]  ;;  %5890 = vst [vmem:[#allocation2 + $0x390] sm:$0xff] %v5719_v37  ;;  %v12892_v1 = vpop.f32.mrb[243].mxu0 }
 0x306   : > { %v6982_v62 = vrot.slane %v12874_v46, 2  ;;  %6771 = vst [vmem:[#allocation2 + $0x780] sm:$0xff] %v6707_v3  ;;  %6772 = vst [vmem:[#allocation2 + $0x7a0] sm:$0x1f] %v6708_v13  ;;  %v7448_v53 = vrot.slane %v7319_v19, 3  ;;  %v7007_v51 = vrot.slane %v12890_v45, 2  ;;  %v7453_v23 = vsel %vm7447_vm10, %v7451_v32, %v7452_v43 }
 0x307   : > { %v12896_v56 = vld [vmem:[#allocation2 + $0x330] sm:$0x7f]  ;;  %5893 = vst [vmem:[#allocation2 + $0x3f0] sm:$0xff] %v9778_v12  ;;  %v7458_v52 = vrot.slane %v12883_v9, 3  ;;  %v6979_v50 = vrot.slane %v12880_v18, 2  ;;  %v5722_v2 = vpop.f32.mrb[243].mxu1  ;;  %v7610_v57 = vadd.f32 %v7453_v23, %v7129_v35 }
 0x308   : > { %7212 = vst [vmem:[#allocation2 + $0x2a0] sm:$0x1f] %v7148_v61  ;;  %v6800_v28 = vld [vmem:[#allocation2 + $0x320] sm:$0x1f]  ;;  %v7004_v8 = vrot.slane %v12896_v56, 2  ;;  %v7455_v14 = vrot.slane %v12892_v1, 3  ;;  %v7154_v4 = vadd.f32 %v7007_v51, %v6802_v20  ;;  %v7450_v43 = vsel %vm7447_vm10, %v7448_v53, %v7449_v59 }
 0x309   : > { %v6781_v25 = vld [vmem:[#allocation2 + $0xc0] sm:$0xff]  ;;  %v6853_v21 = vld [vmem:[#allocation2 + $0x1d0] sm:$0xfc]  ;;  %5891 = vst [vmem:[#allocation2 + $0x3b0] sm:$0xff] %v5722_v2  ;;  %v7608_v34 = vadd.f32 %v7450_v43, %v7127_v5  ;;  %7674 = vst [vmem:[#allocation2 + $0x40] sm:$0xff] %v7610_v57  ;;  %v9825_v31 = vpop.f32.mrb[244].mxu0  ;;  %v6984_v19 = vsel %vm4043_vm9, %v6982_v62, %v6983_v55  ;;  %v6981_v37 = vsel %vm4043_vm9, %v6979_v50, %v6980_v48 }
 0x30a   : > { %v6779_v63 = vld [vmem:[#allocation2 + $0x80] sm:$0xff]  ;;  %v12908_v7 = vld [vmem:[#allocation2 + $0x190] sm:$0xfc]  ;;  %v7152_v54 = vadd.f32 %v7004_v8, %v6800_v28  ;;  %7218 = vst [vmem:[#allocation2 + $0x360] sm:$0x1f] %v7154_v4  ;;  %v7133_v59 = vadd.f32 %v6978_v29, %v6781_v25  ;;  %v6988_v35 = vrot.slane %v6853_v21, 2 }
 0x30b   : > { %v7262_v39 = vld [vmem:[#allocation2 + $0xe0] sm:$0x1f]  ;;  %v12915_v11 = vld [vmem:[#allocation2 + $0x250] sm:$0xfc]  ;;  %v7325_v46 = vld [vmem:[#allocation2 + $0xd8] sm:$0xf8]  ;;  %v7131_v30 = vadd.f32 %v6975_v36, %v6779_v63 }
 0x30c   : > { %v7260_v27 = vld [vmem:[#allocation2 + $0xa0] sm:$0x1f]  ;;  %v7615_v38 = vadd.f32 %v7458_v52, %v7262_v39  ;;  %7216 = vst [vmem:[#allocation2 + $0x320] sm:$0x1f] %v7152_v54  ;;  %7672 = vst [vmem:[#allocation2] sm:$0xff] %v7608_v34  ;;  %v7457_v18 = vrot.slane %v7325_v46, 3  ;;  %v6990_v63 = vsel %vm4043_vm9, %v6988_v35, %v6989_v47 }
 0x30d   : > { %v7739_v24 = vld [vmem:[#allocation2 + $0x60] sm:$0x1f]  ;;  %v7613_v0 = vadd.f32 %v7455_v14, %v7260_v27  ;;  %v7323_v3 = vld [vmem:[#allocation2 + $0x98] sm:$0xf8]  ;;  %v9781_v13 = vpop.f32.mrb[244].mxu1  ;;  %6241 = vst [vmem:[#allocation2 + $0x158] sm:$0xff] %v9825_v31 }
 0x30e   : > { %v7737_v42 = vld [vmem:[#allocation2 + $0x20] sm:$0x1f]  ;;  %v7808_v40 = vsel %vm7447_vm10, %v7739_v24, -inf  ;;  %v6985_v9 = vrot.slane %v12908_v7, 2  ;;  %v12927_v5 = vld [vmem:[#allocation2 + $0x210] sm:$0xfc]  ;;  %v7459_v55 = vsel %vm7447_vm10, %v7457_v18, %v7458_v52 }
 0x30f   : > { %v7454_v29 = vrot.slane %v7323_v3, 3  ;;  %7679 = vst [vmem:[#allocation2 + $0xe0] sm:$0x1f] %v7615_v38  ;;  %7677 = vst [vmem:[#allocation2 + $0xa0] sm:$0x1f] %v7613_v0  ;;  %v5735_v61 = vpop.f32.mrb[245].mxu1  ;;  %v12936_v62 = vmax.f32 %v7610_v57, %v7808_v40  ;;  %v12939_v50 = vadd.f32 %v7459_v55, %v7133_v59 }
 0x310   : > { %5896 = vst [vmem:[#allocation2 + $0x450] sm:$0xff] %v9781_v13  ;;  %v6008_v32 = vpop.f32.mrb[245].mxu0  ;;  %v6994_v20 = vrot.slane %v12915_v11, 2  ;;  %v6806_v12 = vld [vmem:[#allocation2 + $0x3e0] sm:$0x1f]  ;;  %5894 = vst [vmem:[#allocation2 + $0x410] sm:$0xff] %v5735_v61 }
 0x311   : > { %v12930_v10 = vld [vmem:[#allocation2 + $0x3f0] sm:$0x7f]  ;;  %6239 = vst [vmem:[#allocation2 + $0x118] sm:$0xff] %v6008_v32  ;;  %v9782_v16 = vpop.f32.mrb[246].mxu1  ;;  %v12933_v48 = vpop.f32.mrb[246].mxu0  ;;  %v7800_v1 = vsel %vm7447_vm10, %v7737_v42, -inf  ;;  %v7456_v23 = vsel %vm7447_vm10, %v7454_v29, %v7455_v14 }
 0x312   : > { %v7013_v53 = vrot.slane %v12930_v10, 2  ;;  %5897 = vst [vmem:[#allocation2 + $0x470] sm:$0xff] %v9782_v16  ;;  %v7266_v28 = vld [vmem:[#allocation2 + $0x160] sm:$0x1f]  ;;  %v7464_v2 = vrot.slane %v12933_v48, 3  ;;  %v5738_v52 = vpop.f32.mrb[247].mxu1  ;;  %v12951_v57 = vadd.f32 %v7456_v23, %v7131_v30  ;;  %v12958_v27 = vmax.f32 %v7608_v34, %v7800_v1 }
 0x313   : > { %v12943_v25 = vpop.f32.mrb[247].mxu0  ;;  %v6991_v36 = vrot.slane %v12927_v5, 2  ;;  %v6861_v21 = vld [vmem:[#allocation2 + $0x2d0] sm:$0xfc]  ;;  %5895 = vst [vmem:[#allocation2 + $0x430] sm:$0xff] %v5738_v52  ;;  %v6785_v43 = vld [vmem:[#allocation2 + $0x140] sm:$0xff]  ;;  %v6996_v32 = vsel %vm4043_vm9, %v6994_v20, %v6995_v6 }
 0x314   : > { %v12949_v4 = vld [vmem:[#allocation2 + $0x3b0] sm:$0x7f]  ;;  %v7461_v14 = vrot.slane %v12943_v25, 3  ;;  %v7158_v11 = vadd.f32 %v7013_v53, %v6806_v12  ;;  %7678 = vst [vmem:[#allocation2 + $0xc0] sm:$0xff] %v12939_v50  ;;  %v7619_v47 = vadd.f32 %v7464_v2, %v7266_v28  ;;  %v7264_v54 = vld [vmem:[#allocation2 + $0x120] sm:$0x1f]  ;;  %v7137_v42 = vadd.f32 %v6984_v19, %v6785_v43 }
 0x315   : > { %v6859_v39 = vld [vmem:[#allocation2 + $0x290] sm:$0xfc]  ;;  %v7010_v26 = vrot.slane %v12949_v4, 2  ;;  %v6783_v24 = vld [vmem:[#allocation2 + $0x100] sm:$0xff]  ;;  %7676 = vst [vmem:[#allocation2 + $0x80] sm:$0xff] %v12951_v57  ;;  %v7810_v31 = vrot.slane %v12936_v62, 4  ;;  %v6987_v19 = vsel %vm4043_vm9, %v6985_v9, %v6986_v33 }
 0x316   : > { %v6789_v46 = vld [vmem:[#allocation2 + $0x1c0] sm:$0xff]  ;;  %v7617_v0 = vadd.f32 %v7461_v14, %v7264_v54  ;;  %v7000_v40 = vrot.slane %v6861_v21, 2  ;;  %v12964_v59 = vld [vmem:[#allocation2 + $0x350] sm:$0xfc]  ;;  %7222 = vst [vmem:[#allocation2 + $0x3e0] sm:$0x1f] %v7158_v11  ;;  %v7135_v18 = vadd.f32 %v6981_v37, %v6783_v24  ;;  %v6993_v37 = vsel %vm4043_vm9, %v6991_v36, %v6992_v17 }
 0x317   : > { %v6804_v38 = vld [vmem:[#allocation2 + $0x3a0] sm:$0x1f]  ;;  %v7329_v34 = vld [vmem:[#allocation2 + $0x158] sm:$0xf8]  ;;  %7683 = vst [vmem:[#allocation2 + $0x160] sm:$0x1f] %v7619_v47  ;;  %v12968_v3 = vadd.f32 %v6990_v63, %v6789_v46  ;;  %v12991_v20 = vmax.f32 %v12936_v62, %v7810_v31 }
 0x318   : > { %v7156_v30 = vadd.f32 %v7010_v26, %v6804_v38  ;;  %v9829_v35 = vpop.f32.mrb[248].mxu0  ;;  %v6997_v13 = vrot.slane %v6859_v39, 2  ;;  %v7463_v5 = vrot.slane %v7329_v34, 3  ;;  %7681 = vst [vmem:[#allocation2 + $0x120] sm:$0x1f] %v7617_v0  ;;  %v9785_v29 = vpop.f32.mrb[248].mxu1  ;;  %v7002_v48 = vsel %vm4043_vm9, %v7000_v40, %v7001_v49 }
 0x319   : > { %6245 = vst [vmem:[#allocation2 + $0x1d8] sm:$0xff] %v9829_v35  ;;  %v6024_v61 = vpop.f32.mrb[249].mxu0  ;;  %v12981_v12 = vld [vmem:[#allocation2 + $0x310] sm:$0xfc]  ;;  %v7327_v55 = vld [vmem:[#allocation2 + $0x118] sm:$0xf8] }
 0x31a   : > { %7220 = vst [vmem:[#allocation2 + $0x3a0] sm:$0x1f] %v7156_v30  ;;  %5900 = vst [vmem:[#allocation2 + $0x4d0] sm:$0xff] %v9785_v29  ;;  %v5751_v16 = vpop.f32.mrb[249].mxu1  ;;  %v7802_v58 = vrot.slane %v12958_v27, 4  ;;  %v7006_v7 = vrot.slane %v12964_v59, 2  ;;  %v7465_v6 = vsel %vm7447_vm10, %v7463_v5, %v7464_v2  ;;  %v6999_v44 = vsel %vm4043_vm9, %v6997_v13, %v6998_v15 }
 0x31b   : > { %6243 = vst [vmem:[#allocation2 + $0x198] sm:$0xff] %v6024_v61  ;;  %v7460_v33 = vrot.slane %v7327_v55, 3  ;;  %v6810_v9 = vld [vmem:[#allocation2 + $0x460] sm:$0x1f]  ;;  %v12985_v22 = vld [vmem:[#allocation2 + $0x470] sm:$0x7f]  ;;  %v12997_v23 = vadd.f32 %v7465_v6, %v7137_v42 }
 0x31c   : > { %5898 = vst [vmem:[#allocation2 + $0x490] sm:$0xff] %v5751_v16  ;;  %v9786_v41 = vpop.f32.mrb[250].mxu1  ;;  %v12988_v17 = vpop.f32.mrb[250].mxu0  ;;  %v7019_v1 = vrot.slane %v12985_v22, 2  ;;  %v6808_v28 = vld [vmem:[#allocation2 + $0x420] sm:$0x1f]  ;;  %v13024_v25 = vmax.f32 %v12958_v27, %v7802_v58  ;;  %v7008_v27 = vsel %vm4043_vm9, %v7006_v7, %v7007_v51 }
 0x31d   : > { %v12999_v52 = vld [vmem:[#allocation2 + $0x430] sm:$0x7f]  ;;  %5901 = vst [vmem:[#allocation2 + $0x4f0] sm:$0xff] %v9786_v41  ;;  %v7470_v2 = vrot.slane %v12988_v17, 3  ;;  %v5754_v63 = vpop.f32.mrb[251].mxu1  ;;  %v13002_v36 = vpop.f32.mrb[251].mxu0  ;;  %v7462_v43 = vsel %vm7447_vm10, %v7460_v33, %v7461_v14 }
 0x31e   : > { %v6787_v21 = vld [vmem:[#allocation2 + $0x180] sm:$0xff]  ;;  %v13007_v62 = vld [vmem:[#allocation2 + $0x3d0] sm:$0xfc]  ;;  %v7016_v49 = vrot.slane %v12999_v52, 2  ;;  %5899 = vst [vmem:[#allocation2 + $0x4b0] sm:$0xff] %v5754_v63  ;;  %v7467_v11 = vrot.slane %v13002_v36, 3  ;;  %v7162_v60 = vadd.f32 %v7019_v1, %v6810_v9  ;;  %v13021_v15 = vadd.f32 %v7462_v43, %v7135_v18 }
 0x31f   : > { %v7270_v39 = vld [vmem:[#allocation2 + $0x1e0] sm:$0x1f]  ;;  %v13014_v47 = vld [vmem:[#allocation2 + $0x390] sm:$0xfc]  ;;  %7682 = vst [vmem:[#allocation2 + $0x140] sm:$0xff] %v12997_v23  ;;  %v7003_v31 = vrot.slane %v12981_v12, 2  ;;  %v7139_v30 = vadd.f32 %v6987_v19, %v6787_v21 }
 0x320   : > { %v13016_v54 = vld [vmem:[#allocation2 + $0x450] sm:$0xfc]  ;;  %v7623_v24 = vadd.f32 %v7470_v2, %v7270_v39  ;;  %v7268_v46 = vld [vmem:[#allocation2 + $0x1a0] sm:$0x1f]  ;;  %v7160_v42 = vadd.f32 %v7016_v49, %v6808_v28  ;;  %v7812_v59 = vrot.slane %v12991_v20, 2  ;;  %v7012_v13 = vrot.slane %v13007_v62, 2 }
 0x321   : > { %v6793_v14 = vld [vmem:[#allocation2 + $0x240] sm:$0xff]  ;;  %v7621_v40 = vadd.f32 %v7467_v11, %v7268_v46  ;;  %7226 = vst [vmem:[#allocation2 + $0x460] sm:$0x1f] %v7162_v60  ;;  %7680 = vst [vmem:[#allocation2 + $0x100] sm:$0xff] %v13021_v15  ;;  %v7333_v5 = vld [vmem:[#allocation2 + $0x1d8] sm:$0xf8]  ;;  %v7005_v41 = vsel %vm4043_vm9, %v7003_v31, %v7004_v8 }
 0x322   : > { %v6791_v38 = vld [vmem:[#allocation2 + $0x200] sm:$0xff]  ;;  %v13030_v34 = vadd.f32 %v6996_v32, %v6793_v14  ;;  %7687 = vst [vmem:[#allocation2 + $0x1e0] sm:$0x1f] %v7623_v24  ;;  %v9833_v29 = vpop.f32.mrb[252].mxu0  ;;  %v7009_v19 = vrot.slane %v13014_v47, 2  ;;  %v7018_v32 = vrot.slane %v13016_v54, 2  ;;  %v13061_v62 = vmax.f32 %v12991_v20, %v7812_v59 }
 0x323   : > { %v6797_v0 = vld [vmem:[#allocation2 + $0x2c0] sm:$0xff]  ;;  %v13037_v61 = vadd.f32 %v6993_v37, %v6791_v38  ;;  %7224 = vst [vmem:[#allocation2 + $0x420] sm:$0x1f] %v7160_v42  ;;  %v7469_v12 = vrot.slane %v7333_v5, 3  ;;  %v7331_v55 = vld [vmem:[#allocation2 + $0x198] sm:$0xf8]  ;;  %v7014_v20 = vsel %vm4043_vm9, %v7012_v13, %v7013_v53 }
 0x324   : > { %v6795_v35 = vld [vmem:[#allocation2 + $0x280] sm:$0xff]  ;;  %7685 = vst [vmem:[#allocation2 + $0x1a0] sm:$0x1f] %v7621_v40  ;;  %v9789_v45 = vpop.f32.mrb[252].mxu1  ;;  %6249 = vst [vmem:[#allocation2 + $0x258] sm:$0xff] %v9833_v29  ;;  %v13041_v51 = vadd.f32 %v7002_v48, %v6797_v0  ;;  %v7466_v7 = vrot.slane %v7331_v55, 3 }
 0x325   : > { %v6801_v18 = vld [vmem:[#allocation2 + $0x340] sm:$0xff]  ;;  %v13043_v16 = vadd.f32 %v6999_v44, %v6795_v35  ;;  %v13045_v58 = vld [vmem:[#allocation2 + $0x410] sm:$0xfc]  ;;  %5904 = vst [vmem:[#allocation2 + $0x550] sm:$0xff] %v9789_v45  ;;  %v5767_v37 = vpop.f32.mrb[253].mxu1  ;;  %v6040_v33 = vpop.f32.mrb[253].mxu0  ;;  %v7471_v63 = vsel %vm7447_vm10, %v7469_v12, %v7470_v2 }
 0x326   : > { %v7804_v9 = vrot.slane %v13024_v25, 2  ;;  %v13048_v6 = vadd.f32 %v7008_v27, %v6801_v18  ;;  %v13053_v17 = vld [vmem:[#allocation2 + $0x4d0] sm:$0xfc]  ;;  %v6814_v48 = vld [vmem:[#allocation2 + $0x4e0] sm:$0x1f]  ;;  %5902 = vst [vmem:[#allocation2 + $0x510] sm:$0xff] %v5767_v37  ;;  %v13065_v8 = vadd.f32 %v7471_v63, %v12968_v3  ;;  %v7468_v47 = vsel %vm7447_vm10, %v7466_v7, %v7467_v11 }
 0x327   : > { %v13055_v28 = vld [vmem:[#allocation2 + $0x4f0] sm:$0x7f]  ;;  %6247 = vst [vmem:[#allocation2 + $0x218] sm:$0xff] %v6040_v33  ;;  %v9790_v36 = vpop.f32.mrb[254].mxu1  ;;  %v13058_v21 = vpop.f32.mrb[254].mxu0  ;;  %v13079_v14 = vadd.f32 %v7468_v47, %v7139_v30  ;;  %v7015_v0 = vrot.slane %v13045_v58, 2  ;;  %v7011_v30 = vsel %vm4043_vm9, %v7009_v19, %v7010_v26 }
 0x328   : > { %v7274_v44 = vld [vmem:[#allocation2 + $0x260] sm:$0x1f]  ;;  %v7025_v56 = vrot.slane %v13055_v28, 2  ;;  %v13067_v39 = vld [vmem:[#allocation2 + $0x4b0] sm:$0x7f]  ;;  %5905 = vst [vmem:[#allocation2 + $0x570] sm:$0xff] %v9790_v36  ;;  %v13085_v53 = vmax.f32 %v13024_v25, %v7804_v9 }
 0x329   : > { %v6812_v43 = vld [vmem:[#allocation2 + $0x4a0] sm:$0x1f]  ;;  %v7476_v2 = vrot.slane %v13058_v21, 3  ;;  %v5770_v60 = vpop.f32.mrb[255].mxu1  ;;  %v13071_v24 = vpop.f32.mrb[255].mxu0  ;;  %v7022_v3 = vrot.slane %v13067_v39, 2 }
 0x32a   : > { %v13076_v46 = vld [vmem:[#allocation2 + $0x490] sm:$0xfc]  ;;  %5903 = vst [vmem:[#allocation2 + $0x530] sm:$0xff] %v5770_v60  ;;  %v7473_v38 = vrot.slane %v13071_v24, 3  ;;  %v7741_v11 = vld [vmem:[#allocation2 + $0xa0] sm:$0x1f]  ;;  %v7166_v31 = vadd.f32 %v7025_v56, %v6814_v48  ;;  %v7017_v48 = vsel %vm4043_vm9, %v7015_v0, %v7016_v49 }
 0x32b   : > { %7686 = vst [vmem:[#allocation2 + $0x1c0] sm:$0xff] %v13065_v8  ;;  %v7627_v42 = vadd.f32 %v7476_v2, %v7274_v44  ;;  %v7272_v40 = vld [vmem:[#allocation2 + $0x220] sm:$0x1f]  ;;  %v7024_v27 = vrot.slane %v13053_v17, 2  ;;  %v7164_v13 = vadd.f32 %v7022_v3, %v6812_v43  ;;  %7684 = vst [vmem:[#allocation2 + $0x180] sm:$0xff] %v13079_v14  ;;  %v7021_v25 = vrot.slane %v13076_v46, 2 }
 0x32c   : > { %v7743_v10 = vld [vmem:[#allocation2 + $0xe0] sm:$0x1f]  ;;  %v7625_v5 = vadd.f32 %v7473_v38, %v7272_v40  ;;  %7230 = vst [vmem:[#allocation2 + $0x4e0] sm:$0x1f] %v7166_v31  ;;  %v7337_v12 = vld [vmem:[#allocation2 + $0x258] sm:$0xf8]  ;;  %v7020_v17 = vsel %vm4043_vm9, %v7018_v32, %v7019_v1 }
 0x32d   : > { %v6799_v59 = vld [vmem:[#allocation2 + $0x300] sm:$0xff]  ;;  %7691 = vst [vmem:[#allocation2 + $0x260] sm:$0x1f] %v7627_v42  ;;  %v9837_v4 = vpop.f32.mrb[0].mxu0  ;;  %v7814_v26 = vrot.slane %v13061_v62, 1  ;;  %v7816_v19 = vsel %vm7447_vm10, %v7741_v11, -inf  ;;  %v7026_v21 = vsel %vm4043_vm9, %v7024_v27, %v7025_v56 }
 0x32e   : > { %v6805_v35 = vld [vmem:[#allocation2 + $0x3c0] sm:$0xff]  ;;  %v13096_v29 = vadd.f32 %v7005_v41, %v6799_v59  ;;  %7228 = vst [vmem:[#allocation2 + $0x4a0] sm:$0x1f] %v7164_v13  ;;  %v13103_v45 = vld [vmem:[#allocation2 + $0x550] sm:$0xfc]  ;;  %v7475_v58 = vrot.slane %v7337_v12, 3  ;;  %v7817_v33 = vmax.f32 %v12951_v57, %v7816_v19 }
 0x32f   : > { %v6803_v18 = vld [vmem:[#allocation2 + $0x380] sm:$0xff]  ;;  %v13101_v55 = vadd.f32 %v7014_v20, %v6805_v35  ;;  %7689 = vst [vmem:[#allocation2 + $0x220] sm:$0x1f] %v7625_v5  ;;  %v9793_v7 = vpop.f32.mrb[0].mxu1  ;;  %6253 = vst [vmem:[#allocation2 + $0x2d8] sm:$0xff] %v9837_v4  ;;  %v6056_v37 = vpop.f32.mrb[1].mxu0 }
 0x330   : > { %v7824_v9 = vsel %vm7447_vm10, %v7743_v10, -inf  ;;  %v13107_v41 = vadd.f32 %v7011_v30, %v6803_v18  ;;  %v13117_v28 = vld [vmem:[#allocation2 + $0x510] sm:$0xfc]  ;;  %v7335_v63 = vld [vmem:[#allocation2 + $0x218] sm:$0xf8]  ;;  %5908 = vst [vmem:[#allocation2 + $0x5d0] sm:$0xff] %v9793_v7  ;;  %v7477_v1 = vsel %vm7447_vm10, %v7475_v58, %v7476_v2  ;;  %v7815_v7 = vmax.f32 %v13061_v62, %v7814_v26 }
 0x331   : > { %v5783_v36 = vpop.f32.mrb[1].mxu1  ;;  %6251 = vst [vmem:[#allocation2 + $0x298] sm:$0xff] %v6056_v37  ;;  %v7806_v57 = vrot.slane %v13085_v53, 1  ;;  %v7030_v22 = vrot.slane %v13103_v45, 2  ;;  %v7472_v44 = vrot.slane %v7335_v63, 3  ;;  %v13123_v49 = vpop.f32.mrb[2].mxu0  ;;  %v7626_v60 = vadd.f32 %v7477_v1, %v13030_v34 }
 0x332   : > { %v6818_v54 = vld [vmem:[#allocation2 + $0x560] sm:$0x1f]  ;;  %v6882_v43 = vld [vmem:[#allocation2 + $0x570] sm:$0x7f]  ;;  %5906 = vst [vmem:[#allocation2 + $0x590] sm:$0xff] %v5783_v36  ;;  %v9794_v52 = vpop.f32.mrb[2].mxu1  ;;  %v7825_v31 = vmax.f32 %v12939_v50, %v7824_v9 }
 0x333   : > { %v7278_v32 = vld [vmem:[#allocation2 + $0x2e0] sm:$0x1f]  ;;  %v7031_v47 = vrot.slane %v6882_v43, 2  ;;  %v6880_v20 = vld [vmem:[#allocation2 + $0x530] sm:$0x7f]  ;;  %5909 = vst [vmem:[#allocation2 + $0x5f0] sm:$0xff] %v9794_v52  ;;  %v7474_v2 = vsel %vm7447_vm10, %v7472_v44, %v7473_v38  ;;  %v7807_v62 = vmax.f32 %v13085_v53, %v7806_v57 }
 0x334   : > { %v7482_v11 = vrot.slane %v13123_v49, 3  ;;  %v5786_v56 = vpop.f32.mrb[3].mxu1  ;;  %v13127_v0 = vpop.f32.mrb[3].mxu0  ;;  %v6809_v42 = vld [vmem:[#allocation2 + $0x440] sm:$0xff]  ;;  %v7028_v40 = vrot.slane %v6880_v20, 2  ;;  %v7818_v34 = vrot.slane %v7817_v33, 4  ;;  %v7624_v13 = vadd.f32 %v7474_v2, %v13037_v61 }
 0x335   : > { %5907 = vst [vmem:[#allocation2 + $0x5b0] sm:$0xff] %v5786_v56  ;;  %v7479_v10 = vrot.slane %v13127_v0, 3  ;;  %v7745_v59 = vld [vmem:[#allocation2 + $0x120] sm:$0x1f]  ;;  %v7027_v18 = vrot.slane %v13117_v28, 2  ;;  %v7170_v30 = vadd.f32 %v7031_v47, %v6818_v54  ;;  %7690 = vst [vmem:[#allocation2 + $0x240] sm:$0xff] %v7626_v60  ;;  %v13136_v12 = vadd.f32 %v7020_v17, %v6809_v42 }
 0x336   : > { %v6807_v35 = vld [vmem:[#allocation2 + $0x400] sm:$0xff]  ;;  %v7631_v50 = vadd.f32 %v7482_v11, %v7278_v32  ;;  %7688 = vst [vmem:[#allocation2 + $0x200] sm:$0xff] %v7624_v13  ;;  %v7341_v45 = vld [vmem:[#allocation2 + $0x2d8] sm:$0xf8]  ;;  %v9841_v58 = vpop.f32.mrb[4].mxu0  ;;  %v7819_v37 = vmax.f32 %v7817_v33, %v7818_v34  ;;  %v7826_v61 = vrot.slane %v7825_v31, 4  ;;  %v7032_v26 = vsel %vm4043_vm9, %v7030_v22, %v7031_v47 }
 0x337   : > { %v6816_v27 = vld [vmem:[#allocation2 + $0x520] sm:$0x1f]  ;;  %v13138_v24 = vadd.f32 %v7017_v48, %v6807_v35  ;;  %7234 = vst [vmem:[#allocation2 + $0x560] sm:$0x1f] %v7170_v30  ;;  %v7832_v9 = vsel %vm7447_vm10, %v7745_v59, -inf  ;;  %v7023_v48 = vsel %vm4043_vm9, %v7021_v25, %v7022_v3  ;;  %v7481_v63 = vrot.slane %v7341_v45, 3 }
 0x338   : > { %v7276_v5 = vld [vmem:[#allocation2 + $0x2a0] sm:$0x1f]  ;;  %v7168_v38 = vadd.f32 %v7028_v40, %v6816_v27  ;;  %7695 = vst [vmem:[#allocation2 + $0x2e0] sm:$0x1f] %v7631_v50  ;;  %v13151_v28 = vld [vmem:[#allocation2 + $0x5d0] sm:$0xfc]  ;;  %v7029_v33 = vsel %vm4043_vm9, %v7027_v18, %v7028_v40  ;;  %v7827_v25 = vmax.f32 %v7825_v31, %v7826_v61  ;;  %v13168_v32 = vmax.f32 %v13021_v15, %v7832_v9 }
 0x339   : > { %v7629_v4 = vadd.f32 %v7479_v10, %v7276_v5  ;;  %v6813_v19 = vld [vmem:[#allocation2 + $0x4c0] sm:$0xff]  ;;  %v7339_v36 = vld [vmem:[#allocation2 + $0x298] sm:$0xf8]  ;;  %v9797_v44 = vpop.f32.mrb[4].mxu1  ;;  %6257 = vst [vmem:[#allocation2 + $0x358] sm:$0xff] %v9841_v58  ;;  %v6072_v3 = vpop.f32.mrb[5].mxu0  ;;  %v7483_v57 = vsel %vm7447_vm10, %v7481_v63, %v7482_v11 }
 0x33a   : > { %v13144_v17 = vadd.f32 %v7026_v21, %v6813_v19  ;;  %7232 = vst [vmem:[#allocation2 + $0x520] sm:$0x1f] %v7168_v38  ;;  %v13156_v21 = vld [vmem:[#allocation2 + $0x590] sm:$0xfc]  ;;  %v7478_v39 = vrot.slane %v7339_v36, 3  ;;  %5912 = vst [vmem:[#allocation2 + $0x650] sm:$0xff] %v9797_v44  ;;  %v7630_v20 = vadd.f32 %v7483_v57, %v13041_v51 }
 0x33b   : > { %7693 = vst [vmem:[#allocation2 + $0x2a0] sm:$0x1f] %v7629_v4  ;;  %v5799_v46 = vpop.f32.mrb[5].mxu1  ;;  %v13161_v54 = vld [vmem:[%s13553_s2 + $0x2] ss:$0 sm:$0xff]  ;;  %v7036_v43 = vrot.slane %v13151_v28, 2 }
 0x33c   : > { %v6822_v1 = vld [vmem:[#allocation2 + $0x5e0] sm:$0x1f]  ;;  %v6886_v53 = vld [vmem:[#allocation2 + $0x5f0] sm:$0x7f]  ;;  %5910 = vst [vmem:[#allocation2 + $0x610] sm:$0xff] %v5799_v46  ;;  %6255 = vst [vmem:[#allocation2 + $0x318] sm:$0xff] %v6072_v3  ;;  %v7480_v0 = vsel %vm7447_vm10, %v7478_v39, %v7479_v10  ;;  %v13184_v4 = vadd.f32 %v13161_v54, %v7815_v7 }
 0x33d   : > { %v9798_v22 = vpop.f32.mrb[6].mxu1  ;;  %v13165_v52 = vpop.f32.mrb[6].mxu0  ;;  %v7820_v49 = vrot.slane %v7819_v37, 2  ;;  %v6811_v47 = vld [vmem:[#allocation2 + $0x480] sm:$0xff]  ;;  %v7037_v60 = vrot.slane %v6886_v53, 2  ;;  %v13176_v59 = vadd.f32 %v7480_v0, %v13043_v16  ;;  %v7033_v51 = vrot.slane %v13156_v21, 2 }
 0x33e   : > { %v6884_v56 = vld [vmem:[#allocation2 + $0x5b0] sm:$0x7f]  ;;  %5913 = vst [vmem:[#allocation2 + $0x670] sm:$0xff] %v9798_v22  ;;  %v7488_v31 = vrot.slane %v13165_v52, 3  ;;  %v5802_v11 = vpop.f32.mrb[7].mxu1  ;;  %v13173_v42 = vpop.f32.mrb[7].mxu0  ;;  %v13180_v50 = vadd.f32 %v7023_v48, %v6811_v47  ;;  %v13190_v48 = vadd.f32 %v13161_v54, %v7807_v62 }
 0x33f   : > { %v6820_v40 = vld [vmem:[#allocation2 + $0x5a0] sm:$0x1f]  ;;  %v7034_v2 = vrot.slane %v6884_v56, 2  ;;  %5911 = vst [vmem:[#allocation2 + $0x630] sm:$0xff] %v5802_v11  ;;  %v7485_v34 = vrot.slane %v13173_v42, 3  ;;  %v7821_v35 = vmax.f32 %v7819_v37, %v7820_v49  ;;  %v7174_v18 = vadd.f32 %v7037_v60, %v6822_v1  ;;  %7694 = vst [vmem:[#allocation2 + $0x2c0] sm:$0xff] %v7630_v20 }
 0x340   : > { %v7282_v15 = vld [vmem:[#allocation2 + $0x360] sm:$0x1f]  ;;  %v7828_v13 = vrot.slane %v7827_v25, 2  ;;  %7692 = vst [vmem:[#allocation2 + $0x280] sm:$0xff] %v13176_v59  ;;  %v7345_v58 = vld [vmem:[#allocation2 + $0x358] sm:$0xf8]  ;;  %v7038_v39 = vsel %vm4043_vm9, %v7036_v43, %v7037_v60 }
 0x341   : > { %v7635_v10 = vadd.f32 %v7488_v31, %v7282_v15  ;;  %v7280_v30 = vld [vmem:[#allocation2 + $0x320] sm:$0x1f]  ;;  %v7172_v38 = vadd.f32 %v7034_v2, %v6820_v40  ;;  %7238 = vst [vmem:[#allocation2 + $0x5e0] sm:$0x1f] %v7174_v18  ;;  %v9845_v37 = vpop.f32.mrb[8].mxu0  ;;  %v7822_v61 = vrot.slane %v7821_v35, 1  ;;  %v7035_v46 = vsel %vm4043_vm9, %v7033_v51, %v7034_v2 }
 0x342   : > { %v7747_v27 = vld [vmem:[#allocation2 + $0x160] sm:$0x1f]  ;;  %v7633_v16 = vadd.f32 %v7485_v34, %v7280_v30  ;;  %v7834_v9 = vrot.slane %v13168_v32, 4  ;;  %v6889_v63 = vld [vmem:[#allocation2 + $0x650] sm:$0xfc]  ;;  %v7487_v36 = vrot.slane %v7345_v58, 3 }
 0x343   : > { %v6817_v5 = vld [vmem:[#allocation2 + $0x540] sm:$0xff]  ;;  %7699 = vst [vmem:[#allocation2 + $0x360] sm:$0x1f] %v7635_v10  ;;  %7236 = vst [vmem:[#allocation2 + $0x5a0] sm:$0x1f] %v7172_v38  ;;  %v9801_v7 = vpop.f32.mrb[8].mxu1  ;;  %v7823_v53 = vmax.f32 %v7821_v35, %v7822_v61 }
 0x344   : > { %v13186_v19 = vadd.f32 %v7032_v26, %v6817_v5  ;;  %v6815_v45 = vld [vmem:[#allocation2 + $0x500] sm:$0xff]  ;;  %7697 = vst [vmem:[#allocation2 + $0x320] sm:$0x1f] %v7633_v16  ;;  %6261 = vst [vmem:[#allocation2 + $0x3d8] sm:$0xff] %v9845_v37  ;;  %v6088_v44 = vpop.f32.mrb[9].mxu0  ;;  %v7829_v26 = vmax.f32 %v7827_v25, %v7828_v13  ;;  %v7840_v21 = vsel %vm7447_vm10, %v7747_v27, -inf  ;;  %v7489_v47 = vsel %vm7447_vm10, %v7487_v36, %v7488_v31 }
 0x345   : > { %v13192_v28 = vadd.f32 %v7029_v33, %v6815_v45  ;;  %v7042_v3 = vrot.slane %v6889_v63, 2  ;;  %v6887_v1 = vld [vmem:[#allocation2 + $0x610] sm:$0xfc]  ;;  %v7343_v62 = vld [vmem:[#allocation2 + $0x318] sm:$0xf8]  ;;  %5916 = vst [vmem:[#allocation2 + $0x6d0] sm:$0xff] %v9801_v7  ;;  %v7835_v43 = vmax.f32 %v13168_v32, %v7834_v9  ;;  %v13202_v56 = vadd.f32 %v7489_v47, %v13048_v6 }
 0x346   : > { %v5815_v33 = vpop.f32.mrb[9].mxu1  ;;  %6259 = vst [vmem:[#allocation2 + $0x398] sm:$0xff] %v6088_v44  ;;  %v7039_v57 = vrot.slane %v6887_v1, 2  ;;  %v7484_v22 = vrot.slane %v7343_v62, 3  ;;  %v6826_v52 = vld [vmem:[#allocation2 + $0x660] sm:$0x1f]  ;;  %v7841_v2 = vmax.f32 %v12997_v23, %v7840_v21 }
 0x347   : > { %v6890_v49 = vld [vmem:[#allocation2 + $0x670] sm:$0x7f]  ;;  %5914 = vst [vmem:[#allocation2 + $0x690] sm:$0xff] %v5815_v33  ;;  %v9802_v25 = vpop.f32.mrb[10].mxu1  ;;  %v13198_v20 = vpop.f32.mrb[10].mxu0  ;;  %v7830_v51 = vrot.slane %v7829_v26, 1  ;;  %v13226_v33 = vadd.f32 %v13161_v54, %v7823_v53 }
 0x348   : > { %v7043_v60 = vrot.slane %v6890_v49, 2  ;;  %v6888_v0 = vld [vmem:[#allocation2 + $0x630] sm:$0x7f]  ;;  %5917 = vst [vmem:[#allocation2 + $0x6f0] sm:$0xff] %v9802_v25  ;;  %v7494_v11 = vrot.slane %v13198_v20, 3  ;;  %v5818_v42 = vpop.f32.mrb[11].mxu1  ;;  %v7486_v15 = vsel %vm7447_vm10, %v7484_v22, %v7485_v34 }
 0x349   : > { %v13205_v40 = vpop.f32.mrb[11].mxu0  ;;  %v7040_v31 = vrot.slane %v6888_v0, 2  ;;  %v7286_v35 = vld [vmem:[#allocation2 + $0x3e0] sm:$0x1f]  ;;  %5915 = vst [vmem:[#allocation2 + $0x6b0] sm:$0xff] %v5818_v42  ;;  %7698 = vst [vmem:[#allocation2 + $0x340] sm:$0xff] %v13202_v56  ;;  %v13213_v27 = vadd.f32 %v7486_v15, %v13096_v29  ;;  %v7831_v36 = vmax.f32 %v7829_v26, %v7830_v51 }
 0x34a   : > { %v7491_v32 = vrot.slane %v13205_v40, 3  ;;  %v6821_v18 = vld [vmem:[#allocation2 + $0x5c0] sm:$0xff]  ;;  %v7044_v6 = vsel %vm4043_vm9, %v7042_v3, %v7043_v60  ;;  %v7178_v10 = vadd.f32 %v7043_v60, %v6826_v52  ;;  %v7639_v13 = vadd.f32 %v7494_v11, %v7286_v35  ;;  %v9849_v29 = vpop.f32.mrb[12].mxu0 }
 0x34b   : > { %v6824_v30 = vld [vmem:[#allocation2 + $0x620] sm:$0x1f]  ;;  %v13215_v5 = vadd.f32 %v7038_v39, %v6821_v18  ;;  %v7041_v16 = vsel %vm4043_vm9, %v7039_v57, %v7040_v31  ;;  %7696 = vst [vmem:[#allocation2 + $0x300] sm:$0xff] %v13213_v27  ;;  %v7349_v63 = vld [vmem:[#allocation2 + $0x3d8] sm:$0xf8]  ;;  %v7836_v7 = vrot.slane %v7835_v43, 2  ;;  %v13231_v15 = vadd.f32 %v13161_v54, %v7831_v36 }
 0x34c   : > { %v7284_v23 = vld [vmem:[#allocation2 + $0x3a0] sm:$0x1f]  ;;  %v7176_v45 = vadd.f32 %v7040_v31, %v6824_v30  ;;  %7242 = vst [vmem:[#allocation2 + $0x660] sm:$0x1f] %v7178_v10  ;;  %7703 = vst [vmem:[#allocation2 + $0x3e0] sm:$0x1f] %v7639_v13 }
 0x34d   : > { %v6819_v34 = vld [vmem:[#allocation2 + $0x580] sm:$0xff]  ;;  %v7637_v58 = vadd.f32 %v7491_v32, %v7284_v23  ;;  %v7842_v44 = vrot.slane %v7841_v2, 4  ;;  %v6893_v3 = vld [vmem:[#allocation2 + $0x6d0] sm:$0xfc]  ;;  %v7493_v1 = vrot.slane %v7349_v63, 3  ;;  %6265 = vst [vmem:[#allocation2 + $0x458] sm:$0xff] %v9849_v29  ;;  %v7837_v47 = vmax.f32 %v7835_v43, %v7836_v7 }
 0x34e   : > { %v6825_v38 = vld [vmem:[#allocation2 + $0x640] sm:$0xff]  ;;  %v13218_v61 = vadd.f32 %v7035_v46, %v6819_v34  ;;  %7240 = vst [vmem:[#allocation2 + $0x620] sm:$0x1f] %v7176_v45  ;;  %v7347_v62 = vld [vmem:[#allocation2 + $0x398] sm:$0xf8]  ;;  %v9805_v46 = vpop.f32.mrb[12].mxu1 }
 0x34f   : > { %v7749_v37 = vld [vmem:[#allocation2 + $0x1a0] sm:$0x1f]  ;;  %v13221_v21 = vadd.f32 %v7044_v6, %v6825_v38  ;;  %7701 = vst [vmem:[#allocation2 + $0x3a0] sm:$0x1f] %v7637_v58  ;;  %v7048_v57 = vrot.slane %v6893_v3, 2  ;;  %v7490_v52 = vrot.slane %v7347_v62, 3  ;;  %v7843_v25 = vmax.f32 %v7841_v2, %v7842_v44 }
 0x350   : > { %v6823_v9 = vld [vmem:[#allocation2 + $0x600] sm:$0xff]  ;;  %v6891_v22 = vld [vmem:[#allocation2 + $0x690] sm:$0xfc]  ;;  %5920 = vst [vmem:[#allocation2 + $0x750] sm:$0xff] %v9805_v46  ;;  %v5831_v26 = vpop.f32.mrb[13].mxu1  ;;  %v6104_v49 = vpop.f32.mrb[13].mxu0  ;;  %v7495_v42 = vsel %vm7447_vm10, %v7493_v1, %v7494_v11 }
 0x351   : > { %v13223_v39 = vadd.f32 %v7041_v16, %v6823_v9  ;;  %v7045_v20 = vrot.slane %v6891_v22, 2  ;;  %v6830_v60 = vld [vmem:[#allocation2 + $0x6e0] sm:$0x1f]  ;;  %v6894_v0 = vld [vmem:[#allocation2 + $0x6f0] sm:$0x7f]  ;;  %5918 = vst [vmem:[#allocation2 + $0x710] sm:$0xff] %v5831_v26  ;;  %v13234_v51 = vadd.f32 %v7495_v42, %v13101_v55  ;;  %v7492_v18 = vsel %vm7447_vm10, %v7490_v52, %v7491_v32 }
 0x352   : > { %6263 = vst [vmem:[#allocation2 + $0x418] sm:$0xff] %v6104_v49  ;;  %v9806_v40 = vpop.f32.mrb[14].mxu1  ;;  %v9850_v31 = vpop.f32.mrb[14].mxu0  ;;  %v7848_v53 = vsel %vm7447_vm10, %v7749_v37, -inf  ;;  %v7049_v35 = vrot.slane %v6894_v0, 2  ;;  %v13240_v13 = vadd.f32 %v7492_v18, %v13107_v41  ;;  %v7838_v38 = vrot.slane %v7837_v47, 1 }
 0x353   : > { %v6828_v43 = vld [vmem:[#allocation2 + $0x6a0] sm:$0x1f]  ;;  %v6892_v2 = vld [vmem:[#allocation2 + $0x6b0] sm:$0x7f]  ;;  %5921 = vst [vmem:[#allocation2 + $0x770] sm:$0xff] %v9806_v40  ;;  %v7500_v6 = vrot.slane %v9850_v31, 3  ;;  %v7849_v46 = vmax.f32 %v13079_v14, %v7848_v53 }
 0x354   : > { %v5834_v11 = vpop.f32.mrb[15].mxu1  ;;  %v13237_v10 = vpop.f32.mrb[15].mxu0  ;;  %v7046_v30 = vrot.slane %v6892_v2, 2  ;;  %v7290_v23 = vld [vmem:[#allocation2 + $0x460] sm:$0x1f]  ;;  %v7050_v16 = vsel %vm4043_vm9, %v7048_v57, %v7049_v35  ;;  %v7182_v45 = vadd.f32 %v7049_v35, %v6830_v60  ;;  %7702 = vst [vmem:[#allocation2 + $0x3c0] sm:$0xff] %v13234_v51  ;;  %v7839_v1 = vmax.f32 %v7837_v47, %v7838_v38 }
 0x355   : > { %5919 = vst [vmem:[#allocation2 + $0x730] sm:$0xff] %v5834_v11  ;;  %v7497_v34 = vrot.slane %v13237_v10, 3  ;;  %v6829_v55 = vld [vmem:[#allocation2 + $0x6c0] sm:$0xff]  ;;  %v7643_v32 = vadd.f32 %v7500_v6, %v7290_v23  ;;  %v7844_v9 = vrot.slane %v7843_v25, 2  ;;  %7700 = vst [vmem:[#allocation2 + $0x380] sm:$0xff] %v13240_v13  ;;  %v9853_v57 = vpop.f32.mrb[16].mxu0 }
 0x356   : > { %v7288_v58 = vld [vmem:[#allocation2 + $0x420] sm:$0x1f]  ;;  %v7181_v63 = vadd.f32 %v7050_v16, %v6829_v55  ;;  %v7047_v41 = vsel %vm4043_vm9, %v7045_v20, %v7046_v30  ;;  %v7180_v36 = vadd.f32 %v7046_v30, %v6828_v43  ;;  %7246 = vst [vmem:[#allocation2 + $0x6e0] sm:$0x1f] %v7182_v45  ;;  %v7353_v3 = vld [vmem:[#allocation2 + $0x458] sm:$0xf8]  ;;  %v13253_v42 = vadd.f32 %v13161_v54, %v7839_v1 }
 0x357   : > { %v7751_v37 = vld [vmem:[#allocation2 + $0x1e0] sm:$0x1f]  ;;  %v7641_v7 = vadd.f32 %v7497_v34, %v7288_v58  ;;  %7707 = vst [vmem:[#allocation2 + $0x460] sm:$0x1f] %v7643_v32  ;;  %v7845_v62 = vmax.f32 %v7843_v25, %v7844_v9  ;;  %v6897_v22 = vld [vmem:[#allocation2 + $0x750] sm:$0xfc] }
 0x358   : > { %v6827_v29 = vld [vmem:[#allocation2 + $0x680] sm:$0xff]  ;;  %7245 = vst [vmem:[#allocation2 + $0x6c0] sm:$0xff] %v7181_v63  ;;  %7244 = vst [vmem:[#allocation2 + $0x6a0] sm:$0x1f] %v7180_v36  ;;  %v7499_v52 = vrot.slane %v7353_v3, 3  ;;  %v7856_v26 = vsel %vm7447_vm10, %v7751_v37, -inf }
 0x359   : > { %v7179_v44 = vadd.f32 %v7047_v41, %v6827_v29  ;;  %7705 = vst [vmem:[#allocation2 + $0x420] sm:$0x1f] %v7641_v7  ;;  %v8095_v49 = vmax.f32 %v13190_v48, 0.0  ;;  %v8096_v20 = vmax.f32 %v13184_v4, 0.0  ;;  %6269 = vst [vmem:[#allocation2 + $0x4d8] sm:$0xff] %v9853_v57  ;;  %v7054_v60 = vrot.slane %v6897_v22, 2 }
 0x35a   : > { %v6895_v0 = vld [vmem:[#allocation2 + $0x710] sm:$0xfc]  ;;  %v7351_v47 = vld [vmem:[#allocation2 + $0x418] sm:$0xf8]  ;;  %v7846_v25 = vrot.slane %v7845_v62, 1  ;;  %v7857_v14 = vmax.f32 %v13065_v8, %v7856_v26  ;;  %v7501_v35 = vsel %vm7447_vm10, %v7499_v52, %v7500_v6  ;;  %v7850_v43 = vrot.slane %v7849_v46, 4 }
 0x35b   : > { %7243 = vst [vmem:[#allocation2 + $0x680] sm:$0xff] %v7179_v44  ;;  %v7051_v40 = vrot.slane %v6895_v0, 2  ;;  %v7496_v31 = vrot.slane %v7351_v47, 3  ;;  %v6898_v53 = vld [vmem:[#allocation2 + $0x770] sm:$0x7f]  ;;  %v9809_v2 = vpop.f32.mrb[16].mxu1  ;;  %v7642_v4 = vadd.f32 %v7501_v35, %v13136_v12 }
 0x35c   : > { %v7055_v18 = vrot.slane %v6898_v53, 2  ;;  %v6896_v11 = vld [vmem:[#allocation2 + $0x730] sm:$0x7f]  ;;  %v7847_v10 = vmax.f32 %v7845_v62, %v7846_v25  ;;  %v7858_v30 = vrot.slane %v7857_v14, 4  ;;  %5924 = vst [vmem:[#allocation2 + $0x7d0] sm:$0xff] %v9809_v2  ;;  %v5847_v23 = vpop.f32.mrb[17].mxu1  ;;  %v7851_v45 = vmax.f32 %v7849_v46, %v7850_v43 }
 0x35d   : > { %v6120_v38 = vpop.f32.mrb[17].mxu0  ;;  %v6834_v8 = vld [vmem:[#allocation2 + $0x760] sm:$0x1f]  ;;  %v7052_v55 = vrot.slane %v6896_v11, 2  ;;  %v7498_v16 = vsel %vm7447_vm10, %v7496_v31, %v7497_v34  ;;  %v8097_v32 = vmax.f32 %v13226_v33, 0.0  ;;  %5922 = vst [vmem:[#allocation2 + $0x790] sm:$0xff] %v5847_v23 }
 0x35e   : > { %6267 = vst [vmem:[#allocation2 + $0x498] sm:$0xff] %v6120_v38  ;;  %v9810_v6 = vpop.f32.mrb[18].mxu1  ;;  %v13259_v58 = vpop.f32.mrb[18].mxu0  ;;  %v6833_v37 = vld [vmem:[#allocation2 + $0x740] sm:$0xff]  ;;  %v7056_v12 = vsel %vm4043_vm9, %v7054_v60, %v7055_v18  ;;  %v7186_v9 = vadd.f32 %v7055_v18, %v6834_v8  ;;  %7706 = vst [vmem:[#allocation2 + $0x440] sm:$0xff] %v7642_v4  ;;  %v7640_v29 = vadd.f32 %v7498_v16, %v13138_v24  ;;  %v7852_v1 = vrot.slane %v7851_v45, 2 }
 0x35f   : > { %v6832_v63 = vld [vmem:[#allocation2 + $0x720] sm:$0x1f]  ;;  %v7859_v41 = vmax.f32 %v7857_v14, %v7858_v30  ;;  %5925 = vst [vmem:[#allocation2 + $0x7f0] sm:$0xff] %v9810_v6  ;;  %v5850_v36 = vpop.f32.mrb[19].mxu1  ;;  %v13263_v34 = vpop.f32.mrb[19].mxu0  ;;  %v13265_v7 = vadd.f32 %v7056_v12, %v6833_v37  ;;  %v7053_v44 = vsel %vm4043_vm9, %v7051_v40, %v7052_v55  ;;  %v8068_v24 = vadd.f32 %v13161_v54, %v7847_v10 }
 0x360   : > { %v6831_v33 = vld [vmem:[#allocation2 + $0x700] sm:$0xff]  ;;  %v7184_v3 = vadd.f32 %v7052_v55, %v6832_v63  ;;  %5923 = vst [vmem:[#allocation2 + $0x7b0] sm:$0xff] %v5850_v36  ;;  %7250 = vst [vmem:[#allocation2 + $0x760] sm:$0x1f] %v7186_v9  ;;  %v8098_v57 = vmax.f32 %v13231_v15, 0.0  ;;  %v9857_v52 = vpop.f32.mrb[20].mxu0  ;;  %v7853_v26 = vmax.f32 %v7851_v45, %v7852_v1 }
 0x361   : > { %v13268_v62 = vadd.f32 %v7053_v44, %v6831_v33  ;;  %7704 = vst [vmem:[#allocation2 + $0x400] sm:$0xff] %v7640_v29  ;;  %v7860_v46 = vrot.slane %v7859_v41, 2  ;;  %v7357_v22 = vld [vmem:[#allocation2 + $0x4d8] sm:$0xf8]  ;;  %v8099_v60 = vmax.f32 %v13253_v42, 0.0  ;;  %v8159_v0 = vrot.slane %v8096_v20, 7 }
 0x362   : > { %7248 = vst [vmem:[#allocation2 + $0x720] sm:$0x1f] %v7184_v3  ;;  %v8161_v47 = vrot.slane %v8097_v32, 6  ;;  %6273 = vst [vmem:[#allocation2 + $0x558] sm:$0xff] %v9857_v52  ;;  %v13273_v25 = vpop.f32.mrb[20].mxu1  ;;  %v6136_v14 = vpop.f32.mrb[21].mxu0 }
 0x363   : > { %v7861_v40 = vmax.f32 %v7859_v41, %v7860_v46  ;;  %v8100_v31 = vmax.f32 %v8068_v24, 0.0  ;;  %v8163_v53 = vrot.slane %v8098_v57, 5  ;;  %v7505_v35 = vrot.slane %v7357_v22, 3  ;;  %6271 = vst [vmem:[#allocation2 + $0x518] sm:$0xff] %v6136_v14  ;;  %v13275_v43 = vpop.f32.mrb[21].mxu1  ;;  %v13277_v15 = vpop.f32.mrb[22].mxu0 }
 0x364   : > { %v7854_v2 = vrot.slane %v7853_v26, 1  ;;  %v8160_v42 = vsel %vm2194_vm2, %v8159_v0, %v8095_v49  ;;  %v8165_v20 = vrot.slane %v8099_v60, 4  ;;  %v6901_v18 = vld [vmem:[#allocation2 + $0x7d0] sm:$0xfc]  ;;  %v7506_v4 = vrot.slane %v13259_v58, 3  ;;  %v13283_v11 = vpop.f32.mrb[23].mxu0 }
 0x365   : > { %v7862_v10 = vrot.slane %v7861_v40, 1  ;;  %v8162_v30 = vsel %vm2197_vm3, %v8161_v47, %v8160_v42  ;;  %v8167_v23 = vrot.slane %v8100_v31, 3  ;;  %v7060_v38 = vrot.slane %v6901_v18, 2  ;;  %v6899_v8 = vld [vmem:[#allocation2 + $0x790] sm:$0xfc]  ;;  %v6837_v36 = vld [vmem:[#allocation2 + $0x7c0] sm:$0xff] }
 0x366   : > { %v7855_v55 = vmax.f32 %v7853_v26, %v7854_v2  ;;  %v8164_v16 = vsel %vm2200_vm4, %v8163_v53, %v8162_v30  ;;  %v7057_v45 = vrot.slane %v6899_v8, 2  ;;  %v7355_v32 = vld [vmem:[#allocation2 + $0x498] sm:$0xf8]  ;;  %v6902_v48 = vld [vmem:[#allocation2 + $0x7f0] sm:$0x7f]  ;;  %v7507_v49 = vsel %vm7447_vm10, %v7505_v35, %v7506_v4  ;;  %v9861_v26 = vpop.f32.mrb[24].mxu0 }
 0x367   : > { %v7863_v6 = vmax.f32 %v7861_v40, %v7862_v10  ;;  %v8166_v37 = vsel %vm2203_vm5, %v8165_v20, %v8164_v16  ;;  %v7502_v58 = vrot.slane %v7355_v32, 3  ;;  %v7061_v12 = vrot.slane %v6902_v48, 2  ;;  %v7294_v9 = vld [vmem:[#allocation2 + $0x4e0] sm:$0x1f]  ;;  %v6900_v63 = vld [vmem:[#allocation2 + $0x7b0] sm:$0x7f] }
 0x368   : > { %v8069_v29 = vadd.f32 %v13161_v54, %v7855_v55  ;;  %v8168_v41 = vsel %vm2206_vm6, %v8167_v23, %v8166_v37  ;;  %v6838_v33 = vld [vmem:[#allocation2 + $0x7e0] sm:$0x1f]  ;;  %v13292_v44 = vadd.f32 %v7507_v49, %v13144_v17  ;;  %v7647_v3 = vadd.f32 %v7506_v4, %v7294_v9  ;;  %6277 = vst [vmem:[#allocation2 + $0x5d8] sm:$0xff] %v9861_v26  ;;  %v6152_v40 = vpop.f32.mrb[25].mxu0 }
 0x369   : > { %v8070_v1 = vadd.f32 %v13161_v54, %v7863_v6  ;;  %v7062_v46 = vsel %vm4043_vm9, %v7060_v38, %v7061_v12  ;;  %v7190_v24 = vadd.f32 %v7061_v12, %v6838_v33  ;;  %v6836_v57 = vld [vmem:[#allocation2 + $0x7a0] sm:$0x1f]  ;;  %v7058_v22 = vrot.slane %v6900_v63, 2  ;;  %v7361_v52 = vld [vmem:[#allocation2 + $0x558] sm:$0xf8]  ;;  %6275 = vst [vmem:[#allocation2 + $0x598] sm:$0xff] %v6152_v40 }
 0x36a   : > { %v8101_v60 = vmax.f32 %v8069_v29, 0.0  ;;  %v13296_v0 = vadd.f32 %v7062_v46, %v6837_v36  ;;  %7710 = vst [vmem:[#allocation2 + $0x4c0] sm:$0xff] %v13292_v44  ;;  %7711 = vst [vmem:[#allocation2 + $0x4e0] sm:$0x1f] %v7647_v3  ;;  %v7503_v47 = vrot.slane %v13263_v34, 3  ;;  %v7511_v17 = vrot.slane %v7361_v52, 3 }
 0x36b   : > { %v7359_v14 = vld [vmem:[#allocation2 + $0x518] sm:$0xf8]  ;;  %v8102_v31 = vmax.f32 %v8070_v1, 0.0  ;;  %7254 = vst [vmem:[#allocation2 + $0x7e0] sm:$0x1f] %v7190_v24  ;;  %v6835_v53 = vld [vmem:[#allocation2 + $0x780] sm:$0xff]  ;;  %v7059_v35 = vsel %vm4043_vm9, %v7057_v45, %v7058_v22  ;;  %v7188_v2 = vadd.f32 %v7058_v22, %v6836_v57  ;;  %v13313_v45 = vadd.f32 %v13275_v43, %v13273_v25 }
 0x36c   : > { %v7292_v42 = vld [vmem:[#allocation2 + $0x4a0] sm:$0x1f]  ;;  %v7508_v20 = vrot.slane %v7359_v14, 3  ;;  %v13301_v18 = vpop.f32.mrb[26].mxu0  ;;  %v8169_v4 = vrot.slane %v8101_v60, 2  ;;  %v13303_v10 = vadd.f32 %v7059_v35, %v6835_v53  ;;  %v7504_v34 = vsel %vm7447_vm10, %v7502_v58, %v7503_v47 }
 0x36d   : > { %v7645_v30 = vadd.f32 %v7503_v47, %v7292_v42  ;;  %v13306_v23 = vpop.f32.mrb[27].mxu0  ;;  %v7753_v38 = vld [vmem:[#allocation2 + $0x220] sm:$0x1f]  ;;  %v8171_v55 = vrot.slane %v8102_v31, 1  ;;  %7252 = vst [vmem:[#allocation2 + $0x7a0] sm:$0x1f] %v7188_v2  ;;  %v13309_v16 = vadd.f32 %v7504_v34, %v13180_v50 }
 0x36e   : > { %v7755_v8 = vld [vmem:[#allocation2 + $0x260] sm:$0x1f]  ;;  %v7512_v48 = vrot.slane %v13277_v15, 3  ;;  %v8170_v6 = vsel %vm2209_vm7, %v8169_v4, %v8168_v41  ;;  %v7509_v58 = vrot.slane %v13283_v11, 3  ;;  %v7518_v12 = vrot.slane %v13301_v18, 3  ;;  %v9865_v26 = vpop.f32.mrb[28].mxu0 }
 0x36f   : > { %v7298_v32 = vld [vmem:[#allocation2 + $0x560] sm:$0x1f]  ;;  %7709 = vst [vmem:[#allocation2 + $0x4a0] sm:$0x1f] %v7645_v30  ;;  %v7515_v9 = vrot.slane %v13306_v23, 3  ;;  %v8172_v63 = vsel %vm2212_vm8, %v8171_v55, %v8170_v6  ;;  %7708 = vst [vmem:[#allocation2 + $0x480] sm:$0xff] %v13309_v16 }
 0x370   : > { %v7759_v49 = vld [vmem:[#allocation2 + $0x2e0] sm:$0x1f]  ;;  %v7513_v25 = vsel %vm7447_vm10, %v7511_v17, %v7512_v48  ;;  %v7651_v43 = vadd.f32 %v7512_v48, %v7298_v32  ;;  %v7864_v41 = vsel %vm7447_vm10, %v7753_v38, -inf  ;;  %9911 = vmatprep.mubr.f32.mxu1 %v8172_v63  ;;  %v7510_v33 = vsel %vm7447_vm10, %v7508_v20, %v7509_v58  ;;  %v7365_v22 = vld [vmem:[#allocation2 + $0x5d8] sm:$0xf8]  ;;  %6281 = vst [vmem:[#allocation2 + $0x658] sm:$0xff] %v9865_v26 }
 0x371   : > { %v7296_v37 = vld [vmem:[#allocation2 + $0x520] sm:$0x1f]  ;;  %v13325_v11 = vadd.f32 %v7513_v25, %v13186_v19  ;;  %v13329_v57 = vadd.f32 %v7510_v33, %v13192_v28  ;;  %v7872_v17 = vsel %vm7447_vm10, %v7755_v8, -inf  ;;  %v7517_v19 = vrot.slane %v7365_v22, 3  ;;  %v7363_v14 = vld [vmem:[#allocation2 + $0x598] sm:$0xf8] }
 0x372   : > { %v7752_v50 = vld [vmem:[#allocation2 + $0x200] sm:$0xff]  ;;  %v7649_v3 = vadd.f32 %v7509_v58, %v7296_v37  ;;  %7715 = vst [vmem:[#allocation2 + $0x560] sm:$0x1f] %v7651_v43  ;;  %v6168_v40 = vpop.f32.mrb[29].mxu0  ;;  %v7888_v28 = vsel %vm7447_vm10, %v7759_v49, -inf  ;;  %v7514_v35 = vrot.slane %v7363_v14, 3 }
 0x373   : > { %v7302_v15 = vld [vmem:[#allocation2 + $0x5e0] sm:$0x1f]  ;;  %v7865_v47 = vmax.f32 %v7752_v50, %v7864_v41  ;;  %7714 = vst [vmem:[#allocation2 + $0x540] sm:$0xff] %v13325_v11  ;;  %7712 = vst [vmem:[#allocation2 + $0x500] sm:$0xff] %v13329_v57  ;;  %v9866_v2 = vpop.f32.mrb[30].mxu0  ;;  %v9238_v34 = vpop.f32.mrb[22].mxu1  ;;  %v7519_v30 = vsel %vm7447_vm10, %v7517_v19, %v7518_v12 }
 0x374   : > { %v7754_v29 = vld [vmem:[#allocation2 + $0x240] sm:$0xff]  ;;  %v7655_v1 = vadd.f32 %v7518_v12, %v7302_v15  ;;  %7713 = vst [vmem:[#allocation2 + $0x520] sm:$0x1f] %v7649_v3  ;;  %6279 = vst [vmem:[#allocation2 + $0x618] sm:$0xff] %v6168_v40  ;;  %v7524_v23 = vrot.slane %v9866_v2, 3  ;;  %v6171_v38 = vpop.f32.mrb[31].mxu0  ;;  %v13340_v48 = vadd.f32 %v7519_v30, %v13215_v5  ;;  %v7516_v49 = vsel %vm7447_vm10, %v7514_v35, %v7515_v9 }
 0x375   : > { %v7757_v36 = vld [vmem:[#allocation2 + $0x2a0] sm:$0x1f]  ;;  %v7873_v31 = vmax.f32 %v7754_v29, %v7872_v17  ;;  %v7866_v20 = vrot.slane %v7865_v47, 4  ;;  %v9239_v32 = vpop.f32.mrb[23].mxu1  ;;  %v7521_v37 = vrot.slane %v6171_v38, 3  ;;  %v13346_v63 = vadd.f32 %v7516_v49, %v13218_v61 }
 0x376   : > { %v7300_v46 = vld [vmem:[#allocation2 + $0x5a0] sm:$0x1f]  ;;  %7719 = vst [vmem:[#allocation2 + $0x5e0] sm:$0x1f] %v7655_v1  ;;  %v7880_v53 = vsel %vm7447_vm10, %v7757_v36, -inf  ;;  %7718 = vst [vmem:[#allocation2 + $0x5c0] sm:$0xff] %v13340_v48 }
 0x377   : > { %v7758_v24 = vld [vmem:[#allocation2 + $0x2c0] sm:$0xff]  ;;  %v7653_v52 = vadd.f32 %v7515_v9, %v7300_v46  ;;  %v7881_v18 = vmax.f32 %v13176_v59, %v7880_v53  ;;  %v7874_v8 = vrot.slane %v7873_v31, 4  ;;  %v7867_v50 = vmax.f32 %v7865_v47, %v7866_v20  ;;  %7716 = vst [vmem:[#allocation2 + $0x580] sm:$0xff] %v13346_v63  ;;  %v7369_v3 = vld [vmem:[#allocation2 + $0x658] sm:$0xf8] }
 0x378   : > { %v7761_v60 = vld [vmem:[#allocation2 + $0x320] sm:$0x1f]  ;;  %v7889_v4 = vmax.f32 %v7758_v24, %v7888_v28  ;;  %v13343_v59 = vadd.f32 %v9239_v32, %v9238_v34  ;;  %v7523_v26 = vrot.slane %v7369_v3, 3 }
 0x379   : > { %7717 = vst [vmem:[#allocation2 + $0x5a0] sm:$0x1f] %v7653_v52  ;;  %v7763_v42 = vld [vmem:[#allocation2 + $0x360] sm:$0x1f]  ;;  %v7896_v55 = vsel %vm7447_vm10, %v7761_v60, -inf  ;;  %v7875_v43 = vmax.f32 %v7873_v31, %v7874_v8  ;;  %v7868_v29 = vrot.slane %v7867_v50, 2 }
 0x37a   : > { %v7306_v6 = vld [vmem:[#allocation2 + $0x660] sm:$0x1f]  ;;  %v7882_v5 = vrot.slane %v7881_v18, 4  ;;  %v7890_v36 = vrot.slane %v7889_v4, 4  ;;  %v7897_v41 = vmax.f32 %v13213_v27, %v7896_v55  ;;  %v7904_v33 = vsel %vm7447_vm10, %v7763_v42, -inf  ;;  %v9869_v52 = vpop.f32.mrb[32].mxu0 }
 0x37b   : > { %v7765_v58 = vld [vmem:[#allocation2 + $0x3a0] sm:$0x1f]  ;;  %v7659_v12 = vadd.f32 %v7524_v23, %v7306_v6  ;;  %v7876_v9 = vrot.slane %v7875_v43, 2  ;;  %v7869_v1 = vmax.f32 %v7867_v50, %v7868_v29  ;;  %v7905_v22 = vmax.f32 %v13202_v56, %v7904_v33  ;;  %v7367_v60 = vld [vmem:[#allocation2 + $0x618] sm:$0xf8]  ;;  %6285 = vst [vmem:[#allocation2 + $0x6d8] sm:$0xff] %v9869_v52 }
 0x37c   : > { %v7304_v25 = vld [vmem:[#allocation2 + $0x620] sm:$0x1f]  ;;  %v7912_v61 = vsel %vm7447_vm10, %v7765_v58, -inf  ;;  %v7883_v46 = vmax.f32 %v7881_v18, %v7882_v5  ;;  %v7891_v24 = vmax.f32 %v7889_v4, %v7890_v36  ;;  %v7898_v17 = vrot.slane %v7897_v41, 4  ;;  %v6184_v27 = vpop.f32.mrb[33].mxu0 }
 0x37d   : > { %v7657_v15 = vadd.f32 %v7521_v37, %v7304_v25  ;;  %7723 = vst [vmem:[#allocation2 + $0x660] sm:$0x1f] %v7659_v12  ;;  %v7877_v47 = vmax.f32 %v7875_v43, %v7876_v9  ;;  %v7913_v19 = vmax.f32 %v13240_v13, %v7912_v61  ;;  %v7520_v14 = vrot.slane %v7367_v60, 3  ;;  %6283 = vst [vmem:[#allocation2 + $0x698] sm:$0xff] %v6184_v27  ;;  %v13355_v28 = vpop.f32.mrb[34].mxu0 }
 0x37e   : > { %v7870_v40 = vrot.slane %v7869_v1, 1  ;;  %v7884_v31 = vrot.slane %v7883_v46, 2  ;;  %v7892_v53 = vrot.slane %v7891_v24, 2  ;;  %v7525_v35 = vsel %vm7447_vm10, %v7523_v26, %v7524_v23  ;;  %v7767_v2 = vld [vmem:[#allocation2 + $0x3e0] sm:$0x1f]  ;;  %v13358_v18 = vpop.f32.mrb[35].mxu0 }
 0x37f   : > { %7721 = vst [vmem:[#allocation2 + $0x620] sm:$0x1f] %v7657_v15  ;;  %v7878_v56 = vrot.slane %v7877_v47, 1  ;;  %v7899_v42 = vmax.f32 %v7897_v41, %v7898_v17  ;;  %v7906_v20 = vrot.slane %v7905_v22, 4  ;;  %v13361_v4 = vadd.f32 %v7525_v35, %v13221_v21  ;;  %v9873_v5 = vpop.f32.mrb[36].mxu0 }
 0x380   : > { %v7522_v13 = vsel %vm7447_vm10, %v7520_v14, %v7521_v37  ;;  %v7871_v34 = vmax.f32 %v7869_v1, %v7870_v40  ;;  %v7885_v30 = vmax.f32 %v7883_v46, %v7884_v31  ;;  %v7893_v55 = vmax.f32 %v7891_v24, %v7892_v53  ;;  %6289 = vst [vmem:[#allocation2 + $0x758] sm:$0xff] %v9873_v5  ;;  %v6200_v61 = vpop.f32.mrb[37].mxu0 }
 0x381   : > { %v13365_v38 = vadd.f32 %v7522_v13, %v13223_v39  ;;  %v7879_v8 = vmax.f32 %v7877_v47, %v7878_v56  ;;  %v7900_v32 = vrot.slane %v7899_v42, 2  ;;  %7722 = vst [vmem:[#allocation2 + $0x640] sm:$0xff] %v13361_v4  ;;  %v7907_v49 = vmax.f32 %v7905_v22, %v7906_v20  ;;  %6287 = vst [vmem:[#allocation2 + $0x718] sm:$0xff] %v6200_v61  ;;  %v13374_v22 = vpop.f32.mrb[38].mxu0 }
 0x382   : > { %v7886_v23 = vrot.slane %v7885_v30, 1  ;;  %v7914_v6 = vrot.slane %v7913_v19, 4  ;;  %v7920_v58 = vsel %vm7447_vm10, %v7767_v2, -inf  ;;  %v7894_v21 = vrot.slane %v7893_v55, 1  ;;  %v7373_v29 = vld [vmem:[#allocation2 + $0x6d8] sm:$0xf8] }
 0x383   : > { %7720 = vst [vmem:[#allocation2 + $0x600] sm:$0xff] %v13365_v38  ;;  %v7901_v50 = vmax.f32 %v7899_v42, %v7900_v32  ;;  %v7921_v37 = vmax.f32 %v13234_v51, %v7920_v58  ;;  %v8071_v12 = vadd.f32 %v13161_v54, %v7871_v34  ;;  %v7908_v25 = vrot.slane %v7907_v49, 2  ;;  %v13377_v17 = vpop.f32.mrb[39].mxu0 }
 0x384   : > { %v7887_v39 = vmax.f32 %v7885_v30, %v7886_v23  ;;  %v7915_v43 = vmax.f32 %v7913_v19, %v7914_v6  ;;  %v8072_v15 = vadd.f32 %v13161_v54, %v7879_v8  ;;  %v7895_v36 = vmax.f32 %v7893_v55, %v7894_v21  ;;  %v7371_v24 = vld [vmem:[#allocation2 + $0x698] sm:$0xf8]  ;;  %v7310_v6 = vld [vmem:[#allocation2 + $0x6e0] sm:$0x1f]  ;;  %v9877_v21 = vpop.f32.mrb[40].mxu0 }
 0x385   : > { %v7902_v9 = vrot.slane %v7901_v50, 1  ;;  %v7922_v41 = vrot.slane %v7921_v37, 4  ;;  %v8103_v33 = vmax.f32 %v8071_v12, 0.0  ;;  %v7909_v3 = vmax.f32 %v7907_v49, %v7908_v25  ;;  %6293 = vst [vmem:[#allocation2 + $0x7d8] sm:$0xff] %v9877_v21 }
 0x386   : > { %v7916_v1 = vrot.slane %v7915_v43, 2  ;;  %v8073_v46 = vadd.f32 %v13161_v54, %v7887_v39  ;;  %v8104_v51 = vmax.f32 %v8072_v15, 0.0  ;;  %v8074_v60 = vadd.f32 %v13161_v54, %v7895_v36  ;;  %v7309_v39 = vld [vmem:[#allocation2 + $0x6c0] sm:$0xff]  ;;  %v6216_v15 = vpop.f32.mrb[41].mxu0 }
 0x387   : > { %v7903_v52 = vmax.f32 %v7901_v50, %v7902_v9  ;;  %v7923_v26 = vmax.f32 %v7921_v37, %v7922_v41  ;;  %v7529_v47 = vrot.slane %v7373_v29, 3  ;;  %v7910_v19 = vrot.slane %v7909_v3, 1  ;;  %v7308_v36 = vld [vmem:[#allocation2 + $0x6a0] sm:$0x1f]  ;;  %6291 = vst [vmem:[#allocation2 + $0x798] sm:$0xff] %v6216_v15  ;;  %v9878_v41 = vpop.f32.mrb[42].mxu0 }
 0x388   : > { %v7917_v27 = vmax.f32 %v7915_v43, %v7916_v1  ;;  %v8105_v14 = vmax.f32 %v8073_v46, 0.0  ;;  %v8173_v40 = vrot.slane %v8104_v51, 7  ;;  %v8106_v35 = vmax.f32 %v8074_v60, 0.0  ;;  %v7377_v43 = vld [vmem:[#allocation2 + $0x758] sm:$0xf8]  ;;  %v13397_v51 = vpop.f32.mrb[43].mxu0 }
 0x389   : > { %v7924_v31 = vrot.slane %v7923_v26, 2  ;;  %v8075_v53 = vadd.f32 %v13161_v54, %v7903_v52  ;;  %v7526_v2 = vrot.slane %v7371_v24, 3  ;;  %v7911_v56 = vmax.f32 %v7909_v3, %v7910_v19  ;;  %v7375_v9 = vld [vmem:[#allocation2 + $0x718] sm:$0xf8]  ;;  %v7307_v3 = vld [vmem:[#allocation2 + $0x680] sm:$0xff] }
 0x38a   : > { %v7918_v42 = vrot.slane %v7917_v27, 1  ;;  %v8174_v20 = vsel %vm2194_vm2, %v8173_v40, %v8103_v33  ;;  %v8175_v13 = vrot.slane %v8105_v14, 6  ;;  %v8177_v8 = vrot.slane %v8106_v35, 5  ;;  %v7314_v14 = vld [vmem:[#allocation2 + $0x760] sm:$0x1f] }
 0x38b   : > { %v7925_v34 = vmax.f32 %v7923_v26, %v7924_v31  ;;  %v8107_v30 = vmax.f32 %v8075_v53, 0.0  ;;  %v7530_v55 = vrot.slane %v13355_v28, 3  ;;  %v8076_v23 = vadd.f32 %v13161_v54, %v7911_v56  ;;  %v13390_v54 = vld [vmem:[%s13553_s2 + $0x2] ss:$0 sm:$0xff] }
 0x38c   : > { %v7919_v32 = vmax.f32 %v7917_v27, %v7918_v42  ;;  %v8176_v49 = vsel %vm2197_vm3, %v8175_v13, %v8174_v20  ;;  %v7527_v58 = vrot.slane %v13358_v18, 3  ;;  %v7535_v60 = vrot.slane %v7377_v43, 3  ;;  %v7771_v53 = vld [vmem:[#allocation2 + $0x460] sm:$0x1f] }
 0x38d   : > { %v7926_v50 = vrot.slane %v7925_v34, 1  ;;  %v8178_v37 = vsel %vm2200_vm4, %v8177_v8, %v8176_v49  ;;  %v8179_v12 = vrot.slane %v8107_v30, 4  ;;  %v7531_v25 = vsel %vm7447_vm10, %v7529_v47, %v7530_v55  ;;  %v9241_v47 = vpop.f32.mrb[24].mxu1  ;;  %v7769_v13 = vld [vmem:[#allocation2 + $0x420] sm:$0x1f] }
 0x38e   : > { %v8077_v28 = vadd.f32 %v13390_v54, %v7919_v32  ;;  %v8108_v29 = vmax.f32 %v8076_v23, 0.0  ;;  %v13393_v18 = vadd.f32 %v7531_v25, %v7309_v39  ;;  %v7663_v5 = vadd.f32 %v7530_v55, %v7310_v6  ;;  %v9242_v35 = vpop.f32.mrb[25].mxu1  ;;  %v7312_v32 = vld [vmem:[#allocation2 + $0x720] sm:$0x1f]  ;;  %v7379_v15 = vld [vmem:[#allocation2 + $0x798] sm:$0xf8] }
 0x38f   : > { %v7927_v33 = vmax.f32 %v7925_v34, %v7926_v50  ;;  %v8180_v61 = vsel %vm2203_vm5, %v8179_v12, %v8178_v37  ;;  %v7528_v1 = vsel %vm7447_vm10, %v7526_v2, %v7527_v58  ;;  %v7661_v46 = vadd.f32 %v7527_v58, %v7308_v36  ;;  %v7770_v34 = vld [vmem:[#allocation2 + $0x440] sm:$0xff]  ;;  %v7381_v50 = vld [vmem:[#allocation2 + $0x7d8] sm:$0xf8] }
 0x390   : > { %v8109_v24 = vmax.f32 %v8077_v28, 0.0  ;;  %v8181_v52 = vrot.slane %v8108_v29, 3  ;;  %7726 = vst [vmem:[#allocation2 + $0x6c0] sm:$0xff] %v13393_v18  ;;  %7727 = vst [vmem:[#allocation2 + $0x6e0] sm:$0x1f] %v7663_v5  ;;  %v13400_v26 = vadd.f32 %v7528_v1, %v7307_v3  ;;  %v7532_v27 = vrot.slane %v7375_v9, 3 }
 0x391   : > { %v8078_v19 = vadd.f32 %v13390_v54, %v7927_v33  ;;  %7725 = vst [vmem:[#allocation2 + $0x6a0] sm:$0x1f] %v7661_v46  ;;  %v7536_v40 = vrot.slane %v13374_v22, 3  ;;  %v7533_v31 = vrot.slane %v13377_v17, 3  ;;  %v7542_v42 = vrot.slane %v9878_v41, 3  ;;  %v7768_v17 = vld [vmem:[#allocation2 + $0x400] sm:$0xff] }
 0x392   : > { %v8182_v2 = vsel %vm2206_vm6, %v8181_v52, %v8180_v61  ;;  %v8183_v56 = vrot.slane %v8109_v24, 2  ;;  %7724 = vst [vmem:[#allocation2 + $0x680] sm:$0xff] %v13400_v26  ;;  %v7539_v20 = vrot.slane %v13397_v51, 3  ;;  %v13408_v30 = vadd.f32 %v9242_v35, %v9241_v47  ;;  %v7775_v23 = vld [vmem:[#allocation2 + $0x4e0] sm:$0x1f] }
 0x393   : > { %v8110_v8 = vmax.f32 %v8078_v19, 0.0  ;;  %v7537_v55 = vsel %vm7447_vm10, %v7535_v60, %v7536_v40  ;;  %v7667_v22 = vadd.f32 %v7536_v40, %v7314_v14  ;;  %v7534_v58 = vsel %vm7447_vm10, %v7532_v27, %v7533_v31  ;;  %v7318_v37 = vld [vmem:[#allocation2 + $0x7e0] sm:$0x1f] }
 0x394   : > { %v8184_v49 = vsel %vm2209_vm7, %v8183_v56, %v8182_v2  ;;  %v13413_v6 = vadd.f32 %v7537_v55, %v13265_v7  ;;  %v7665_v21 = vadd.f32 %v7533_v31, %v7312_v32  ;;  %v7316_v12 = vld [vmem:[#allocation2 + $0x7a0] sm:$0x1f]  ;;  %v13417_v25 = vadd.f32 %v7534_v58, %v13268_v62 }
 0x395   : > { %v8185_v39 = vrot.slane %v8110_v8, 1  ;;  %7731 = vst [vmem:[#allocation2 + $0x760] sm:$0x1f] %v7667_v22  ;;  %v7541_v43 = vrot.slane %v7381_v50, 3  ;;  %v7671_v28 = vadd.f32 %v7542_v42, %v7318_v37  ;;  %v7773_v29 = vld [vmem:[#allocation2 + $0x4a0] sm:$0x1f]  ;;  %v7669_v5 = vadd.f32 %v7539_v20, %v7316_v12 }
 0x396   : > { %7730 = vst [vmem:[#allocation2 + $0x740] sm:$0xff] %v13413_v6  ;;  %7729 = vst [vmem:[#allocation2 + $0x720] sm:$0x1f] %v7665_v21  ;;  %v7538_v7 = vrot.slane %v7379_v15, 3  ;;  %v7928_v36 = vsel %vm7447_vm10, %v7769_v13, -inf  ;;  %v7936_v9 = vsel %vm7447_vm10, %v7771_v53, -inf }
 0x397   : > { %v8186_v41 = vsel %vm2212_vm8, %v8185_v39, %v8184_v49  ;;  %7728 = vst [vmem:[#allocation2 + $0x700] sm:$0xff] %v13417_v25  ;;  %v7543_v62 = vsel %vm7447_vm10, %v7541_v43, %v7542_v42  ;;  %7735 = vst [vmem:[#allocation2 + $0x7e0] sm:$0x1f] %v7671_v28  ;;  %v7777_v33 = vld [vmem:[#allocation2 + $0x520] sm:$0x1f]  ;;  %v7929_v1 = vmax.f32 %v7768_v17, %v7928_v36  ;;  %v7944_v52 = vsel %vm7447_vm10, %v7773_v29, -inf }
 0x398   : > { %v7779_v61 = vld [vmem:[#allocation2 + $0x560] sm:$0x1f]  ;;  %v7937_v46 = vmax.f32 %v7770_v34, %v7936_v9  ;;  %9912 = vmatmul.mubr.f32.vlgmr.msra.gmra.mrb[28].mxu1 %v8186_v41  ;;  %v13426_v51 = vadd.f32 %v7543_v62, %v13296_v0  ;;  %v7540_v24 = vsel %vm7447_vm10, %v7538_v7, %v7539_v20  ;;  %7733 = vst [vmem:[#allocation2 + $0x7a0] sm:$0x1f] %v7669_v5  ;;  %v7952_v60 = vsel %vm7447_vm10, %v7775_v23, -inf }
 0x399   : > { %v7781_v3 = vld [vmem:[#allocation2 + $0x5a0] sm:$0x1f]  ;;  %v13432_v47 = vadd.f32 %v7540_v24, %v13303_v10  ;;  %v7930_v27 = vrot.slane %v7929_v1, 4  ;;  %v7945_v40 = vmax.f32 %v13309_v16, %v7944_v52  ;;  %v7953_v0 = vmax.f32 %v13292_v44, %v7952_v60 }
 0x39a   : > { %v7783_v19 = vld [vmem:[#allocation2 + $0x5e0] sm:$0x1f]  ;;  %v7938_v14 = vrot.slane %v7937_v46, 4  ;;  %7734 = vst [vmem:[#allocation2 + $0x7c0] sm:$0xff] %v13426_v51  ;;  %v7960_v31 = vsel %vm7447_vm10, %v7777_v33, -inf  ;;  %v7968_v53 = vsel %vm7447_vm10, %v7779_v61, -inf }
 0x39b   : > { %v7976_v35 = vsel %vm7447_vm10, %v7781_v3, -inf  ;;  %7732 = vst [vmem:[#allocation2 + $0x780] sm:$0xff] %v13432_v47  ;;  %v7931_v2 = vmax.f32 %v7929_v1, %v7930_v27  ;;  %v7946_v56 = vrot.slane %v7945_v40, 4  ;;  %v7961_v42 = vmax.f32 %v13329_v57, %v7960_v31 }
 0x39c   : > { %v7939_v10 = vmax.f32 %v7937_v46, %v7938_v14  ;;  %v7954_v20 = vrot.slane %v7953_v0, 4  ;;  %v7969_v16 = vmax.f32 %v13325_v11, %v7968_v53  ;;  %v7977_v13 = vmax.f32 %v13346_v63, %v7976_v35 }
 0x39d   : > { %v7984_v44 = vsel %vm7447_vm10, %v7783_v19, -inf  ;;  %v7932_v34 = vrot.slane %v7931_v2, 2  ;;  %v7947_v55 = vmax.f32 %v7945_v40, %v7946_v56  ;;  %v7962_v22 = vrot.slane %v7961_v42, 4 }
 0x39e   : > { %v7940_v8 = vrot.slane %v7939_v10, 2  ;;  %v7955_v32 = vmax.f32 %v7953_v0, %v7954_v20  ;;  %v7970_v17 = vrot.slane %v7969_v16, 4  ;;  %v7978_v23 = vrot.slane %v7977_v13, 4  ;;  %v7785_v0 = vld [vmem:[#allocation2 + $0x620] sm:$0x1f] }
 0x39f   : > { %v7985_v49 = vmax.f32 %v13340_v48, %v7984_v44  ;;  %v7933_v58 = vmax.f32 %v7931_v2, %v7932_v34  ;;  %v7948_v50 = vrot.slane %v7947_v55, 2  ;;  %v7963_v57 = vmax.f32 %v7961_v42, %v7962_v22 }
 0x3a0   : > { %v7941_v21 = vmax.f32 %v7939_v10, %v7940_v8  ;;  %v7956_v37 = vrot.slane %v7955_v32, 2  ;;  %v7971_v12 = vmax.f32 %v7969_v16, %v7970_v17  ;;  %v7979_v11 = vmax.f32 %v7977_v13, %v7978_v23  ;;  %v7787_v17 = vld [vmem:[#allocation2 + $0x660] sm:$0x1f] }
 0x3a1   : > { %v7986_v39 = vrot.slane %v7985_v49, 4  ;;  %v7934_v63 = vrot.slane %v7933_v58, 1  ;;  %v7949_v15 = vmax.f32 %v7947_v55, %v7948_v50  ;;  %v7964_v28 = vrot.slane %v7963_v57, 2 }
 0x3a2   : > { %v7942_v43 = vrot.slane %v7941_v21, 1  ;;  %v7957_v29 = vmax.f32 %v7955_v32, %v7956_v37  ;;  %v7972_v7 = vrot.slane %v7971_v12, 2  ;;  %v7980_v5 = vrot.slane %v7979_v11, 2 }
 0x3a3   : > { %v7987_v36 = vmax.f32 %v7985_v49, %v7986_v39  ;;  %v7935_v9 = vmax.f32 %v7933_v58, %v7934_v63  ;;  %v7950_v62 = vrot.slane %v7949_v15, 1  ;;  %v7965_v48 = vmax.f32 %v7963_v57, %v7964_v28 }
 0x3a4   : > { %v7943_v41 = vmax.f32 %v7941_v21, %v7942_v43  ;;  %v7958_v33 = vrot.slane %v7957_v29, 1  ;;  %v7973_v61 = vmax.f32 %v7971_v12, %v7972_v7  ;;  %v7981_v3 = vmax.f32 %v7979_v11, %v7980_v5  ;;  %v7789_v11 = vld [vmem:[#allocation2 + $0x6a0] sm:$0x1f] }
 0x3a5   : > { %v7988_v1 = vrot.slane %v7987_v36, 2  ;;  %v7951_v46 = vmax.f32 %v7949_v15, %v7950_v62  ;;  %v7966_v24 = vrot.slane %v7965_v48, 1  ;;  %v8079_v52 = vadd.f32 %v13390_v54, %v7935_v9  ;;  %v7791_v43 = vld [vmem:[#allocation2 + $0x6e0] sm:$0x1f] }
 0x3a6   : > { %v8080_v60 = vadd.f32 %v13390_v54, %v7943_v41  ;;  %v7959_v19 = vmax.f32 %v7957_v29, %v7958_v33  ;;  %v7974_v27 = vrot.slane %v7973_v61, 1  ;;  %v7982_v14 = vrot.slane %v7981_v3, 1  ;;  %v7793_v9 = vld [vmem:[#allocation2 + $0x720] sm:$0x1f] }
 0x3a7   : > { %v7989_v40 = vmax.f32 %v7987_v36, %v7988_v1  ;;  %v7967_v31 = vmax.f32 %v7965_v48, %v7966_v24  ;;  %v8081_v53 = vadd.f32 %v13390_v54, %v7951_v46  ;;  %v8111_v35 = vmax.f32 %v8079_v52, 0.0  ;;  %v7795_v41 = vld [vmem:[#allocation2 + $0x760] sm:$0x1f] }
 0x3a8   : > { %v8112_v2 = vmax.f32 %v8080_v60, 0.0  ;;  %v7975_v10 = vmax.f32 %v7973_v61, %v7974_v27  ;;  %v7983_v56 = vmax.f32 %v7981_v3, %v7982_v14  ;;  %v8082_v20 = vadd.f32 %v13390_v54, %v7959_v19  ;;  %v7797_v52 = vld [vmem:[#allocation2 + $0x7a0] sm:$0x1f]  ;;  %v9244_v14 = vpop.f32.mrb[26].mxu1 }
 0x3a9   : > { %v7990_v42 = vrot.slane %v7989_v40, 1  ;;  %v8083_v16 = vadd.f32 %v13390_v54, %v7967_v31  ;;  %v8113_v13 = vmax.f32 %v8081_v53, 0.0  ;;  %v7992_v34 = vsel %vm7447_vm10, %v7785_v0, -inf  ;;  %v9245_v53 = vpop.f32.mrb[27].mxu1 }
 0x3aa   : > { %v8187_v44 = vrot.slane %v8112_v2, 7  ;;  %v8084_v55 = vadd.f32 %v13390_v54, %v7975_v10  ;;  %v8085_v22 = vadd.f32 %v13390_v54, %v7983_v56  ;;  %v8114_v32 = vmax.f32 %v8082_v20, 0.0 }
 0x3ab   : > { %v7991_v8 = vmax.f32 %v7989_v40, %v7990_v42  ;;  %v8115_v23 = vmax.f32 %v8083_v16, 0.0  ;;  %v8189_v58 = vrot.slane %v8113_v13, 6  ;;  %v7993_v21 = vmax.f32 %v13365_v38, %v7992_v34 }
 0x3ac   : > { %v8188_v49 = vsel %vm2194_vm2, %v8187_v44, %v8111_v35  ;;  %v8116_v57 = vmax.f32 %v8084_v55, 0.0  ;;  %v8117_v37 = vmax.f32 %v8085_v22, 0.0  ;;  %v8191_v12 = vrot.slane %v8114_v32, 5 }
 0x3ad   : > { %v8086_v50 = vadd.f32 %v13390_v54, %v7991_v8  ;;  %v8190_v39 = vsel %vm2197_vm3, %v8189_v58, %v8188_v49  ;;  %v8193_v63 = vrot.slane %v8115_v23, 4  ;;  %v7994_v15 = vrot.slane %v7993_v21, 4 }
 0x3ae   : > { %v8000_v28 = vsel %vm7447_vm10, %v7787_v17, -inf  ;;  %v8192_v7 = vsel %vm2200_vm4, %v8191_v12, %v8190_v39  ;;  %v8195_v5 = vrot.slane %v8116_v57, 3  ;;  %v8197_v36 = vrot.slane %v8117_v37, 2 }
 0x3af   : > { %v8118_v29 = vmax.f32 %v8086_v50, 0.0  ;;  %v8194_v38 = vsel %vm2203_vm5, %v8193_v63, %v8192_v7  ;;  %v7995_v62 = vmax.f32 %v7993_v21, %v7994_v15  ;;  %v8001_v48 = vmax.f32 %v13361_v4, %v8000_v28 }
 0x3b0   : > { %v8008_v33 = vsel %vm7447_vm10, %v7789_v11, -inf  ;;  %v8196_v61 = vsel %vm2206_vm6, %v8195_v5, %v8194_v38  ;;  %v8016_v46 = vsel %vm7447_vm10, %v7791_v43, -inf  ;;  %v8024_v0 = vsel %vm7447_vm10, %v7793_v9, -inf }
 0x3b1   : > { %v8199_v3 = vrot.slane %v8118_v29, 1  ;;  %v8009_v1 = vmax.f32 %v13400_v26, %v8008_v33  ;;  %v8198_v24 = vsel %vm2209_vm7, %v8197_v36, %v8196_v61  ;;  %v7996_v60 = vrot.slane %v7995_v62, 2  ;;  %v7799_v26 = vld [vmem:[#allocation2 + $0x7e0] sm:$0x1f] }
 0x3b2   : > { %v8002_v19 = vrot.slane %v8001_v48, 4  ;;  %v8017_v27 = vmax.f32 %v13393_v18, %v8016_v46  ;;  %v8032_v31 = vsel %vm7447_vm10, %v7795_v41, -inf  ;;  %v8025_v56 = vmax.f32 %v13417_v25, %v8024_v0 }
 0x3b3   : > { %v8200_v40 = vsel %vm2212_vm8, %v8199_v3, %v8198_v24  ;;  %v8010_v4 = vrot.slane %v8009_v1, 4  ;;  %v7997_v35 = vmax.f32 %v7995_v62, %v7996_v60  ;;  %v13472_v42 = vadd.f32 %v9245_v53, %v9244_v14 }
 0x3b4   : > { %9914 = vmatprep.mubr.f32.mxu1 %v8200_v40  ;;  %v8003_v2 = vmax.f32 %v8001_v48, %v8002_v19  ;;  %v8018_v10 = vrot.slane %v8017_v27, 4  ;;  %v8033_v18 = vmax.f32 %v13413_v6, %v8032_v31  ;;  %v8040_v16 = vsel %vm7447_vm10, %v7797_v52, -inf }
 0x3b5   : > { %v8011_v20 = vmax.f32 %v8009_v1, %v8010_v4  ;;  %v7998_v13 = vrot.slane %v7997_v35, 1  ;;  %v8026_v8 = vrot.slane %v8025_v56, 4  ;;  %v8041_v32 = vmax.f32 %v13432_v47, %v8040_v16 }
 0x3b6   : > { %v8004_v44 = vrot.slane %v8003_v2, 2  ;;  %v8019_v34 = vmax.f32 %v8017_v27, %v8018_v10  ;;  %v8034_v22 = vrot.slane %v8033_v18, 4  ;;  %v8048_v17 = vsel %vm7447_vm10, %v7799_v26, -inf }
 0x3b7   : > { %v8012_v55 = vrot.slane %v8011_v20, 2  ;;  %v7999_v23 = vmax.f32 %v7997_v35, %v7998_v13  ;;  %v8027_v58 = vmax.f32 %v8025_v56, %v8026_v8  ;;  %v8042_v57 = vrot.slane %v8041_v32, 4 }
 0x3b8   : > { %v8005_v49 = vmax.f32 %v8003_v2, %v8004_v44  ;;  %v8020_v25 = vrot.slane %v8019_v34, 2  ;;  %v8035_v50 = vmax.f32 %v8033_v18, %v8034_v22  ;;  %v8049_v6 = vmax.f32 %v13426_v51, %v8048_v17 }
 0x3b9   : > { %v8013_v21 = vmax.f32 %v8011_v20, %v8012_v55  ;;  %v8028_v11 = vrot.slane %v8027_v58, 2  ;;  %v8043_v43 = vmax.f32 %v8041_v32, %v8042_v57  ;;  %v8087_v7 = vadd.f32 %v13390_v54, %v7999_v23 }
 0x3ba   : > { %v8006_v37 = vrot.slane %v8005_v49, 1  ;;  %v8021_v12 = vmax.f32 %v8019_v34, %v8020_v25  ;;  %v8036_v63 = vrot.slane %v8035_v50, 2  ;;  %v8050_v15 = vrot.slane %v8049_v6, 4 }
 0x3bb   : > { %v8014_v39 = vrot.slane %v8013_v21, 1  ;;  %v8029_v29 = vmax.f32 %v8027_v58, %v8028_v11  ;;  %v8044_v38 = vrot.slane %v8043_v43, 2  ;;  %v8119_v24 = vmax.f32 %v8087_v7, 0.0 }
 0x3bc   : > { %v8007_v28 = vmax.f32 %v8005_v49, %v8006_v37  ;;  %v8022_v47 = vrot.slane %v8021_v12, 1  ;;  %v8037_v36 = vmax.f32 %v8035_v50, %v8036_v63  ;;  %v8051_v9 = vmax.f32 %v8049_v6, %v8050_v15 }
 0x3bd   : > { %v8015_v5 = vmax.f32 %v8013_v21, %v8014_v39  ;;  %v8030_v62 = vrot.slane %v8029_v29, 1  ;;  %v8045_v33 = vmax.f32 %v8043_v43, %v8044_v38 }
 0x3be   : > { %v8023_v41 = vmax.f32 %v8021_v12, %v8022_v47  ;;  %v8088_v51 = vadd.f32 %v13390_v54, %v8007_v28  ;;  %v8038_v48 = vrot.slane %v8037_v36, 1  ;;  %v8052_v61 = vrot.slane %v8051_v9, 2 }
 0x3bf   : > { %v8089_v3 = vadd.f32 %v13390_v54, %v8015_v5  ;;  %v8031_v1 = vmax.f32 %v8029_v29, %v8030_v62  ;;  %v8046_v19 = vrot.slane %v8045_v33, 1 }
 0x3c0   : > { %v8090_v46 = vadd.f32 %v13390_v54, %v8023_v41  ;;  %v8120_v52 = vmax.f32 %v8088_v51, 0.0  ;;  %v8039_v60 = vmax.f32 %v8037_v36, %v8038_v48  ;;  %v8053_v27 = vmax.f32 %v8051_v9, %v8052_v61 }
 0x3c1   : > { %v8121_v14 = vmax.f32 %v8089_v3, 0.0  ;;  %v8091_v40 = vadd.f32 %v13390_v54, %v8031_v1  ;;  %v8047_v31 = vmax.f32 %v8045_v33, %v8046_v19 }
 0x3c2   : > { %v8122_v4 = vmax.f32 %v8090_v46, 0.0  ;;  %v8201_v0 = vrot.slane %v8120_v52, 7  ;;  %v8054_v53 = vrot.slane %v8053_v27, 1  ;;  %v8092_v26 = vadd.f32 %v13390_v54, %v8039_v60 }
 0x3c3   : > { %v8203_v35 = vrot.slane %v8121_v14, 6  ;;  %v8123_v2 = vmax.f32 %v8091_v40, 0.0  ;;  %v8093_v18 = vadd.f32 %v13390_v54, %v8047_v31 }
 0x3c4   : > { %v8202_v10 = vsel %vm2194_vm2, %v8201_v0, %v8119_v24  ;;  %v8205_v56 = vrot.slane %v8122_v4, 5  ;;  %v8055_v20 = vmax.f32 %v8053_v27, %v8054_v53  ;;  %v8124_v16 = vmax.f32 %v8092_v26, 0.0 }
 0x3c5   : > { %v8204_v13 = vsel %vm2197_vm3, %v8203_v35, %v8202_v10  ;;  %v8207_v34 = vrot.slane %v8123_v2, 4  ;;  %v8125_v55 = vmax.f32 %v8093_v18, 0.0 }
 0x3c6   : > { %v8206_v44 = vsel %vm2200_vm4, %v8205_v56, %v8204_v13  ;;  %v8094_v8 = vadd.f32 %v13390_v54, %v8055_v20  ;;  %v8209_v22 = vrot.slane %v8124_v16, 3  ;;  %v8889_v54 = vld [vmem:[%s13555_s4] ss:$0 sm:$0xff] }
 0x3c7   : > { %v8208_v32 = vsel %vm2203_vm5, %v8207_v34, %v8206_v44  ;;  %v8211_v49 = vrot.slane %v8125_v55, 2  ;;  %v8362_v50 = vadd.f32 %v13343_v59, %v8889_v54  ;;  %v8357_v6 = vadd.f32 %v13313_v45, %v8889_v54 }
 0x3c8   : > { %v8126_v17 = vmax.f32 %v8094_v8, 0.0  ;;  %v8210_v23 = vsel %vm2206_vm6, %v8209_v22, %v8208_v32  ;;  %v8372_v39 = vadd.f32 %v13472_v42, %v8889_v54  ;;  %v8367_v43 = vadd.f32 %v13408_v30, %v8889_v54 }
 0x3c9   : > { %v8212_v25 = vsel %vm2209_vm7, %v8211_v49, %v8210_v23 }
 0x3ca   : > { %v8213_v58 = vrot.slane %v8126_v17, 1 }
 0x3cc   : > { %v8214_v21 = vsel %vm2212_vm8, %v8213_v58, %v8212_v25 }
 0x3cd   : > { %9915 = vmatmul.mubr.f32.gmra.mrb[30].mxu1 %v8214_v21 }
 0x46b   : > { %v9913_v57 = vpop.f32.mrb[28].mxu1 }
 0x46c   : > { %v8447_v37 = vadd.f32 %v9913_v57, %v8362_v50  ;;  %v8441_v12 = vpop.f32.mrb[29].mxu1 }
 0x46d   : > { %v8442_v11 = vadd.f32 %v8441_v12, %v8357_v6 }
 0x46e   : > { %8461 = vst [vmem:[%s220_s8 + $0x8] sm:$0xff] %v8447_v37 }
 0x46f   : > { %8460 = vst [vmem:[%s220_s8] sm:$0xff] %v8442_v11 }
 0x4a0   : > { %v9916_v63 = vpop.f32.mrb[30].mxu1 }
 0x4a1   : > { %v8457_v45 = vadd.f32 %v9916_v63, %v8372_v39  ;;  %v8451_v59 = vpop.f32.mrb[31].mxu1 }
 0x4a2   : > { %v8452_v15 = vadd.f32 %v8451_v59, %v8367_v43 }
 0x4a3   : > { %8463 = vst [vmem:[%s220_s8 + $0x18] sm:$0xff] %v8457_v45 }
 0x4a4   : > { %8462 = vst [vmem:[%s220_s8 + $0x10] sm:$0xff] %v8452_v15 }
 0x4a5   : > { %10168 = shalt.err (!%p10165_p3)
}
 0x4a6   : > { %s10169_s23 = scalar_lea.hbm %s13508_s12, 512  ;;  %s10173_s30 = scalar_lea.hbm %s13556_s5, 1024 }
 0x4a7   : > { %p10170_p4 = scmp.ne.s32.totalorder %s13508_s12, %s10169_s23  ;;  %p10174_p9 = scmp.lt.u32.totalorder %s13508_s12, %s13556_s5 }
 0x4a8   : > { %p10175_p10 = scmp.lt.u32.totalorder %s10173_s30, %s10169_s23  ;;  %p10177_p12 = scmp.lt.u32.totalorder %s10169_s23, %s13508_s12 }
 0x4a9   : > { %p10171_p7 = pnand %p10170_p4, %p10290_p5 }
 0x4aa   : > { %p10176_p11 = por %p10175_p10, %p10174_p9 }
 0x4ab   : > { %p10172_p8 = pneg %p10171_p7 }
 0x4ac   : > { %p10178_p13 = por %p10177_p12, %p10176_p11 }
 0x4ae   : > { %p10179_p0 = pnand %p10178_p13, %p10172_p8 }
 0x4b0   : > { %10182 = shalt.err (!%p10179_p0)
}
 0x4b1   : > { %s10220_s8 = smov 128   ;;  %s10221_s10 = smov 8  }
 0x4b2   : > { %9985 = dma.vmem_to_hbm [thread:$0]  (%p10290_p5), %s13503_s9, 512, %s13508_s12, %s13510_s13, %s10220_s8, %s10220_s8, %s10221_s10  }
 0x4b3 PF: > { %p9991_p1 = scmp.ge.s32.totalorder %s10217_s21, 2  ;;  %s8493_s11 = sand.u32 1, %s10205_s18  }
 0x4b4   : > { %s8494_s17 = scalar_lea.sflag [#allocation5], %s8493_s11 }
 0x4b5   : > { %p9988_p2 = pnand %p9991_p1, %p10294_p6 }
 0x4b7   : > { %10200 = dma.done.wait (!%p9988_p2), %s8494_s17, 512  }
 0x4b8   : > { %10202 = vsyncadd (!%p9988_p2), %s8494_s17, 4294966784  ;;  %p15_p3 = scmp.ge.s32.totalorder %s10277_s24, 4   ;;  %s13650_s18 = smov %s10209_s19 }
 0x4b9   : > { %s13651_s19 = smov %s10213_s20  ;;  %s13652_s20 = smov %s10288_s27 }
 0x4ba   : > { %s13653_s21 = smov %s10277_s24  ;;  %17 = sbr.rel (!%p15_p3) target bundleno = 3 (0x3), region = 75 }
 0x4c1   :  { %8499 = vsyncpa [#allocation5], 1 }
 0x4c2   :  { %8501 = vsyncpa [#allocation5 + $0x1], 1 }

</bundles_post_ra>
